<compile_context>
chip_gen: v6e
topology: v6e:2x2x1
jax: 0.10.0
libtpu: 0.0.40
codegen_flags: <defaults>
</compile_context>

<pallas_src>
import math

import jax
import jax.numpy as jnp
from jax.experimental import pallas as pl
from jax.experimental.pallas import tpu as pltpu

# ---- small synthetic Vicuna-layer config (HEAD_DIM kept at the real 128) ----
HIDDEN = 256
N_HEADS = 2
HEAD_DIM = HIDDEN // N_HEADS          # 128 -> lane-tile aligned, like real Vicuna
INTERMEDIATE = 512
EPS = 1e-6
ROPE_BASE = 10000.0
_BF16_MIN = -3.38e38                  # finite in bf16; clamp huge-negative masks


# ---- rotary cos/sin tables (parameter-style glue, computed in plain JAX) ----
def rotary_cos_sin(position_ids, head_dim, base=ROPE_BASE):
    inv_freq = 1.0 / (
        base ** (jnp.arange(0, head_dim, 2, dtype=jnp.float32) / head_dim)
    )
    freqs = position_ids.astype(jnp.float32)[..., None] * inv_freq[None, None, :]
    emb = jnp.concatenate([freqs, freqs], axis=-1)        # (B, S, head_dim)
    return jnp.cos(emb), jnp.sin(emb)


def _rotate_half_matrix():
    """(H, H) block-diagonal matrix R with x @ R == per-head rotate_half(x)."""
    half = HEAD_DIM // 2
    idx = jnp.arange(half)
    r = jnp.zeros((HEAD_DIM, HEAD_DIM), jnp.float32)
    r = r.at[idx + half, idx].set(-1.0)   # out[j] = -x[j+half]  for j < half
    r = r.at[idx, idx + half].set(1.0)    # out[j] =  x[j-half]  for j >= half
    return jnp.kron(jnp.eye(N_HEADS, dtype=jnp.float32), r)


def _rms_norm(x, w):
    var = jnp.mean(x * x, axis=-1, keepdims=True)
    return x * jax.lax.rsqrt(var + EPS) * w


# ---- fused decoder-layer kernel (bb batch elements per grid step) -----------
def decoder_layer_kernel(
    hidden_ref, mask_ref, cos_ref, sin_ref,
    ln1_ref, wqkvr_ref, wo_ref,
    ln2_ref, wgu_ref, wd_ref,
    out_ref, key_ref, val_ref,
):
    bb, s, h = hidden_ref.shape
    hd = cos_ref.shape[-1]
    nh = h // hd
    rows = bb * s
    inter = wd_ref.shape[0]

    # Fold the batch block into the matmul M axis.
    x = hidden_ref[...].reshape(rows, h).astype(jnp.float32)

    # --- self attention block -------------------------------------------------
    residual = x
    xn = _rms_norm(x, ln1_ref[...])                        # f32 statistics

    # One fused (rows, H) @ (H, 5H) bf16 matmul:
    #   [q*scale | rotate_half(q)*scale | k | rotate_half(k) | v]
    proj = jnp.dot(xn.astype(jnp.bfloat16), wqkvr_ref[...],
                   preferred_element_type=jnp.float32)     # (rows, 5H) f32
    q = proj[:, 0 * h:1 * h]
    qr = proj[:, 1 * h:2 * h]
    k = proj[:, 2 * h:3 * h]
    kr = proj[:, 3 * h:4 * h]
    v = proj[:, 4 * h:5 * h]

    # RoPE: rotate_half already folded into the weights -> pure VPU work.
    # cos/sin arrive once per (batch, seq) at HEAD_DIM width; broadcast across
    # heads with a lane-tile-aligned concat (no HBM duplication).
    cos = jnp.concatenate([cos_ref[...].reshape(rows, hd)] * nh, axis=-1)
    sin = jnp.concatenate([sin_ref[...].reshape(rows, hd)] * nh, axis=-1)
    q = q * cos + qr * sin                                  # pre-scaled by 1/sqrt(hd)
    k = k * cos + kr * sin

    # Lane-dense present-K/V cache stores: one full-width (bb, S, H) store each.
    key_ref[...] = k.reshape(bb, s, h).astype(key_ref.dtype)
    val_ref[...] = v.reshape(bb, s, h).astype(val_ref.dtype)

    # Per-(batch, head) batched attention. HEAD_DIM (=128) slices are
    # lane-tile aligned so the group split is relayout-free.
    def to_groups(t):
        return jnp.stack(
            [t[b * s:(b + 1) * s, hh * hd:(hh + 1) * hd]
             for b in range(bb) for hh in range(nh)], axis=0)   # (bb*nh, S, hd)

    qg = to_groups(q).astype(jnp.bfloat16)
    kg = to_groups(k).astype(jnp.bfloat16)
    vg = to_groups(v).astype(jnp.bfloat16)

    scores = jnp.einsum("gqd,gkd->gqk", qg, kg,
                        preferred_element_type=jnp.float32)     # (bb*nh, S, S)

    # Additive mask (bf16 input -> f32), broadcast over heads via a free
    # leading-dim reshape.  (In-kernel causal-iota generation would remove this
    # input entirely when the mask is known to be causal.)
    mask = mask_ref[...].astype(jnp.float32)                    # (bb, S, S)
    scores = (scores.reshape(bb, nh, s, s) + mask[:, None]).reshape(bb * nh, s, s)

    # Row softmax in f32; reciprocal on the EUP (approx OK at 2e-2 tolerance).
    scores = scores - jnp.max(scores, axis=-1, keepdims=True)
    p = jnp.exp(scores)
    p = p * pl.reciprocal(jnp.sum(p, axis=-1, keepdims=True), approx=True)

    ctx = jnp.einsum("gqk,gkd->gqd", p.astype(jnp.bfloat16), vg,
                     preferred_element_type=jnp.float32)        # (bb*nh, S, hd)

    # Merge heads back to (rows, H) with tile-aligned concats (no add chain).
    attn = jnp.concatenate(
        [jnp.concatenate([ctx[b * nh + hh] for hh in range(nh)], axis=-1)
         for b in range(bb)], axis=0)                            # (rows, H)

    attn = jnp.dot(attn.astype(jnp.bfloat16), wo_ref[...],
                   preferred_element_type=jnp.float32)
    x = residual + attn

    # --- MLP (SwiGLU) block ---------------------------------------------------
    residual = x
    xn2 = _rms_norm(x, ln2_ref[...])
    gu = jnp.dot(xn2.astype(jnp.bfloat16), wgu_ref[...],
                 preferred_element_type=jnp.float32)             # (rows, 2I)
    g = gu[:, :inter]
    u = gu[:, inter:]
    mlp = jnp.dot((g * jax.nn.sigmoid(g) * u).astype(jnp.bfloat16), wd_ref[...],
                  preferred_element_type=jnp.float32)
    out_ref[...] = (residual + mlp).reshape(bb, s, h).astype(out_ref.dtype)


# ---- wrapper ----------------------------------------------------------------
def first_vicuna_layer(hidden_states, attention_mask, position_ids, p,
                       *, batch_block=None, kv_dtype=None):
    B, S, H = hidden_states.shape
    if kv_dtype is None:
        kv_dtype = hidden_states.dtype          # cache dtype follows model dtype

    # Fold batch elements into the M axis until each grid step has >=128 rows,
    # while keeping the grid length >=2 (parallel) so both v7x TCs get work.
    if batch_block is None:
        batch_block = 1
        while (batch_block * S < 128 and batch_block < B
               and B % (batch_block * 2) == 0):
            batch_block *= 2
    assert B % batch_block == 0
    grid_b = B // batch_block

    cos, sin = rotary_cos_sin(position_ids, HEAD_DIM)            # (B, S, hd) f32

    # Fused weights: rotate_half folded via block-diag R, attention scale
    # 1/sqrt(hd) folded into the q / rotate(q) columns.  bf16 for the MXU.
    R = _rotate_half_matrix()
    scale = 1.0 / math.sqrt(HEAD_DIM)
    w_qkvr = jnp.concatenate(
        [p["wq"] * scale, (p["wq"] @ R) * scale, p["wk"], p["wk"] @ R, p["wv"]],
        axis=1).astype(jnp.bfloat16)                             # (H, 5H)
    w_gu = jnp.concatenate([p["wg"], p["wu"]], axis=1).astype(jnp.bfloat16)
    w_o = p["wo"].astype(jnp.bfloat16)
    w_d = p["wd"].astype(jnp.bfloat16)

    # HF-style (B, 1, S, S) additive mask -> bf16 (B, S, S); assumes the head
    # dim is broadcastable (standard HF causal/padding masks).
    mask_b = jnp.maximum(attention_mask[:, 0], _BF16_MIN).astype(jnp.bfloat16)

    bb = batch_block
    grid_spec = pltpu.PrefetchScalarGridSpec(
        num_scalar_prefetch=0,
        grid=(grid_b,),
        in_specs=[
            pl.BlockSpec((bb, S, H), lambda b: (b, 0, 0)),             # hidden
            pl.BlockSpec((bb, S, S), lambda b: (b, 0, 0)),             # mask (bf16)
            pl.BlockSpec((bb, S, HEAD_DIM), lambda b: (b, 0, 0)),      # cos
            pl.BlockSpec((bb, S, HEAD_DIM), lambda b: (b, 0, 0)),      # sin
            pl.BlockSpec((1, H), lambda b: (0, 0)),                    # ln1
            pl.BlockSpec((H, 5 * H), lambda b: (0, 0)),                # qkv+rot (scaled)
            pl.BlockSpec((H, H), lambda b: (0, 0)),                    # wo
            pl.BlockSpec((1, H), lambda b: (0, 0)),                    # ln2
            pl.BlockSpec((H, 2 * INTERMEDIATE), lambda b: (0, 0)),     # gate|up
            pl.BlockSpec((INTERMEDIATE, H), lambda b: (0, 0)),         # down
        ],
        out_specs=[
            pl.BlockSpec((bb, S, H), lambda b: (b, 0, 0)),             # hidden out
            pl.BlockSpec((bb, S, H), lambda b: (b, 0, 0)),             # present K (lane-dense)
            pl.BlockSpec((bb, S, H), lambda b: (b, 0, 0)),             # present V (lane-dense)
        ],
    )
    out, k_flat, v_flat = pl.pallas_call(
        decoder_layer_kernel,
        out_shape=(
            jax.ShapeDtypeStruct((B, S, H), hidden_states.dtype),
            jax.ShapeDtypeStruct((B, S, H), kv_dtype),
            jax.ShapeDtypeStruct((B, S, H), kv_dtype),
        ),
        grid_spec=grid_spec,
        compiler_params=pltpu.CompilerParams(
            dimension_semantics=("parallel",),
            vmem_limit_bytes=64 * 1024 * 1024),
    )(hidden_states, mask_b, cos, sin,
      p["ln1"], w_qkvr, w_o, p["ln2"], w_gu, w_d)

    # HF cache layout (B, n_heads, S, head_dim) via cheap wrapper reshape.
    pk = k_flat.reshape(B, S, N_HEADS, HEAD_DIM).transpose(0, 2, 1, 3)
    pv = v_flat.reshape(B, S, N_HEADS, HEAD_DIM).transpose(0, 2, 1, 3)
    return out, pk, pv


# ---- pure-JAX reference (mirrors the HF LlamaDecoderLayer math) -------------
def reference(hidden_states, attention_mask, position_ids, p):
    B, S, H = hidden_states.shape
    cos, sin = rotary_cos_sin(position_ids, HEAD_DIM)

    def rms(x, w):
        return x * jax.lax.rsqrt(jnp.mean(x * x, -1, keepdims=True) + EPS) * w

    def split(t):
        return t.reshape(B, S, N_HEADS, HEAD_DIM).transpose(0, 2, 1, 3)

    def rot(t):
        half = HEAD_DIM // 2
        return jnp.concatenate([-t[..., half:], t[..., :half]], -1)

    x = hidden_states
    res = x
    xn = rms(x, p["ln1"][0])
    q, k, v = split(xn @ p["wq"]), split(xn @ p["wk"]), split(xn @ p["wv"])
    cb, sb = cos[:, None], sin[:, None]
    q = q * cb + rot(q) * sb
    k = k * cb + rot(k) * sb
    scores = jnp.einsum("bhqd,bhkd->bhqk", q, k) / math.sqrt(HEAD_DIM)
    scores = scores + attention_mask
    attn = jnp.einsum("bhqk,bhkd->bhqd", jax.nn.softmax(scores, -1), v)
    attn = attn.transpose(0, 2, 1, 3).reshape(B, S, H) @ p["wo"]
    x = res + attn
    res = x
    xn = rms(x, p["ln2"][0])
    mlp = (jax.nn.silu(xn @ p["wg"]) * (xn @ p["wu"])) @ p["wd"]
    return res + mlp, k, v


# ---- deterministic parameter init + demo ------------------------------------
def init_params(key):
    ks = jax.random.split(key, 7)
    s = 0.02
    return {
        "ln1": jnp.ones((1, HIDDEN), jnp.float32),
        "wq": s * jax.random.normal(ks[0], (HIDDEN, HIDDEN), jnp.float32),
        "wk": s * jax.random.normal(ks[1], (HIDDEN, HIDDEN), jnp.float32),
        "wv": s * jax.random.normal(ks[2], (HIDDEN, HIDDEN), jnp.float32),
        "wo": s * jax.random.normal(ks[3], (HIDDEN, HIDDEN), jnp.float32),
        "ln2": jnp.ones((1, HIDDEN), jnp.float32),
        "wg": s * jax.random.normal(ks[4], (HIDDEN, INTERMEDIATE), jnp.float32),
        "wu": s * jax.random.normal(ks[5], (HIDDEN, INTERMEDIATE), jnp.float32),
        "wd": s * jax.random.normal(ks[6], (INTERMEDIATE, HIDDEN), jnp.float32),
    }


if __name__ == "__main__":
    B, S = 4, 64          # 2 batch elements folded per step -> 128 rows, grid=(2,)
    key = jax.random.PRNGKey(0)
    k_h, k_p = jax.random.split(key)
    params = init_params(k_p)

    hidden_states = jax.random.normal(k_h, (B, S, HIDDEN), jnp.float32)
    # HF-style additive causal mask: 0 where attended, large negative otherwise.
    causal = jnp.tril(jnp.ones((S, S), jnp.float32))
    attention_mask = jnp.where(causal == 1.0, 0.0, -1e9)[None, None]
    attention_mask = jnp.broadcast_to(attention_mask, (B, 1, S, S))
    position_ids = jnp.broadcast_to(jnp.arange(S, dtype=jnp.int32)[None], (B, S))

    out, pk, pv = first_vicuna_layer(
        hidden_states, attention_mask, position_ids, params
    )
    jax.block_until_ready((out, pk, pv))

    ref_out, ref_k, ref_v = reference(
        hidden_states, attention_mask, position_ids, params
    )
    assert out.shape == (B, S, HIDDEN)
    assert pk.shape == (B, N_HEADS, S, HEAD_DIM)
    assert pv.shape == (B, N_HEADS, S, HEAD_DIM)
    assert jnp.allclose(out, ref_out, atol=2e-2, rtol=2e-2)
    assert jnp.allclose(pk, ref_k, atol=2e-2, rtol=2e-2)
    assert jnp.allclose(pv, ref_v, atol=2e-2, rtol=2e-2)

    print("KERNEL_OK")
</pallas_src>

<mosaic_0001>
module attributes {stable_mosaic.version = 11 : i64} {
  func.func @decoder_layer_kernel(%arg0: i32, %arg1: memref<2x64x256xf32, #tpu.memory_space<vmem>>, %arg2: memref<2x64x64xbf16, #tpu.memory_space<vmem>>, %arg3: memref<2x64x128xf32, #tpu.memory_space<vmem>>, %arg4: memref<2x64x128xf32, #tpu.memory_space<vmem>>, %arg5: memref<1x256xf32, #tpu.memory_space<vmem>>, %arg6: memref<256x1280xbf16, #tpu.memory_space<vmem>>, %arg7: memref<256x256xbf16, #tpu.memory_space<vmem>>, %arg8: memref<1x256xf32, #tpu.memory_space<vmem>>, %arg9: memref<256x1024xbf16, #tpu.memory_space<vmem>>, %arg10: memref<512x256xbf16, #tpu.memory_space<vmem>>, %arg11: memref<2x64x256xf32, #tpu.memory_space<vmem>>, %arg12: memref<2x64x256xf32, #tpu.memory_space<vmem>>, %arg13: memref<2x64x256xf32, #tpu.memory_space<vmem>>) attributes {dimension_semantics = [#tpu.dimension_semantics<parallel>], iteration_bounds = array<i64: 2>, scalar_prefetch = 0 : i64, scratch_operands = 0 : i64, tpu.core_type = #tpu.core_type<tc>, window_params = [{transform_indices = @transform_0, window_bounds = array<i64: 2, 64, 256>}, {transform_indices = @transform_1, window_bounds = array<i64: 2, 64, 64>}, {transform_indices = @transform_2, window_bounds = array<i64: 2, 64, 128>}, {transform_indices = @transform_3, window_bounds = array<i64: 2, 64, 128>}, {pipeline_mode = #tpu.pipeline_mode<synchronous>, transform_indices = @transform_4, window_bounds = array<i64: 1, 256>}, {pipeline_mode = #tpu.pipeline_mode<synchronous>, transform_indices = @transform_5, window_bounds = array<i64: 256, 1280>}, {pipeline_mode = #tpu.pipeline_mode<synchronous>, transform_indices = @transform_6, window_bounds = array<i64: 256, 256>}, {pipeline_mode = #tpu.pipeline_mode<synchronous>, transform_indices = @transform_7, window_bounds = array<i64: 1, 256>}, {pipeline_mode = #tpu.pipeline_mode<synchronous>, transform_indices = @transform_8, window_bounds = array<i64: 256, 1024>}, {pipeline_mode = #tpu.pipeline_mode<synchronous>, transform_indices = @transform_9, window_bounds = array<i64: 512, 256>}, {transform_indices = @transform_10, window_bounds = array<i64: 2, 64, 256>}, {transform_indices = @transform_11, window_bounds = array<i64: 2, 64, 256>}, {transform_indices = @transform_12, window_bounds = array<i64: 2, 64, 256>}]} {
    %c0 = arith.constant 0 : index
    %c0_0 = arith.constant 0 : index
    %c0_1 = arith.constant 0 : index
    %0 = vector.load %arg1[%c0, %c0_0, %c0_1] : memref<2x64x256xf32, #tpu.memory_space<vmem>>, vector<2x64x256xf32>
    %1 = vector.shape_cast %0 : vector<2x64x256xf32> to vector<128x256xf32>
    %c0_2 = arith.constant 0 : index
    %c0_3 = arith.constant 0 : index
    %2 = vector.load %arg5[%c0_2, %c0_3] : memref<1x256xf32, #tpu.memory_space<vmem>>, vector<1x256xf32>
    %3 = arith.mulf %1, %1 : vector<128x256xf32>
    %cst = arith.constant dense<0.000000e+00> : vector<128xf32>
    %4 = vector.multi_reduction <add>, %3, %cst [1] : vector<128x256xf32> to vector<128xf32>
    %5 = vector.shape_cast %4 : vector<128xf32> to vector<128x1xf32>
    %cst_4 = arith.constant 2.560000e+02 : f32
    %6 = vector.broadcast %cst_4 : f32 to vector<128x1xf32>
    %7 = arith.divf %5, %6 : vector<128x1xf32>
    %cst_5 = arith.constant 9.99999997E-7 : f32
    %8 = vector.broadcast %cst_5 : f32 to vector<128x1xf32>
    %9 = arith.addf %7, %8 : vector<128x1xf32>
    %10 = math.rsqrt %9 : vector<128x1xf32>
    %11 = vector.broadcast %10 : vector<128x1xf32> to vector<128x256xf32>
    %12 = arith.mulf %1, %11 : vector<128x256xf32>
    %13 = vector.broadcast %2 : vector<1x256xf32> to vector<128x256xf32>
    %14 = arith.mulf %12, %13 : vector<128x256xf32>
    %15 = arith.truncf %14 : vector<128x256xf32> to vector<128x256xbf16>
    %c0_6 = arith.constant 0 : index
    %c0_7 = arith.constant 0 : index
    %16 = vector.load %arg6[%c0_6, %c0_7] : memref<256x1280xbf16, #tpu.memory_space<vmem>>, vector<256x1280xbf16>
    %cst_8 = arith.constant dense<0.000000e+00> : vector<128x1280xf32>
    %17 = tpu.matmul %15, %16, %cst_8 {dimension_numbers = #tpu.dot_dimension_numbers<[1], [0], [0], [1], [0, 0, 1, 1], [], []>} : vector<128x256xbf16>, vector<256x1280xbf16>, vector<128x1280xf32> -> vector<128x1280xf32>
    %18 = vector.extract_strided_slice %17 {offsets = [0, 0], sizes = [128, 256], strides = [1, 1]} : vector<128x1280xf32> to vector<128x256xf32>
    %19 = vector.extract_strided_slice %17 {offsets = [0, 256], sizes = [128, 256], strides = [1, 1]} : vector<128x1280xf32> to vector<128x256xf32>
    %20 = vector.extract_strided_slice %17 {offsets = [0, 512], sizes = [128, 256], strides = [1, 1]} : vector<128x1280xf32> to vector<128x256xf32>
    %21 = vector.extract_strided_slice %17 {offsets = [0, 768], sizes = [128, 256], strides = [1, 1]} : vector<128x1280xf32> to vector<128x256xf32>
    %22 = vector.extract_strided_slice %17 {offsets = [0, 1024], sizes = [128, 256], strides = [1, 1]} : vector<128x1280xf32> to vector<128x256xf32>
    %c0_9 = arith.constant 0 : index
    %c0_10 = arith.constant 0 : index
    %c0_11 = arith.constant 0 : index
    %23 = vector.load %arg3[%c0_9, %c0_10, %c0_11] : memref<2x64x128xf32, #tpu.memory_space<vmem>>, vector<2x64x128xf32>
    %24 = vector.shape_cast %23 : vector<2x64x128xf32> to vector<128x128xf32>
    %25 = tpu.concatenate %24, %24 in 1 : vector<128x128xf32>, vector<128x128xf32> -> vector<128x256xf32>
    %c0_12 = arith.constant 0 : index
    %c0_13 = arith.constant 0 : index
    %c0_14 = arith.constant 0 : index
    %26 = vector.load %arg4[%c0_12, %c0_13, %c0_14] : memref<2x64x128xf32, #tpu.memory_space<vmem>>, vector<2x64x128xf32>
    %27 = vector.shape_cast %26 : vector<2x64x128xf32> to vector<128x128xf32>
    %28 = tpu.concatenate %27, %27 in 1 : vector<128x128xf32>, vector<128x128xf32> -> vector<128x256xf32>
    %29 = arith.mulf %18, %25 : vector<128x256xf32>
    %30 = arith.mulf %19, %28 : vector<128x256xf32>
    %31 = arith.addf %29, %30 : vector<128x256xf32>
    %32 = arith.mulf %20, %25 : vector<128x256xf32>
    %33 = arith.mulf %21, %28 : vector<128x256xf32>
    %34 = arith.addf %32, %33 : vector<128x256xf32>
    %35 = vector.shape_cast %34 : vector<128x256xf32> to vector<2x64x256xf32>
    %c0_15 = arith.constant 0 : index
    %c0_16 = arith.constant 0 : index
    %c0_17 = arith.constant 0 : index
    %36 = vector.load %arg12[%c0_15, %c0_16, %c0_17] : memref<2x64x256xf32, #tpu.memory_space<vmem>>, vector<2x64x256xf32>
    tpu.vector_store %arg12[%c0_15, %c0_16, %c0_17], %35 {strides = array<i32>} : memref<2x64x256xf32, #tpu.memory_space<vmem>>, vector<2x64x256xf32>,
    %37 = vector.shape_cast %22 : vector<128x256xf32> to vector<2x64x256xf32>
    %c0_18 = arith.constant 0 : index
    %c0_19 = arith.constant 0 : index
    %c0_20 = arith.constant 0 : index
    %38 = vector.load %arg13[%c0_18, %c0_19, %c0_20] : memref<2x64x256xf32, #tpu.memory_space<vmem>>, vector<2x64x256xf32>
    tpu.vector_store %arg13[%c0_18, %c0_19, %c0_20], %37 {strides = array<i32>} : memref<2x64x256xf32, #tpu.memory_space<vmem>>, vector<2x64x256xf32>,
    %39 = vector.extract_strided_slice %31 {offsets = [0, 0], sizes = [64, 128], strides = [1, 1]} : vector<128x256xf32> to vector<64x128xf32>
    %40 = vector.extract_strided_slice %31 {offsets = [0, 128], sizes = [64, 128], strides = [1, 1]} : vector<128x256xf32> to vector<64x128xf32>
    %41 = vector.extract_strided_slice %31 {offsets = [64, 0], sizes = [64, 128], strides = [1, 1]} : vector<128x256xf32> to vector<64x128xf32>
    %42 = vector.extract_strided_slice %31 {offsets = [64, 128], sizes = [64, 128], strides = [1, 1]} : vector<128x256xf32> to vector<64x128xf32>
    %43 = vector.shape_cast %39 : vector<64x128xf32> to vector<1x64x128xf32>
    %44 = vector.shape_cast %40 : vector<64x128xf32> to vector<1x64x128xf32>
    %45 = vector.shape_cast %41 : vector<64x128xf32> to vector<1x64x128xf32>
    %46 = vector.shape_cast %42 : vector<64x128xf32> to vector<1x64x128xf32>
    %47 = tpu.concatenate %43, %44, %45, %46 in 0 : vector<1x64x128xf32>, vector<1x64x128xf32>, vector<1x64x128xf32>, vector<1x64x128xf32> -> vector<4x64x128xf32>
    %48 = arith.truncf %47 : vector<4x64x128xf32> to vector<4x64x128xbf16>
    %49 = vector.extract_strided_slice %34 {offsets = [0, 0], sizes = [64, 128], strides = [1, 1]} : vector<128x256xf32> to vector<64x128xf32>
    %50 = vector.extract_strided_slice %34 {offsets = [0, 128], sizes = [64, 128], strides = [1, 1]} : vector<128x256xf32> to vector<64x128xf32>
    %51 = vector.extract_strided_slice %34 {offsets = [64, 0], sizes = [64, 128], strides = [1, 1]} : vector<128x256xf32> to vector<64x128xf32>
    %52 = vector.extract_strided_slice %34 {offsets = [64, 128], sizes = [64, 128], strides = [1, 1]} : vector<128x256xf32> to vector<64x128xf32>
    %53 = vector.shape_cast %49 : vector<64x128xf32> to vector<1x64x128xf32>
    %54 = vector.shape_cast %50 : vector<64x128xf32> to vector<1x64x128xf32>
    %55 = vector.shape_cast %51 : vector<64x128xf32> to vector<1x64x128xf32>
    %56 = vector.shape_cast %52 : vector<64x128xf32> to vector<1x64x128xf32>
    %57 = tpu.concatenate %53, %54, %55, %56 in 0 : vector<1x64x128xf32>, vector<1x64x128xf32>, vector<1x64x128xf32>, vector<1x64x128xf32> -> vector<4x64x128xf32>
    %58 = arith.truncf %57 : vector<4x64x128xf32> to vector<4x64x128xbf16>
    %59 = vector.extract_strided_slice %22 {offsets = [0, 0], sizes = [64, 128], strides = [1, 1]} : vector<128x256xf32> to vector<64x128xf32>
    %60 = vector.extract_strided_slice %22 {offsets = [0, 128], sizes = [64, 128], strides = [1, 1]} : vector<128x256xf32> to vector<64x128xf32>
    %61 = vector.extract_strided_slice %22 {offsets = [64, 0], sizes = [64, 128], strides = [1, 1]} : vector<128x256xf32> to vector<64x128xf32>
    %62 = vector.extract_strided_slice %22 {offsets = [64, 128], sizes = [64, 128], strides = [1, 1]} : vector<128x256xf32> to vector<64x128xf32>
    %63 = vector.shape_cast %59 : vector<64x128xf32> to vector<1x64x128xf32>
    %64 = vector.shape_cast %60 : vector<64x128xf32> to vector<1x64x128xf32>
    %65 = vector.shape_cast %61 : vector<64x128xf32> to vector<1x64x128xf32>
    %66 = vector.shape_cast %62 : vector<64x128xf32> to vector<1x64x128xf32>
    %67 = tpu.concatenate %63, %64, %65, %66 in 0 : vector<1x64x128xf32>, vector<1x64x128xf32>, vector<1x64x128xf32>, vector<1x64x128xf32> -> vector<4x64x128xf32>
    %68 = arith.truncf %67 : vector<4x64x128xf32> to vector<4x64x128xbf16>
    "tpu.trace_start"() <{level = 10 : i32, message = "gqd,gkd->gqk"}> : () -> ()
    %cst_21 = arith.constant dense<0.000000e+00> : vector<4x64x64xf32>
    %69 = tpu.matmul %48, %58, %cst_21 {dimension_numbers = #tpu.dot_dimension_numbers<[2], [2], [1], [1], [0, 0, 0, 1, 1, 1], [0], [0]>} : vector<4x64x128xbf16>, vector<4x64x128xbf16>, vector<4x64x64xf32> -> vector<4x64x64xf32>
    "tpu.trace_stop"() : () -> ()
    %c0_22 = arith.constant 0 : index
    %c0_23 = arith.constant 0 : index
    %c0_24 = arith.constant 0 : index
    %70 = vector.load %arg2[%c0_22, %c0_23, %c0_24] : memref<2x64x64xbf16, #tpu.memory_space<vmem>>, vector<2x64x64xbf16>
    %71 = arith.extf %70 : vector<2x64x64xbf16> to vector<2x64x64xf32>
    %72 = vector.shape_cast %69 : vector<4x64x64xf32> to vector<2x2x64x64xf32>
    %73 = vector.shape_cast %71 : vector<2x64x64xf32> to vector<2x1x64x64xf32>
    %74 = vector.broadcast %73 : vector<2x1x64x64xf32> to vector<2x2x64x64xf32>
    %75 = arith.addf %72, %74 : vector<2x2x64x64xf32>
    %76 = vector.shape_cast %75 : vector<2x2x64x64xf32> to vector<4x64x64xf32>
    %cst_25 = arith.constant dense<0xFF800000> : vector<4x64xf32>
    %77 = vector.multi_reduction <maximumf>, %76, %cst_25 [2] : vector<4x64x64xf32> to vector<4x64xf32>
    %78 = vector.shape_cast %77 : vector<4x64xf32> to vector<4x64x1xf32>
    %79 = vector.broadcast %78 : vector<4x64x1xf32> to vector<4x64x64xf32>
    %80 = arith.subf %76, %79 : vector<4x64x64xf32>
    %81 = math.exp %80 : vector<4x64x64xf32>
    %cst_26 = arith.constant dense<0.000000e+00> : vector<4x64xf32>
    %82 = vector.multi_reduction <add>, %81, %cst_26 [2] : vector<4x64x64xf32> to vector<4x64xf32>
    %83 = vector.shape_cast %82 : vector<4x64xf32> to vector<4x64x1xf32>
    %84 = tpu.reciprocal %83 {approx = true} : vector<4x64x1xf32> -> vector<4x64x1xf32>
    %85 = vector.broadcast %84 : vector<4x64x1xf32> to vector<4x64x64xf32>
    %86 = arith.mulf %81, %85 : vector<4x64x64xf32>
    %87 = arith.truncf %86 : vector<4x64x64xf32> to vector<4x64x64xbf16>
    "tpu.trace_start"() <{level = 10 : i32, message = "gqk,gkd->gqd"}> : () -> ()
    %cst_27 = arith.constant dense<0.000000e+00> : vector<4x64x128xf32>
    %88 = tpu.matmul %87, %68, %cst_27 {dimension_numbers = #tpu.dot_dimension_numbers<[2], [1], [1], [2], [0, 0, 0, 1, 1, 2], [0], [0]>} : vector<4x64x64xbf16>, vector<4x64x128xbf16>, vector<4x64x128xf32> -> vector<4x64x128xf32>
    "tpu.trace_stop"() : () -> ()
    %89 = vector.extract_strided_slice %88 {offsets = [0, 0, 0], sizes = [1, 64, 128], strides = [1, 1, 1]} : vector<4x64x128xf32> to vector<1x64x128xf32>
    %90 = vector.shape_cast %89 : vector<1x64x128xf32> to vector<64x128xf32>
    %91 = vector.extract_strided_slice %88 {offsets = [1, 0, 0], sizes = [1, 64, 128], strides = [1, 1, 1]} : vector<4x64x128xf32> to vector<1x64x128xf32>
    %92 = vector.shape_cast %91 : vector<1x64x128xf32> to vector<64x128xf32>
    %93 = tpu.concatenate %90, %92 in 1 : vector<64x128xf32>, vector<64x128xf32> -> vector<64x256xf32>
    %94 = vector.extract_strided_slice %88 {offsets = [2, 0, 0], sizes = [1, 64, 128], strides = [1, 1, 1]} : vector<4x64x128xf32> to vector<1x64x128xf32>
    %95 = vector.shape_cast %94 : vector<1x64x128xf32> to vector<64x128xf32>
    %96 = vector.extract_strided_slice %88 {offsets = [3, 0, 0], sizes = [1, 64, 128], strides = [1, 1, 1]} : vector<4x64x128xf32> to vector<1x64x128xf32>
    %97 = vector.shape_cast %96 : vector<1x64x128xf32> to vector<64x128xf32>
    %98 = tpu.concatenate %95, %97 in 1 : vector<64x128xf32>, vector<64x128xf32> -> vector<64x256xf32>
    %99 = tpu.concatenate %93, %98 in 0 : vector<64x256xf32>, vector<64x256xf32> -> vector<128x256xf32>
    %100 = arith.truncf %99 : vector<128x256xf32> to vector<128x256xbf16>
    %c0_28 = arith.constant 0 : index
    %c0_29 = arith.constant 0 : index
    %101 = vector.load %arg7[%c0_28, %c0_29] : memref<256x256xbf16, #tpu.memory_space<vmem>>, vector<256x256xbf16>
    %cst_30 = arith.constant dense<0.000000e+00> : vector<128x256xf32>
    %102 = tpu.matmul %100, %101, %cst_30 {dimension_numbers = #tpu.dot_dimension_numbers<[1], [0], [0], [1], [0, 0, 1, 1], [], []>} : vector<128x256xbf16>, vector<256x256xbf16>, vector<128x256xf32> -> vector<128x256xf32>
    %103 = arith.addf %1, %102 : vector<128x256xf32>
    %c0_31 = arith.constant 0 : index
    %c0_32 = arith.constant 0 : index
    %104 = vector.load %arg8[%c0_31, %c0_32] : memref<1x256xf32, #tpu.memory_space<vmem>>, vector<1x256xf32>
    %105 = arith.mulf %103, %103 : vector<128x256xf32>
    %cst_33 = arith.constant dense<0.000000e+00> : vector<128xf32>
    %106 = vector.multi_reduction <add>, %105, %cst_33 [1] : vector<128x256xf32> to vector<128xf32>
    %107 = vector.shape_cast %106 : vector<128xf32> to vector<128x1xf32>
    %cst_34 = arith.constant 2.560000e+02 : f32
    %108 = vector.broadcast %cst_34 : f32 to vector<128x1xf32>
    %109 = arith.divf %107, %108 : vector<128x1xf32>
    %cst_35 = arith.constant 9.99999997E-7 : f32
    %110 = vector.broadcast %cst_35 : f32 to vector<128x1xf32>
    %111 = arith.addf %109, %110 : vector<128x1xf32>
    %112 = math.rsqrt %111 : vector<128x1xf32>
    %113 = vector.broadcast %112 : vector<128x1xf32> to vector<128x256xf32>
    %114 = arith.mulf %103, %113 : vector<128x256xf32>
    %115 = vector.broadcast %104 : vector<1x256xf32> to vector<128x256xf32>
    %116 = arith.mulf %114, %115 : vector<128x256xf32>
    %117 = arith.truncf %116 : vector<128x256xf32> to vector<128x256xbf16>
    %c0_36 = arith.constant 0 : index
    %c0_37 = arith.constant 0 : index
    %118 = vector.load %arg9[%c0_36, %c0_37] : memref<256x1024xbf16, #tpu.memory_space<vmem>>, vector<256x1024xbf16>
    %cst_38 = arith.constant dense<0.000000e+00> : vector<128x1024xf32>
    %119 = tpu.matmul %117, %118, %cst_38 {dimension_numbers = #tpu.dot_dimension_numbers<[1], [0], [0], [1], [0, 0, 1, 1], [], []>} : vector<128x256xbf16>, vector<256x1024xbf16>, vector<128x1024xf32> -> vector<128x1024xf32>
    %120 = vector.extract_strided_slice %119 {offsets = [0, 0], sizes = [128, 512], strides = [1, 1]} : vector<128x1024xf32> to vector<128x512xf32>
    %121 = vector.extract_strided_slice %119 {offsets = [0, 512], sizes = [128, 512], strides = [1, 1]} : vector<128x1024xf32> to vector<128x512xf32>
    %122 = arith.negf %120 : vector<128x512xf32>
    %123 = math.exp %122 : vector<128x512xf32>
    %cst_39 = arith.constant 1.000000e+00 : f32
    %124 = vector.broadcast %cst_39 : f32 to vector<128x512xf32>
    %125 = arith.addf %124, %123 : vector<128x512xf32>
    %126 = arith.divf %124, %125 : vector<128x512xf32>
    %127 = arith.mulf %120, %126 : vector<128x512xf32>
    %128 = arith.mulf %127, %121 : vector<128x512xf32>
    %129 = arith.truncf %128 : vector<128x512xf32> to vector<128x512xbf16>
    %c0_40 = arith.constant 0 : index
    %c0_41 = arith.constant 0 : index
    %130 = vector.load %arg10[%c0_40, %c0_41] : memref<512x256xbf16, #tpu.memory_space<vmem>>, vector<512x256xbf16>
    %cst_42 = arith.constant dense<0.000000e+00> : vector<128x256xf32>
    %131 = tpu.matmul %129, %130, %cst_42 {dimension_numbers = #tpu.dot_dimension_numbers<[1], [0], [0], [1], [0, 0, 1, 1], [], []>} : vector<128x512xbf16>, vector<512x256xbf16>, vector<128x256xf32> -> vector<128x256xf32>
    %132 = arith.addf %103, %131 : vector<128x256xf32>
    %133 = vector.shape_cast %132 : vector<128x256xf32> to vector<2x64x256xf32>
    %c0_43 = arith.constant 0 : index
    %c0_44 = arith.constant 0 : index
    %c0_45 = arith.constant 0 : index
    %134 = vector.load %arg11[%c0_43, %c0_44, %c0_45] : memref<2x64x256xf32, #tpu.memory_space<vmem>>, vector<2x64x256xf32>
    tpu.vector_store %arg11[%c0_43, %c0_44, %c0_45], %133 {strides = array<i32>} : memref<2x64x256xf32, #tpu.memory_space<vmem>>, vector<2x64x256xf32>,
    return
  }
  func.func @transform_0(%arg0: i32) -> (i32, i32, i32) {
    %c0_i32 = arith.constant 0 : i32
    %c0_i32_0 = arith.constant 0 : i32
    %c0_i32_1 = arith.constant 0 : i32
    return %arg0, %c0_i32, %c0_i32_0 : i32, i32, i32
  }
  func.func @transform_1(%arg0: i32) -> (i32, i32, i32) {
    %c0_i32 = arith.constant 0 : i32
    %c0_i32_0 = arith.constant 0 : i32
    %c0_i32_1 = arith.constant 0 : i32
    return %arg0, %c0_i32, %c0_i32_0 : i32, i32, i32
  }
  func.func @transform_2(%arg0: i32) -> (i32, i32, i32) {
    %c0_i32 = arith.constant 0 : i32
    %c0_i32_0 = arith.constant 0 : i32
    %c0_i32_1 = arith.constant 0 : i32
    return %arg0, %c0_i32, %c0_i32_0 : i32, i32, i32
  }
  func.func @transform_3(%arg0: i32) -> (i32, i32, i32) {
    %c0_i32 = arith.constant 0 : i32
    %c0_i32_0 = arith.constant 0 : i32
    %c0_i32_1 = arith.constant 0 : i32
    return %arg0, %c0_i32, %c0_i32_0 : i32, i32, i32
  }
  func.func @transform_4(%arg0: i32) -> (i32, i32) {
    %c0_i32 = arith.constant 0 : i32
    %c0_i32_0 = arith.constant 0 : i32
    %c0_i32_1 = arith.constant 0 : i32
    return %c0_i32, %c0_i32_0 : i32, i32
  }
  func.func @transform_5(%arg0: i32) -> (i32, i32) {
    %c0_i32 = arith.constant 0 : i32
    %c0_i32_0 = arith.constant 0 : i32
    %c0_i32_1 = arith.constant 0 : i32
    return %c0_i32, %c0_i32_0 : i32, i32
  }
  func.func @transform_6(%arg0: i32) -> (i32, i32) {
    %c0_i32 = arith.constant 0 : i32
    %c0_i32_0 = arith.constant 0 : i32
    %c0_i32_1 = arith.constant 0 : i32
    return %c0_i32, %c0_i32_0 : i32, i32
  }
  func.func @transform_7(%arg0: i32) -> (i32, i32) {
    %c0_i32 = arith.constant 0 : i32
    %c0_i32_0 = arith.constant 0 : i32
    %c0_i32_1 = arith.constant 0 : i32
    return %c0_i32, %c0_i32_0 : i32, i32
  }
  func.func @transform_8(%arg0: i32) -> (i32, i32) {
    %c0_i32 = arith.constant 0 : i32
    %c0_i32_0 = arith.constant 0 : i32
    %c0_i32_1 = arith.constant 0 : i32
    return %c0_i32, %c0_i32_0 : i32, i32
  }
  func.func @transform_9(%arg0: i32) -> (i32, i32) {
    %c0_i32 = arith.constant 0 : i32
    %c0_i32_0 = arith.constant 0 : i32
    %c0_i32_1 = arith.constant 0 : i32
    return %c0_i32, %c0_i32_0 : i32, i32
  }
  func.func @transform_10(%arg0: i32) -> (i32, i32, i32) {
    %c0_i32 = arith.constant 0 : i32
    %c0_i32_0 = arith.constant 0 : i32
    %c0_i32_1 = arith.constant 0 : i32
    return %arg0, %c0_i32, %c0_i32_0 : i32, i32, i32
  }
  func.func @transform_11(%arg0: i32) -> (i32, i32, i32) {
    %c0_i32 = arith.constant 0 : i32
    %c0_i32_0 = arith.constant 0 : i32
    %c0_i32_1 = arith.constant 0 : i32
    return %arg0, %c0_i32, %c0_i32_0 : i32, i32, i32
  }
  func.func @transform_12(%arg0: i32) -> (i32, i32, i32) {
    %c0_i32 = arith.constant 0 : i32
    %c0_i32_0 = arith.constant 0 : i32
    %c0_i32_1 = arith.constant 0 : i32
    return %arg0, %c0_i32, %c0_i32_0 : i32, i32, i32
  }
}

</mosaic_0001>

<bundles_post_ra>
// kernel: tpu_custom_call.1
= control target key start
LH: loop header
LB: loop body
LE: loop exit
PB: predicated region body
PF: predicated region fallthrough
CT: control target
= control target key end

     0   :  { %s11833_s0 = inlined_call_operand.hbm [shape: f32[4,64,256], index: 0, kind: input, shape index: {}]   ;;  %s11834_s1 = inlined_call_operand.hbm [shape: bf16[4,64,64], index: 1, kind: input, shape index: {}]   ;;  %s11835_s2 = inlined_call_operand.hbm [shape: f32[4,64,128], index: 2, kind: input, shape index: {}]   ;;  %s11836_s3 = inlined_call_operand.hbm [shape: f32[4,64,128], index: 3, kind: input, shape index: {}]   ;;  %s11837_s4 = inlined_call_operand.vmem [shape: f32[1,256], index: 4, kind: input, shape index: {}]   ;;  %s11838_s5 = inlined_call_operand.hbm [shape: bf16[256,1280], index: 5, kind: input, shape index: {}]   ;;  %s11839_s6 = inlined_call_operand.hbm [shape: bf16[256,256], index: 6, kind: input, shape index: {}]   ;;  %s11840_s7 = inlined_call_operand.vmem [shape: f32[1,256], index: 7, kind: input, shape index: {}]   ;;  %s11841_s8 = inlined_call_operand.hbm [shape: bf16[256,1024], index: 8, kind: input, shape index: {}]   ;;  %s11842_s9 = inlined_call_operand.hbm [shape: bf16[512,256], index: 9, kind: input, shape index: {}]   ;;  %s11843_s10 = inlined_call_operand.hbm [shape: f32[4,64,256], index: 10, kind: output, shape index: {0}]   ;;  %s11844_s11 = inlined_call_operand.hbm [shape: f32[4,64,256], index: 11, kind: output, shape index: {1}]   ;;  %s11845_s12 = inlined_call_operand.hbm [shape: f32[4,64,256], index: 12, kind: output, shape index: {2}]  }
   0x1   :  { %11951 = sst [smem:[#allocation107_spill]] %s11833_s0 }
   0x2   :  { %11952 = sst [smem:[#allocation108_spill]] %s11834_s1 }
   0x3   :  { %11953 = sst [smem:[#allocation109_spill]] %s11838_s5 }
   0x4   :  { %11954 = sst [smem:[#allocation110_spill]] %s11839_s6 }
   0x5   :  { %11955 = sst [smem:[#allocation111_spill]] %s11841_s8 }
   0x6   :  { %11956 = sst [smem:[#allocation112_spill]] %s11842_s9 }
   0x7   :  { %11957 = sst [smem:[#allocation113_spill]] %s11843_s10 }
   0x8   :  { %11958 = sst [smem:[#allocation114_spill]] %s11844_s11 }
   0x9   :  { %11959 = sst [smem:[#allocation115_spill]] %s11845_s12 }
   0xa   :  { %18 = vsyncpa [#allocation3], 0 }
   0xb   :  { %20 = vsyncpa [#allocation3 + $0x1], 0 }
   0xc   :  { %21 = vsyncpa [#allocation6], 0 }
   0xd   :  { %23 = vsyncpa [#allocation6 + $0x1], 0 }
   0xe   :  { %24 = vsyncpa [#allocation9], 0 }
   0xf   :  { %26 = vsyncpa [#allocation9 + $0x1], 0 }
  0x10   :  { %27 = vsyncpa [#allocation12], 0 }
  0x11   :  { %28 = vsyncpa [#allocation15], 0 }
  0x12   :  { %29 = vsyncpa [#allocation4], 0 }
  0x13   :  { %31 = vsyncpa [#allocation4 + $0x1], 0 }
  0x14   :  { %32 = vsyncpa [#allocation18], 0 }
  0x15   :  { %34 = vsyncpa [#allocation18 + $0x1], 0  ;;  %s9322_s21 = smov 0   ;;  %s9324_s22 = smov 0  }
  0x16   :  { %s9326_s23 = smov 0   ;;  %s9328_s24 = smov 0  }
  0x17 LB: > { %11960 = sst [smem:[#allocation28_spill]] %s9220_s21  ;;  %s9343_s25 = sadd.s32 4294967295, %s9232_s24   ;;  %s9232_s24 = sphi %s9328_s24, %s12211_s24   ;;  %s9228_s23 = sphi %s9326_s23, %s12213_s23   ;;  %s9224_s22 = sphi %s9324_s22, %s12215_s22   ;;  %s9220_s21 = sphi %s9322_s21, %s12214_s21  }
  0x18   : > { %11961 = sst [smem:[#allocation29_spill]] %s9228_s23  ;;  %s11847_s26 = sadd.s32 4294967294, %s9232_s24  }
  0x19   : > { %p60_p0 = scmp.ne.s32.totalorder %s9224_s22, %s9220_s21  ;;  %p11846_p1 = scmp.eq.s32.totalorder %s9343_s25, 0 }
  0x1a   : > { %p294_p3 = scmp.eq.s32.totalorder %s11847_s26, 1  ;;  %p7061_p5 = scmp.ge.s32.totalorder %s9232_s24, 1 }
  0x1b   : > { %p9354_p4 = por %p11846_p1, %p60_p0  ;;  %p353_p7 = scmp.lt.s32.totalorder %s9232_s24, 3 }
  0x1c   : > { %p9359_p6 = por %p294_p3, %p60_p0  ;;  %s9234_s30 = smov [#allocation10]  }
  0x1d   : > { %s11962_s27 = scalar_select %p9354_p4, 1, 0 }
  0x1e   : > { %s11963_s28 = scalar_select %p9359_p6, 1, 0 }
  0x1f   : > { %p9364_p8 = pnand %p7061_p5, %p353_p7  ;;  %s368_s13 = sshll.u32 %s9234_s30, 4  ;;  %s369_s13 = int_to_ptr.vmem [resolvable:$true] %s368_s13 }
  0x20   : > { %11964 = sst [smem:[#allocation30_spill]] %s11963_s28  ;;  %s9235_s15 = smov [#allocation11]  }
  0x21   : > { %s11965_s29 = scalar_select %p9364_p8, 1, 0 }
  0x22   : > { %p7880_p9 = pneg %p9364_p8  ;;  %s381_s16 = sshll.u32 %s9235_s15, 4  ;;  %s382_s16 = int_to_ptr.vmem [resolvable:$true] %s381_s16 }
  0x23   : > { %s8887_s17 = scalar_lea.vmem %s369_s13, 20480  ;;  %p8895_p5 = scmp.lt.s32.totalorder %s369_s13, %s369_s13 }
  0x24   : > { %p9373_p11 = pnand %p7880_p9, %p11846_p1  ;;  %p8888_p13 = scmp.ne.s32.totalorder %s369_s13, %s8887_s17 }
  0x25   : > { %p8896_p7 = scmp.lt.s32.totalorder %s8887_s17, %s8887_s17 }
  0x26   : > { %s11966_s14 = scalar_select %p9373_p11, 1, 0 }
  0x27   : > { %p11858_p12 = pneg %p9373_p11  ;;  %p8897_p10 = por %p8896_p7, %p8895_p5 }
  0x29   : > { %p8890_p0 = pnand %p8888_p13, %p11858_p12 }
  0x2b   : > { %p8891_p3 = pneg %p8890_p0 }
  0x2d   : > { %p8898_p9 = pnand %p8897_p10, %p8891_p3 }
  0x2f   : > { %8901 = shalt.err (!%p8898_p9)
}
  0x30   : > { %s9236_s18 = smov 640   ;;  %s9237_s19 = smov 40  }
  0x31   : > { %s11967_s5 = sld [smem:[#allocation109_spill]]  ;;  %s8913_s15 = scalar_lea.vmem %s382_s16, 4096 }
  0x32   : > { %p8914_p1 = scmp.ne.s32.totalorder %s382_s16, %s8913_s15  ;;  %p8921_p2 = scmp.lt.s32.totalorder %s382_s16, %s382_s16 }
  0x33   : > { %p8922_p6 = scmp.lt.s32.totalorder %s8913_s15, %s8913_s15 }
  0x34   : > { %p8916_p13 = pnand %p8914_p1, %p11858_p12 }
  0x35   : > { %p8923_p5 = por %p8922_p6, %p8921_p2 }
  0x36   : > { %p8917_p0 = pneg %p8916_p13 }
  0x37   : > { %7883 = dma.hbm_to_vmem [thread:$0]  (!%p9373_p11), %s11967_s5, 20480, %s369_s13, [#allocation9], %s9236_s18, %s9236_s18, %s9237_s19  }
  0x38   : > { %p8924_p10 = pnand %p8923_p5, %p8917_p0 }
  0x3a   : > { %8927 = shalt.err (!%p8924_p10)
}
  0x3b   : > { %s11848_s17 = smov 128   ;;  %s11850_s13 = smov 8  }
  0x3c   : > { %s11968_s6 = sld [smem:[#allocation110_spill]]  ;;  %s9399_s20 = sadd.s32 1, %s9232_s24  }
  0x3d   : > { %11969 = sst [smem:[#allocation31_spill]] %s9399_s20  ;;  %s44_s30 = ssub.s32 %s9232_s24, %s9399_s20 }
  0x3e   : > { %p45_p1 = scmp.eq.s32.totalorder %s44_s30, 0  ;;  %s47_s15 = sadd.s32 1, %s9228_s23 }
  0x3f   : > { %p54_p2 = scmp.ne.s32.totalorder %s9228_s23, %s9224_s22  ;;  %p55_p6 = scmp.eq.s32.totalorder %s9232_s24, 0 }
  0x40   : > { %s9408_s26 = scalar_select %p45_p1, %s9228_s23, %s47_s15  }
  0x41   : > { %p56_p3 = por %p55_p6, %p54_p2  ;;  %p11971_p7 = scmp.eq.s32.totalorder %s9343_s25, 1 }
  0x42   : > { %7886 = dma.hbm_to_vmem [thread:$0]  (!%p9373_p11), %s11968_s6, 4096, %s382_s16, [#allocation12], %s11848_s17, %s11848_s17, %s11850_s13  }
  0x43   : > { %11970 = sst [smem:[#allocation32_spill]] %s9408_s26  ;;  %p9412_p9 = por %p11971_p7, %p54_p2 }
  0x44   : > { %p7920_p13 = scmp.lt.s32.totalorder %s9232_s24, 2  ;;  %s9418_s18 = sand.u32 1, %s9228_s23  }
  0x45   : > { %s11972_s5 = scalar_select %p9412_p9, 1, 0 }
  0x46   : > { %s11857_s16 = sand.u32 1, %s9232_s24   ;;  %s7071_s19 = sshll.u32 %s9418_s18, 6 }
  0x47   : > { %p9422_p0 = pnand %p7920_p13, %p56_p3  ;;  %s7576_s17 = sshll.u32 %s9232_s24, 10 }
  0x48   : > { %s11974_s1 = sld [smem:[#allocation108_spill]]  ;;  %s450_s26 = scalar_lea.vmem [#allocation5], %s7071_s19 }
  0x49   : > { %s458_s23 = sshll.u32 %s450_s26, 4  ;;  %s9436_s20 = scalar_lea.sflag [#allocation6], %s11857_s16  ;;  %s9432_s23 = int_to_ptr.vmem [resolvable:$true] %s458_s23 }
  0x4a   : > { %p9442_p10 = pneg %p9422_p0 }
  0x4e   : > { %s9430_s6 = scalar_lea.hbm %s11974_s1, %s7576_s17  ;;  %s8933_s26 = scalar_lea.hbm %s11974_s1, 2048 }
  0x4f   : > { %s8928_s28 = scalar_lea.hbm %s9430_s6, 1024  ;;  %p8934_p6 = scmp.lt.s32.totalorder %s9430_s6, %s11974_s1 }
  0x50   : > { %p8929_p5 = scmp.ne.s32.totalorder %s9430_s6, %s8928_s28  ;;  %p8935_p3 = scmp.lt.s32.totalorder %s8933_s26, %s8928_s28 }
  0x52   : > { %p8931_p1 = pnand %p9442_p10, %p8929_p5  ;;  %p8936_p7 = por %p8935_p3, %p8934_p6 }
  0x54   : > { %p8932_p2 = pneg %p8931_p1 }
  0x56   : > { %p8937_p13 = pnand %p8936_p7, %p8932_p2 }
  0x58   : > { %8940 = shalt.err (!%p8937_p13)
}
  0x59   : > { %s8941_s16 = scalar_lea.vmem %s9432_s23, 1024  ;;  %s9240_s10 = smov [#allocation5]  }
  0x5a   : > { %p8942_p12 = scmp.ne.s32.totalorder %s9432_s23, %s8941_s16  ;;  %s8946_s17 = sshll.u32 %s9240_s10, 4  ;;  %s8947_s17 = int_to_ptr.vmem [resolvable:$false] %s8946_s17 }
  0x5b   : > { %s8948_s13 = scalar_lea.vmem %s8947_s17, 2048  ;;  %p8949_p9 = scmp.lt.s32.totalorder %s9432_s23, %s8947_s17 }
  0x5c   : > { %p8944_p5 = pnand %p8942_p12, %p9442_p10  ;;  %p8950_p4 = scmp.lt.s32.totalorder %s8948_s13, %s8941_s16 }
  0x5e   : > { %p8945_p1 = pneg %p8944_p5  ;;  %p8951_p8 = por %p8950_p4, %p8949_p9 }
  0x60   : > { %p8952_p11 = pnand %p8951_p8, %p8945_p1 }
  0x62   : > { %8955 = shalt.err (!%p8952_p11)
}
  0x63   : > { %s9241_s28 = smov 64   ;;  %s9242_s26 = smov 4  }
  0x64   : > { %7899 = dma.hbm_to_vmem [thread:$0]  (!%p9422_p0), %s9430_s6, 1024, %s9432_s23, %s9436_s20, %s9241_s28, %s9241_s28, %s9242_s26  }
  0x65   : > { %s9243_s19 = smov [#allocation13]   ;;  %p11976_p2 = scmp.ne.s32.totalorder %s11966_s14, 0 }
  0x66   : > { %s397_s15 = sshll.u32 %s9243_s19, 4  ;;  %s398_s15 = int_to_ptr.vmem [resolvable:$true] %s397_s15 }
  0x67   : > { %s8967_s10 = scalar_lea.vmem %s398_s15, 16384  ;;  %p11977_p6 = pneg %p11976_p2 }
  0x68   : > { %p8968_p12 = scmp.ne.s32.totalorder %s398_s15, %s8967_s10  ;;  %p8975_p8 = scmp.lt.s32.totalorder %s398_s15, %s398_s15 }
  0x69   : > { %p8976_p11 = scmp.lt.s32.totalorder %s8967_s10, %s8967_s10 }
  0x6a   : > { %p8970_p3 = pnand %p8968_p12, %p11977_p6 }
  0x6b   : > { %p8977_p9 = por %p8976_p11, %p8975_p8 }
  0x6c   : > { %p8971_p4 = pneg %p8970_p3 }
  0x6e   : > { %p8978_p7 = pnand %p8977_p9, %p8971_p4 }
  0x70   : > { %8981 = shalt.err (!%p8978_p7)
}
  0x71   : > { %s9244_s16 = smov 512   ;;  %s9245_s17 = smov 32  }
  0x72   : > { %s11978_s8 = sld [smem:[#allocation111_spill]]  ;;  %s9246_s13 = smov [#allocation14]  }
  0x73   : > { %s410_s28 = sshll.u32 %s9246_s13, 4  ;;  %s7067_s26 = sshll.u32 %s9418_s18, 8  ;;  %s411_s28 = int_to_ptr.vmem [resolvable:$true] %s410_s28 }
  0x74   : > { %s8993_s19 = scalar_lea.vmem %s411_s28, 8192  ;;  %p11979_p5 = pmov %p11977_p6 }
  0x75   : > { %p8994_p13 = scmp.ne.s32.totalorder %s411_s28, %s8993_s19  ;;  %p9001_p6 = scmp.lt.s32.totalorder %s411_s28, %s411_s28 }
  0x76   : > { %p9002_p3 = scmp.lt.s32.totalorder %s8993_s19, %s8993_s19 }
  0x77   : > { %p8996_p1 = pnand %p8994_p13, %p11979_p5 }
  0x78   : > { %7889 = dma.hbm_to_vmem [thread:$0]  (!%p11976_p2), %s11978_s8, 16384, %s398_s15, [#allocation12], %s9244_s16, %s9244_s16, %s9245_s17  }
  0x79   : > { %p8997_p12 = pneg %p8996_p1  ;;  %p9003_p4 = por %p9002_p3, %p9001_p6 }
  0x7b   : > { %p9004_p8 = pnand %p9003_p4, %p8997_p12 }
  0x7d   : > { %9007 = shalt.err (!%p9004_p8)
}
  0x7e   : > { %s11980_s10 = smov 8   ;;  %s11981_s6 = smov 128  }
  0x7f   : > { %s11982_s9 = sld [smem:[#allocation112_spill]]  ;;  %s7574_s17 = sshll.u32 %s9232_s24, 12 }
  0x80   : > { %s428_s23 = scalar_lea.vmem [#allocation2], %s7067_s26  ;;  %s11983_s0 = sld [smem:[#allocation107_spill]] }
  0x81   : > { %s436_s13 = sshll.u32 %s428_s23, 4  ;;  %s425_s14 = scalar_lea.sflag [#allocation3], %s9418_s18  ;;  %s9491_s13 = int_to_ptr.vmem [resolvable:$true] %s436_s13 }
  0x85   : > { %7892 = dma.hbm_to_vmem [thread:$0]  (!%p11976_p2), %s11982_s9, 8192, %s411_s28, [#allocation15], %s11981_s6, %s11981_s6, %s11980_s10  }
  0x86   : > { %s9489_s8 = scalar_lea.hbm %s11983_s0, %s7574_s17  ;;  %s9013_s26 = scalar_lea.hbm %s11983_s0, 8192 }
  0x87   : > { %s9008_s12 = scalar_lea.hbm %s9489_s8, 4096  ;;  %p9014_p2 = scmp.lt.s32.totalorder %s9489_s8, %s11983_s0 }
  0x88   : > { %p9009_p11 = scmp.ne.s32.totalorder %s9489_s8, %s9008_s12  ;;  %p9015_p13 = scmp.lt.s32.totalorder %s9013_s26, %s9008_s12 }
  0x8a   : > { %p9011_p9 = pnand %p9009_p11, %p9442_p10  ;;  %p9016_p5 = por %p9015_p13, %p9014_p2 }
  0x8c   : > { %p9012_p7 = pneg %p9011_p9 }
  0x8e   : > { %p9017_p1 = pnand %p9016_p5, %p9012_p7 }
  0x90   : > { %9020 = shalt.err (!%p9017_p1)
}
  0x91   : > { %s9021_s1 = scalar_lea.vmem %s9491_s13, 4096  ;;  %s9247_s17 = smov [#allocation2]  }
  0x92   : > { %p9022_p12 = scmp.ne.s32.totalorder %s9491_s13, %s9021_s1  ;;  %s9026_s19 = sshll.u32 %s9247_s17, 4  ;;  %s9027_s19 = int_to_ptr.vmem [resolvable:$false] %s9026_s19 }
  0x93   : > { %s9028_s28 = scalar_lea.vmem %s9027_s19, 8192  ;;  %p9029_p4 = scmp.lt.s32.totalorder %s9491_s13, %s9027_s19 }
  0x94   : > { %p9024_p6 = pnand %p9022_p12, %p9442_p10  ;;  %p9030_p8 = scmp.lt.s32.totalorder %s9028_s28, %s9021_s1 }
  0x96   : > { %p9025_p3 = pneg %p9024_p6  ;;  %p9031_p11 = por %p9030_p8, %p9029_p4 }
  0x98   : > { %p9032_p9 = pnand %p9031_p11, %p9025_p3 }
  0x9a   : > { %9035 = shalt.err (!%p9032_p9)
}
  0x9b   : > { %s9248_s12 = smov 256   ;;  %s9249_s15 = smov 16  }
  0x9c   : > { %7896 = dma.hbm_to_vmem [thread:$0]  (!%p9422_p0), %s9489_s8, 4096, %s9491_s13, %s425_s14, %s9248_s12, %s9248_s12, %s9249_s15  }
  0x9d   : > { %s7075_s26 = sshll.u32 %s9418_s18, 7  ;;  %s7578_s16 = sshll.u32 %s9232_s24, 11 }
  0x9e   : > { %s9521_s17 = scalar_lea.hbm %s11835_s2, %s7578_s16  ;;  %s472_s19 = scalar_lea.vmem [#allocation7], %s7075_s26 }
  0x9f   : > { %s480_s28 = sshll.u32 %s472_s19, 4  ;;  %s9530_s11 = scalar_lea.hbm %s11836_s3, %s7578_s16  ;;  %s9525_s28 = int_to_ptr.vmem [resolvable:$true] %s480_s28 }
  0xa0   : > { %s9036_s8 = scalar_lea.hbm %s9521_s17, 2048  ;;  %s9041_s12 = scalar_lea.hbm %s11835_s2, 4096 }
  0xa1   : > { %p9037_p7 = scmp.ne.s32.totalorder %s9521_s17, %s9036_s8  ;;  %p9042_p5 = scmp.lt.s32.totalorder %s9521_s17, %s11835_s2 }
  0xa2   : > { %p9043_p1 = scmp.lt.s32.totalorder %s9041_s12, %s9036_s8 }
  0xa3   : > { %p9039_p2 = pnand %p9037_p7, %p9442_p10 }
  0xa4   : > { %p9044_p12 = por %p9043_p1, %p9042_p5 }
  0xa5   : > { %p9040_p13 = pneg %p9039_p2 }
  0xa7   : > { %p9045_p6 = pnand %p9044_p12, %p9040_p13 }
  0xa9   : > { %9048 = shalt.err (!%p9045_p6)
}
  0xaa   : > { %s9049_s0 = scalar_lea.vmem %s9525_s28, 2048  ;;  %s9250_s9 = smov [#allocation7]  }
  0xab   : > { %p9050_p3 = scmp.ne.s32.totalorder %s9525_s28, %s9049_s0  ;;  %s9054_s16 = sshll.u32 %s9250_s9, 4  ;;  %s9055_s16 = int_to_ptr.vmem [resolvable:$false] %s9054_s16 }
  0xac   : > { %s9056_s1 = scalar_lea.vmem %s9055_s16, 4096  ;;  %p9057_p11 = scmp.lt.s32.totalorder %s9525_s28, %s9055_s16 }
  0xad   : > { %p9052_p4 = pnand %p9050_p3, %p9442_p10  ;;  %p9058_p9 = scmp.lt.s32.totalorder %s9056_s1, %s9049_s0 }
  0xaf   : > { %p9053_p8 = pneg %p9052_p4  ;;  %p9059_p7 = por %p9058_p9, %p9057_p11 }
  0xb1   : > { %p9060_p2 = pnand %p9059_p7, %p9053_p8 }
  0xb3   : > { %9063 = shalt.err (!%p9060_p2)
}
  0xb4   : > { %7902 = dma.hbm_to_vmem [thread:$0]  (!%p9422_p0), %s9521_s17, 2048, %s9525_s28, %s9436_s20, %s11981_s6, %s11981_s6, %s11980_s10  }
  0xb5   : > { %s494_s19 = scalar_lea.vmem [#allocation8], %s7075_s26  ;;  %s11984_s13 = sand.u32 1, %s9232_s24  }
  0xb6   : > { %s502_s8 = sshll.u32 %s494_s19, 4  ;;  %s491_s14 = scalar_lea.sflag [#allocation9], %s11984_s13  ;;  %s9558_s8 = int_to_ptr.vmem [resolvable:$true] %s502_s8 }
  0xb7   : > { %s9064_s12 = scalar_lea.hbm %s9530_s11, 2048  ;;  %s9069_s0 = scalar_lea.hbm %s11836_s3, 4096 }
  0xb8   : > { %p9065_p13 = scmp.ne.s32.totalorder %s9530_s11, %s9064_s12  ;;  %p9070_p12 = scmp.lt.s32.totalorder %s9530_s11, %s11836_s3 }
  0xb9   : > { %p9071_p6 = scmp.lt.s32.totalorder %s9069_s0, %s9064_s12 }
  0xba   : > { %p9067_p5 = pnand %p9065_p13, %p9442_p10 }
  0xbb   : > { %p9072_p3 = por %p9071_p6, %p9070_p12 }
  0xbc   : > { %p9068_p1 = pneg %p9067_p5 }
  0xbe   : > { %p9073_p4 = pnand %p9072_p3, %p9068_p1 }
  0xc0   : > { %9076 = shalt.err (!%p9073_p4)
}
  0xc1   : > { %s9077_s20 = scalar_lea.vmem %s9558_s8, 2048  ;;  %s9251_s18 = smov [#allocation8]  }
  0xc2   : > { %p9078_p8 = scmp.ne.s32.totalorder %s9558_s8, %s9077_s20  ;;  %s9082_s26 = sshll.u32 %s9251_s18, 4  ;;  %s9083_s26 = int_to_ptr.vmem [resolvable:$false] %s9082_s26 }
  0xc3   : > { %s9084_s17 = scalar_lea.vmem %s9083_s26, 4096  ;;  %p9085_p7 = scmp.lt.s32.totalorder %s9558_s8, %s9083_s26 }
  0xc4   : > { %p9080_p11 = pnand %p9078_p8, %p9442_p10  ;;  %p9086_p2 = scmp.lt.s32.totalorder %s9084_s17, %s9077_s20 }
  0xc6   : > { %p9081_p9 = pneg %p9080_p11  ;;  %p9087_p13 = por %p9086_p2, %p9085_p7 }
  0xc8   : > { %p9088_p5 = pnand %p9087_p13, %p9081_p9 }
  0xca   : > { %9091 = shalt.err (!%p9088_p5)
}
  0xcb   : > { %7905 = dma.hbm_to_vmem [thread:$0]  (!%p9422_p0), %s9530_s11, 2048, %s9558_s8, %s491_s14, %s11981_s6, %s11981_s6, %s11980_s10  }
  0xcc   : > { %p11985_p10 = scmp.ne.s32.totalorder %s11965_s29, 0 }
  0xce   : > { %514 = sbr.rel (%p11985_p10) target bundleno = 2407 (0x967), region = 60 }
  0xd3   : > { %s9588_s21 = sand.u32 1, %s9224_s22   ;;  %p11986_p1 = scmp.ne.s32.totalorder %s11962_s27, 0 }
  0xd4   : > { %s9591_s28 = sshll.u32 %s9588_s21, 8  ;;  %s517_s1 = scalar_lea.sflag [#allocation3], %s9588_s21 }
  0xd5   : > { %s9595_s30 = scalar_lea.vmem [#allocation2], %s9591_s28 }
  0xd6   : > { %9187 = dma.done.wait (%p11986_p1), %s517_s1, 4096  }
  0xd7   : > { %9189 = vsyncadd (%p11986_p1), %s517_s1, 4294963200  ;;  %s9602_s11 = sand.u32 1, %s9343_s25   ;;  %s7085_s29 = sshll.u32 %s9588_s21, 6 }
  0xd8   : > { %s526_s10 = scalar_lea.sflag [#allocation6], %s9602_s11  ;;  %s9606_s6 = scalar_lea.vmem [#allocation5], %s7085_s29 }
  0xd9   : > { %9191 = dma.done.wait (%p11986_p1), %s526_s10, 3072  }
  0xda   : > { %9193 = vsyncadd (%p11986_p1), %s526_s10, 4294964224  ;;  %s7086_s19 = sshll.u32 %s9588_s21, 7  ;;  %s544_s13 = scalar_lea.sflag [#allocation9], %s9602_s11 }
  0xdb   : > { %s9613_s8 = scalar_lea.vmem [#allocation7], %s7086_s19  ;;  %s9616_s14 = scalar_lea.vmem [#allocation8], %s7086_s19 }
  0xdc   : > { %9195 = dma.done.wait (%p11986_p1), %s544_s13, 2048  }
  0xdd   : > { %9197 = vsyncadd (%p11986_p1), %s544_s13, 4294965248  ;;  %p11987_p0 = scmp.eq.s32.totalorder %s9343_s25, 0 }
  0xdf   : > { %9199 = dma.done.wait (%p11987_p0), [#allocation9], 20480   ;;  %p11988_p12 = pmov %p11987_p0 }
  0xe0   : > { %p11989_p6 = pmov %p11987_p0 }
  0xe1   : > { %9201 = vsyncadd (%p11988_p12), [#allocation9], 4294946816 }
  0xe2   : > { %9203 = dma.done.wait (%p11989_p6), [#allocation12], 20480   ;;  %p11990_p3 = pmov %p11987_p0 }
  0xe3   : > { %p11991_p4 = pmov %p11987_p0 }
  0xe4   : > { %9205 = vsyncadd (%p11990_p3), [#allocation12], 4294946816 }
  0xe5   : > { %9207 = dma.done.wait (%p11991_p4), [#allocation15], 8192   ;;  %p11992_p8 = pmov %p11987_p0 }
  0xe6   : > { %v637_v0 = vld [vmem:[%s9595_s30] sm:$0xff]  ;;  %v638_v1 = vld [vmem:[%s9595_s30 + $0x8] sm:$0xff]  ;;  %v639_v7 = vld [vmem:[%s9595_s30 + $0x10] sm:$0xff]  ;;  %s10092_s15 = scalar_lea.vmem [#allocation17], %s9591_s28  ;;  %s10262_s23 = scalar_lea.vmem [#allocation19], %s9591_s28  ;;  %vm3075_vm0 = vcmask 523264  }
  0xe7   : > { %9209 = vsyncadd (%p11992_p8), [#allocation15], 4294959104  ;;  %v641_v2 = vld [vmem:[%s9595_s30 + $0x20] sm:$0xff]  ;;  %v670_v3 = vmul.f32 %v637_v0, %v637_v0  ;;  %v671_v4 = vmul.f32 %v638_v1, %v638_v1  ;;  %v642_v5 = vld [vmem:[%s9595_s30 + $0x28] sm:$0xff]  ;;  %v672_v10 = vmul.f32 %v639_v7, %v639_v7  ;;  %s11648_s16 = sshll.u32 %s9343_s25, 12  ;;  %s12170_s26 = sld [smem:[#allocation114_spill]] }
  0xe8   : > { %v674_v6 = vmul.f32 %v641_v2, %v641_v2  ;;  %v640_v8 = vld [vmem:[%s9595_s30 + $0x18] sm:$0xff]  ;;  %v675_v9 = vmul.f32 %v642_v5, %v642_v5  ;;  %v643_v12 = vld [vmem:[%s9595_s30 + $0x30] sm:$0xff]  ;;  %v645_v19 = vld [vmem:[%s9595_s30 + $0x40] sm:$0xff]  ;;  %s6805_s1 = sshll.u32 %s10092_s15, 4  ;;  %p12171_p9 = scmp.ne.s32.totalorder %s11972_s5, 0  ;;  %s11657_s1 = int_to_ptr.vmem [resolvable:$true] %s6805_s1 }
  0xe9   : > { %v673_v11 = vmul.f32 %v640_v8, %v640_v8  ;;  %v644_v13 = vld [vmem:[%s9595_s30 + $0x38] sm:$0xff]  ;;  %v647_v14 = vld [vmem:[%s9595_s30 + $0x50] sm:$0xff]  ;;  %v702_v15 = vadd.f32 %v671_v4, %v670_v3  ;;  %v676_v16 = vmul.f32 %v643_v12, %v643_v12  ;;  %v646_v20 = vld [vmem:[%s9595_s30 + $0x48] sm:$0xff]  ;;  %v678_v23 = vmul.f32 %v645_v19, %v645_v19  ;;  %s9092_s29 = scalar_lea.vmem %s11657_s1, 4096  ;;  %s9252_s25 = smov [#allocation17]  }
  0xea   : > { %v677_v17 = vmul.f32 %v644_v13, %v644_v13  ;;  %v648_v18 = vld [vmem:[%s9595_s30 + $0x58] sm:$0xff]  ;;  %v708_v21 = vadd.f32 %v675_v9, %v674_v6  ;;  %v679_v24 = vmul.f32 %v646_v20, %v646_v20  ;;  %v680_v26 = vmul.f32 %v647_v14, %v647_v14  ;;  %v649_v28 = vld [vmem:[%s9595_s30 + $0x60] sm:$0xff]  ;;  %v650_v29 = vld [vmem:[%s9595_s30 + $0x68] sm:$0xff]  ;;  %p9093_p11 = scmp.ne.s32.totalorder %s11657_s1, %s9092_s29  ;;  %s9096_s10 = sshll.u32 %s9252_s25, 4  ;;  %s9097_s10 = int_to_ptr.vmem [resolvable:$false] %s9096_s10 }
  0xeb   : > { %703 = vadd.xlane.f32.xlu0 %v702_v15  ;;  %v705_v22 = vadd.f32 %v673_v11, %v672_v10  ;;  %v681_v27 = vmul.f32 %v648_v18, %v648_v18  ;;  %v651_v30 = vld [vmem:[%s9595_s30 + $0x70] sm:$0xff]  ;;  %v652_v31 = vld [vmem:[%s9595_s30 + $0x78] sm:$0xff]  ;;  %v682_v33 = vmul.f32 %v649_v28, %v649_v28  ;;  %v683_v34 = vmul.f32 %v650_v29, %v650_v29  ;;  %v653_v40 = vld [vmem:[%s9595_s30 + $0x80] sm:$0xff]  ;;  %p9099_p13 = scmp.lt.s32.totalorder %s11657_s1, %s9097_s10 }
  0xec   : > { %709 = vadd.xlane.f32.xlu1 %v708_v21  ;;  %v711_v25 = vadd.f32 %v677_v17, %v676_v16  ;;  %v714_v32 = vadd.f32 %v679_v24, %v678_v23  ;;  %v655_v35 = vld [vmem:[%s9595_s30 + $0x90] sm:$0xff]  ;;  %v656_v36 = vld [vmem:[%s9595_s30 + $0x98] sm:$0xff]  ;;  %v684_v38 = vmul.f32 %v651_v30, %v651_v30  ;;  %v685_v39 = vmul.f32 %v652_v31, %v652_v31  ;;  %v654_v41 = vld [vmem:[%s9595_s30 + $0x88] sm:$0xff]  ;;  %p9094_p7 = pnand %p9093_p11, %p12171_p9 }
  0xed   : > { %v717_v37 = vadd.f32 %v681_v27, %v680_v26  ;;  %v7974_v42 = vld [vmem:[#allocation10 + $0x234] ss:$40 sps:$4 sm:$0xff]   ;;  %v657_v43 = vld [vmem:[%s9595_s30 + $0xa0] sm:$0xff]  ;;  %v658_v44 = vld [vmem:[%s9595_s30 + $0xa8] sm:$0xff]  ;;  %v720_v47 = vadd.f32 %v683_v34, %v682_v33  ;;  %v686_v48 = vmul.f32 %v653_v40, %v653_v40  ;;  %v687_v49 = vmul.f32 %v654_v41, %v654_v41  ;;  %s11654_s17 = scalar_lea.hbm %s12170_s26, %s11648_s16 }
  0xee   : > { %v7976_v45 = vld [vmem:[#allocation10 + $0x23c] ss:$40 sps:$4 sm:$0xff]   ;;  %v7978_v46 = vld [vmem:[#allocation10 + $0x230] ss:$40 sps:$4 sm:$0xff]   ;;  %1850 = vmatprep.subr.bf16.mxu0 %v7974_v42  ;;  %v723_v53 = vadd.f32 %v685_v39, %v684_v38  ;;  %v688_v54 = vmul.f32 %v655_v35, %v655_v35  ;;  %v689_v55 = vmul.f32 %v656_v36, %v656_v36  ;;  %v7982_v57 = vld [vmem:[#allocation10 + $0x1ec] ss:$40 sps:$4 sm:$0xff]   ;;  %v690_v63 = vmul.f32 %v657_v43, %v657_v43  ;;  %p9095_p2 = pneg %p9094_p7 }
  0xef   : > { %706 = vadd.xlane.f32.xlu0 %v705_v22  ;;  %v659_v50 = vld [vmem:[%s9595_s30 + $0xb0] sm:$0xff]  ;;  %v660_v51 = vld [vmem:[%s9595_s30 + $0xb8] sm:$0xff]  ;;  %1963 = vmatprep.subr.bf16.mxu1 %v7976_v45  ;;  %v7980_v56 = vld [vmem:[#allocation10 + $0x1e4] ss:$40 sps:$4 sm:$0xff]   ;;  %v726_v62 = vadd.f32 %v687_v49, %v686_v48  ;;  %v691_v0 = vmul.f32 %v658_v44, %v658_v44 }
  0xf0   : > { %712 = vadd.xlane.f32.xlu1 %v711_v25  ;;  %v7979_v52 = vld [vmem:[#allocation10 + $0x238] ss:$40 sps:$4 sm:$0xff]   ;;  %1851 = vmatpush1.bf16.msra.mxu0 %v7978_v46  ;;  %v7985_v59 = vld [vmem:[#allocation10 + $0x1e8] ss:$40 sps:$4 sm:$0xff]   ;;  %v7986_v61 = vld [vmem:[#allocation10 + $0x194] ss:$40 sps:$4 sm:$0xff]   ;;  %v729_v4 = vadd.f32 %v689_v55, %v688_v54  ;;  %v692_v5 = vmul.f32 %v659_v50, %v659_v50  ;;  %v693_v6 = vmul.f32 %v660_v51, %v660_v51 }
  0xf1   : > { %1964 = vmatpush1.bf16.msra.mxu1 %v7979_v52  ;;  %v7984_v58 = vld [vmem:[#allocation10 + $0x1e0] ss:$40 sps:$4 sm:$0xff]   ;;  %1852 = vmatprep.subr.bf16.mxu0 %v7980_v56  ;;  %v663_v1 = vld [vmem:[%s9595_s30 + $0xd0] sm:$0xff]  ;;  %v664_v2 = vld [vmem:[%s9595_s30 + $0xd8] sm:$0xff]  ;;  %v732_v12 = vadd.f32 %v691_v0, %v690_v63 }
  0xf2   : > { %v661_v60 = vld [vmem:[%s9595_s30 + $0xc0] sm:$0xff]  ;;  %1965 = vmatprep.subr.bf16.mxu1 %v7982_v57  ;;  %v662_v7 = vld [vmem:[%s9595_s30 + $0xc8] sm:$0xff]  ;;  %v7990_v8 = vld [vmem:[#allocation10 + $0x190] ss:$40 sps:$4 sm:$0xff]   ;;  %v735_v18 = vadd.f32 %v693_v6, %v692_v5  ;;  %v696_v19 = vmul.f32 %v663_v1, %v663_v1  ;;  %v697_v20 = vmul.f32 %v664_v2, %v664_v2 }
  0xf3   : > { %715 = vadd.xlane.f32.xlu0 %v714_v32  ;;  %v7988_v3 = vld [vmem:[#allocation10 + $0x19c] ss:$40 sps:$4 sm:$0xff]   ;;  %v7991_v9 = vld [vmem:[#allocation10 + $0x198] ss:$40 sps:$4 sm:$0xff]   ;;  %v7994_v11 = vld [vmem:[#allocation10 + $0x14c] ss:$40 sps:$4 sm:$0xff]   ;;  %v694_v13 = vmul.f32 %v661_v60, %v661_v60  ;;  %v695_v14 = vmul.f32 %v662_v7, %v662_v7 }
  0xf4   : > { %718 = vadd.xlane.f32.xlu1 %v717_v37  ;;  %1853 = vmatpush1.bf16.msra.mxu0 %v7984_v58  ;;  %v7992_v10 = vld [vmem:[#allocation10 + $0x144] ss:$40 sps:$4 sm:$0xff]   ;;  %v667_v15 = vld [vmem:[%s9595_s30 + $0xf0] sm:$0xff]  ;;  %v668_v16 = vld [vmem:[%s9595_s30 + $0xf8] sm:$0xff]  ;;  %v741_v29 = vadd.f32 %v697_v20, %v696_v19 }
  0xf5   : > { %1966 = vmatpush1.bf16.msra.mxu1 %v7985_v59  ;;  %1854 = vmatprep.subr.bf16.mxu0 %v7986_v61  ;;  %v665_v17 = vld [vmem:[%s9595_s30 + $0xe0] sm:$0xff]  ;;  %v666_v21 = vld [vmem:[%s9595_s30 + $0xe8] sm:$0xff]  ;;  %v7998_v24 = vld [vmem:[#allocation10 + $0xf4] ss:$40 sps:$4 sm:$0xff]   ;;  %v738_v26 = vadd.f32 %v695_v14, %v694_v13  ;;  %v700_v30 = vmul.f32 %v667_v15, %v667_v15  ;;  %v701_v31 = vmul.f32 %v668_v16, %v668_v16 }
  0xf6   : > { %1967 = vmatprep.subr.bf16.mxu1 %v7988_v3  ;;  %v7996_v22 = vld [vmem:[#allocation10 + $0x140] ss:$40 sps:$4 sm:$0xff]   ;;  %v8000_v25 = vld [vmem:[#allocation10 + $0xfc] ss:$40 sps:$4 sm:$0xff]   ;;  %v698_v27 = vmul.f32 %v665_v17, %v665_v17  ;;  %v699_v28 = vmul.f32 %v666_v21, %v666_v21  ;;  %v8002_v32 = vld [vmem:[#allocation10 + $0xf0] ss:$40 sps:$4 sm:$0xff]  }
  0xf7   : > { %721 = vadd.xlane.f32.xlu0 %v720_v47  ;;  %v7997_v23 = vld [vmem:[#allocation10 + $0x148] ss:$40 sps:$4 sm:$0xff]   ;;  %v8003_v33 = vld [vmem:[#allocation10 + $0xf8] ss:$40 sps:$4 sm:$0xff]   ;;  %v8004_v34 = vld [vmem:[#allocation10 + $0xa4] ss:$40 sps:$4 sm:$0xff]   ;;  %v747_v37 = vadd.f32 %v701_v31, %v700_v30 }
  0xf8   : > { %724 = vadd.xlane.f32.xlu1 %v723_v53  ;;  %1855 = vmatpush1.bf16.msra.mxu0 %v7990_v8  ;;  %v8006_v35 = vld [vmem:[#allocation10 + $0xac] ss:$40 sps:$4 sm:$0xff]   ;;  %v744_v36 = vadd.f32 %v699_v28, %v698_v27  ;;  %v8008_v38 = vld [vmem:[#allocation10 + $0xa0] ss:$40 sps:$4 sm:$0xff]   ;;  %v8012_v41 = vld [vmem:[#allocation10 + $0x5c] ss:$40 sps:$4 sm:$0xff]  }
  0xf9   : > { %1968 = vmatpush1.bf16.msra.mxu1 %v7991_v9  ;;  %1856 = vmatprep.subr.bf16.mxu0 %v7992_v10  ;;  %v8009_v39 = vld [vmem:[#allocation10 + $0xa8] ss:$40 sps:$4 sm:$0xff]   ;;  %v8010_v40 = vld [vmem:[#allocation10 + $0x54] ss:$40 sps:$4 sm:$0xff]   ;;  %v8015_v43 = vld [vmem:[#allocation10 + $0x58] ss:$40 sps:$4 sm:$0xff]  }
  0xfa   : > { %1969 = vmatprep.subr.bf16.mxu1 %v7994_v11  ;;  %v8014_v42 = vld [vmem:[#allocation10 + $0x50] ss:$40 sps:$4 sm:$0xff]   ;;  %v8016_v44 = vld [vmem:[#allocation10 + $0x4] ss:$40 sps:$4 sm:$0xff]   ;;  %v8020_v46 = vld [vmem:[#allocation10] ss:$40 sps:$4 sm:$0xff]  }
  0xfb   : > { %727 = vadd.xlane.f32.xlu0 %v726_v62  ;;  %v8018_v45 = vld [vmem:[#allocation10 + $0xc] ss:$40 sps:$4 sm:$0xff]   ;;  %v8021_v47 = vld [vmem:[#allocation10 + $0x8] ss:$40 sps:$4 sm:$0xff]   ;;  %v8024_v49 = vld [vmem:[#allocation10 + $0x4bc] ss:$40 sps:$4 sm:$0xff]  }
  0xfc   : > { %730 = vadd.xlane.f32.xlu1 %v729_v4  ;;  %1857 = vmatpush1.bf16.msra.mxu0 %v7996_v22  ;;  %v8022_v48 = vld [vmem:[#allocation10 + $0x4b4] ss:$40 sps:$4 sm:$0xff]   ;;  %v8026_v50 = vld [vmem:[#allocation10 + $0x4b0] ss:$40 sps:$4 sm:$0xff]   ;;  %v8028_v52 = vld [vmem:[#allocation10 + $0x464] ss:$40 sps:$4 sm:$0xff]  }
  0xfd   : > { %1970 = vmatpush1.bf16.msra.mxu1 %v7997_v23  ;;  %1858 = vmatprep.subr.bf16.mxu0 %v7998_v24  ;;  %v8027_v51 = vld [vmem:[#allocation10 + $0x4b8] ss:$40 sps:$4 sm:$0xff]   ;;  %v8030_v53 = vld [vmem:[#allocation10 + $0x46c] ss:$40 sps:$4 sm:$0xff]   ;;  %v8033_v55 = vld [vmem:[#allocation10 + $0x468] ss:$40 sps:$4 sm:$0xff]  }
  0xfe   : > { %1971 = vmatprep.subr.bf16.mxu1 %v8000_v25  ;;  %v8032_v54 = vld [vmem:[#allocation10 + $0x460] ss:$40 sps:$4 sm:$0xff]   ;;  %v8034_v56 = vld [vmem:[#allocation10 + $0x414] ss:$40 sps:$4 sm:$0xff]   ;;  %v8038_v58 = vld [vmem:[#allocation10 + $0x410] ss:$40 sps:$4 sm:$0xff]  }
  0xff   : > { %733 = vadd.xlane.f32.xlu0 %v732_v12  ;;  %v8036_v57 = vld [vmem:[#allocation10 + $0x41c] ss:$40 sps:$4 sm:$0xff]   ;;  %v8039_v59 = vld [vmem:[#allocation10 + $0x418] ss:$40 sps:$4 sm:$0xff]   ;;  %v8042_v61 = vld [vmem:[#allocation10 + $0x3cc] ss:$40 sps:$4 sm:$0xff]  }
 0x100   : > { %736 = vadd.xlane.f32.xlu1 %v735_v18  ;;  %1859 = vmatpush1.bf16.msra.mxu0 %v8002_v32  ;;  %v8040_v60 = vld [vmem:[#allocation10 + $0x3c4] ss:$40 sps:$4 sm:$0xff]   ;;  %v8044_v62 = vld [vmem:[#allocation10 + $0x3c0] ss:$40 sps:$4 sm:$0xff]   ;;  %v8046_v0 = vld [vmem:[#allocation10 + $0x374] ss:$40 sps:$4 sm:$0xff]  }
 0x101   : > { %1972 = vmatpush1.bf16.msra.mxu1 %v8003_v33  ;;  %1860 = vmatprep.subr.bf16.mxu0 %v8004_v34  ;;  %v8045_v63 = vld [vmem:[#allocation10 + $0x3c8] ss:$40 sps:$4 sm:$0xff]   ;;  %v8048_v1 = vld [vmem:[#allocation10 + $0x37c] ss:$40 sps:$4 sm:$0xff]   ;;  %v8051_v3 = vld [vmem:[#allocation10 + $0x378] ss:$40 sps:$4 sm:$0xff]  }
 0x102   : > { %1973 = vmatprep.subr.bf16.mxu1 %v8006_v35  ;;  %v8050_v2 = vld [vmem:[#allocation10 + $0x370] ss:$40 sps:$4 sm:$0xff]   ;;  %v8052_v4 = vld [vmem:[#allocation10 + $0x324] ss:$40 sps:$4 sm:$0xff]   ;;  %v8056_v6 = vld [vmem:[#allocation10 + $0x320] ss:$40 sps:$4 sm:$0xff]  }
 0x103   : > { %739 = vadd.xlane.f32.xlu0 %v738_v26  ;;  %v8054_v5 = vld [vmem:[#allocation10 + $0x32c] ss:$40 sps:$4 sm:$0xff]   ;;  %v8057_v7 = vld [vmem:[#allocation10 + $0x328] ss:$40 sps:$4 sm:$0xff]   ;;  %v8060_v9 = vld [vmem:[#allocation10 + $0x2dc] ss:$40 sps:$4 sm:$0xff]  }
 0x104   : > { %742 = vadd.xlane.f32.xlu1 %v741_v29  ;;  %1861 = vmatpush1.bf16.msra.mxu0 %v8008_v38  ;;  %v8058_v8 = vld [vmem:[#allocation10 + $0x2d4] ss:$40 sps:$4 sm:$0xff]   ;;  %v8062_v10 = vld [vmem:[#allocation10 + $0x2d0] ss:$40 sps:$4 sm:$0xff]   ;;  %v8064_v12 = vld [vmem:[#allocation10 + $0x284] ss:$40 sps:$4 sm:$0xff]   ;;  %v832_v29 = vlaneseq }
 0x105   : > { %1974 = vmatpush1.bf16.msra.mxu1 %v8009_v39  ;;  %1862 = vmatprep.subr.bf16.mxu0 %v8010_v40  ;;  %v8063_v11 = vld [vmem:[#allocation10 + $0x2d8] ss:$40 sps:$4 sm:$0xff]   ;;  %v8066_v13 = vld [vmem:[#allocation10 + $0x28c] ss:$40 sps:$4 sm:$0xff]   ;;  %v8069_v15 = vld [vmem:[#allocation10 + $0x288] ss:$40 sps:$4 sm:$0xff]  }
 0x106   : > { %1975 = vmatprep.subr.bf16.mxu1 %v8012_v41  ;;  %v8068_v14 = vld [vmem:[#allocation10 + $0x280] ss:$40 sps:$4 sm:$0xff]   ;;  %v8072_v16 = vld [vmem:[#allocation10 + $0x244] ss:$40 sps:$4 sm:$0xff]  }
 0x107   : > { %745 = vadd.xlane.f32.xlu0 %v744_v36  ;;  %v8075_v17 = vld [vmem:[#allocation10 + $0x24c] ss:$40 sps:$4 sm:$0xff]   ;;  %v9666_v36 = vshrl.u32 %v832_v29, 7 }
 0x108   : > { %748 = vadd.xlane.f32.xlu1 %v747_v37  ;;  %1863 = vmatpush1.bf16.msra.mxu0 %v8014_v42  ;;  %v8815_v29 = vld [vmem:[%s9595_s30 + $0x48] sm:$0xff] }
 0x109   : > { %1976 = vmatpush1.bf16.msra.mxu1 %v8015_v43  ;;  %1864 = vmatprep.subr.bf16.mxu0 %v8016_v44  ;;  %11993 = vst [vmem:[#allocation33_spill] sm:$0xff] %v9666_v36  ;;  %v11867_v42 = vsub.s32 1, %v9666_v36  ;;  %v669_v44 = vld [vmem:[%s11837_s4] sm:$0x3] }
 0x10a   : > { %1977 = vmatprep.subr.bf16.mxu1 %v8018_v45 }
 0x10c   : > { %1865 = vmatpush1.bf16.msra.mxu0 %v8020_v46  ;;  %v11868_v46 = vsub.s32 0, %v9666_v36 }
 0x10d   : > { %1978 = vmatpush1.bf16.msra.mxu1 %v8021_v47  ;;  %1866 = vmatprep.subr.bf16.mxu0 %v8022_v48 }
 0x10e   : > { %1979 = vmatprep.subr.bf16.mxu1 %v8024_v49 }
 0x110   : > { %1867 = vmatpush2.bf16.msra.mxu0 %v8026_v50 }
 0x111   : > { %1980 = vmatpush2.bf16.msra.mxu1 %v8027_v51  ;;  %1868 = vmatprep.subr.bf16.mxu0 %v8028_v52  ;;  %v9675_v51 = vrot.slane %v669_v44, %v11867_v42  ;;  %v8806_v52 = vld [vmem:[%s9595_s30 + $0x28] sm:$0xff] }
 0x112   : > { %1981 = vmatprep.subr.bf16.mxu1 %v8030_v53 }
 0x114   : > { %1869 = vmatpush2.bf16.msra.mxu0 %v8032_v54 }
 0x115   : > { %1982 = vmatpush2.bf16.msra.mxu1 %v8033_v55  ;;  %1870 = vmatprep.subr.bf16.mxu0 %v8034_v56  ;;  %v8807_v56 = vld [vmem:[%s9595_s30] sm:$0xff] }
 0x116   : > { %1983 = vmatprep.subr.bf16.mxu1 %v8036_v57 }
 0x118   : > { %1871 = vmatpush2.bf16.msra.mxu0 %v8038_v58  ;;  %v8808_v58 = vld [vmem:[%s9595_s30 + $0x8] sm:$0xff] }
 0x119   : > { %1984 = vmatpush2.bf16.msra.mxu1 %v8039_v59  ;;  %1872 = vmatprep.subr.bf16.mxu0 %v8040_v60  ;;  %v9682_v60 = vrot.slane %v669_v44, %v11868_v46 }
 0x11a   : > { %1985 = vmatprep.subr.bf16.mxu1 %v8042_v61 }
 0x11c   : > { %1873 = vmatpush2.bf16.msra.mxu0 %v8044_v62 }
 0x11d   : > { %1986 = vmatpush2.bf16.msra.mxu1 %v8045_v63  ;;  %1874 = vmatprep.subr.bf16.mxu0 %v8046_v0  ;;  %v8809_v63 = vld [vmem:[%s9595_s30 + $0x10] sm:$0xff] }
 0x11e   : > { %1987 = vmatprep.subr.bf16.mxu1 %v8048_v1  ;;  %v8810_v1 = vld [vmem:[%s9595_s30 + $0x18] sm:$0xff] }
 0x120   : > { %1875 = vmatpush2.bf16.msra.mxu0 %v8050_v2 }
 0x121   : > { %1988 = vmatpush2.bf16.msra.mxu1 %v8051_v3  ;;  %1876 = vmatprep.subr.bf16.mxu0 %v8052_v4  ;;  %v8811_v3 = vld [vmem:[%s9595_s30 + $0x38] sm:$0xff] }
 0x122   : > { %1989 = vmatprep.subr.bf16.mxu1 %v8054_v5 }
 0x124   : > { %1877 = vmatpush2.bf16.msra.mxu0 %v8056_v6 }
 0x125   : > { %1990 = vmatpush2.bf16.msra.mxu1 %v8057_v7  ;;  %1878 = vmatprep.subr.bf16.mxu0 %v8058_v8 }
 0x126   : > { %1991 = vmatprep.subr.bf16.mxu1 %v8060_v9 }
 0x128   : > { %1879 = vmatpush2.bf16.msra.mxu0 %v8062_v10 }
 0x129   : > { %1992 = vmatpush2.bf16.msra.mxu1 %v8063_v11  ;;  %1880 = vmatprep.subr.bf16.mxu0 %v8064_v12 }
 0x12a   : > { %1993 = vmatprep.subr.bf16.mxu1 %v8066_v13 }
 0x12c   : > { %1881 = vmatpush2.bf16.msra.mxu0 %v8068_v14 }
 0x12d   : > { %1994 = vmatpush2.bf16.msra.mxu1 %v8069_v15  ;;  %2076 = vmatprep.subr.bf16.mxu0 %v8072_v16 }
 0x12e   : > { %2189 = vmatprep.subr.bf16.mxu1 %v8075_v17  ;;  %v8812_v17 = vld [vmem:[%s9595_s30 + $0x20] sm:$0xff] }
 0x174   : > { %v704_v18 = vpop.xlane.xlu0 %703 }
 0x175   : > { %v751_v19 = vmul.f32 0.00390625, %v704_v18  ;;  %v710_v20 = vpop.xlane.xlu1 %709 }
 0x176   : > { %v753_v21 = vmul.f32 0.00390625, %v710_v20  ;;  %v8070_v20 = vld [vmem:[#allocation10 + $0x240] ss:$40 sps:$4 sm:$0xff]  }
 0x177   : > { %v767_v22 = vadd.f32 1e-06, %v751_v19 }
 0x178   : > { %v769_v23 = vadd.f32 1e-06, %v753_v21  ;;  %v707_v24 = vpop.xlane.xlu0 %706  ;;  %v8073_v21 = vld [vmem:[#allocation10 + $0x248] ss:$40 sps:$4 sm:$0xff]  }
 0x179   : > { %8358 = vrsqrt.f32 %v767_v22  ;;  %v752_v25 = vmul.f32 0.00390625, %v707_v24  ;;  %v713_v26 = vpop.xlane.xlu1 %712 }
 0x17a   : > { %8360 = vrsqrt.f32 %v769_v23  ;;  %v754_v27 = vmul.f32 0.00390625, %v713_v26  ;;  %v8813_v23 = vld [vmem:[%s9595_s30 + $0x30] sm:$0xff] }
 0x17b   : > { %v768_v28 = vadd.f32 1e-06, %v752_v25 }
 0x17c   : > { %v770_v30 = vadd.f32 1e-06, %v754_v27  ;;  %v716_v31 = vpop.xlane.xlu0 %715  ;;  %v8814_v27 = vld [vmem:[%s9595_s30 + $0x58] sm:$0xff] }
 0x17d   : > { %8362 = vrsqrt.f32 %v768_v28  ;;  %v719_v32 = vpop.xlane.xlu1 %718  ;;  %v755_v33 = vmul.f32 0.00390625, %v716_v31  ;;  %v8078_v31 = vld [vmem:[#allocation10 + $0x1f4] ss:$40 sps:$4 sm:$0xff]  }
 0x17e   : > { %8364 = vrsqrt.f32 %v770_v30  ;;  %v756_v34 = vmul.f32 0.00390625, %v719_v32  ;;  %v8081_v32 = vld [vmem:[#allocation10 + $0x1fc] ss:$40 sps:$4 sm:$0xff]  }
 0x17f   : > { %v771_v35 = vadd.f32 1e-06, %v755_v33 }
 0x180   : > { %v772_v37 = vadd.f32 1e-06, %v756_v34  ;;  %v722_v38 = vpop.xlane.xlu0 %721  ;;  %v8076_v34 = vld [vmem:[#allocation10 + $0x1f0] ss:$40 sps:$4 sm:$0xff]  }
 0x181   : > { %8366 = vrsqrt.f32 %v771_v35  ;;  %v725_v39 = vpop.xlane.xlu1 %724  ;;  %v757_v40 = vmul.f32 0.00390625, %v722_v38  ;;  %v8079_v35 = vld [vmem:[#allocation10 + $0x1f8] ss:$40 sps:$4 sm:$0xff]   ;;  %v8087_v38 = vld [vmem:[#allocation10 + $0x1ac] ss:$40 sps:$4 sm:$0xff]  }
 0x182   : > { %8368 = vrsqrt.f32 %v772_v37  ;;  %v758_v41 = vmul.f32 0.00390625, %v725_v39  ;;  %v8084_v37 = vld [vmem:[#allocation10 + $0x1a4] ss:$40 sps:$4 sm:$0xff]  }
 0x183   : > { %v773_v43 = vadd.f32 1e-06, %v757_v40 }
 0x184   : > { %v774_v45 = vadd.f32 1e-06, %v758_v41  ;;  %v728_v48 = vpop.xlane.xlu0 %727 }
 0x185   : > { %v731_v47 = vpop.xlane.xlu1 %730  ;;  %8370 = vrsqrt.f32 %v773_v43  ;;  %v759_v55 = vmul.f32 0.00390625, %v728_v48 }
 0x186   : > { %v8359_v49 = vpop.eup %8358  ;;  %v760_v54 = vmul.f32 0.00390625, %v731_v47  ;;  %8372 = vrsqrt.f32 %v774_v45 }
 0x187   : > { %v8361_v50 = vpop.eup %8360  ;;  %v799_v57 = vmul.f32 %v8807_v56, %v8359_v49  ;;  %v800_v59 = vmul.f32 %v8808_v58, %v8359_v49  ;;  %v775_v7 = vadd.f32 1e-06, %v759_v55  ;;  %v8082_v56 = vld [vmem:[#allocation10 + $0x1a0] ss:$40 sps:$4 sm:$0xff]  }
 0x188   : > { %v804_v53 = vmul.f32 %v8806_v52, %v8361_v50  ;;  %v776_v6 = vadd.f32 1e-06, %v760_v54  ;;  %v734_v12 = vpop.xlane.xlu0 %733  ;;  %v803_v18 = vmul.f32 %v8812_v17, %v8361_v50  ;;  %v8816_v52 = vld [vmem:[%s9595_s30 + $0x50] sm:$0xff]  ;;  %v8817_v54 = vld [vmem:[%s9595_s30 + $0x40] sm:$0xff] }
 0x189   : > { %v843_v8 = vmul.f32 %v9675_v51, %v800_v59  ;;  %v842_v10 = vmul.f32 %v9682_v60, %v799_v57  ;;  %v737_v15 = vpop.xlane.xlu1 %736  ;;  %8374 = vrsqrt.f32 %v775_v7  ;;  %v761_v26 = vmul.f32 0.00390625, %v734_v12  ;;  %v8085_v57 = vld [vmem:[#allocation10 + $0x1a8] ss:$40 sps:$4 sm:$0xff]   ;;  %v8090_v59 = vld [vmem:[#allocation10 + $0x154] ss:$40 sps:$4 sm:$0xff]  }
 0x18a   : > { %v8363_v61 = vpop.eup %8362  ;;  %v847_v5 = vmul.f32 %v9675_v51, %v804_v53  ;;  %8376 = vrsqrt.f32 %v776_v6  ;;  %v762_v33 = vmul.f32 0.00390625, %v737_v15  ;;  %v846_v39 = vmul.f32 %v9682_v60, %v803_v18  ;;  %v8088_v7 = vld [vmem:[#allocation10 + $0x150] ss:$40 sps:$4 sm:$0xff]  }
 0x18b   : > { %v8365_v62 = vpop.eup %8364  ;;  %v801_v0 = vmul.f32 %v8809_v63, %v8363_v61  ;;  %v802_v2 = vmul.f32 %v8810_v1, %v8363_v61  ;;  %v777_v41 = vadd.f32 1e-06, %v761_v26  ;;  %v8093_v61 = vld [vmem:[#allocation10 + $0x15c] ss:$40 sps:$4 sm:$0xff]  }
 0x18c   : > { %v806_v4 = vmul.f32 %v8811_v3, %v8365_v62  ;;  %v805_v24 = vmul.f32 %v8813_v23, %v8365_v62  ;;  %v778_v44 = vadd.f32 1e-06, %v762_v33  ;;  %v740_v49 = vpop.xlane.xlu0 %739  ;;  %v8821_v23 = vld [vmem:[%s9595_s30 + $0x60] sm:$0xff]  ;;  %v8822_v33 = vld [vmem:[%s9595_s30 + $0x98] sm:$0xff] }
 0x18d   : > { %v845_v9 = vmul.f32 %v9675_v51, %v802_v2  ;;  %v844_v11 = vmul.f32 %v9682_v60, %v801_v0  ;;  %v743_v48 = vpop.xlane.xlu1 %742  ;;  %8378 = vrsqrt.f32 %v777_v41  ;;  %v763_v63 = vmul.f32 0.00390625, %v740_v49  ;;  %v8818_v0 = vld [vmem:[%s9595_s30 + $0x78] sm:$0xff]  ;;  %v8819_v2 = vld [vmem:[%s9595_s30 + $0x68] sm:$0xff] }
 0x18e   : > { %v8367_v13 = vpop.eup %8366  ;;  %v849_v14 = vmul.f32 %v9675_v51, %v806_v4  ;;  %v848_v40 = vmul.f32 %v9682_v60, %v805_v24  ;;  %v764_v62 = vmul.f32 0.00390625, %v743_v48  ;;  %8380 = vrsqrt.f32 %v778_v44  ;;  %v8100_v41 = vld [vmem:[#allocation10 + $0xb0] ss:$40 sps:$4 sm:$0xff]   ;;  %v8108_v44 = vld [vmem:[#allocation10 + $0x64] ss:$40 sps:$4 sm:$0xff]  }
 0x18f   : > { %v8369_v16 = vpop.eup %8368  ;;  %v9694_v19 = vpack.c.bf16 %v845_v9, %v843_v8  ;;  %v9696_v22 = vpack.c.bf16 %v844_v11, %v842_v10  ;;  %v808_v30 = vmul.f32 %v8815_v29, %v8367_v13  ;;  %v807_v55 = vmul.f32 %v8817_v54, %v8367_v13  ;;  %v8091_v8 = vld [vmem:[#allocation10 + $0x158] ss:$40 sps:$4 sm:$0xff]   ;;  %v8096_v9 = vld [vmem:[#allocation10 + $0x104] ss:$40 sps:$4 sm:$0xff]   ;;  %v8102_v29 = vld [vmem:[#allocation10 + $0xb4] ss:$40 sps:$4 sm:$0xff]  }
 0x190   : > { %v9699_v25 = vpack.c.bf16 %v849_v14, %v847_v5  ;;  %v810_v28 = vmul.f32 %v8814_v27, %v8369_v16  ;;  %v809_v53 = vmul.f32 %v8816_v52, %v8369_v16  ;;  %v9715_v58 = vpack.c.bf16 %v848_v40, %v846_v39  ;;  %v8099_v10 = vld [vmem:[#allocation10 + $0x10c] ss:$40 sps:$4 sm:$0xff]   ;;  %v746_v17 = vpop.xlane.xlu0 %745  ;;  %v8094_v27 = vld [vmem:[#allocation10 + $0x100] ss:$40 sps:$4 sm:$0xff]  }
 0x191   : > { %1882 = vmatprep.mubr.bf16.mxu0 %v9694_v19  ;;  %1995 = vmatprep.mubr.bf16.mxu1 %v9694_v19  ;;  %v851_v45 = vmul.f32 %v9675_v51, %v808_v30  ;;  %v850_v5 = vmul.f32 %v9682_v60, %v807_v55  ;;  %v780_v11 = vadd.f32 1e-06, %v764_v62  ;;  %v779_v13 = vadd.f32 1e-06, %v763_v63  ;;  %v749_v16 = vpop.xlane.xlu1 %748  ;;  %v8105_v30 = vld [vmem:[#allocation10 + $0xbc] ss:$40 sps:$4 sm:$0xff]  }
 0x192   : > { %1883 = vmatmul.mubr.bf16.vlgmr.msra.gmra.mxu0 %v9696_v22  ;;  %1996 = vmatmul.mubr.bf16.vlgmr.msra.gmra.mxu1 %v9696_v22  ;;  %v8371_v43 = vpop.eup %8370  ;;  %v853_v47 = vmul.f32 %v9675_v51, %v810_v28  ;;  %v852_v6 = vmul.f32 %v9682_v60, %v809_v53  ;;  %v8097_v28 = vld [vmem:[#allocation10 + $0x108] ss:$40 sps:$4 sm:$0xff]   ;;  %v8114_v63 = vld [vmem:[#allocation10 + $0x14] ss:$40 sps:$4 sm:$0xff]  }
 0x193   : > { %2077 = vmatpush1.bf16.msra.mxu0 %v8070_v20  ;;  %2190 = vmatpush1.bf16.msra.mxu1 %v8073_v21  ;;  %v8373_v50 = vpop.eup %8372  ;;  %v812_v3 = vmul.f32 %v8819_v2, %v8371_v43  ;;  %v8820_v20 = vld [vmem:[%s9595_s30 + $0x70] sm:$0xff]  ;;  %v811_v24 = vmul.f32 %v8821_v23, %v8371_v43  ;;  %8382 = vrsqrt.f32 %v780_v11  ;;  %v8103_v43 = vld [vmem:[#allocation10 + $0xb8] ss:$40 sps:$4 sm:$0xff]   ;;  %v8120_v11 = vld [vmem:[#allocation10 + $0x4c4] ss:$40 sps:$4 sm:$0xff]  }
 0x194   : > { %1892 = vmatprep.mubr.bf16.mxu0 %v9699_v25  ;;  %2005 = vmatprep.mubr.bf16.mxu1 %v9699_v25  ;;  %v814_v1 = vmul.f32 %v8818_v0, %v8373_v50  ;;  %v9719_v4 = vpack.c.bf16 %v853_v47, %v851_v45  ;;  %v813_v21 = vmul.f32 %v8820_v20, %v8373_v50  ;;  %8384 = vrsqrt.f32 %v779_v13  ;;  %v8111_v45 = vld [vmem:[#allocation10 + $0x6c] ss:$40 sps:$4 sm:$0xff]   ;;  %v8109_v62 = vld [vmem:[#allocation10 + $0x68] ss:$40 sps:$4 sm:$0xff]   ;;  %v8117_v0 = vld [vmem:[#allocation10 + $0x1c] ss:$40 sps:$4 sm:$0xff]  }
 0x195   : > { %2078 = vmatprep.subr.bf16.mxu0 %v8078_v31  ;;  %2191 = vmatprep.subr.bf16.mxu1 %v8081_v32  ;;  %v855_v14 = vmul.f32 %v9675_v51, %v812_v3  ;;  %v9731_v26 = vpack.c.bf16 %v852_v6, %v850_v5  ;;  %v766_v31 = vmul.f32 0.00390625, %v749_v16  ;;  %v765_v32 = vmul.f32 0.00390625, %v746_v17  ;;  %v8824_v54 = vld [vmem:[%s9595_s30 + $0x90] sm:$0xff]  ;;  %v8827_v3 = vld [vmem:[%s9595_s30 + $0xa8] sm:$0xff]  ;;  %v8829_v20 = vld [vmem:[%s9595_s30 + $0xa0] sm:$0xff] }
 0x196   : > { %v8375_v12 = vpop.eup %8374  ;;  %v857_v15 = vmul.f32 %v9675_v51, %v814_v1  ;;  %v854_v39 = vmul.f32 %v9682_v60, %v811_v24  ;;  %v856_v40 = vmul.f32 %v9682_v60, %v813_v21  ;;  %v8826_v1 = vld [vmem:[%s9595_s30 + $0xb8] sm:$0xff]  ;;  %v8828_v17 = vld [vmem:[%s9595_s30 + $0xb0] sm:$0xff]  ;;  %v8118_v24 = vld [vmem:[#allocation10 + $0x4c0] ss:$40 sps:$4 sm:$0xff]  }
 0x197   : > { %2079 = vmatpush1.bf16.msra.mxu0 %v8076_v34  ;;  %2192 = vmatpush1.bf16.msra.mxu1 %v8079_v35  ;;  %v8377_v18 = vpop.eup %8376  ;;  %v8823_v35 = vld [vmem:[%s9595_s30 + $0x88] sm:$0xff]  ;;  %v782_v47 = vadd.f32 1e-06, %v766_v31  ;;  %v781_v49 = vadd.f32 1e-06, %v765_v32 }
 0x198   : > { %2080 = vmatprep.subr.bf16.mxu0 %v8084_v37  ;;  %2193 = vmatprep.subr.bf16.mxu1 %v8087_v38  ;;  %v818_v34 = vmul.f32 %v8822_v33, %v8377_v18  ;;  %v816_v37 = vmul.f32 %v8823_v35, %v8375_v12  ;;  %v9735_v38 = vpack.c.bf16 %v857_v15, %v855_v14  ;;  %v8831_v32 = vld [vmem:[%s9595_s30 + $0xc8] sm:$0xff] }
 0x199   : > { %v817_v55 = vmul.f32 %v8824_v54, %v8377_v18  ;;  %8386 = vrsqrt.f32 %v782_v47 }
 0x19a   : > { %1893 = vmatmul.mubr.bf16.gmra.mxu0 %v9715_v58  ;;  %2006 = vmatmul.mubr.bf16.gmra.mxu1 %v9715_v58  ;;  %v8379_v48 = vpop.eup %8378  ;;  %v859_v50 = vmul.f32 %v9675_v51, %v816_v37  ;;  %v861_v52 = vmul.f32 %v9675_v51, %v818_v34  ;;  %8388 = vrsqrt.f32 %v781_v49  ;;  %v8832_v49 = vld [vmem:[%s9595_s30 + $0xd0] sm:$0xff] }
 0x19b   : > { %2081 = vmatpush1.bf16.msra.mxu0 %v8082_v56  ;;  %2194 = vmatpush1.bf16.msra.mxu1 %v8085_v57  ;;  %v8381_v53 = vpop.eup %8380  ;;  %v8825_v56 = vld [vmem:[%s9595_s30 + $0x80] sm:$0xff]  ;;  %v820_v5 = vmul.f32 %v8827_v3, %v8379_v48  ;;  %v819_v21 = vmul.f32 %v8829_v20, %v8379_v48  ;;  %v8145_v20 = vld [vmem:[#allocation10 + $0x388] ss:$40 sps:$4 sm:$0xff]  }
 0x19c   : > { %2082 = vmatprep.subr.bf16.mxu0 %v8090_v59  ;;  %2195 = vmatprep.subr.bf16.mxu1 %v8093_v61  ;;  %v815_v57 = vmul.f32 %v8825_v56, %v8375_v12  ;;  %v9747_v59 = vpack.c.bf16 %v856_v40, %v854_v39  ;;  %v8106_v61 = vld [vmem:[#allocation10 + $0x60] ss:$40 sps:$4 sm:$0xff]   ;;  %v822_v2 = vmul.f32 %v8826_v1, %v8381_v53  ;;  %v8123_v12 = vld [vmem:[#allocation10 + $0x4cc] ss:$40 sps:$4 sm:$0xff]   ;;  %v8124_v39 = vld [vmem:[#allocation10 + $0x470] ss:$40 sps:$4 sm:$0xff]  }
 0x19d   : > { %1902 = vmatprep.mubr.bf16.mxu0 %v9719_v4  ;;  %2015 = vmatprep.mubr.bf16.mxu1 %v9719_v4  ;;  %v9751_v6 = vpack.c.bf16 %v861_v52, %v859_v50  ;;  %v863_v14 = vmul.f32 %v9675_v51, %v820_v5  ;;  %v821_v18 = vmul.f32 %v8828_v17, %v8381_v53  ;;  %v8127_v40 = vld [vmem:[#allocation10 + $0x478] ss:$40 sps:$4 sm:$0xff]   ;;  %v8133_v56 = vld [vmem:[#allocation10 + $0x428] ss:$40 sps:$4 sm:$0xff]  }
 0x19e   : > { %v865_v15 = vmul.f32 %v9675_v51, %v822_v2  ;;  %v862_v35 = vmul.f32 %v9682_v60, %v819_v21  ;;  %v8833_v52 = vld [vmem:[%s9595_s30 + $0xc0] sm:$0xff]  ;;  %v8150_v21 = vld [vmem:[#allocation10 + $0x334] ss:$40 sps:$4 sm:$0xff]  }
 0x19f   : > { %2083 = vmatpush1.bf16.msra.mxu0 %v8088_v7  ;;  %2196 = vmatpush1.bf16.msra.mxu1 %v8091_v8  ;;  %v858_v7 = vmul.f32 %v9682_v60, %v815_v57  ;;  %v860_v8 = vmul.f32 %v9682_v60, %v817_v55  ;;  %v864_v37 = vmul.f32 %v9682_v60, %v821_v18  ;;  %v8130_v55 = vld [vmem:[#allocation10 + $0x420] ss:$40 sps:$4 sm:$0xff]   ;;  %v8138_v57 = vld [vmem:[#allocation10 + $0x3d4] ss:$40 sps:$4 sm:$0xff]  }
 0x1a0   : > { %2084 = vmatprep.subr.bf16.mxu0 %v8096_v9  ;;  %2197 = vmatprep.subr.bf16.mxu1 %v8099_v10  ;;  %v8112_v9 = vld [vmem:[#allocation10 + $0x10] ss:$40 sps:$4 sm:$0xff]   ;;  %v8383_v13 = vpop.eup %8382  ;;  %v9767_v34 = vpack.c.bf16 %v865_v15, %v863_v14  ;;  %v8837_v15 = vld [vmem:[%s9595_s30 + $0xe0] sm:$0xff] }
 0x1a1   : > { %v8115_v10 = vld [vmem:[#allocation10 + $0x18] ss:$40 sps:$4 sm:$0xff]   ;;  %v8385_v16 = vpop.eup %8384  ;;  %v9763_v23 = vpack.c.bf16 %v860_v8, %v858_v7  ;;  %v825_v50 = vmul.f32 %v8832_v49, %v8383_v13  ;;  %v9779_v54 = vpack.c.bf16 %v864_v37, %v862_v35  ;;  %v8157_v37 = vld [vmem:[#allocation10 + $0x2e8] ss:$40 sps:$4 sm:$0xff]  }
 0x1a2   : > { %1903 = vmatmul.mubr.bf16.gmra.mxu0 %v9731_v26  ;;  %2016 = vmatmul.mubr.bf16.gmra.mxu1 %v9731_v26  ;;  %v824_v33 = vmul.f32 %v8831_v32, %v8385_v16  ;;  %v823_v53 = vmul.f32 %v8833_v52, %v8385_v16  ;;  %v8136_v7 = vld [vmem:[#allocation10 + $0x3d0] ss:$40 sps:$4 sm:$0xff]   ;;  %v8142_v18 = vld [vmem:[#allocation10 + $0x380] ss:$40 sps:$4 sm:$0xff]   ;;  %v8159_v32 = vld [vmem:[#allocation10 + $0x2ec] ss:$40 sps:$4 sm:$0xff]  }
 0x1a3   : > { %2085 = vmatpush1.bf16.msra.mxu0 %v8094_v27  ;;  %2198 = vmatpush1.bf16.msra.mxu1 %v8097_v28  ;;  %v8121_v27 = vld [vmem:[#allocation10 + $0x4c8] ss:$40 sps:$4 sm:$0xff]   ;;  %v8126_v28 = vld [vmem:[#allocation10 + $0x474] ss:$40 sps:$4 sm:$0xff]   ;;  %v868_v5 = vmul.f32 %v9682_v60, %v825_v50  ;;  %v8139_v8 = vld [vmem:[#allocation10 + $0x3d8] ss:$40 sps:$4 sm:$0xff]  }
 0x1a4   : > { %2086 = vmatprep.subr.bf16.mxu0 %v8102_v29  ;;  %2199 = vmatprep.subr.bf16.mxu1 %v8105_v30  ;;  %v8129_v29 = vld [vmem:[#allocation10 + $0x47c] ss:$40 sps:$4 sm:$0xff]   ;;  %v866_v3 = vmul.f32 %v9682_v60, %v823_v53  ;;  %v8154_v35 = vld [vmem:[#allocation10 + $0x2e0] ss:$40 sps:$4 sm:$0xff]   ;;  %v8172_v49 = vld [vmem:[#allocation10 + $0x1b0] ss:$40 sps:$4 sm:$0xff]  }
 0x1a5   : > { %1912 = vmatprep.mubr.bf16.mxu0 %v9735_v38  ;;  %2025 = vmatprep.mubr.bf16.mxu1 %v9735_v38  ;;  %v8830_v30 = vld [vmem:[%s9595_s30 + $0xd8] sm:$0xff]  ;;  %v8177_v50 = vld [vmem:[#allocation10 + $0x164] ss:$40 sps:$4 sm:$0xff]   ;;  %v8175_v52 = vld [vmem:[#allocation10 + $0x160] ss:$40 sps:$4 sm:$0xff]  }
 0x1a6   : > { %v826_v31 = vmul.f32 %v8830_v30, %v8383_v13  ;;  %v8836_v13 = vld [vmem:[%s9595_s30 + $0xf0] sm:$0xff]  ;;  %v9795_v17 = vpack.c.bf16 %v868_v5, %v866_v3  ;;  %v8151_v30 = vld [vmem:[#allocation10 + $0x338] ss:$40 sps:$4 sm:$0xff]   ;;  %v8195_v5 = vld [vmem:[#allocation10 + $0x484] ss:$40 sps:$4 sm:$0xff]  }
 0x1a7   : > { %2087 = vmatpush1.bf16.msra.mxu0 %v8100_v41  ;;  %2200 = vmatpush1.bf16.msra.mxu1 %v8103_v43  ;;  %v8132_v41 = vld [vmem:[#allocation10 + $0x424] ss:$40 sps:$4 sm:$0xff]   ;;  %v8180_v53 = vld [vmem:[#allocation10 + $0x114] ss:$40 sps:$4 sm:$0xff]   ;;  %v8190_v3 = vld [vmem:[#allocation10 + $0x4d0] ss:$40 sps:$4 sm:$0xff]  }
 0x1a8   : > { %2088 = vmatprep.subr.bf16.mxu0 %v8108_v44  ;;  %2201 = vmatprep.subr.bf16.mxu1 %v8111_v45  ;;  %v8135_v43 = vld [vmem:[#allocation10 + $0x42c] ss:$40 sps:$4 sm:$0xff]   ;;  %v8387_v44 = vpop.eup %8386  ;;  %v867_v45 = vmul.f32 %v9675_v51, %v824_v33  ;;  %v869_v47 = vmul.f32 %v9675_v51, %v826_v31 }
 0x1a9   : > { %v8389_v48 = vpop.eup %8388  ;;  %v829_v14 = vmul.f32 %v8836_v13, %v8387_v44  ;;  %v8156_v31 = vld [vmem:[#allocation10 + $0x2e4] ss:$40 sps:$4 sm:$0xff]   ;;  %v8202_v13 = vld [vmem:[#allocation10 + $0x390] ss:$40 sps:$4 sm:$0xff]  }
 0x1aa   : > { %1913 = vmatmul.mubr.bf16.gmra.mxu0 %v9747_v59  ;;  %2026 = vmatmul.mubr.bf16.gmra.mxu1 %v9747_v59  ;;  %v9783_v2 = vpack.c.bf16 %v869_v47, %v867_v45  ;;  %v827_v16 = vmul.f32 %v8837_v15, %v8389_v48  ;;  %v8171_v45 = vld [vmem:[#allocation10 + $0x204] ss:$40 sps:$4 sm:$0xff]   ;;  %v8169_v47 = vld [vmem:[#allocation10 + $0x200] ss:$40 sps:$4 sm:$0xff]  }
 0x1ab   : > { %2089 = vmatpush1.bf16.msra.mxu0 %v8106_v61  ;;  %2202 = vmatpush1.bf16.msra.mxu1 %v8109_v62  ;;  %v8141_v61 = vld [vmem:[#allocation10 + $0x3dc] ss:$40 sps:$4 sm:$0xff]   ;;  %v8205_v15 = vld [vmem:[#allocation10 + $0x340] ss:$40 sps:$4 sm:$0xff]  }
 0x1ac   : > { %2090 = vmatprep.subr.bf16.mxu0 %v8114_v63  ;;  %2203 = vmatprep.subr.bf16.mxu1 %v8117_v0  ;;  %v8834_v62 = vld [vmem:[%s9595_s30 + $0xf8] sm:$0xff]  ;;  %v8835_v0 = vld [vmem:[%s9595_s30 + $0xe8] sm:$0xff] }
 0x1ad   : > { %1922 = vmatprep.mubr.bf16.mxu0 %v9751_v6  ;;  %2035 = vmatprep.mubr.bf16.mxu1 %v9751_v6  ;;  %v830_v63 = vmul.f32 %v8834_v62, %v8387_v44  ;;  %v828_v1 = vmul.f32 %v8835_v0, %v8389_v48  ;;  %v8166_v44 = vld [vmem:[#allocation10 + $0x250] ss:$40 sps:$4 sm:$0xff]   ;;  %v8174_v48 = vld [vmem:[#allocation10 + $0x1b4] ss:$40 sps:$4 sm:$0xff]   ;;  %v8187_v0 = vld [vmem:[#allocation10 + $0x20] ss:$40 sps:$4 sm:$0xff]  }
 0x1ae   : > { %v8184_v62 = vld [vmem:[#allocation10 + $0x70] ss:$40 sps:$4 sm:$0xff]  }
 0x1af   : > { %2091 = vmatpush1.bf16.msra.mxu0 %v8112_v9  ;;  %2204 = vmatpush1.bf16.msra.mxu1 %v8115_v10  ;;  %v8144_v9 = vld [vmem:[#allocation10 + $0x384] ss:$40 sps:$4 sm:$0xff]  }
 0x1b0   : > { %2092 = vmatprep.subr.bf16.mxu0 %v8120_v11  ;;  %2205 = vmatprep.subr.bf16.mxu1 %v8123_v12  ;;  %v8147_v10 = vld [vmem:[#allocation10 + $0x38c] ss:$40 sps:$4 sm:$0xff]   ;;  %v871_v11 = vmul.f32 %v9675_v51, %v828_v1  ;;  %v873_v12 = vmul.f32 %v9675_v51, %v830_v63  ;;  %v870_v51 = vmul.f32 %v9682_v60, %v827_v16 }
 0x1b1   : > { %v8189_v63 = vld [vmem:[#allocation10 + $0x24] ss:$40 sps:$4 sm:$0xff]   ;;  %v8192_v1 = vld [vmem:[#allocation10 + $0x4d4] ss:$40 sps:$4 sm:$0xff]  }
 0x1b2   : > { %1923 = vmatmul.mubr.bf16.gmra.mxu0 %v9763_v23  ;;  %2036 = vmatmul.mubr.bf16.gmra.mxu1 %v9763_v23  ;;  %v8210_v16 = vld [vmem:[#allocation10 + $0x2f4] ss:$40 sps:$4 sm:$0xff]  }
 0x1b3   : > { %2093 = vmatpush2.bf16.msra.mxu0 %v8118_v24  ;;  %2206 = vmatpush2.bf16.msra.mxu1 %v8121_v27  ;;  %v8153_v24 = vld [vmem:[#allocation10 + $0x33c] ss:$40 sps:$4 sm:$0xff]   ;;  %v9797_v27 = vpack.c.bf16 %v873_v12, %v871_v11  ;;  %v8199_v11 = vld [vmem:[#allocation10 + $0x3e0] ss:$40 sps:$4 sm:$0xff]  }
 0x1b4   : > { %2094 = vmatprep.subr.bf16.mxu0 %v8126_v28  ;;  %2207 = vmatprep.subr.bf16.mxu1 %v8129_v29  ;;  %v872_v28 = vmul.f32 %v9682_v60, %v829_v14  ;;  %v8148_v29 = vld [vmem:[#allocation10 + $0x330] ss:$40 sps:$4 sm:$0xff]   ;;  %v8162_v60 = vld [vmem:[#allocation10 + $0x294] ss:$40 sps:$4 sm:$0xff]   ;;  %v8207_v14 = vld [vmem:[#allocation10 + $0x344] ss:$40 sps:$4 sm:$0xff]  }
 0x1b5   : > { %1932 = vmatprep.mubr.bf16.mxu0 %v9767_v34  ;;  %2045 = vmatprep.mubr.bf16.mxu1 %v9767_v34  ;;  %v8204_v12 = vld [vmem:[#allocation10 + $0x394] ss:$40 sps:$4 sm:$0xff]  }
 0x1b6   : > { %v9805_v33 = vpack.c.bf16 %v872_v28, %v870_v51 }
 0x1b7   : > { %2095 = vmatpush2.bf16.msra.mxu0 %v8124_v39  ;;  %2208 = vmatpush2.bf16.msra.mxu1 %v8127_v40  ;;  %v8165_v39 = vld [vmem:[#allocation10 + $0x29c] ss:$40 sps:$4 sm:$0xff]   ;;  %v8160_v40 = vld [vmem:[#allocation10 + $0x290] ss:$40 sps:$4 sm:$0xff]  }
 0x1b8   : > { %2096 = vmatprep.subr.bf16.mxu0 %v8132_v41  ;;  %2209 = vmatprep.subr.bf16.mxu1 %v8135_v43  ;;  %v8163_v41 = vld [vmem:[#allocation10 + $0x298] ss:$40 sps:$4 sm:$0xff]   ;;  %v8168_v43 = vld [vmem:[#allocation10 + $0x254] ss:$40 sps:$4 sm:$0xff]  }
 0x1ba   : > { %1933 = vmatmul.mubr.bf16.gmra.mxu0 %v9779_v54  ;;  %2046 = vmatmul.mubr.bf16.gmra.mxu1 %v9779_v54 }
 0x1bb   : > { %2097 = vmatpush2.bf16.msra.mxu0 %v8130_v55  ;;  %2210 = vmatpush2.bf16.msra.mxu1 %v8133_v56  ;;  %v8178_v55 = vld [vmem:[#allocation10 + $0x110] ss:$40 sps:$4 sm:$0xff]   ;;  %v8183_v56 = vld [vmem:[#allocation10 + $0xc4] ss:$40 sps:$4 sm:$0xff]  }
 0x1bc   : > { %2098 = vmatprep.subr.bf16.mxu0 %v8138_v57  ;;  %2211 = vmatprep.subr.bf16.mxu1 %v8141_v61  ;;  %v8181_v57 = vld [vmem:[#allocation10 + $0xc0] ss:$40 sps:$4 sm:$0xff]   ;;  %v8186_v61 = vld [vmem:[#allocation10 + $0x74] ss:$40 sps:$4 sm:$0xff]  }
 0x1bd   : > { %1942 = vmatprep.mubr.bf16.mxu0 %v9783_v2  ;;  %2055 = vmatprep.mubr.bf16.mxu1 %v9783_v2 }
 0x1bf   : > { %2099 = vmatpush2.bf16.msra.mxu0 %v8136_v7  ;;  %2212 = vmatpush2.bf16.msra.mxu1 %v8139_v8  ;;  %v8193_v7 = vld [vmem:[#allocation10 + $0x480] ss:$40 sps:$4 sm:$0xff]   ;;  %v8198_v8 = vld [vmem:[#allocation10 + $0x434] ss:$40 sps:$4 sm:$0xff]  }
 0x1c0   : > { %2100 = vmatprep.subr.bf16.mxu0 %v8144_v9  ;;  %2213 = vmatprep.subr.bf16.mxu1 %v8147_v10  ;;  %v8196_v9 = vld [vmem:[#allocation10 + $0x430] ss:$40 sps:$4 sm:$0xff]   ;;  %v8201_v10 = vld [vmem:[#allocation10 + $0x3e4] ss:$40 sps:$4 sm:$0xff]  }
 0x1c2   : > { %1943 = vmatmul.mubr.bf16.gmra.mxu0 %v9795_v17  ;;  %2056 = vmatmul.mubr.bf16.gmra.mxu1 %v9795_v17 }
 0x1c3   : > { %2101 = vmatpush2.bf16.msra.mxu0 %v8142_v18  ;;  %2214 = vmatpush2.bf16.msra.mxu1 %v8145_v20  ;;  %v8208_v18 = vld [vmem:[#allocation10 + $0x2f0] ss:$40 sps:$4 sm:$0xff]   ;;  %v8213_v20 = vld [vmem:[#allocation10 + $0x2a4] ss:$40 sps:$4 sm:$0xff]  }
 0x1c4   : > { %2102 = vmatprep.subr.bf16.mxu0 %v8150_v21  ;;  %2215 = vmatprep.subr.bf16.mxu1 %v8153_v24  ;;  %v8211_v21 = vld [vmem:[#allocation10 + $0x2a0] ss:$40 sps:$4 sm:$0xff]  }
 0x1c5   : > { %1952 = vmatprep.mubr.bf16.mxu0 %v9797_v27  ;;  %2065 = vmatprep.mubr.bf16.mxu1 %v9797_v27 }
 0x1c7   : > { %2103 = vmatpush2.bf16.msra.mxu0 %v8148_v29  ;;  %2216 = vmatpush2.bf16.msra.mxu1 %v8151_v30  ;;  %v9882_v30 = vld [vmem:[%s9613_s8 + $0x10] sm:$0xff] }
 0x1c8   : > { %2104 = vmatprep.subr.bf16.mxu0 %v8156_v31  ;;  %2217 = vmatprep.subr.bf16.mxu1 %v8159_v32  ;;  %v9885_v31 = vld [vmem:[%s9616_s14 + $0x10] sm:$0xff] }
 0x1ca   : > { %1953 = vmatmul.mubr.bf16.gmra.mxu0 %v9805_v33  ;;  %2066 = vmatmul.mubr.bf16.gmra.mxu1 %v9805_v33 }
 0x1cb   : > { %2105 = vmatpush2.bf16.msra.mxu0 %v8154_v35  ;;  %2218 = vmatpush2.bf16.msra.mxu1 %v8157_v37 }
 0x1cc   : > { %2108 = vmatprep.mubr.bf16.mxu0 %v9694_v19  ;;  %2221 = vmatprep.mubr.bf16.mxu1 %v9694_v19 }
 0x1cd   : > { %2106 = vmatprep.subr.bf16.mxu0 %v8162_v60  ;;  %2219 = vmatprep.subr.bf16.mxu1 %v8165_v39 }
 0x1cf   : > { %2107 = vmatpush2.bf16.msra.mxu0 %v8160_v40  ;;  %2220 = vmatpush2.bf16.msra.mxu1 %v8163_v41 }
 0x1d0   : > { %2302 = vmatprep.subr.bf16.mxu0 %v8168_v43  ;;  %7818 = vmatprep.subr.bf16.mxu1 %v8168_v43 }
 0x1d2   : > { %2109 = vmatmul.mubr.bf16.vlgmr.msra.gmra.mxu0 %v9696_v22  ;;  %2222 = vmatmul.mubr.bf16.vlgmr.msra.gmra.mxu1 %v9696_v22 }
 0x1d3   : > { %2118 = vmatprep.mubr.bf16.mxu0 %v9699_v25  ;;  %2231 = vmatprep.mubr.bf16.mxu1 %v9699_v25 }
 0x1d4   : > { %2303 = vmatpush1.bf16.msra.mxu0 %v8166_v44  ;;  %7834 = vmatpush1.bf16.msra.mxu1 %v8166_v44  ;;  %v9890_v44 = vld [vmem:[%s9613_s8 + $0x18] sm:$0xff] }
 0x1d5   : > { %2304 = vmatprep.subr.bf16.mxu0 %v8171_v45  ;;  %7819 = vmatprep.subr.bf16.mxu1 %v8171_v45  ;;  %v9893_v45 = vld [vmem:[%s9616_s14 + $0x18] sm:$0xff] }
 0x1d8   : > { %2305 = vmatpush1.bf16.msra.mxu0 %v8169_v47  ;;  %7835 = vmatpush1.bf16.msra.mxu1 %v8169_v47 }
 0x1d9   : > { %2306 = vmatprep.subr.bf16.mxu0 %v8174_v48  ;;  %7820 = vmatprep.subr.bf16.mxu1 %v8174_v48 }
 0x1da   : > { %2119 = vmatmul.mubr.bf16.gmra.mxu0 %v9715_v58  ;;  %2232 = vmatmul.mubr.bf16.gmra.mxu1 %v9715_v58 }
 0x1db   : > { %2128 = vmatprep.mubr.bf16.mxu0 %v9719_v4  ;;  %2241 = vmatprep.mubr.bf16.mxu1 %v9719_v4 }
 0x1dc   : > { %2307 = vmatpush1.bf16.msra.mxu0 %v8172_v49  ;;  %7836 = vmatpush1.bf16.msra.mxu1 %v8172_v49 }
 0x1dd   : > { %2308 = vmatprep.subr.bf16.mxu0 %v8177_v50  ;;  %7821 = vmatprep.subr.bf16.mxu1 %v8177_v50 }
 0x1e0   : > { %2309 = vmatpush1.bf16.msra.mxu0 %v8175_v52  ;;  %7837 = vmatpush1.bf16.msra.mxu1 %v8175_v52 }
 0x1e1   : > { %2310 = vmatprep.subr.bf16.mxu0 %v8180_v53  ;;  %7822 = vmatprep.subr.bf16.mxu1 %v8180_v53 }
 0x1e2   : > { %2129 = vmatmul.mubr.bf16.gmra.mxu0 %v9731_v26  ;;  %2242 = vmatmul.mubr.bf16.gmra.mxu1 %v9731_v26 }
 0x1e3   : > { %2138 = vmatprep.mubr.bf16.mxu0 %v9735_v38  ;;  %2251 = vmatprep.mubr.bf16.mxu1 %v9735_v38 }
 0x1e4   : > { %2311 = vmatpush1.bf16.msra.mxu0 %v8178_v55  ;;  %7838 = vmatpush1.bf16.msra.mxu1 %v8178_v55 }
 0x1e5   : > { %2312 = vmatprep.subr.bf16.mxu0 %v8183_v56  ;;  %7823 = vmatprep.subr.bf16.mxu1 %v8183_v56 }
 0x1e8   : > { %2313 = vmatpush1.bf16.msra.mxu0 %v8181_v57  ;;  %7839 = vmatpush1.bf16.msra.mxu1 %v8181_v57 }
 0x1e9   : > { %2314 = vmatprep.subr.bf16.mxu0 %v8186_v61  ;;  %7824 = vmatprep.subr.bf16.mxu1 %v8186_v61 }
 0x1ea   : > { %2139 = vmatmul.mubr.bf16.gmra.mxu0 %v9747_v59  ;;  %2252 = vmatmul.mubr.bf16.gmra.mxu1 %v9747_v59 }
 0x1eb   : > { %2148 = vmatprep.mubr.bf16.mxu0 %v9751_v6  ;;  %2261 = vmatprep.mubr.bf16.mxu1 %v9751_v6 }
 0x1ec   : > { %2315 = vmatpush1.bf16.msra.mxu0 %v8184_v62  ;;  %7840 = vmatpush1.bf16.msra.mxu1 %v8184_v62  ;;  %v9908_v62 = vld [vmem:[%s9613_s8 + $0x20] sm:$0xff] }
 0x1ed   : > { %2316 = vmatprep.subr.bf16.mxu0 %v8189_v63  ;;  %7825 = vmatprep.subr.bf16.mxu1 %v8189_v63  ;;  %v9911_v63 = vld [vmem:[%s9616_s14 + $0x20] sm:$0xff] }
 0x1f0   : > { %2317 = vmatpush1.bf16.msra.mxu0 %v8187_v0  ;;  %7841 = vmatpush1.bf16.msra.mxu1 %v8187_v0 }
 0x1f1   : > { %2318 = vmatprep.subr.bf16.mxu0 %v8192_v1  ;;  %7826 = vmatprep.subr.bf16.mxu1 %v8192_v1 }
 0x1f2   : > { %2149 = vmatmul.mubr.bf16.gmra.mxu0 %v9763_v23  ;;  %2262 = vmatmul.mubr.bf16.gmra.mxu1 %v9763_v23 }
 0x1f3   : > { %2158 = vmatprep.mubr.bf16.mxu0 %v9767_v34  ;;  %2271 = vmatprep.mubr.bf16.mxu1 %v9767_v34 }
 0x1f4   : > { %2319 = vmatpush2.bf16.msra.mxu0 %v8190_v3  ;;  %7842 = vmatpush2.bf16.msra.mxu1 %v8190_v3 }
 0x1f5   : > { %2320 = vmatprep.subr.bf16.mxu0 %v8195_v5  ;;  %7827 = vmatprep.subr.bf16.mxu1 %v8195_v5  ;;  %v10037_v5 = vld [vmem:[%s9616_s14 + $0x68] sm:$0xff] }
 0x1f8   : > { %2321 = vmatpush2.bf16.msra.mxu0 %v8193_v7  ;;  %7843 = vmatpush2.bf16.msra.mxu1 %v8193_v7 }
 0x1f9   : > { %2322 = vmatprep.subr.bf16.mxu0 %v8198_v8  ;;  %7828 = vmatprep.subr.bf16.mxu1 %v8198_v8 }
 0x1fa   : > { %2159 = vmatmul.mubr.bf16.gmra.mxu0 %v9779_v54  ;;  %2272 = vmatmul.mubr.bf16.gmra.mxu1 %v9779_v54 }
 0x1fb   : > { %2168 = vmatprep.mubr.bf16.mxu0 %v9783_v2  ;;  %2281 = vmatprep.mubr.bf16.mxu1 %v9783_v2 }
 0x1fc   : > { %2323 = vmatpush2.bf16.msra.mxu0 %v8196_v9  ;;  %7844 = vmatpush2.bf16.msra.mxu1 %v8196_v9 }
 0x1fd   : > { %2324 = vmatprep.subr.bf16.mxu0 %v8201_v10  ;;  %7829 = vmatprep.subr.bf16.mxu1 %v8201_v10 }
 0x200   : > { %2325 = vmatpush2.bf16.msra.mxu0 %v8199_v11  ;;  %7845 = vmatpush2.bf16.msra.mxu1 %v8199_v11  ;;  %v9920_v11 = vld [vmem:[%s9613_s8 + $0x28] sm:$0xff] }
 0x201   : > { %2326 = vmatprep.subr.bf16.mxu0 %v8204_v12  ;;  %7830 = vmatprep.subr.bf16.mxu1 %v8204_v12  ;;  %v9923_v12 = vld [vmem:[%s9616_s14 + $0x28] sm:$0xff] }
 0x202   : > { %2169 = vmatmul.mubr.bf16.gmra.mxu0 %v9795_v17  ;;  %2282 = vmatmul.mubr.bf16.gmra.mxu1 %v9795_v17  ;;  %11995 = vst [vmem:[#allocation35_spill] sm:$0xff] %v9923_v12 }
 0x203   : > { %2178 = vmatprep.mubr.bf16.mxu0 %v9797_v27  ;;  %2291 = vmatprep.mubr.bf16.mxu1 %v9797_v27 }
 0x204   : > { %2327 = vmatpush2.bf16.msra.mxu0 %v8202_v13  ;;  %7846 = vmatpush2.bf16.msra.mxu1 %v8202_v13 }
 0x205   : > { %2328 = vmatprep.subr.bf16.mxu0 %v8207_v14  ;;  %7831 = vmatprep.subr.bf16.mxu1 %v8207_v14 }
 0x208   : > { %2329 = vmatpush2.bf16.msra.mxu0 %v8205_v15  ;;  %7847 = vmatpush2.bf16.msra.mxu1 %v8205_v15 }
 0x209   : > { %2330 = vmatprep.subr.bf16.mxu0 %v8210_v16  ;;  %7832 = vmatprep.subr.bf16.mxu1 %v8210_v16 }
 0x20a   : > { %2179 = vmatmul.mubr.bf16.gmra.mxu0 %v9805_v33  ;;  %2292 = vmatmul.mubr.bf16.gmra.mxu1 %v9805_v33 }
 0x20b   : > { %2334 = vmatprep.mubr.bf16.mxu0 %v9694_v19  ;;  %2374 = vmatprep.mubr.bf16.mxu1 %v9751_v6  ;;  %v9864_v6 = vld [vmem:[%s9613_s8 + $0x8] sm:$0xff] }
 0x20c   : > { %2331 = vmatpush2.bf16.msra.mxu0 %v8208_v18  ;;  %7848 = vmatpush2.bf16.msra.mxu1 %v8208_v18 }
 0x20d   : > { %2332 = vmatprep.subr.bf16.mxu0 %v8213_v20  ;;  %7833 = vmatprep.subr.bf16.mxu1 %v8213_v20 }
 0x210   : > { %2333 = vmatpush2.bf16.msra.mxu0 %v8211_v21  ;;  %7849 = vmatpush2.bf16.msra.mxu1 %v8211_v21 }
 0x213   : > { %2335 = vmatmul.mubr.bf16.vlgmr.msra.gmra.mxu0 %v9696_v22  ;;  %2375 = vmatmul.mubr.bf16.vlgmr.msra.gmra.mxu1 %v9763_v23  ;;  %v9858_v22 = vld [vmem:[%s9613_s8] sm:$0xff]  ;;  %v9867_v23 = vld [vmem:[%s9616_s14 + $0x8] sm:$0xff] }
 0x214   : > { %2344 = vmatprep.mubr.bf16.mxu0 %v9699_v25  ;;  %2384 = vmatprep.mubr.bf16.mxu1 %v9767_v34 }
 0x21b   : > { %2345 = vmatmul.mubr.bf16.gmra.mxu0 %v9715_v58  ;;  %2385 = vmatmul.mubr.bf16.gmra.mxu1 %v9779_v54  ;;  %v9861_v58 = vld [vmem:[%s9616_s14] sm:$0xff] }
 0x21c   : > { %2354 = vmatprep.mubr.bf16.mxu0 %v9719_v4  ;;  %2394 = vmatprep.mubr.bf16.mxu1 %v9783_v2 }
 0x223   : > { %2355 = vmatmul.mubr.bf16.gmra.mxu0 %v9731_v26  ;;  %2395 = vmatmul.mubr.bf16.gmra.mxu1 %v9795_v17 }
 0x224   : > { %2364 = vmatprep.mubr.bf16.mxu0 %v9735_v38  ;;  %2404 = vmatprep.mubr.bf16.mxu1 %v9797_v27 }
 0x22b   : > { %2365 = vmatmul.mubr.bf16.gmra.mxu0 %v9747_v59  ;;  %2405 = vmatmul.mubr.bf16.gmra.mxu1 %v9805_v33 }
 0x252   : > { %v1884_v19 = vpop.f32.mrf.mxu0  ;;  %v1997_v25 = vpop.f32.mrf.mxu1 }
 0x253   : > { %v2447_v38 = vmul.f32 %v9858_v22, %v1884_v19  ;;  %v2479_v59 = vmul.f32 %v9861_v58, %v1997_v25 }
 0x254   : > { %v1886_v4 = vpop.f32.mrf.mxu0  ;;  %v1999_v26 = vpop.f32.mrf.mxu1 }
 0x255   : > { %v2448_v34 = vmul.f32 %v9858_v22, %v1886_v4  ;;  %v2480_v54 = vmul.f32 %v9861_v58, %v1999_v26  ;;  %v2511_v32 = vadd.f32 %v2479_v59, %v2447_v38  ;;  %v9938_v26 = vld [vmem:[%s9613_s8 + $0x30] sm:$0xff] }
 0x256   : > { %v1888_v2 = vpop.f32.mrf.mxu0  ;;  %v2001_v17 = vpop.f32.mrf.mxu1  ;;  %v9941_v38 = vld [vmem:[%s9616_s14 + $0x30] sm:$0xff] }
 0x257   : > { %v9873_v24 = vadd.f32 %v2480_v54, %v2448_v34  ;;  %v2449_v27 = vmul.f32 %v9864_v6, %v1888_v2  ;;  %v2481_v51 = vmul.f32 %v9867_v23, %v2001_v17 }
 0x258   : > { %v9877_v28 = vpop.f32.mrf.mxu0  ;;  %v9879_v29 = vpop.f32.mrf.mxu1 }
 0x259   : > { %v2513_v33 = vadd.f32 %v2481_v51, %v2449_v27  ;;  %v10034_v27 = vld [vmem:[%s9613_s8 + $0x68] sm:$0xff] }
 0x25a   : > { %v1894_v35 = vpop.f32.mrf.mxu0  ;;  %v2007_v37 = vpop.f32.mrf.mxu1 }
 0x25b   : > { %v2451_v60 = vmul.f32 %v9882_v30, %v1894_v35  ;;  %v2483_v39 = vmul.f32 %v9885_v31, %v2007_v37  ;;  %v2703_v40 = vpack.c.bf16 %v2513_v33, %v2511_v32  ;;  %v9950_v33 = vld [vmem:[%s9613_s8 + $0x38] sm:$0xff] }
 0x25c   : > { %v1896_v41 = vpop.f32.mrf.mxu0  ;;  %v2009_v43 = vpop.f32.mrf.mxu1  ;;  %v9953_v35 = vld [vmem:[%s9616_s14 + $0x38] sm:$0xff] }
 0x25d   : > { %v9895_v47 = vadd.f32 %v2483_v39, %v2451_v60  ;;  %v2452_v48 = vmul.f32 %v9882_v30, %v1896_v41  ;;  %v2484_v49 = vmul.f32 %v9885_v31, %v2009_v43  ;;  %7698 = vmatprep.mubr.bf16.mxu1 %v2703_v40 }
 0x25e   : > { %v1898_v50 = vpop.f32.mrf.mxu0  ;;  %v2011_v52 = vpop.f32.mrf.mxu1 }
 0x25f   : > { %v9899_v53 = vadd.f32 %v2484_v49, %v2452_v48  ;;  %v2453_v55 = vmul.f32 %v9890_v44, %v1898_v50  ;;  %v2485_v56 = vmul.f32 %v9893_v45, %v2011_v52 }
 0x260   : > { %v9903_v57 = vpop.f32.mrf.mxu0  ;;  %v9905_v61 = vpop.f32.mrf.mxu1 }
 0x261   : > { %11994 = vst [vmem:[#allocation34_spill] sm:$0xff] %v9899_v53  ;;  %v9913_v0 = vadd.f32 %v2485_v56, %v2453_v55 }
 0x262   : > { %v1904_v1 = vpop.f32.mrf.mxu0  ;;  %v2017_v3 = vpop.f32.mrf.mxu1 }
 0x263   : > { %v2455_v7 = vmul.f32 %v9908_v62, %v1904_v1  ;;  %v2487_v8 = vmul.f32 %v9911_v63, %v2017_v3  ;;  %v9970_v1 = vld [vmem:[%s9613_s8 + $0x40] sm:$0xff] }
 0x264   : > { %v1906_v9 = vpop.f32.mrf.mxu0  ;;  %v2019_v10 = vpop.f32.mrf.mxu1 }
 0x265   : > { %v9925_v13 = vadd.f32 %v2487_v8, %v2455_v7  ;;  %v2456_v14 = vmul.f32 %v9908_v62, %v1906_v9  ;;  %v2488_v15 = vmul.f32 %v9911_v63, %v2019_v10  ;;  %v9973_v7 = vld [vmem:[%s9616_s14 + $0x40] sm:$0xff] }
 0x266   : > { %v1908_v16 = vpop.f32.mrf.mxu0  ;;  %v2021_v18 = vpop.f32.mrf.mxu1 }
 0x267   : > { %v9929_v20 = vadd.f32 %v2488_v15, %v2456_v14  ;;  %v2457_v21 = vmul.f32 %v9920_v11, %v1908_v16  ;;  %v2489_v19 = vmul.f32 %v9923_v12, %v2021_v18  ;;  %v9978_v14 = vld [vmem:[%s9613_s8 + $0x48] sm:$0xff] }
 0x268   : > { %v9933_v25 = vpop.f32.mrf.mxu0  ;;  %v9935_v4 = vpop.f32.mrf.mxu1  ;;  %v9981_v15 = vld [vmem:[%s9616_s14 + $0x48] sm:$0xff] }
 0x269   : > { %11996 = vst [vmem:[#allocation36_spill] sm:$0xff] %v9929_v20  ;;  %v9943_v59 = vadd.f32 %v2489_v19, %v2457_v21 }
 0x26a   : > { %v1914_v34 = vpop.f32.mrf.mxu0  ;;  %v2027_v54 = vpop.f32.mrf.mxu1 }
 0x26b   : > { %v2459_v2 = vmul.f32 %v9938_v26, %v1914_v34  ;;  %v2491_v17 = vmul.f32 %v9941_v38, %v2027_v54 }
 0x26c   : > { %v1916_v51 = vpop.f32.mrf.mxu0  ;;  %v2029_v32 = vpop.f32.mrf.mxu1 }
 0x26d   : > { %v9955_v37 = vadd.f32 %v2491_v17, %v2459_v2  ;;  %v2460_v60 = vmul.f32 %v9938_v26, %v1916_v51  ;;  %v2492_v39 = vmul.f32 %v9941_v38, %v2029_v32 }
 0x26e   : > { %v1918_v40 = vpop.f32.mrf.mxu0  ;;  %v2031_v41 = vpop.f32.mrf.mxu1 }
 0x26f   : > { %v9959_v43 = vadd.f32 %v2492_v39, %v2460_v60  ;;  %v2461_v48 = vmul.f32 %v9950_v33, %v1918_v40  ;;  %v2493_v49 = vmul.f32 %v9953_v35, %v2031_v41  ;;  %v9996_v39 = vld [vmem:[%s9613_s8 + $0x50] sm:$0xff] }
 0x270   : > { %v9963_v50 = vpop.f32.mrf.mxu0  ;;  %v9965_v52 = vpop.f32.mrf.mxu1  ;;  %v9999_v40 = vld [vmem:[%s9616_s14 + $0x50] sm:$0xff] }
 0x271   : > { %11997 = vst [vmem:[#allocation37_spill] sm:$0xff] %v9959_v43  ;;  %11998 = vst [vmem:[#allocation38_spill] sm:$0xff] %v9963_v50  ;;  %v9967_v55 = vadd.f32 %v2493_v49, %v2461_v48 }
 0x272   : > { %11999 = vst [vmem:[#allocation39_spill] sm:$0xff] %v9965_v52  ;;  %v1924_v56 = vpop.f32.mrf.mxu0  ;;  %v2037_v3 = vpop.f32.mrf.mxu1 }
 0x273   : > { %v2463_v16 = vmul.f32 %v9970_v1, %v1924_v56  ;;  %v2495_v18 = vmul.f32 %v9973_v7, %v2037_v3 }
 0x274   : > { %v1926_v9 = vpop.f32.mrf.mxu0  ;;  %v2039_v10 = vpop.f32.mrf.mxu1 }
 0x275   : > { %v2464_v21 = vmul.f32 %v9970_v1, %v1926_v9  ;;  %v2496_v19 = vmul.f32 %v9973_v7, %v2039_v10  ;;  %v2527_v41 = vadd.f32 %v2495_v18, %v2463_v16 }
 0x276   : > { %v1928_v34 = vpop.f32.mrf.mxu0  ;;  %v2041_v54 = vpop.f32.mrf.mxu1 }
 0x277   : > { %v9987_v2 = vadd.f32 %v2496_v19, %v2464_v21  ;;  %v2465_v17 = vmul.f32 %v9978_v14, %v1928_v34  ;;  %v2497_v51 = vmul.f32 %v9981_v15, %v2041_v54  ;;  %v10004_v34 = vld [vmem:[%s9613_s8 + $0x58] sm:$0xff] }
 0x278   : > { %v9991_v32 = vpop.f32.mrf.mxu0  ;;  %v9993_v60 = vpop.f32.mrf.mxu1  ;;  %v10007_v54 = vld [vmem:[%s9616_s14 + $0x58] sm:$0xff] }
 0x279   : > { %12000 = vst [vmem:[#allocation40_spill] sm:$0xff] %v9987_v2  ;;  %12001 = vst [vmem:[#allocation41_spill] sm:$0xff] %v9991_v32  ;;  %v2529_v48 = vadd.f32 %v2497_v51, %v2465_v17 }
 0x27a   : > { %12002 = vst [vmem:[#allocation42_spill] sm:$0xff] %v9993_v60  ;;  %v1934_v49 = vpop.f32.mrf.mxu0  ;;  %v2047_v56 = vpop.f32.mrf.mxu1 }
 0x27b   : > { %v2467_v3 = vmul.f32 %v9996_v39, %v1934_v49  ;;  %v2499_v9 = vmul.f32 %v9999_v40, %v2047_v56  ;;  %v2711_v10 = vpack.c.bf16 %v2529_v48, %v2527_v41 }
 0x27c   : > { %v1936_v21 = vpop.f32.mrf.mxu0  ;;  %v2049_v19 = vpop.f32.mrf.mxu1 }
 0x27d   : > { %v10009_v42 = vadd.f32 %v2499_v9, %v2467_v3  ;;  %v2468_v16 = vmul.f32 %v9996_v39, %v1936_v21  ;;  %v2500_v18 = vmul.f32 %v9999_v40, %v2049_v19  ;;  %7730 = vmatprep.mubr.bf16.mxu0 %v2711_v10  ;;  %v10022_v3 = vld [vmem:[%s9613_s8 + $0x60] sm:$0xff] }
 0x27e   : > { %v1938_v17 = vpop.f32.mrf.mxu0  ;;  %v2051_v51 = vpop.f32.mrf.mxu1  ;;  %v10025_v9 = vld [vmem:[%s9616_s14 + $0x60] sm:$0xff] }
 0x27f   : > { %12003 = vst [vmem:[#allocation43_spill] sm:$0xff] %v10009_v42  ;;  %v10013_v49 = vadd.f32 %v2500_v18, %v2468_v16  ;;  %v2469_v41 = vmul.f32 %v10004_v34, %v1938_v17  ;;  %v2501_v48 = vmul.f32 %v10007_v54, %v2051_v51 }
 0x280   : > { %v10017_v56 = vpop.f32.mrf.mxu0  ;;  %v10019_v46 = vpop.f32.mrf.mxu1 }
 0x281   : > { %12004 = vst [vmem:[#allocation44_spill] sm:$0xff] %v10013_v49  ;;  %12005 = vst [vmem:[#allocation45_spill] sm:$0xff] %v10017_v56  ;;  %v10027_v21 = vadd.f32 %v2501_v48, %v2469_v41 }
 0x282   : > { %12006 = vst [vmem:[#allocation46_spill] sm:$0xff] %v10019_v46  ;;  %v1944_v10 = vpop.f32.mrf.mxu0  ;;  %v2057_v19 = vpop.f32.mrf.mxu1 }
 0x283   : > { %12007 = vst [vmem:[#allocation47_spill] sm:$0xff] %v10027_v21  ;;  %v2471_v18 = vmul.f32 %v10022_v3, %v1944_v10  ;;  %v2503_v17 = vmul.f32 %v10025_v9, %v2057_v19 }
 0x284   : > { %v1946_v51 = vpop.f32.mrf.mxu0  ;;  %v2059_v8 = vpop.f32.mrf.mxu1 }
 0x285   : > { %v10039_v36 = vadd.f32 %v2503_v17, %v2471_v18  ;;  %v2472_v41 = vmul.f32 %v10022_v3, %v1946_v51  ;;  %v2504_v48 = vmul.f32 %v10025_v9, %v2059_v8  ;;  %v10052_v18 = vld [vmem:[%s9613_s8 + $0x70] sm:$0xff] }
 0x286   : > { %v1948_v49 = vpop.f32.mrf.mxu0  ;;  %v2061_v16 = vpop.f32.mrf.mxu1  ;;  %v10055_v17 = vld [vmem:[%s9616_s14 + $0x70] sm:$0xff] }
 0x287   : > { %12008 = vst [vmem:[#allocation48_spill] sm:$0xff] %v10039_v36  ;;  %v10043_v10 = vadd.f32 %v2504_v48, %v2472_v41  ;;  %v2473_v19 = vmul.f32 %v10034_v27, %v1948_v49  ;;  %v2505_v46 = vmul.f32 %v10037_v5, %v2061_v16 }
 0x288   : > { %v10047_v56 = vpop.f32.mrf.mxu0  ;;  %v10049_v2 = vpop.f32.mrf.mxu1 }
 0x289   : > { %12009 = vst [vmem:[#allocation49_spill] sm:$0xff] %v10043_v10  ;;  %12010 = vst [vmem:[#allocation50_spill] sm:$0xff] %v10047_v56  ;;  %v10057_v51 = vadd.f32 %v2505_v46, %v2473_v19  ;;  %v10064_v56 = vld [vmem:[%s9613_s8 + $0x78] sm:$0xff] }
 0x28a   : > { %12011 = vst [vmem:[#allocation51_spill] sm:$0xff] %v10049_v2  ;;  %v1954_v8 = vpop.f32.mrf.mxu0  ;;  %v2067_v43 = vpop.f32.mrf.mxu1  ;;  %v10067_v2 = vld [vmem:[%s9616_s14 + $0x78] sm:$0xff] }
 0x28b   : > { %12012 = vst [vmem:[#allocation52_spill] sm:$0xff] %v10057_v51  ;;  %v2475_v41 = vmul.f32 %v10052_v18, %v1954_v8  ;;  %v2507_v48 = vmul.f32 %v10055_v17, %v2067_v43 }
 0x28c   : > { %v1956_v16 = vpop.f32.mrf.mxu0  ;;  %v2069_v10 = vpop.f32.mrf.mxu1 }
 0x28d   : > { %v10069_v42 = vadd.f32 %v2507_v48, %v2475_v41  ;;  %v2476_v46 = vmul.f32 %v10052_v18, %v1956_v16  ;;  %v2508_v19 = vmul.f32 %v10055_v17, %v2069_v10 }
 0x28e   : > { %v1958_v21 = vpop.f32.mrf.mxu0  ;;  %v2071_v20 = vpop.f32.mrf.mxu1 }
 0x28f   : > { %12013 = vst [vmem:[#allocation53_spill] sm:$0xff] %v10069_v42  ;;  %v10073_v8 = vadd.f32 %v2508_v19, %v2476_v46  ;;  %v2477_v43 = vmul.f32 %v10064_v56, %v1958_v21  ;;  %v2509_v49 = vmul.f32 %v10067_v2, %v2071_v20 }
 0x290   : > { %v10077_v36 = vpop.f32.mrf.mxu0  ;;  %v10079_v51 = vpop.f32.mrf.mxu1 }
 0x291   : > { %12014 = vst [vmem:[#allocation54_spill] sm:$0xff] %v10073_v8  ;;  %12015 = vst [vmem:[#allocation55_spill] sm:$0xff] %v10077_v36  ;;  %v10081_v60 = vadd.f32 %v2509_v49, %v2477_v43 }
 0x292   : > { %12016 = vst [vmem:[#allocation56_spill] sm:$0xff] %v10079_v51  ;;  %v2110_v41 = vpop.f32.mrf.mxu0  ;;  %v2223_v48 = vpop.f32.mrf.mxu1 }
 0x293   : > { %12017 = vst [vmem:[#allocation57_spill] sm:$0xff] %v10081_v60  ;;  %v2543_v16 = vmul.f32 %v9858_v22, %v2110_v41  ;;  %v2575_v10 = vmul.f32 %v9861_v58, %v2223_v48 }
 0x294   : > { %v2112_v19 = vpop.f32.mrf.mxu0  ;;  %v2225_v21 = vpop.f32.mrf.mxu1 }
 0x295   : > { %v10087_v8 = vadd.f32 %v2575_v10, %v2543_v16  ;;  %v2544_v20 = vmul.f32 %v9858_v22, %v2112_v19  ;;  %v2576_v36 = vmul.f32 %v9861_v58, %v2225_v21 }
 0x296   : > { %v2114_v51 = vpop.f32.mrf.mxu0  ;;  %v2227_v49 = vpop.f32.mrf.mxu1 }
 0x297   : > { %2639 = vst [vmem:[%s10092_s15] sm:$0xff] %v10087_v8  ;;  %v2608_v43 = vadd.f32 %v2576_v36, %v2544_v20  ;;  %v2545_v41 = vmul.f32 %v9864_v6, %v2114_v51  ;;  %v2577_v48 = vmul.f32 %v9867_v23, %v2227_v49 }
 0x298   : > { %v2116_v16 = vpop.f32.mrf.mxu0  ;;  %v2229_v10 = vpop.f32.mrf.mxu1 }
 0x299   : > { %2640 = vst [vmem:[%s10092_s15 + $0x8] sm:$0xff] %v2608_v43  ;;  %v10099_v22 = vadd.f32 %v2577_v48, %v2545_v41  ;;  %v2546_v58 = vmul.f32 %v9864_v6, %v2116_v16  ;;  %v2578_v19 = vmul.f32 %v9867_v23, %v2229_v10 }
 0x29a   : > { %v2120_v21 = vpop.f32.mrf.mxu0  ;;  %v2233_v46 = vpop.f32.mrf.mxu1 }
 0x29b   : > { %2641 = vst [vmem:[%s10092_s15 + $0x10] sm:$0xff] %v10099_v22  ;;  %v2610_v36 = vadd.f32 %v2578_v19, %v2546_v58  ;;  %v2547_v51 = vmul.f32 %v9882_v30, %v2120_v21  ;;  %v2579_v20 = vmul.f32 %v9885_v31, %v2233_v46 }
 0x29c   : > { %v2122_v49 = vpop.f32.mrf.mxu0  ;;  %v2235_v42 = vpop.f32.mrf.mxu1 }
 0x29d   : > { %2642 = vst [vmem:[%s10092_s15 + $0x18] sm:$0xff] %v2610_v36  ;;  %v10108_v41 = vadd.f32 %v2579_v20, %v2547_v51  ;;  %v2548_v48 = vmul.f32 %v9882_v30, %v2122_v49  ;;  %v2580_v16 = vmul.f32 %v9885_v31, %v2235_v42  ;;  %v10112_v10 = vpack.c.bf16 %v2610_v36, %v2608_v43 }
 0x29e   : > { %v2124_v60 = vpop.f32.mrf.mxu0  ;;  %v2237_v32 = vpop.f32.mrf.mxu1 }
 0x29f   : > { %2643 = vst [vmem:[%s10092_s15 + $0x20] sm:$0xff] %v10108_v41  ;;  %v10116_v58 = vadd.f32 %v2580_v16, %v2548_v48  ;;  %v2549_v46 = vmul.f32 %v9890_v44, %v2124_v60  ;;  %v2581_v19 = vmul.f32 %v9893_v45, %v2237_v32 }
 0x2a0   : > { %v2126_v21 = vpop.f32.mrf.mxu0  ;;  %v2239_v51 = vpop.f32.mrf.mxu1 }
 0x2a1   : > { %2644 = vst [vmem:[%s10092_s15 + $0x28] sm:$0xff] %v10116_v58  ;;  %v10122_v30 = vadd.f32 %v2581_v19, %v2549_v46  ;;  %v2550_v42 = vmul.f32 %v9890_v44, %v2126_v21  ;;  %v2582_v31 = vmul.f32 %v9893_v45, %v2239_v51 }
 0x2a2   : > { %v2130_v43 = vpop.f32.mrf.mxu0  ;;  %v2243_v36 = vpop.f32.mrf.mxu1 }
 0x2a3   : > { %2645 = vst [vmem:[%s10092_s15 + $0x30] sm:$0xff] %v10122_v30  ;;  %v10128_v20 = vadd.f32 %v2582_v31, %v2550_v42  ;;  %v2551_v60 = vmul.f32 %v9908_v62, %v2130_v43  ;;  %v2583_v32 = vmul.f32 %v9911_v63, %v2243_v36 }
 0x2a4   : > { %v2132_v49 = vpop.f32.mrf.mxu0  ;;  %v2245_v48 = vpop.f32.mrf.mxu1 }
 0x2a5   : > { %2646 = vst [vmem:[%s10092_s15 + $0x38] sm:$0xff] %v10128_v20  ;;  %v2615_v16 = vadd.f32 %v2583_v32, %v2551_v60  ;;  %v2552_v46 = vmul.f32 %v9908_v62, %v2132_v49  ;;  %v2584_v19 = vmul.f32 %v9911_v63, %v2245_v48 }
 0x2a6   : > { %v2134_v21 = vpop.f32.mrf.mxu0  ;;  %v2247_v51 = vpop.f32.mrf.mxu1 }
 0x2a7   : > { %2647 = vst [vmem:[%s10092_s15 + $0x40] sm:$0xff] %v2615_v16  ;;  %v10137_v42 = vadd.f32 %v2584_v19, %v2552_v46  ;;  %v2553_v31 = vmul.f32 %v9920_v11, %v2134_v21  ;;  %v2585_v43 = vmul.f32 %v9923_v12, %v2247_v51 }
 0x2a8   : > { %v2136_v36 = vpop.f32.mrf.mxu0  ;;  %v2249_v52 = vpop.f32.mrf.mxu1 }
 0x2a9   : > { %2648 = vst [vmem:[%s10092_s15 + $0x48] sm:$0xff] %v10137_v42  ;;  %v2617_v60 = vadd.f32 %v2585_v43, %v2553_v31  ;;  %v2554_v62 = vmul.f32 %v9920_v11, %v2136_v36  ;;  %v2586_v63 = vmul.f32 %v9923_v12, %v2249_v52 }
 0x2aa   : > { %v2140_v32 = vpop.f32.mrf.mxu0  ;;  %v2253_v49 = vpop.f32.mrf.mxu1 }
 0x2ab   : > { %2649 = vst [vmem:[%s10092_s15 + $0x50] sm:$0xff] %v2617_v60  ;;  %v10146_v48 = vadd.f32 %v2586_v63, %v2554_v62  ;;  %v2555_v46 = vmul.f32 %v9938_v26, %v2140_v32  ;;  %v2587_v19 = vmul.f32 %v9941_v38, %v2253_v49 }
 0x2ac   : > { %v2142_v21 = vpop.f32.mrf.mxu0  ;;  %v2255_v51 = vpop.f32.mrf.mxu1 }
 0x2ad   : > { %2650 = vst [vmem:[%s10092_s15 + $0x58] sm:$0xff] %v10146_v48  ;;  %v2619_v31 = vadd.f32 %v2587_v19, %v2555_v46  ;;  %v2556_v43 = vmul.f32 %v9938_v26, %v2142_v21  ;;  %v2588_v52 = vmul.f32 %v9941_v38, %v2255_v51 }
 0x2ae   : > { %v2144_v36 = vpop.f32.mrf.mxu0  ;;  %v2257_v50 = vpop.f32.mrf.mxu1 }
 0x2af   : > { %2651 = vst [vmem:[%s10092_s15 + $0x60] sm:$0xff] %v2619_v31  ;;  %v10155_v62 = vadd.f32 %v2588_v52, %v2556_v43  ;;  %v2557_v63 = vmul.f32 %v9950_v33, %v2144_v36  ;;  %v2589_v32 = vmul.f32 %v9953_v35, %v2257_v50 }
 0x2b0   : > { %v2146_v49 = vpop.f32.mrf.mxu0  ;;  %v2259_v53 = vpop.f32.mrf.mxu1 }
 0x2b1   : > { %2652 = vst [vmem:[%s10092_s15 + $0x68] sm:$0xff] %v10155_v62  ;;  %v2621_v46 = vadd.f32 %v2589_v32, %v2557_v63  ;;  %v2558_v26 = vmul.f32 %v9950_v33, %v2146_v49  ;;  %v2590_v19 = vmul.f32 %v9953_v35, %v2259_v53  ;;  %v2721_v49 = vpack.c.bf16 %v2617_v60, %v2615_v16 }
 0x2b2   : > { %v2150_v38 = vpop.f32.mrf.mxu0  ;;  %v2263_v21 = vpop.f32.mrf.mxu1 }
 0x2b3   : > { %2653 = vst [vmem:[%s10092_s15 + $0x70] sm:$0xff] %v2621_v46  ;;  %v10164_v51 = vadd.f32 %v2590_v19, %v2558_v26  ;;  %v2559_v43 = vmul.f32 %v9970_v1, %v2150_v38  ;;  %v2591_v50 = vmul.f32 %v9973_v7, %v2263_v21  ;;  %v2722_v52 = vpack.c.bf16 %v2621_v46, %v2619_v31 }
 0x2b4   : > { %v2152_v36 = vpop.f32.mrf.mxu0  ;;  %v2265_v12 = vpop.f32.mrf.mxu1 }
 0x2b5   : > { %2654 = vst [vmem:[%s10092_s15 + $0x78] sm:$0xff] %v10164_v51  ;;  %v10170_v63 = vadd.f32 %v2591_v50, %v2559_v43  ;;  %v2560_v53 = vmul.f32 %v9970_v1, %v2152_v36  ;;  %v2592_v32 = vmul.f32 %v9973_v7, %v2265_v12  ;;  %7690 = vmatprep.subr.bf16.mxu1 %v2722_v52 }
 0x2b6   : > { %v2154_v26 = vpop.f32.mrf.mxu0  ;;  %v2267_v19 = vpop.f32.mrf.mxu1  ;;  %7691 = vmatpush3.bf16.xpose.msra.mxu1 %v2722_v52 }
 0x2b7   : > { %2655 = vst [vmem:[%s10092_s15 + $0x80] sm:$0xff] %v10170_v63  ;;  %v2624_v31 = vadd.f32 %v2592_v32, %v2560_v53  ;;  %v2561_v46 = vmul.f32 %v9978_v14, %v2154_v26  ;;  %v2593_v38 = vmul.f32 %v9981_v15, %v2267_v19  ;;  %7692 = vmatprep.subr.bf16.mxu1 %v2721_v49 }
 0x2b8   : > { %v2156_v21 = vpop.f32.mrf.mxu0  ;;  %v2269_v43 = vpop.f32.mrf.mxu1  ;;  %v2720_v26 = vpack.c.bf16 %v10122_v30, %v10108_v41 }
 0x2b9   : > { %2656 = vst [vmem:[%s10092_s15 + $0x88] sm:$0xff] %v2624_v31  ;;  %v10179_v1 = vadd.f32 %v2593_v38, %v2561_v46  ;;  %v2562_v12 = vmul.f32 %v9978_v14, %v2156_v21  ;;  %v2594_v7 = vmul.f32 %v9981_v15, %v2269_v43 }
 0x2ba   : > { %v2160_v16 = vpop.f32.mrf.mxu0  ;;  %v2273_v60 = vpop.f32.mrf.mxu1 }
 0x2bb   : > { %2657 = vst [vmem:[%s10092_s15 + $0x90] sm:$0xff] %v10179_v1  ;;  %v2626_v50 = vadd.f32 %v2594_v7, %v2562_v12  ;;  %v2563_v52 = vmul.f32 %v9996_v39, %v2160_v16  ;;  %v2595_v36 = vmul.f32 %v9999_v40, %v2273_v60 }
 0x2bc   : > { %v2162_v53 = vpop.f32.mrf.mxu0  ;;  %v2275_v32 = vpop.f32.mrf.mxu1 }
 0x2bd   : > { %2658 = vst [vmem:[%s10092_s15 + $0x98] sm:$0xff] %v2626_v50  ;;  %v10190_v19 = vadd.f32 %v2595_v36, %v2563_v52  ;;  %v2564_v46 = vmul.f32 %v9996_v39, %v2162_v53  ;;  %v2596_v38 = vmul.f32 %v9999_v40, %v2275_v32  ;;  %v10194_v21 = vpack.c.bf16 %v2626_v50, %v2624_v31 }
 0x2be   : > { %v2164_v43 = vpop.f32.mrf.mxu0  ;;  %v2277_v12 = vpop.f32.mrf.mxu1  ;;  %7693 = vmatpush3.bf16.xpose.msra.mxu1 %v2721_v49 }
 0x2bf   : > { %2659 = vst [vmem:[%s10092_s15 + $0xa0] sm:$0xff] %v10190_v19  ;;  %v10198_v7 = vadd.f32 %v2596_v38, %v2564_v46  ;;  %v2565_v41 = vmul.f32 %v10004_v34, %v2164_v43  ;;  %v2597_v30 = vmul.f32 %v10007_v54, %v2277_v12  ;;  %7694 = vmatprep.subr.bf16.mxu1 %v2720_v26 }
 0x2c0   : > { %v2166_v16 = vpop.f32.mrf.mxu0  ;;  %v2279_v39 = vpop.f32.mrf.mxu1 }
 0x2c1   : > { %2660 = vst [vmem:[%s10092_s15 + $0xa8] sm:$0xff] %v10198_v7  ;;  %v10204_v40 = vadd.f32 %v2597_v30, %v2565_v41  ;;  %v2566_v31 = vmul.f32 %v10004_v34, %v2166_v16  ;;  %v2598_v49 = vmul.f32 %v10007_v54, %v2279_v39  ;;  %v2719_v41 = vpack.c.bf16 %v10099_v22, %v10087_v8 }
 0x2c2   : > { %v2170_v60 = vpop.f32.mrf.mxu0  ;;  %v2283_v50 = vpop.f32.mrf.mxu1 }
 0x2c3   : > { %2661 = vst [vmem:[%s10092_s15 + $0xb0] sm:$0xff] %v10204_v40  ;;  %v10210_v52 = vadd.f32 %v2598_v49, %v2566_v31  ;;  %v2567_v36 = vmul.f32 %v10022_v3, %v2170_v60  ;;  %v2599_v53 = vmul.f32 %v10025_v9, %v2283_v50 }
 0x2c4   : > { %v2172_v32 = vpop.f32.mrf.mxu0  ;;  %v2285_v46 = vpop.f32.mrf.mxu1 }
 0x2c5   : > { %2662 = vst [vmem:[%s10092_s15 + $0xb8] sm:$0xff] %v10210_v52  ;;  %v10216_v38 = vadd.f32 %v2599_v53, %v2567_v36  ;;  %v2568_v43 = vmul.f32 %v10022_v3, %v2172_v32  ;;  %v2600_v12 = vmul.f32 %v10025_v9, %v2285_v46 }
 0x2c6   : > { %v2174_v30 = vpop.f32.mrf.mxu0  ;;  %v2287_v16 = vpop.f32.mrf.mxu1  ;;  %7695 = vmatpush3.bf16.xpose.msra.mxu1 %v2720_v26 }
 0x2c7   : > { %2663 = vst [vmem:[%s10092_s15 + $0xc0] sm:$0xff] %v10216_v38  ;;  %v10224_v39 = vadd.f32 %v2600_v12, %v2568_v43  ;;  %v2569_v31 = vmul.f32 %v10034_v27, %v2174_v30  ;;  %v2601_v49 = vmul.f32 %v10037_v5, %v2287_v16  ;;  %7696 = vmatprep.subr.bf16.mxu1 %v2719_v41 }
 0x2c8   : > { %v2176_v3 = vpop.f32.mrf.mxu0  ;;  %v2289_v60 = vpop.f32.mrf.mxu1 }
 0x2c9   : > { %2664 = vst [vmem:[%s10092_s15 + $0xc8] sm:$0xff] %v10224_v39  ;;  %v2633_v9 = vadd.f32 %v2601_v49, %v2569_v31  ;;  %v2570_v8 = vmul.f32 %v10034_v27, %v2176_v3  ;;  %v2602_v22 = vmul.f32 %v10037_v5, %v2289_v60  ;;  %v2726_v31 = vpack.c.bf16 %v10164_v51, %v10155_v62 }
 0x2ca   : > { %v2180_v26 = vpop.f32.mrf.mxu0  ;;  %v2293_v50 = vpop.f32.mrf.mxu1 }
 0x2cb   : > { %2665 = vst [vmem:[%s10092_s15 + $0xd0] sm:$0xff] %v2633_v9  ;;  %v10233_v36 = vadd.f32 %v2602_v22, %v2570_v8  ;;  %v2571_v53 = vmul.f32 %v10052_v18, %v2180_v26  ;;  %v2603_v32 = vmul.f32 %v10055_v17, %v2293_v50 }
 0x2cc   : > { %v2182_v46 = vpop.f32.mrf.mxu0  ;;  %v2295_v43 = vpop.f32.mrf.mxu1 }
 0x2cd   : > { %2666 = vst [vmem:[%s10092_s15 + $0xd8] sm:$0xff] %v10233_v36  ;;  %v2635_v12 = vadd.f32 %v2603_v32, %v2571_v53  ;;  %v2572_v30 = vmul.f32 %v10052_v18, %v2182_v46  ;;  %v2604_v16 = vmul.f32 %v10055_v17, %v2295_v43  ;;  %v2450_v46 = vmul.f32 %v9864_v6, %v9877_v28 }
 0x2ce   : > { %v2184_v49 = vpop.f32.mrf.mxu0  ;;  %v2297_v3 = vpop.f32.mrf.mxu1  ;;  %7697 = vmatpush3.bf16.xpose.msra.mxu1 %v2719_v41  ;;  %v2482_v43 = vmul.f32 %v9867_v23, %v9879_v29  ;;  %v12018_v6 = vpack.c.bf16 %v9913_v0, %v9895_v47  ;;  %v2725_v23 = vpack.c.bf16 %v10146_v48, %v10137_v42  ;;  %v12019_v28 = vpack.c.bf16 %v9943_v59, %v9925_v13 }
 0x2cf   : > { %2667 = vst [vmem:[%s10092_s15 + $0xe0] sm:$0xff] %v2635_v12  ;;  %v10244_v60 = vadd.f32 %v2604_v16, %v2572_v30  ;;  %v2573_v8 = vmul.f32 %v10064_v56, %v2184_v49  ;;  %v2605_v22 = vmul.f32 %v10067_v2, %v2297_v3  ;;  %7706 = vmatprep.subr.bf16.mxu1 %v2726_v31 }
 0x2d0   : > { %v2186_v26 = vpop.f32.mrf.mxu0  ;;  %v2299_v18 = vpop.f32.mrf.mxu1  ;;  %v2729_v29 = vpack.c.bf16 %v2633_v9, %v10216_v38  ;;  %v2514_v0 = vadd.f32 %v2482_v43, %v2450_v46  ;;  %v12020_v3 = vpack.c.bf16 %v9967_v55, %v9955_v37 }
 0x2d1   : > { %2668 = vst [vmem:[%s10092_s15 + $0xe8] sm:$0xff] %v10244_v60  ;;  %v2637_v17 = vadd.f32 %v2605_v22, %v2573_v8  ;;  %v2574_v62 = vmul.f32 %v10064_v56, %v2186_v26  ;;  %v2606_v51 = vmul.f32 %v10067_v2, %v2299_v18  ;;  %v2724_v8 = vpack.c.bf16 %v10128_v20, %v10116_v58 }
 0x2d2   : > { %v2707_v9 = vpack.c.bf16 %v2514_v0, %v9873_v24  ;;  %v2728_v24 = vpack.c.bf16 %v10204_v40, %v10190_v19 }
 0x2d3   : > { %2669 = vst [vmem:[%s10092_s15 + $0xf0] sm:$0xff] %v2637_v17  ;;  %v10253_v41 = vadd.f32 %v2606_v51, %v2574_v62  ;;  %v10255_v50 = vpop.f32.mrf.mxu0  ;;  %v2376_v53 = vpop.f32.mrf.mxu1  ;;  %v2730_v32 = vpack.c.bf16 %v2637_v17, %v2635_v12  ;;  %v2727_v17 = vpack.c.bf16 %v10179_v1, %v10170_v63  ;;  %v2454_v63 = vmul.f32 %v9890_v44, %v9903_v57 }
 0x2d4   : > { %2671 = vst [vmem:[%s10262_s23] sm:$0xff] %v10255_v50  ;;  %2687 = vst [vmem:[%s10262_s23 + $0x80] sm:$0xff] %v2376_v53  ;;  %v2486_v1 = vmul.f32 %v9893_v45, %v9905_v61 }
 0x2d5   : > { %2670 = vst [vmem:[%s10092_s15 + $0xf8] sm:$0xff] %v10253_v41  ;;  %v10269_v30 = vpop.f32.mrf.mxu0  ;;  %v2378_v12 = vpop.f32.mrf.mxu1  ;;  %7699 = vmatmul.mubr.bf16.vlgmr.msra.gmra.mxu1 %v12018_v6  ;;  %7722 = vmatprep.subr.bf16.mxu0 %v2730_v32  ;;  %v2458_v6 = vmul.f32 %v9920_v11, %v9933_v25  ;;  %v2734_v44 = vpack.c.bf16 %v10253_v41, %v10244_v60  ;;  %v12022_v60 = vld [vmem:[#allocation34_spill] sm:$0xff] }
 0x2d6   : > { %2672 = vst [vmem:[%s10262_s23 + $0x8] sm:$0xff] %v10269_v30  ;;  %2688 = vst [vmem:[%s10262_s23 + $0x88] sm:$0xff] %v2378_v12  ;;  %7702 = vmatprep.mubr.bf16.mxu1 %v12019_v28  ;;  %7707 = vmatpush3.bf16.xpose.msra.mxu1 %v2726_v31  ;;  %v2518_v45 = vadd.f32 %v2486_v1, %v2454_v63  ;;  %v12032_v63 = vld [vmem:[#allocation48_spill] sm:$0xff] }
 0x2d7   : > { %v10283_v16 = vpop.f32.mrf.mxu0  ;;  %v2380_v47 = vpop.f32.mrf.mxu1  ;;  %7723 = vmatpush3.bf16.xpose.msra.mxu0 %v2730_v32  ;;  %7708 = vmatprep.subr.bf16.mxu1 %v2725_v23 }
 0x2d8   : > { %2673 = vst [vmem:[%s10262_s23 + $0x10] sm:$0xff] %v10283_v16  ;;  %2689 = vst [vmem:[%s10262_s23 + $0x90] sm:$0xff] %v2380_v47  ;;  %v10288_v42 = vpack.c.bf16 %v2380_v47, %v2376_v53  ;;  %7724 = vmatprep.subr.bf16.mxu0 %v2729_v29  ;;  %v2708_v41 = vpack.c.bf16 %v2518_v45, %v12022_v60  ;;  %v12043_v60 = vld [vmem:[#allocation44_spill] sm:$0xff] }
 0x2d9   : > { %v10290_v13 = vpop.f32.mrf.mxu0  ;;  %v2382_v59 = vpop.f32.mrf.mxu1 }
 0x2da   : > { %2674 = vst [vmem:[%s10262_s23 + $0x18] sm:$0xff] %v10290_v13  ;;  %2690 = vst [vmem:[%s10262_s23 + $0x98] sm:$0xff] %v2382_v59  ;;  %v12023_v59 = vld [vmem:[#allocation38_spill] sm:$0xff] }
 0x2db   : > { %v10295_v48 = vpop.f32.mrf.mxu0  ;;  %v2386_v38 = vpop.f32.mrf.mxu1 }
 0x2dc   : > { %2675 = vst [vmem:[%s10262_s23 + $0x20] sm:$0xff] %v10295_v48  ;;  %2691 = vst [vmem:[%s10262_s23 + $0xa0] sm:$0xff] %v2386_v38 }
 0x2dd   : > { %v10301_v31 = vpop.f32.mrf.mxu0  ;;  %v2388_v49 = vpop.f32.mrf.mxu1  ;;  %7703 = vmatmul.mubr.bf16.gmra.mxu1 %v12020_v3 }
 0x2de   : > { %2676 = vst [vmem:[%s10262_s23 + $0x28] sm:$0xff] %v10301_v31  ;;  %2692 = vst [vmem:[%s10262_s23 + $0xa8] sm:$0xff] %v2388_v49  ;;  %7709 = vmatpush3.bf16.xpose.msra.mxu1 %v2725_v23  ;;  %7714 = vmatprep.mubr.bf16.mxu1 %v2707_v9  ;;  %v12021_v23 = vld [vmem:[#allocation35_spill] sm:$0xff]  ;;  %v12025_v49 = vld [vmem:[#allocation41_spill] sm:$0xff] }
 0x2df   : > { %v10313_v22 = vpop.f32.mrf.mxu0  ;;  %v2390_v26 = vpop.f32.mrf.mxu1  ;;  %7725 = vmatpush3.bf16.xpose.msra.mxu0 %v2729_v29  ;;  %7710 = vmatprep.subr.bf16.mxu1 %v2724_v8  ;;  %v2490_v28 = vmul.f32 %v12021_v23, %v9935_v4  ;;  %v2466_v3 = vmul.f32 %v9978_v14, %v12025_v49  ;;  %v12035_v23 = vld [vmem:[#allocation40_spill] sm:$0xff] }
 0x2e0   : > { %2677 = vst [vmem:[%s10262_s23 + $0x30] sm:$0xff] %v10313_v22  ;;  %2693 = vst [vmem:[%s10262_s23 + $0xb0] sm:$0xff] %v2390_v26  ;;  %v10318_v37 = vpack.c.bf16 %v2390_v26, %v2386_v38  ;;  %7726 = vmatprep.subr.bf16.mxu0 %v2728_v24  ;;  %v12024_v38 = vld [vmem:[#allocation39_spill] sm:$0xff]  ;;  %v12027_v26 = vld [vmem:[#allocation36_spill] sm:$0xff] }
 0x2e1   : > { %v10320_v55 = vpop.f32.mrf.mxu0  ;;  %v2392_v58 = vpop.f32.mrf.mxu1  ;;  %v2522_v11 = vadd.f32 %v2490_v28, %v2458_v6  ;;  %v2494_v9 = vmul.f32 %v9953_v35, %v12024_v38  ;;  %v12031_v35 = vld [vmem:[#allocation52_spill] sm:$0xff]  ;;  %v12046_v38 = vld [vmem:[#allocation49_spill] sm:$0xff] }
 0x2e2   : > { %2678 = vst [vmem:[%s10262_s23 + $0x38] sm:$0xff] %v10320_v55  ;;  %2694 = vst [vmem:[%s10262_s23 + $0xb8] sm:$0xff] %v2392_v58  ;;  %v12033_v1 = vpack.c.bf16 %v12031_v35, %v12032_v63  ;;  %v7620_v63 = vld [vmem:[%s9606_s6 + $0x10] sm:$0xff]  }
 0x2e3   : > { %v2356_v20 = vpop.f32.mrf.mxu0  ;;  %v2396_v19 = vpop.f32.mrf.mxu1  ;;  %v2709_v58 = vpack.c.bf16 %v2522_v11, %v12027_v26 }
 0x2e4   : > { %2679 = vst [vmem:[%s10262_s23 + $0x40] sm:$0xff] %v2356_v20  ;;  %2695 = vst [vmem:[%s10262_s23 + $0xc0] sm:$0xff] %v2396_v19 }
 0x2e5   : > { %v10327_v40 = vpop.f32.mrf.mxu0  ;;  %v2398_v18 = vpop.f32.mrf.mxu1 }
 0x2e6   : > { %2680 = vst [vmem:[%s10262_s23 + $0x48] sm:$0xff] %v10327_v40  ;;  %2696 = vst [vmem:[%s10262_s23 + $0xc8] sm:$0xff] %v2398_v18  ;;  %7711 = vmatpush3.bf16.xpose.msra.mxu1 %v2724_v8  ;;  %v12026_v8 = vld [vmem:[#allocation42_spill] sm:$0xff]  ;;  %v12029_v18 = vld [vmem:[#allocation43_spill] sm:$0xff] }
 0x2e7   : > { %v2360_v62 = vpop.f32.mrf.mxu0  ;;  %v2400_v51 = vpop.f32.mrf.mxu1  ;;  %7727 = vmatpush3.bf16.xpose.msra.mxu0 %v2728_v24  ;;  %7712 = vmatprep.subr.bf16.mxu1 %v10112_v10  ;;  %v2498_v24 = vmul.f32 %v9981_v15, %v12026_v8  ;;  %v2736_v15 = vpack.c.bf16 %v10313_v22, %v10295_v48  ;;  %v12039_v22 = vld [vmem:[#allocation45_spill] sm:$0xff] }
 0x2e8   : > { %2681 = vst [vmem:[%s10262_s23 + $0x50] sm:$0xff] %v2360_v62  ;;  %2697 = vst [vmem:[%s10262_s23 + $0xd0] sm:$0xff] %v2400_v51  ;;  %v10337_v53 = vpack.c.bf16 %v2400_v51, %v2396_v19  ;;  %7728 = vmatprep.subr.bf16.mxu0 %v2727_v17  ;;  %v12028_v19 = vld [vmem:[#allocation47_spill] sm:$0xff]  ;;  %v2470_v45 = vmul.f32 %v10004_v34, %v12039_v22  ;;  %v7598_v22 = vunpack.c.h.bf16 %v7620_v63 }
 0x2e9   : > { %v10339_v32 = vpop.f32.mrf.mxu0  ;;  %v2402_v46 = vpop.f32.mrf.mxu1  ;;  %v2530_v14 = vadd.f32 %v2498_v24, %v2466_v3 }
 0x2ea   : > { %2682 = vst [vmem:[%s10262_s23 + $0x58] sm:$0xff] %v10339_v32  ;;  %2698 = vst [vmem:[%s10262_s23 + $0xd8] sm:$0xff] %v2402_v46  ;;  %v2737_v46 = vpack.c.bf16 %v2360_v62, %v2356_v20  ;;  %v2732_v62 = vpack.c.bf16 %v10210_v52, %v10198_v7  ;;  %v12041_v52 = vld [vmem:[#allocation50_spill] sm:$0xff] }
 0x2eb   : > { %v2366_v43 = vpop.f32.mrf.mxu0  ;;  %v2406_v12 = vpop.f32.mrf.mxu1  ;;  %v2715_v28 = vpack.c.bf16 %v2530_v14, %v12035_v23 }
 0x2ec   : > { %2683 = vst [vmem:[%s10262_s23 + $0x60] sm:$0xff] %v2366_v43  ;;  %2699 = vst [vmem:[%s10262_s23 + $0xe0] sm:$0xff] %v2406_v12 }
 0x2ed   : > { %v2368_v29 = vpop.f32.mrf.mxu0  ;;  %v10354_v47 = vpop.f32.mrf.mxu1 }
 0x2ee   : > { %2684 = vst [vmem:[%s10262_s23 + $0x68] sm:$0xff] %v2368_v29  ;;  %2700 = vst [vmem:[%s10262_s23 + $0xe8] sm:$0xff] %v10354_v47  ;;  %7713 = vmatpush3.bf16.xpose.msra.mxu1 %v10112_v10  ;;  %v2462_v10 = vmul.f32 %v9950_v33, %v12023_v59  ;;  %v2733_v33 = vpack.c.bf16 %v10233_v36, %v10224_v39  ;;  %v12036_v39 = vld [vmem:[#allocation57_spill] sm:$0xff]  ;;  %v12044_v59 = vld [vmem:[#allocation55_spill] sm:$0xff] }
 0x2ef   : > { %v2370_v57 = vpop.f32.mrf.mxu0  ;;  %v2410_v61 = vpop.f32.mrf.mxu1  ;;  %7729 = vmatpush3.bf16.xpose.msra.mxu0 %v2727_v17  ;;  %7738 = vmatprep.subr.bf16.mxu1 %v2734_v44  ;;  %v12030_v17 = vpack.c.bf16 %v12028_v19, %v12029_v18  ;;  %v12037_v36 = vld [vmem:[#allocation53_spill] sm:$0xff]  ;;  %v2478_v34 = vmul.f32 %v10064_v56, %v12044_v59  ;;  %v12047_v56 = vld [vmem:[#allocation54_spill] sm:$0xff] }
 0x2f0   : > { %2685 = vst [vmem:[%s10262_s23 + $0x70] sm:$0xff] %v2370_v57  ;;  %v2738_v25 = vpack.c.bf16 %v2370_v57, %v2366_v43  ;;  %2701 = vst [vmem:[%s10262_s23 + $0xf0] sm:$0xff] %v2410_v61  ;;  %v2526_v51 = vadd.f32 %v2494_v9, %v2462_v10  ;;  %v12034_v43 = vld [vmem:[#allocation37_spill] sm:$0xff]  ;;  %v12038_v20 = vpack.c.bf16 %v12036_v39, %v12037_v36  ;;  %v12040_v57 = vld [vmem:[#allocation46_spill] sm:$0xff] }
 0x2f1   : > { %v2372_v4 = vpop.f32.mrf.mxu0  ;;  %v10364_v0 = vpop.f32.mrf.mxu1  ;;  %v10398_v48 = vpack.c.bf16 %v2410_v61, %v2406_v12  ;;  %v2502_v7 = vmul.f32 %v10007_v54, %v12040_v57  ;;  %v12045_v10 = vld [vmem:[#allocation56_spill] sm:$0xff]  ;;  %v7619_v19 = vld [vmem:[%s9606_s6 + $0x8] sm:$0xff]  }
 0x2f2   : > { %2686 = vst [vmem:[%s10262_s23 + $0x78] sm:$0xff] %v2372_v4  ;;  %2702 = vst [vmem:[%s10262_s23 + $0xf8] sm:$0xff] %v10364_v0  ;;  %7754 = vmatprep.subr.bf16.mxu0 %v2738_v25  ;;  %v2710_v6 = vpack.c.bf16 %v2526_v51, %v12034_v43  ;;  %v2742_v12 = vpack.c.bf16 %v2372_v4, %v2368_v29  ;;  %v2510_v54 = vmul.f32 %v10067_v2, %v12045_v10 }
 0x2f3   : > { %v2534_v61 = vadd.f32 %v2502_v7, %v2470_v45  ;;  %v2739_v2 = vpack.c.bf16 %v10290_v13, %v10269_v30  ;;  %v7594_v35 = vunpack.c.h.bf16 %v7619_v19 }
 0x2f5   : > { %7715 = vmatmul.mubr.bf16.vlgmr.msra.gmra.mxu1 %v2708_v41  ;;  %v2716_v41 = vpack.c.bf16 %v2534_v61, %v12043_v60 }
 0x2f6   : > { %7731 = vmatmul.mubr.bf16.vlgmr.msra.gmra.mxu0 %v12030_v17  ;;  %7718 = vmatprep.mubr.bf16.mxu1 %v2709_v58  ;;  %v7593_v17 = vunpack.c.l.bf16 %v7619_v19 }
 0x2f7   : > { %7734 = vmatprep.mubr.bf16.mxu0 %v12033_v1  ;;  %7739 = vmatpush3.bf16.xpose.msra.mxu1 %v2734_v44  ;;  %v2735_v44 = vpack.c.bf16 %v10283_v16, %v10255_v50  ;;  %v2474_v50 = vmul.f32 %v10034_v27, %v12041_v52  ;;  %v12042_v16 = vld [vmem:[#allocation51_spill] sm:$0xff]  ;;  %v2741_v27 = vpack.c.bf16 %v10339_v32, %v10327_v40  ;;  %v7588_v32 = vld [vmem:[%s9606_s6] sm:$0xff]  }
 0x2f8   : > { %7755 = vmatpush3.bf16.msra.mxu0 %v2738_v25  ;;  %7740 = vmatprep.subr.bf16.mxu1 %v2733_v33  ;;  %v2506_v11 = vmul.f32 %v10037_v5, %v12042_v16  ;;  %v2542_v5 = vadd.f32 %v2510_v54, %v2478_v34  ;;  %v10426_v40 = vpack.c.bf16 %v10364_v0, %v10354_v47  ;;  %v7589_v4 = vunpack.c.l.bf16 %v7588_v32  ;;  %v7622_v34 = vld [vmem:[%s9606_s6 + $0x20] sm:$0xff]  }
 0x2f9   : > { %7756 = vmatprep.subr.bf16.mxu0 %v2737_v46  ;;  %v7590_v3 = vunpack.c.h.bf16 %v7588_v32 }
 0x2fa   : > { %v2538_v25 = vadd.f32 %v2506_v11, %v2474_v50  ;;  %v2718_v29 = vpack.c.bf16 %v2542_v5, %v12047_v56 }
 0x2fc   : > { %7757 = vmatpush3.bf16.msra.mxu0 %v2737_v46  ;;  %v2717_v9 = vpack.c.bf16 %v2538_v25, %v12046_v38 }
 0x2fd   : > { %7758 = vmatprep.subr.bf16.mxu0 %v2736_v15  ;;  %7719 = vmatmul.mubr.bf16.gmra.mxu1 %v2710_v6  ;;  %v7597_v6 = vunpack.c.l.bf16 %v7620_v63 }
 0x2fe   : > { %7735 = vmatmul.mubr.bf16.gmra.mxu0 %v12038_v20  ;;  %7746 = vmatprep.mubr.bf16.mxu1 %v2715_v28 }
 0x2ff   : > { %7741 = vmatpush3.bf16.xpose.msra.mxu1 %v2733_v33 }
 0x300   : > { %7759 = vmatpush3.bf16.msra.mxu0 %v2736_v15  ;;  %7742 = vmatprep.subr.bf16.mxu1 %v2732_v62 }
 0x301   : > { %7760 = vmatprep.subr.bf16.mxu0 %v2735_v44 }
 0x304   : > { %7761 = vmatpush3.bf16.msra.mxu0 %v2735_v44  ;;  %v7621_v44 = vld [vmem:[%s9606_s6 + $0x18] sm:$0xff]  }
 0x305   : > { %7786 = vmatprep.subr.bf16.mxu0 %v10398_v48  ;;  %v7601_v16 = vunpack.c.l.bf16 %v7621_v44  ;;  %v7602_v59 = vunpack.c.h.bf16 %v7621_v44 }
 0x307   : > { %7743 = vmatpush3.bf16.xpose.msra.mxu1 %v2732_v62 }
 0x308   : > { %7744 = vmatprep.subr.bf16.mxu1 %v10194_v21 }
 0x30f   : > { %7745 = vmatpush3.bf16.xpose.msra.mxu1 %v10194_v21  ;;  %v2740_v21 = vpack.c.bf16 %v10320_v55, %v10301_v31 }
 0x310   : > { %7770 = vmatprep.subr.bf16.mxu1 %v2742_v12 }
 0x316   : > { %7747 = vmatmul.mubr.bf16.vlgmr.msra.gmra.mxu1 %v2716_v41 }
 0x317   : > { %7750 = vmatprep.mubr.bf16.mxu1 %v2717_v9  ;;  %7771 = vmatpush3.bf16.msra.mxu1 %v2742_v12 }
 0x318   : > { %7772 = vmatprep.subr.bf16.mxu1 %v2741_v27 }
 0x31b   : > { %7773 = vmatpush3.bf16.msra.mxu1 %v2741_v27 }
 0x31c   : > { %7774 = vmatprep.subr.bf16.mxu1 %v2740_v21 }
 0x31e   : > { %7751 = vmatmul.mubr.bf16.gmra.mxu1 %v2718_v29 }
 0x31f   : > { %7775 = vmatpush3.bf16.msra.mxu1 %v2740_v21  ;;  %v7605_v21 = vunpack.c.l.bf16 %v7622_v34 }
 0x320   : > { %7776 = vmatprep.subr.bf16.mxu1 %v2739_v2 }
 0x323   : > { %7777 = vmatpush3.bf16.msra.mxu1 %v2739_v2 }
 0x324   : > { %7802 = vmatprep.subr.bf16.mxu1 %v10426_v40 }
 0x395   : > { %v7700_v31 = vpop.f32.mrf.mxu1 }
 0x396   : > { %v10448_v28 = vadd.f32 %v7700_v31, %v7593_v17  ;;  %v7606_v31 = vunpack.c.h.bf16 %v7622_v34 }
 0x397   : > { %v2785_v55 = vpop.f32.mrf.mxu1 }
 0x398   : > { %v10430_v49 = vadd.f32 %v7589_v4, %v2785_v55  ;;  %v3082_v7 = vsel %vm3075_vm0, %v10448_v28, -inf }
 0x399   : > { %v7701_v8 = vpop.f32.mrf.mxu1 }
 0x39a   : > { %v3076_v30 = vsel %vm3075_vm0, %v10430_v49, -inf  ;;  %v10457_v45 = vadd.f32 %v7701_v8, %v7594_v35 }
 0x39b   : > { %3077 = vmax.xlane.f32.xlu0 %v3076_v30  ;;  %v2788_v13 = vpop.f32.mrf.mxu1 }
 0x39c   : > { %v10434_v47 = vadd.f32 %v7590_v3, %v2788_v13  ;;  %v3085_v25 = vsel %vm3075_vm0, %v10457_v45, -inf }
 0x39d   : > { %v7704_v24 = vpop.f32.mrf.mxu1 }
 0x39e   : > { %v3079_v0 = vsel %vm3075_vm0, %v10434_v47, -inf  ;;  %v10482_v56 = vadd.f32 %v7704_v24, %v7601_v16 }
 0x39f   : > { %3080 = vmax.xlane.f32.xlu1 %v3079_v0  ;;  %v2801_v26 = vpop.f32.mrf.mxu1  ;;  %v7623_v0 = vld [vmem:[%s9606_s6 + $0x28] sm:$0xff]  }
 0x3a0   : > { %v10459_v57 = vadd.f32 %v7597_v6, %v2801_v26  ;;  %v3094_v8 = vsel %vm3075_vm0, %v10482_v56, -inf  ;;  %v7609_v19 = vunpack.c.l.bf16 %v7623_v0  ;;  %v7610_v63 = vunpack.c.h.bf16 %v7623_v0 }
 0x3a1   : > { %v7705_v58 = vpop.f32.mrf.mxu1 }
 0x3a2   : > { %v3088_v61 = vsel %vm3075_vm0, %v10459_v57, -inf  ;;  %v10490_v55 = vadd.f32 %v7705_v58, %v7602_v59 }
 0x3a3   : > { %v2804_v18 = vpop.f32.mrf.mxu1 }
 0x3a4   : > { %v10465_v11 = vadd.f32 %v7598_v22, %v2804_v18  ;;  %v3097_v26 = vsel %vm3075_vm0, %v10490_v55, -inf }
 0x3a6   : > { %v3091_v38 = vsel %vm3075_vm0, %v10465_v11, -inf }
 0x3b5   : > { %v7716_v33 = vpop.f32.mrf.mxu1 }
 0x3b6   : > { %v10439_v51 = vadd.f32 %v7716_v33, %v7593_v17  ;;  %v7732_v60 = vpop.f32.mrf.mxu0 }
 0x3b7   : > { %v2850_v46 = vpop.f32.mrf.mxu1 }
 0x3b8   : > { %v10442_v1 = vadd.f32 %v7589_v4, %v2850_v46  ;;  %v3106_v14 = vsel %vm3075_vm0, %v10439_v51, -inf  ;;  %v2915_v27 = vpop.f32.mrf.mxu0 }
 0x3b9   : > { %3107 = vmax.xlane.f32.xlu0 %v3106_v14  ;;  %v7717_v15 = vpop.f32.mrf.mxu1  ;;  %v7624_v14 = vld [vmem:[%s9606_s6 + $0x30] sm:$0xff]  }
 0x3ba   : > { %v10446_v43 = vadd.f32 %v7717_v15, %v7594_v35  ;;  %v3100_v36 = vsel %vm3075_vm0, %v10442_v1, -inf  ;;  %v7733_v4 = vpop.f32.mrf.mxu0 }
 0x3bb   : > { %v2853_v23 = vpop.f32.mrf.mxu1 }
 0x3bc   : > { %v10450_v39 = vadd.f32 %v7590_v3, %v2853_v23  ;;  %v3109_v20 = vsel %vm3075_vm0, %v10446_v43, -inf  ;;  %v10492_v3 = vadd.f32 %v7605_v21, %v2915_v27  ;;  %v2918_v13 = vpop.f32.mrf.mxu0 }
 0x3bd   : > { %3101 = vmax.xlane.f32.xlu0 %v3100_v36  ;;  %3110 = vmax.xlane.f32.xlu1 %v3109_v20  ;;  %v7720_v62 = vpop.f32.mrf.mxu1  ;;  %v10499_v24 = vadd.f32 %v7606_v31, %v2918_v13 }
 0x3be   : > { %v3103_v52 = vsel %vm3075_vm0, %v10450_v39, -inf  ;;  %v10467_v12 = vadd.f32 %v7720_v62, %v7601_v16  ;;  %v3124_v58 = vsel %vm3075_vm0, %v10492_v3, -inf  ;;  %v7736_v18 = vpop.f32.mrf.mxu0  ;;  %v7613_v62 = vunpack.c.l.bf16 %v7624_v14 }
 0x3bf   : > { %v2866_v50 = vpop.f32.mrf.mxu1  ;;  %v3127_v35 = vsel %vm3075_vm0, %v10499_v24, -inf }
 0x3c0   : > { %v10474_v10 = vadd.f32 %v7597_v6, %v2866_v50  ;;  %v3118_v9 = vsel %vm3075_vm0, %v10467_v12, -inf  ;;  %v2931_v23 = vpop.f32.mrf.mxu0 }
 0x3c1   : > { %3083 = vmax.xlane.f32.xlu0 %v3082_v7  ;;  %3104 = vmax.xlane.f32.xlu1 %v3103_v52  ;;  %v7721_v41 = vpop.f32.mrf.mxu1  ;;  %v10527_v34 = vadd.f32 %v7613_v62, %v2931_v23 }
 0x3c2   : > { %v10476_v54 = vadd.f32 %v7721_v41, %v7602_v59  ;;  %v3112_v2 = vsel %vm3075_vm0, %v10474_v10, -inf  ;;  %v7737_v16 = vpop.f32.mrf.mxu0  ;;  %v7614_v41 = vunpack.c.h.bf16 %v7624_v14  ;;  %v10525_v59 = vadd.f32 %v7733_v4, %v7610_v63 }
 0x3c3   : > { %v2869_v5 = vpop.f32.mrf.mxu1  ;;  %v3136_v4 = vsel %vm3075_vm0, %v10527_v34, -inf }
 0x3c4   : > { %v10484_v29 = vadd.f32 %v7598_v22, %v2869_v5  ;;  %v3121_v32 = vsel %vm3075_vm0, %v10476_v54, -inf  ;;  %v10516_v22 = vadd.f32 %v7732_v60, %v7609_v19 }
 0x3c5   : > { %3089 = vmax.xlane.f32.xlu0 %v3088_v61  ;;  %3086 = vmax.xlane.f32.xlu1 %v3085_v25  ;;  %v7625_v25 = vld [vmem:[%s9606_s6 + $0x38] sm:$0xff]   ;;  %s9098_s6 = scalar_lea.vmem %s9097_s10, 8192 }
 0x3c6   : > { %v3115_v30 = vsel %vm3075_vm0, %v10484_v29, -inf  ;;  %v3130_v60 = vsel %vm3075_vm0, %v10516_v22, -inf  ;;  %v7617_v5 = vunpack.c.l.bf16 %v7625_v25  ;;  %p9100_p5 = scmp.lt.s32.totalorder %s9098_s6, %s9092_s29 }
 0x3c8   : > { %p9101_p10 = por %p9100_p5, %p9099_p13 }
 0x3c9   : > { %3092 = vmax.xlane.f32.xlu1 %v3091_v38  ;;  %3119 = vmax.xlane.f32.xlu0 %v3118_v9  ;;  %v2934_v9 = vpop.f32.mrf.mxu0 }
 0x3ca   : > { %p9102_p1 = pnand %p9101_p10, %p9095_p2 }
 0x3cd   : > { %3113 = vmax.xlane.f32.xlu0 %v3112_v2  ;;  %3122 = vmax.xlane.f32.xlu1 %v3121_v32  ;;  %v3133_v32 = vsel %vm3075_vm0, %v10525_v59, -inf }
 0x3d1   : > { %3095 = vmax.xlane.f32.xlu0 %v3094_v8  ;;  %3116 = vmax.xlane.f32.xlu1 %v3115_v30  ;;  %v7618_v8 = vunpack.c.h.bf16 %v7625_v25 }
 0x3d5   : > { %3098 = vmax.xlane.f32.xlu1 %v3097_v26  ;;  %3125 = vmax.xlane.f32.xlu0 %v3124_v58 }
 0x3d6   : > { %v7748_v17 = vpop.f32.mrf.mxu1 }
 0x3d7   : > { %v10505_v33 = vadd.f32 %v7748_v17, %v7609_v19  ;;  %v10549_v19 = vadd.f32 %v7736_v18, %v7617_v5 }
 0x3d8   : > { %v2980_v46 = vpop.f32.mrf.mxu1 }
 0x3d9   : > { %v10510_v15 = vadd.f32 %v7605_v21, %v2980_v46  ;;  %v3154_v6 = vsel %vm3075_vm0, %v10505_v33, -inf  ;;  %3128 = vmax.xlane.f32.xlu1 %v3127_v35  ;;  %v10533_v21 = vadd.f32 %v7614_v41, %v2934_v9  ;;  %v3142_v14 = vsel %vm3075_vm0, %v10549_v19, -inf }
 0x3da   : > { %v7749_v36 = vpop.f32.mrf.mxu1  ;;  %3155 = vmax.xlane.f32.xlu0 %v3154_v6 }
 0x3db   : > { %v10514_v20 = vadd.f32 %v7749_v36, %v7610_v63  ;;  %v3148_v52 = vsel %vm3075_vm0, %v10510_v15, -inf  ;;  %v3139_v26 = vsel %vm3075_vm0, %v10533_v21, -inf  ;;  %v10557_v63 = vadd.f32 %v7737_v16, %v7618_v8 }
 0x3dc   : > { %v2983_v44 = vpop.f32.mrf.mxu1 }
 0x3dd   : > { %v10518_v7 = vadd.f32 %v7606_v31, %v2983_v44  ;;  %v3157_v50 = vsel %vm3075_vm0, %v10514_v20, -inf  ;;  %v3145_v18 = vsel %vm3075_vm0, %v10557_v63, -inf }
 0x3de   : > { %v7752_v61 = vpop.f32.mrf.mxu1  ;;  %3149 = vmax.xlane.f32.xlu0 %v3148_v52  ;;  %3158 = vmax.xlane.f32.xlu1 %v3157_v50 }
 0x3df   : > { %v3151_v38 = vsel %vm3075_vm0, %v10518_v7, -inf  ;;  %v10535_v2 = vadd.f32 %v7752_v61, %v7617_v5 }
 0x3e0   : > { %v2996_v27 = vpop.f32.mrf.mxu1 }
 0x3e1   : > { %v10541_v30 = vadd.f32 %v7613_v62, %v2996_v27  ;;  %v3166_v0 = vsel %vm3075_vm0, %v10535_v2, -inf }
 0x3e2   : > { %3131 = vmax.xlane.f32.xlu0 %v3130_v60  ;;  %3152 = vmax.xlane.f32.xlu1 %v3151_v38  ;;  %v7753_v31 = vpop.f32.mrf.mxu1 }
 0x3e3   : > { %v10543_v13 = vadd.f32 %v7753_v31, %v7618_v8  ;;  %v3160_v46 = vsel %vm3075_vm0, %v10541_v30, -inf }
 0x3e4   : > { %v2999_v58 = vpop.f32.mrf.mxu1 }
 0x3e5   : > { %v10551_v17 = vadd.f32 %v7614_v41, %v2999_v58  ;;  %v3169_v35 = vsel %vm3075_vm0, %v10543_v13, -inf }
 0x3e6   : > { %3134 = vmax.xlane.f32.xlu1 %v3133_v32  ;;  %3137 = vmax.xlane.f32.xlu0 %v3136_v4 }
 0x3e7   : > { %v3163_v6 = vsel %vm3075_vm0, %v10551_v17, -inf }
 0x3ea   : > { %3167 = vmax.xlane.f32.xlu0 %v3166_v0  ;;  %3140 = vmax.xlane.f32.xlu1 %v3139_v26 }
 0x3ee   : > { %3161 = vmax.xlane.f32.xlu0 %v3160_v46  ;;  %3170 = vmax.xlane.f32.xlu1 %v3169_v35 }
 0x3f2   : > { %3143 = vmax.xlane.f32.xlu0 %v3142_v14  ;;  %3164 = vmax.xlane.f32.xlu1 %v3163_v6 }
 0x3f6   : > { %3146 = vmax.xlane.f32.xlu1 %v3145_v18 }
 0x424   : > { %v3078_v23 = vpop.xlane.xlu0 %3077 }
 0x425   : > { %v3172_v36 = vsub.f32 %v10430_v49, %v3078_v23 }
 0x427   : > { %v3204_v62 = vmul.f32 1.442695, %v3172_v36 }
 0x428   : > { %v3081_v44 = vpop.xlane.xlu1 %3080 }
 0x429   : > { %8390 = vpow2.f32 %v3204_v62  ;;  %v3173_v52 = vsub.f32 %v10434_v47, %v3081_v44 }
 0x42b   : > { %v3206_v50 = vmul.f32 1.442695, %v3173_v52 }
 0x42d   : > { %8392 = vpow2.f32 %v3206_v50 }
 0x436   : > { %v10567_v16 = vpop.eup %8390 }
 0x437   : > { %v3268_v61 = vsel %vm3075_vm0, %v10567_v16, 0.0 }
 0x438   : > { %3269 = vadd.xlane.f32.xlu0 %v3268_v61 }
 0x43a   : > { %v10571_v25 = vpop.eup %8392 }
 0x43b   : > { %v3271_v41 = vsel %vm3075_vm0, %v10571_v25, 0.0 }
 0x43c   : > { %3272 = vadd.xlane.f32.xlu1 %v3271_v41 }
 0x442   : > { %v3108_v49 = vpop.xlane.xlu0 %3107 }
 0x443   : > { %v3182_v60 = vsub.f32 %v10439_v51, %v3108_v49 }
 0x445   : > { %v3224_v38 = vmul.f32 1.442695, %v3182_v60 }
 0x446   : > { %v3102_v9 = vpop.xlane.xlu0 %3101  ;;  %v3111_v47 = vpop.xlane.xlu1 %3110 }
 0x447   : > { %8394 = vpow2.f32 %v3224_v38  ;;  %v3180_v27 = vsub.f32 %v10442_v1, %v3102_v9  ;;  %v3183_v5 = vsub.f32 %v10446_v43, %v3111_v47 }
 0x449   : > { %v3220_v32 = vmul.f32 1.442695, %v3180_v27  ;;  %v3226_v4 = vmul.f32 1.442695, %v3183_v5 }
 0x44a   : > { %v3084_v31 = vpop.xlane.xlu0 %3083  ;;  %v3105_v8 = vpop.xlane.xlu1 %3104 }
 0x44b   : > { %8396 = vpow2.f32 %v3220_v32  ;;  %v3174_v0 = vsub.f32 %v10448_v28, %v3084_v31  ;;  %v3181_v26 = vsub.f32 %v10450_v39, %v3105_v8 }
 0x44c   : > { %8398 = vpow2.f32 %v3226_v4 }
 0x44d   : > { %v3208_v58 = vmul.f32 1.442695, %v3174_v0  ;;  %v3222_v51 = vmul.f32 1.442695, %v3181_v26 }
 0x44e   : > { %v3090_v46 = vpop.xlane.xlu0 %3089  ;;  %v3087_v35 = vpop.xlane.xlu1 %3086 }
 0x44f   : > { %8400 = vpow2.f32 %v3208_v58  ;;  %v3176_v14 = vsub.f32 %v10459_v57, %v3090_v46  ;;  %v3175_v1 = vsub.f32 %v10457_v45, %v3087_v35 }
 0x450   : > { %8402 = vpow2.f32 %v3222_v51 }
 0x451   : > { %v3212_v43 = vmul.f32 1.442695, %v3176_v14  ;;  %v3210_v6 = vmul.f32 1.442695, %v3175_v1 }
 0x452   : > { %v3093_v18 = vpop.xlane.xlu1 %3092  ;;  %v3120_v23 = vpop.xlane.xlu0 %3119 }
 0x453   : > { %8404 = vpow2.f32 %v3212_v43  ;;  %v3177_v28 = vsub.f32 %v10465_v11, %v3093_v18  ;;  %v3186_v39 = vsub.f32 %v10467_v12, %v3120_v23 }
 0x454   : > { %v10584_v36 = vpop.eup %8394  ;;  %8406 = vpow2.f32 %v3210_v6 }
 0x455   : > { %v3214_v62 = vmul.f32 1.442695, %v3177_v28  ;;  %v3232_v44 = vmul.f32 1.442695, %v3186_v39  ;;  %v3298_v57 = vsel %vm3075_vm0, %v10584_v36, 0.0 }
 0x456   : > { %v3114_v52 = vpop.xlane.xlu0 %3113  ;;  %v3123_v45 = vpop.xlane.xlu1 %3122  ;;  %3299 = vadd.xlane.f32.xlu0 %v3298_v57 }
 0x457   : > { %8408 = vpow2.f32 %v3214_v62  ;;  %v3184_v50 = vsub.f32 %v10474_v10, %v3114_v52  ;;  %v3187_v61 = vsub.f32 %v10476_v54, %v3123_v45 }
 0x458   : > { %v10590_v41 = vpop.eup %8396  ;;  %8410 = vpow2.f32 %v3232_v44 }
 0x459   : > { %v10592_v11 = vpop.eup %8398  ;;  %v3228_v12 = vmul.f32 1.442695, %v3184_v50  ;;  %v3234_v49 = vmul.f32 1.442695, %v3187_v61  ;;  %v3292_v60 = vsel %vm3075_vm0, %v10590_v41, 0.0 }
 0x45a   : > { %v3096_v38 = vpop.xlane.xlu0 %3095  ;;  %v3117_v9 = vpop.xlane.xlu1 %3116  ;;  %3293 = vadd.xlane.f32.xlu0 %v3292_v60  ;;  %v3301_v47 = vsel %vm3075_vm0, %v10592_v11, 0.0 }
 0x45b   : > { %8412 = vpow2.f32 %v3228_v12  ;;  %v3178_v10 = vsub.f32 %v10482_v56, %v3096_v38  ;;  %v3185_v54 = vsub.f32 %v10484_v29, %v3117_v9  ;;  %3302 = vadd.xlane.f32.xlu1 %v3301_v47 }
 0x45c   : > { %v10600_v27 = vpop.eup %8400  ;;  %8414 = vpow2.f32 %v3234_v49 }
 0x45d   : > { %v10602_v5 = vpop.eup %8402  ;;  %v3216_v32 = vmul.f32 1.442695, %v3178_v10  ;;  %v3230_v4 = vmul.f32 1.442695, %v3185_v54  ;;  %v3274_v31 = vsel %vm3075_vm0, %v10600_v27, 0.0 }
 0x45e   : > { %v3099_v8 = vpop.xlane.xlu1 %3098  ;;  %v3126_v0 = vpop.xlane.xlu0 %3125  ;;  %3275 = vadd.xlane.f32.xlu0 %v3274_v31  ;;  %v3295_v26 = vsel %vm3075_vm0, %v10602_v5, 0.0 }
 0x45f   : > { %8416 = vpow2.f32 %v3216_v32  ;;  %v3179_v56 = vsub.f32 %v10490_v55, %v3099_v8  ;;  %v3188_v29 = vsub.f32 %v10492_v3, %v3126_v0  ;;  %3296 = vadd.xlane.f32.xlu1 %v3295_v26 }
 0x460   : > { %v10610_v58 = vpop.eup %8404  ;;  %8418 = vpow2.f32 %v3230_v4 }
 0x461   : > { %v10612_v51 = vpop.eup %8406  ;;  %v3218_v46 = vmul.f32 1.442695, %v3179_v56  ;;  %v3236_v35 = vmul.f32 1.442695, %v3188_v29  ;;  %v3280_v14 = vsel %vm3075_vm0, %v10610_v58, 0.0 }
 0x462   : > { %v3129_v1 = vpop.xlane.xlu1 %3128  ;;  %3281 = vadd.xlane.f32.xlu0 %v3280_v14  ;;  %v3277_v43 = vsel %vm3075_vm0, %v10612_v51, 0.0 }
 0x463   : > { %8420 = vpow2.f32 %v3218_v46  ;;  %v3156_v55 = vpop.xlane.xlu0 %3155  ;;  %v3189_v3 = vsub.f32 %v10499_v24, %v3129_v1  ;;  %3278 = vadd.xlane.f32.xlu1 %v3277_v43 }
 0x464   : > { %v10619_v6 = vpop.eup %8408  ;;  %8422 = vpow2.f32 %v3236_v35  ;;  %v3198_v18 = vsub.f32 %v10505_v33, %v3156_v55 }
 0x465   : > { %v10622_v23 = vpop.eup %8410  ;;  %v3238_v28 = vmul.f32 1.442695, %v3189_v3  ;;  %v3283_v39 = vsel %vm3075_vm0, %v10619_v6, 0.0 }
 0x466   : > { %v3256_v62 = vmul.f32 1.442695, %v3198_v18  ;;  %v3310_v44 = vsel %vm3075_vm0, %v10622_v23, 0.0 }
 0x467   : > { %8424 = vpow2.f32 %v3238_v28  ;;  %v3150_v57 = vpop.xlane.xlu0 %3149  ;;  %v3159_v52 = vpop.xlane.xlu1 %3158  ;;  %3311 = vadd.xlane.f32.xlu0 %v3310_v44  ;;  %3284 = vadd.xlane.f32.xlu1 %v3283_v39 }
 0x468   : > { %v10628_v24 = vpop.eup %8412  ;;  %8426 = vpow2.f32 %v3256_v62  ;;  %v3196_v33 = vsub.f32 %v10510_v15, %v3150_v57  ;;  %v3199_v45 = vsub.f32 %v10514_v20, %v3159_v52 }
 0x469   : > { %v10632_v50 = vpop.eup %8414  ;;  %v3304_v61 = vsel %vm3075_vm0, %v10628_v24, 0.0 }
 0x46a   : > { %v3252_v12 = vmul.f32 1.442695, %v3196_v33  ;;  %v3258_v49 = vmul.f32 1.442695, %v3199_v45  ;;  %v3313_v60 = vsel %vm3075_vm0, %v10632_v50, 0.0 }
 0x46b   : > { %v3132_v38 = vpop.xlane.xlu0 %3131  ;;  %v3153_v9 = vpop.xlane.xlu1 %3152  ;;  %3305 = vadd.xlane.f32.xlu0 %v3304_v61  ;;  %3314 = vadd.xlane.f32.xlu1 %v3313_v60 }
 0x46c   : > { %v10638_v47 = vpop.eup %8416  ;;  %8428 = vpow2.f32 %v3252_v12  ;;  %v3190_v15 = vsub.f32 %v10516_v22, %v3132_v38  ;;  %v3197_v20 = vsub.f32 %v10518_v7, %v3153_v9 }
 0x46d   : > { %v10642_v10 = vpop.eup %8418  ;;  %8430 = vpow2.f32 %v3258_v49  ;;  %v3286_v54 = vsel %vm3075_vm0, %v10638_v47, 0.0 }
 0x46e   : > { %v3240_v32 = vmul.f32 1.442695, %v3190_v15  ;;  %v3254_v4 = vmul.f32 1.442695, %v3197_v20  ;;  %v3307_v31 = vsel %vm3075_vm0, %v10642_v10, 0.0 }
 0x46f   : > { %v3135_v8 = vpop.xlane.xlu1 %3134  ;;  %3287 = vadd.xlane.f32.xlu0 %v3286_v54  ;;  %v3138_v0 = vpop.xlane.xlu0 %3137  ;;  %3308 = vadd.xlane.f32.xlu1 %v3307_v31 }
 0x470   : > { %v10648_v26 = vpop.eup %8420  ;;  %8432 = vpow2.f32 %v3240_v32  ;;  %v3191_v22 = vsub.f32 %v10525_v59, %v3135_v8  ;;  %v3192_v7 = vsub.f32 %v10527_v34, %v3138_v0 }
 0x471   : > { %v10652_v56 = vpop.eup %8422  ;;  %8434 = vpow2.f32 %v3254_v4  ;;  %v3289_v29 = vsel %vm3075_vm0, %v10648_v26, 0.0 }
 0x472   : > { %v3242_v46 = vmul.f32 1.442695, %v3191_v22  ;;  %v3244_v35 = vmul.f32 1.442695, %v3192_v7  ;;  %v3316_v14 = vsel %vm3075_vm0, %v10652_v56, 0.0 }
 0x473   : > { %3317 = vadd.xlane.f32.xlu0 %v3316_v14  ;;  %v3168_v1 = vpop.xlane.xlu0 %3167  ;;  %3290 = vadd.xlane.f32.xlu1 %v3289_v29  ;;  %v3141_v43 = vpop.xlane.xlu1 %3140 }
 0x474   : > { %v10658_v55 = vpop.eup %8424  ;;  %8436 = vpow2.f32 %v3242_v46  ;;  %v3202_v59 = vsub.f32 %v10535_v2, %v3168_v1  ;;  %v3193_v34 = vsub.f32 %v10533_v21, %v3141_v43 }
 0x475   : > { %v10662_v3 = vpop.eup %8426  ;;  %8438 = vpow2.f32 %v3244_v35  ;;  %v3319_v18 = vsel %vm3075_vm0, %v10658_v55, 0.0 }
 0x476   : > { %v3264_v28 = vmul.f32 1.442695, %v3202_v59  ;;  %v3246_v39 = vmul.f32 1.442695, %v3193_v34  ;;  %v3346_v62 = vsel %vm3075_vm0, %v10662_v3, 0.0 }
 0x477   : > { %3347 = vadd.xlane.f32.xlu0 %v3346_v62  ;;  %v3162_v44 = vpop.xlane.xlu0 %3161  ;;  %3320 = vadd.xlane.f32.xlu1 %v3319_v18  ;;  %v3171_v57 = vpop.xlane.xlu1 %3170 }
 0x478   : > { %8440 = vpow2.f32 %v3264_v28  ;;  %v3200_v2 = vsub.f32 %v10541_v30, %v3162_v44  ;;  %v3203_v21 = vsub.f32 %v10543_v13, %v3171_v57 }
 0x479   : > { %v10670_v52 = vpop.eup %8428  ;;  %8442 = vpow2.f32 %v3246_v39 }
 0x47a   : > { %v10672_v33 = vpop.eup %8430  ;;  %v3260_v45 = vmul.f32 1.442695, %v3200_v2  ;;  %v3266_v61 = vmul.f32 1.442695, %v3203_v21  ;;  %v3340_v12 = vsel %vm3075_vm0, %v10670_v52, 0.0 }
 0x47b   : > { %3341 = vadd.xlane.f32.xlu0 %v3340_v12  ;;  %v3144_v49 = vpop.xlane.xlu0 %3143  ;;  %v3349_v60 = vsel %vm3075_vm0, %v10672_v33, 0.0  ;;  %v3165_v38 = vpop.xlane.xlu1 %3164 }
 0x47c   : > { %8444 = vpow2.f32 %v3260_v45  ;;  %v3194_v30 = vsub.f32 %v10549_v19, %v3144_v49  ;;  %3350 = vadd.xlane.f32.xlu1 %v3349_v60  ;;  %v3201_v13 = vsub.f32 %v10551_v17, %v3165_v38 }
 0x47d   : > { %v10680_v9 = vpop.eup %8432  ;;  %8446 = vpow2.f32 %v3266_v61 }
 0x47e   : > { %v10682_v15 = vpop.eup %8434  ;;  %v3248_v20 = vmul.f32 1.442695, %v3194_v30  ;;  %v3262_v54 = vmul.f32 1.442695, %v3201_v13  ;;  %v3322_v32 = vsel %vm3075_vm0, %v10680_v9, 0.0 }
 0x47f   : > { %3323 = vadd.xlane.f32.xlu0 %v3322_v32  ;;  %v3343_v4 = vsel %vm3075_vm0, %v10682_v15, 0.0  ;;  %v3147_v31 = vpop.xlane.xlu1 %3146 }
 0x480   : > { %8448 = vpow2.f32 %v3248_v20  ;;  %3344 = vadd.xlane.f32.xlu1 %v3343_v4  ;;  %v3195_v19 = vsub.f32 %v10557_v63, %v3147_v31 }
 0x481   : > { %v10689_v17 = vpop.eup %8436  ;;  %8450 = vpow2.f32 %v3262_v54 }
 0x482   : > { %v10691_v8 = vpop.eup %8438  ;;  %v3250_v0 = vmul.f32 1.442695, %v3195_v19  ;;  %v3325_v22 = vsel %vm3075_vm0, %v10689_v17, 0.0 }
 0x483   : > { %v3328_v7 = vsel %vm3075_vm0, %v10691_v8, 0.0 }
 0x484   : > { %8452 = vpow2.f32 %v3250_v0  ;;  %3329 = vadd.xlane.f32.xlu0 %v3328_v7  ;;  %3326 = vadd.xlane.f32.xlu1 %v3325_v22 }
 0x485   : > { %v10697_v29 = vpop.eup %8440 }
 0x486   : > { %v10699_v46 = vpop.eup %8442  ;;  %v3358_v63 = vsel %vm3075_vm0, %v10697_v29, 0.0 }
 0x487   : > { %v3331_v35 = vsel %vm3075_vm0, %v10699_v46, 0.0 }
 0x488   : > { %3359 = vadd.xlane.f32.xlu0 %v3358_v63  ;;  %3332 = vadd.xlane.f32.xlu1 %v3331_v35 }
 0x489   : > { %v10705_v14 = vpop.eup %8444 }
 0x48a   : > { %v10707_v1 = vpop.eup %8446  ;;  %v3352_v43 = vsel %vm3075_vm0, %v10705_v14, 0.0 }
 0x48b   : > { %v3361_v59 = vsel %vm3075_vm0, %v10707_v1, 0.0 }
 0x48c   : > { %3353 = vadd.xlane.f32.xlu0 %v3352_v43  ;;  %3362 = vadd.xlane.f32.xlu1 %v3361_v59 }
 0x48d   : > { %v10713_v34 = vpop.eup %8448 }
 0x48e   : > { %v10715_v18 = vpop.eup %8450  ;;  %v3334_v28 = vsel %vm3075_vm0, %v10713_v34, 0.0 }
 0x48f   : > { %v3355_v39 = vsel %vm3075_vm0, %v10715_v18, 0.0 }
 0x490   : > { %3335 = vadd.xlane.f32.xlu0 %v3334_v28  ;;  %3356 = vadd.xlane.f32.xlu1 %v3355_v39 }
 0x491   : > { %v10721_v62 = vpop.eup %8452 }
 0x492   : > { %v3337_v44 = vsel %vm3075_vm0, %v10721_v62, 0.0 }
 0x494   : > { %3338 = vadd.xlane.f32.xlu1 %v3337_v44 }
 0x4c1   : > { %v3270_v57 = vpop.xlane.xlu0 %3269 }
 0x4c2   : > { %8454 = vrcp.f32 %v3270_v57 }
 0x4c5   : > { %v3273_v2 = vpop.xlane.xlu1 %3272 }
 0x4c6   : > { %8456 = vrcp.f32 %v3273_v2 }
 0x4cf   : > { %v8455_v21 = vpop.eup %8454 }
 0x4d0   : > { %v3396_v61 = vmul.f32 %v8455_v21, %v10567_v16 }
 0x4d3   : > { %v8457_v45 = vpop.eup %8456 }
 0x4d4   : > { %v3397_v12 = vmul.f32 %v8457_v45, %v10571_v25 }
 0x4d6   : > { %v3428_v49 = vpack.c.bf16 %v3397_v12, %v3396_v61 }
 0x4d8   : > { %7762 = vmatprep.mubr.msk.bf16.mxu0 %vm3075_vm0, %v3428_v49 }
 0x4df   : > { %v3300_v60 = vpop.xlane.xlu0 %3299 }
 0x4e3   : > { %v3294_v38 = vpop.xlane.xlu0 %3293 }
 0x4e4   : > { %v3303_v30 = vpop.xlane.xlu1 %3302 }
 0x4e5   : > { %8458 = vrcp.f32 %v3303_v30 }
 0x4e6   : > { %8460 = vrcp.f32 %v3294_v38  ;;  %v8841_v38 = vld [vmem:[%s10262_s23 + $0xb8] sm:$0xff] }
 0x4e7   : > { %v3276_v13 = vpop.xlane.xlu0 %3275  ;;  %8462 = vrcp.f32 %v3300_v60 }
 0x4e8   : > { %v3297_v20 = vpop.xlane.xlu1 %3296 }
 0x4e9   : > { %8464 = vrcp.f32 %v3297_v20 }
 0x4ea   : > { %8466 = vrcp.f32 %v3276_v13 }
 0x4eb   : > { %v3282_v54 = vpop.xlane.xlu0 %3281 }
 0x4ec   : > { %v3279_v32 = vpop.xlane.xlu1 %3278 }
 0x4ed   : > { %8468 = vrcp.f32 %v3279_v32 }
 0x4ee   : > { %8470 = vrcp.f32 %v3282_v54 }
 0x4f0   : > { %v3312_v16 = vpop.xlane.xlu0 %3311  ;;  %v3285_v4 = vpop.xlane.xlu1 %3284 }
 0x4f1   : > { %8472 = vrcp.f32 %v3285_v4  ;;  %v8842_v4 = vld [vmem:[%s10262_s23 + $0x88] sm:$0xff] }
 0x4f2   : > { %v8459_v25 = vpop.eup %8458 }
 0x4f3   : > { %v8461_v31 = vpop.eup %8460  ;;  %v3407_v63 = vmul.f32 %v8459_v25, %v10592_v11  ;;  %v8843_v25 = vld [vmem:[%s10262_s23 + $0x98] sm:$0xff] }
 0x4f4   : > { %v3306_v19 = vpop.xlane.xlu0 %3305  ;;  %v3315_v0 = vpop.xlane.xlu1 %3314  ;;  %v3404_v35 = vmul.f32 %v8461_v31, %v10590_v41  ;;  %v8838_v41 = vld [vmem:[%s10262_s23 + $0xc8] sm:$0xff]  ;;  %v2747_v31 = vpack.c.bf16 %v8843_v25, %v8842_v4 }
 0x4f5   : > { %v8463_v22 = vpop.eup %8462  ;;  %8474 = vrcp.f32 %v3315_v0 }
 0x4f6   : > { %v8465_v7 = vpop.eup %8464  ;;  %v3406_v28 = vmul.f32 %v8463_v22, %v10584_v36  ;;  %8476 = vrcp.f32 %v3306_v19 }
 0x4f7   : > { %v3405_v43 = vmul.f32 %v8465_v7, %v10602_v5  ;;  %v8467_v59 = vpop.eup %8466  ;;  %8478 = vrcp.f32 %v3312_v16  ;;  %v8839_v5 = vld [vmem:[%s10262_s23 + $0xd8] sm:$0xff] }
 0x4f8   : > { %v3288_v39 = vpop.xlane.xlu0 %3287  ;;  %v3309_v44 = vpop.xlane.xlu1 %3308  ;;  %v3433_v21 = vpack.c.bf16 %v3407_v63, %v3406_v28  ;;  %v3398_v11 = vmul.f32 %v8467_v59, %v10600_v27  ;;  %v2749_v61 = vpack.c.bf16 %v8839_v5, %v8838_v41  ;;  %v8216_v28 = vld [vmem:[#allocation11 + $0x74] ss:$8 sps:$4 sm:$0xff]  }
 0x4f9   : > { %v3432_v57 = vpack.c.bf16 %v3405_v43, %v3404_v35  ;;  %8480 = vrcp.f32 %v3309_v44 }
 0x4fa   : > { %v8469_v2 = vpop.eup %8468  ;;  %8482 = vrcp.f32 %v3288_v39 }
 0x4fb   : > { %v3399_v45 = vmul.f32 %v8469_v2, %v10612_v51  ;;  %7778 = vmatprep.mubr.msk.bf16.mxu1 %vm3075_vm0, %v3432_v57  ;;  %v8471_v49 = vpop.eup %8470  ;;  %v8840_v51 = vld [vmem:[%s10262_s23 + $0xa8] sm:$0xff] }
 0x4fc   : > { %v3318_v36 = vpop.xlane.xlu0 %3317  ;;  %v3291_v12 = vpop.xlane.xlu1 %3290  ;;  %7779 = vmatmul.mubr.msk.bf16.vlgmr.msra.gmra.mxu1 %vm3075_vm0, %v3433_v21  ;;  %v2748_v30 = vpack.c.bf16 %v8841_v38, %v8840_v51  ;;  %v3400_v54 = vmul.f32 %v8471_v49, %v10610_v58 }
 0x4fd   : > { %v3429_v60 = vpack.c.bf16 %v3399_v45, %v3398_v11  ;;  %7803 = vmatpush3.bf16.msra.mxu1 %v10426_v40  ;;  %8484 = vrcp.f32 %v3291_v12 }
 0x4fe   : > { %7804 = vmatprep.subr.bf16.mxu1 %v2749_v61  ;;  %v8473_v27 = vpop.eup %8472  ;;  %8486 = vrcp.f32 %v3318_v36 }
 0x4ff   : > { %7763 = vmatmul.mubr.msk.bf16.vlgmr.msra.gmra.mxu0 %vm3075_vm0, %v3429_v60  ;;  %v3401_v32 = vmul.f32 %v8473_v27, %v10619_v6 }
 0x500   : > { %7787 = vmatpush3.bf16.msra.mxu0 %v10398_v48  ;;  %v3348_v13 = vpop.xlane.xlu0 %3347  ;;  %v3321_v20 = vpop.xlane.xlu1 %3320 }
 0x501   : > { %7788 = vmatprep.subr.bf16.mxu0 %v10337_v53  ;;  %7805 = vmatpush3.bf16.msra.mxu1 %v2749_v61  ;;  %8488 = vrcp.f32 %v3321_v20  ;;  %v3430_v40 = vpack.c.bf16 %v3401_v32, %v3400_v54 }
 0x502   : > { %7806 = vmatprep.subr.bf16.mxu1 %v2748_v30  ;;  %v8475_v16 = vpop.eup %8474 }
 0x503   : > { %7766 = vmatprep.mubr.msk.bf16.mxu0 %vm3075_vm0, %v3430_v40  ;;  %v8477_v19 = vpop.eup %8476  ;;  %v3411_v22 = vmul.f32 %v8475_v16, %v10632_v50  ;;  %v8219_v16 = vld [vmem:[#allocation11 + $0x64] ss:$8 sps:$4 sm:$0xff]  }
 0x504   : > { %7789 = vmatpush3.bf16.msra.mxu0 %v10337_v53  ;;  %v3342_v48 = vpop.xlane.xlu0 %3341  ;;  %v8479_v6 = vpop.eup %8478  ;;  %v3408_v63 = vmul.f32 %v8477_v19, %v10628_v24 }
 0x505   : > { %7790 = vmatprep.subr.bf16.mxu0 %v10318_v37  ;;  %v3351_v58 = vpop.xlane.xlu1 %3350  ;;  %7807 = vmatpush3.bf16.msra.mxu1 %v2748_v30  ;;  %v3410_v59 = vmul.f32 %v8479_v6, %v10622_v23  ;;  %v8220_v6 = vld [vmem:[#allocation11 + $0x50] ss:$8 sps:$4 sm:$0xff]  }
 0x506   : > { %7808 = vmatprep.subr.bf16.mxu1 %v2747_v31  ;;  %v8481_v0 = vpop.eup %8480  ;;  %8490 = vrcp.f32 %v3351_v58 }
 0x507   : > { %8492 = vrcp.f32 %v3342_v48  ;;  %v3409_v53 = vmul.f32 %v8481_v0, %v10642_v10  ;;  %v8483_v35 = vpop.eup %8482  ;;  %v3435_v44 = vpack.c.bf16 %v3411_v22, %v3410_v59  ;;  %v8217_v48 = vld [vmem:[#allocation11 + $0x60] ss:$8 sps:$4 sm:$0xff]   ;;  %v8225_v22 = vld [vmem:[#allocation11 + $0x44] ss:$8 sps:$4 sm:$0xff]  }
 0x508   : > { %7791 = vmatpush3.bf16.msra.mxu0 %v10318_v37  ;;  %v3324_v7 = vpop.xlane.xlu0 %3323  ;;  %8494 = vrcp.f32 %v3348_v13  ;;  %v3402_v37 = vmul.f32 %v8483_v35, %v10638_v47 }
 0x509   : > { %7792 = vmatprep.subr.bf16.mxu0 %v10288_v42  ;;  %v3345_v43 = vpop.xlane.xlu1 %3344  ;;  %7809 = vmatpush3.bf16.msra.mxu1 %v2747_v31  ;;  %v3434_v39 = vpack.c.bf16 %v3409_v53, %v3408_v63 }
 0x50a   : > { %8496 = vrcp.f32 %v3345_v43  ;;  %v8485_v50 = vpop.eup %8484  ;;  %v8223_v43 = vld [vmem:[#allocation11 + $0x40] ss:$8 sps:$4 sm:$0xff]  }
 0x50b   : > { %7782 = vmatprep.mubr.msk.bf16.mxu1 %vm3075_vm0, %v3434_v39  ;;  %v3403_v24 = vmul.f32 %v8485_v50, %v10648_v26  ;;  %v8487_v10 = vpop.eup %8486  ;;  %8498 = vrcp.f32 %v3324_v7  ;;  %v8228_v39 = vld [vmem:[#allocation11 + $0x34] ss:$8 sps:$4 sm:$0xff]  }
 0x50c   : > { %7793 = vmatpush3.bf16.msra.mxu0 %v10288_v42  ;;  %7783 = vmatmul.mubr.msk.bf16.gmra.mxu1 %vm3075_vm0, %v3435_v44  ;;  %v3412_v11 = vmul.f32 %v8487_v10, %v10652_v56  ;;  %v8232_v10 = vld [vmem:[#allocation11 + $0x10] ss:$8 sps:$4 sm:$0xff]  }
 0x50d   : > { %v3330_v57 = vpop.xlane.xlu0 %3329  ;;  %v3327_v2 = vpop.xlane.xlu1 %3326  ;;  %3960 = vmatprep.subr.bf16.mxu0 %v8216_v28  ;;  %v3431_v23 = vpack.c.bf16 %v3403_v24, %v3402_v37  ;;  %v8234_v24 = vld [vmem:[#allocation11 + $0x14] ss:$8 sps:$4 sm:$0xff]  }
 0x50e   : > { %v8489_v21 = vpop.eup %8488  ;;  %8500 = vrcp.f32 %v3327_v2  ;;  %v8238_v2 = vld [vmem:[#allocation11 + $0xf0] ss:$8 sps:$4 sm:$0xff]  }
 0x50f   : > { %7767 = vmatmul.mubr.msk.bf16.gmra.mxu0 %vm3075_vm0, %v3431_v23  ;;  %v3413_v42 = vmul.f32 %v8489_v21, %v10658_v55  ;;  %8502 = vrcp.f32 %v3330_v57  ;;  %v8240_v57 = vld [vmem:[#allocation11 + $0xf4] ss:$8 sps:$4 sm:$0xff]   ;;  %v8243_v23 = vld [vmem:[#allocation11 + $0xe4] ss:$8 sps:$4 sm:$0xff]   ;;  %v8241_v21 = vld [vmem:[#allocation11 + $0xe0] ss:$8 sps:$4 sm:$0xff]  }
 0x511   : > { %v3360_v47 = vpop.xlane.xlu0 %3359  ;;  %v3333_v45 = vpop.xlane.xlu1 %3332  ;;  %v3436_v26 = vpack.c.bf16 %v3413_v42, %v3412_v11  ;;  %v8246_v11 = vld [vmem:[#allocation11 + $0xd4] ss:$8 sps:$4 sm:$0xff]   ;;  %v8244_v42 = vld [vmem:[#allocation11 + $0xd0] ss:$8 sps:$4 sm:$0xff]  }
 0x512   : > { %8504 = vrcp.f32 %v3333_v45  ;;  %v8247_v45 = vld [vmem:[#allocation11 + $0xc0] ss:$8 sps:$4 sm:$0xff]  }
 0x513   : > { %v8491_v41 = vpop.eup %8490  ;;  %7794 = vmatprep.mubr.msk.bf16.mxu0 %vm3075_vm0, %v3436_v26  ;;  %v8252_v26 = vld [vmem:[#allocation11 + $0xb4] ss:$8 sps:$4 sm:$0xff]  }
 0x514   : > { %v8493_v5 = vpop.eup %8492  ;;  %v3423_v60 = vmul.f32 %v8491_v41, %v10672_v33  ;;  %v8250_v41 = vld [vmem:[#allocation11 + $0xb0] ss:$8 sps:$4 sm:$0xff]  }
 0x515   : > { %v3354_v61 = vpop.xlane.xlu0 %3353  ;;  %v3363_v36 = vpop.xlane.xlu1 %3362  ;;  %v3420_v56 = vmul.f32 %v8493_v5, %v10670_v52  ;;  %v8255_v5 = vld [vmem:[#allocation11 + $0xa4] ss:$8 sps:$4 sm:$0xff]  }
 0x516   : > { %v8495_v12 = vpop.eup %8494  ;;  %8506 = vrcp.f32 %v3363_v36  ;;  %v8258_v36 = vld [vmem:[#allocation11 + $0x94] ss:$8 sps:$4 sm:$0xff]  }
 0x517   : > { %v8497_v49 = vpop.eup %8496  ;;  %v3422_v27 = vmul.f32 %v8495_v12, %v10662_v3  ;;  %8508 = vrcp.f32 %v3354_v61  ;;  %v8253_v61 = vld [vmem:[#allocation11 + $0xa0] ss:$8 sps:$4 sm:$0xff]   ;;  %v8256_v12 = vld [vmem:[#allocation11 + $0x90] ss:$8 sps:$4 sm:$0xff]  }
 0x518   : > { %v3421_v55 = vmul.f32 %v8497_v49, %v10682_v15  ;;  %v8499_v30 = vpop.eup %8498  ;;  %8510 = vrcp.f32 %v3360_v47  ;;  %v8214_v15 = vld [vmem:[#allocation11 + $0x70] ss:$8 sps:$4 sm:$0xff]   ;;  %v8249_v47 = vld [vmem:[#allocation11 + $0xc4] ss:$8 sps:$4 sm:$0xff]  }
 0x519   : > { %v3336_v51 = vpop.xlane.xlu0 %3335  ;;  %v3357_v38 = vpop.xlane.xlu1 %3356  ;;  %v3441_v20 = vpack.c.bf16 %v3423_v60, %v3422_v27  ;;  %v3414_v33 = vmul.f32 %v8499_v30, %v10680_v9  ;;  %v8261_v49 = vld [vmem:[#allocation11 + $0x84] ss:$8 sps:$4 sm:$0xff]   ;;  %v8259_v60 = vld [vmem:[#allocation11 + $0x80] ss:$8 sps:$4 sm:$0xff]  }
 0x51a   : > { %v3440_v13 = vpack.c.bf16 %v3421_v55, %v3420_v56  ;;  %8512 = vrcp.f32 %v3357_v38 }
 0x51b   : > { %v8501_v54 = vpop.eup %8500  ;;  %8514 = vrcp.f32 %v3336_v51 }
 0x51c   : > { %7810 = vmatprep.mubr.msk.bf16.mxu1 %vm3075_vm0, %v3440_v13  ;;  %v3415_v52 = vmul.f32 %v8501_v54, %v10689_v17  ;;  %v8503_v3 = vpop.eup %8502  ;;  %v8222_v17 = vld [vmem:[#allocation11 + $0x54] ss:$8 sps:$4 sm:$0xff]  }
 0x51d   : > { %v3339_v32 = vpop.xlane.xlu1 %3338  ;;  %7811 = vmatmul.mubr.msk.bf16.vlgmr.msra.gmra.mxu1 %vm3075_vm0, %v3441_v20  ;;  %v3416_v25 = vmul.f32 %v8503_v3, %v10691_v8 }
 0x51e   : > { %8516 = vrcp.f32 %v3339_v32  ;;  %v3437_v40 = vpack.c.bf16 %v3415_v52, %v3414_v33 }
 0x51f   : > { %v8505_v4 = vpop.eup %8504 }
 0x520   : > { %7795 = vmatmul.mubr.msk.bf16.vlgmr.msra.gmra.mxu0 %vm3075_vm0, %v3437_v40  ;;  %v3417_v31 = vmul.f32 %v8505_v4, %v10699_v46 }
 0x521   : > { %3961 = vmatpush1.bf16.msra.mxu0 %v8214_v15 }
 0x522   : > { %v3438_v9 = vpack.c.bf16 %v3417_v31, %v3416_v25  ;;  %3962 = vmatprep.subr.bf16.mxu0 %v8219_v16 }
 0x523   : > { %v8507_v19 = vpop.eup %8506 }
 0x524   : > { %7798 = vmatprep.mubr.msk.bf16.mxu0 %vm3075_vm0, %v3438_v9  ;;  %v8509_v58 = vpop.eup %8508  ;;  %v3427_v63 = vmul.f32 %v8507_v19, %v10707_v1  ;;  %v8226_v1 = vld [vmem:[#allocation11 + $0x30] ss:$8 sps:$4 sm:$0xff]  }
 0x525   : > { %3963 = vmatpush1.bf16.msra.mxu0 %v8217_v48  ;;  %v8511_v0 = vpop.eup %8510  ;;  %v3424_v46 = vmul.f32 %v8509_v58, %v10705_v14 }
 0x526   : > { %3964 = vmatprep.subr.bf16.mxu0 %v8222_v17  ;;  %v3426_v35 = vmul.f32 %v8511_v0, %v10697_v29  ;;  %v8231_v29 = vld [vmem:[#allocation11 + $0x24] ss:$8 sps:$4 sm:$0xff]  }
 0x527   : > { %v8513_v7 = vpop.eup %8512 }
 0x528   : > { %v8515_v8 = vpop.eup %8514  ;;  %v3425_v53 = vmul.f32 %v8513_v7, %v10715_v18  ;;  %v3443_v50 = vpack.c.bf16 %v3427_v63, %v3426_v35  ;;  %v8229_v18 = vld [vmem:[#allocation11 + $0x20] ss:$8 sps:$4 sm:$0xff]  }
 0x529   : > { %3965 = vmatpush1.bf16.msra.mxu0 %v8220_v6  ;;  %v3418_v44 = vmul.f32 %v8515_v8, %v10713_v34  ;;  %v8237_v34 = vld [vmem:[#allocation11 + $0x4] ss:$8 sps:$4 sm:$0xff]  }
 0x52a   : > { %v3442_v28 = vpack.c.bf16 %v3425_v53, %v3424_v46  ;;  %3966 = vmatprep.subr.bf16.mxu0 %v8225_v22 }
 0x52b   : > { %v8517_v59 = vpop.eup %8516 }
 0x52c   : > { %v3419_v37 = vmul.f32 %v8517_v59, %v10721_v62  ;;  %7814 = vmatprep.mubr.msk.bf16.mxu1 %vm3075_vm0, %v3442_v28  ;;  %v8235_v62 = vld [vmem:[#allocation11] ss:$8 sps:$4 sm:$0xff]  }
 0x52d   : > { %7815 = vmatmul.mubr.msk.bf16.gmra.mxu1 %vm3075_vm0, %v3443_v50  ;;  %3967 = vmatpush1.bf16.msra.mxu0 %v8223_v43 }
 0x52e   : > { %v3439_v14 = vpack.c.bf16 %v3419_v37, %v3418_v44  ;;  %3968 = vmatprep.subr.bf16.mxu0 %v8228_v39 }
 0x530   : > { %7799 = vmatmul.mubr.msk.bf16.gmra.mxu0 %vm3075_vm0, %v3439_v14 }
 0x531   : > { %3969 = vmatpush1.bf16.msra.mxu0 %v8226_v1 }
 0x532   : > { %3970 = vmatprep.subr.bf16.mxu0 %v8231_v29 }
 0x535   : > { %3971 = vmatpush1.bf16.msra.mxu0 %v8229_v18 }
 0x536   : > { %3972 = vmatprep.subr.bf16.mxu0 %v8234_v24 }
 0x539   : > { %3973 = vmatpush1.bf16.msra.mxu0 %v8232_v10 }
 0x53a   : > { %3974 = vmatprep.subr.bf16.mxu0 %v8237_v34 }
 0x53d   : > { %3975 = vmatpush1.bf16.msra.mxu0 %v8235_v62 }
 0x53e   : > { %3976 = vmatprep.subr.bf16.mxu0 %v8240_v57  ;;  %v4381_v57 = vld [vmem:[#allocation13 + $0x1c0] sm:$0xff] }
 0x541   : > { %3977 = vmatpush2.bf16.msra.mxu0 %v8238_v2  ;;  %v4385_v2 = vld [vmem:[#allocation13 + $0x1e0] sm:$0xff] }
 0x542   : > { %3978 = vmatprep.subr.bf16.mxu0 %v8243_v23  ;;  %v4382_v23 = vld [vmem:[#allocation13 + $0x1c8] sm:$0xff] }
 0x545   : > { %3979 = vmatpush2.bf16.msra.mxu0 %v8241_v21  ;;  %v7359_v21 = vcombine.low %v4381_v57, %v4385_v2 }
 0x546   : > { %3980 = vmatprep.subr.bf16.mxu0 %v8246_v11  ;;  %v7360_v11 = vcombine.high %v4381_v57, %v4385_v2  ;;  %v4446_v57 = vld [vmem:[#allocation13 + $0x3c8] sm:$0xff] }
 0x547   : > { %v4450_v2 = vld [vmem:[#allocation13 + $0x3e8] sm:$0xff] }
 0x548   : > { %5093 = vmatprep.subr.bf16.mxu1 %v7360_v11 }
 0x549   : > { %3981 = vmatpush2.bf16.msra.mxu0 %v8244_v42  ;;  %v4386_v42 = vld [vmem:[#allocation13 + $0x1e8] sm:$0xff]  ;;  %5094 = vmatpush1.bf16.msra.mxu1 %v7359_v21 }
 0x54a   : > { %3982 = vmatprep.subr.bf16.mxu0 %v8249_v47  ;;  %v4373_v47 = vld [vmem:[#allocation13 + $0x180] sm:$0xff] }
 0x54d   : > { %3983 = vmatpush2.bf16.msra.mxu0 %v8247_v45  ;;  %v4377_v45 = vld [vmem:[#allocation13 + $0x1a0] sm:$0xff] }
 0x54e   : > { %3984 = vmatprep.subr.bf16.mxu0 %v8252_v26  ;;  %v7361_v26 = vcombine.low %v4382_v23, %v4386_v42 }
 0x551   : > { %3985 = vmatpush2.bf16.msra.mxu0 %v8250_v41  ;;  %v7362_v41 = vcombine.high %v4382_v23, %v4386_v42  ;;  %v7426_v42 = vcombine.high %v4446_v57, %v4450_v2 }
 0x552   : > { %3986 = vmatprep.subr.bf16.mxu0 %v8255_v5  ;;  %v7352_v5 = vcombine.high %v4373_v47, %v4377_v45 }
 0x554   : > { %5095 = vmatprep.subr.bf16.mxu1 %v7352_v5 }
 0x555   : > { %3987 = vmatpush2.bf16.msra.mxu0 %v8253_v61  ;;  %v4374_v61 = vld [vmem:[#allocation13 + $0x188] sm:$0xff] }
 0x556   : > { %3988 = vmatprep.subr.bf16.mxu0 %v8258_v36  ;;  %v4378_v36 = vld [vmem:[#allocation13 + $0x1a8] sm:$0xff] }
 0x559   : > { %3989 = vmatpush2.bf16.msra.mxu0 %v8256_v12  ;;  %v4365_v12 = vld [vmem:[#allocation13 + $0x140] sm:$0xff] }
 0x55a   : > { %3990 = vmatprep.subr.bf16.mxu0 %v8261_v49  ;;  %v7354_v49 = vcombine.high %v4374_v61, %v4378_v36 }
 0x55d   : > { %3991 = vmatpush2.bf16.msra.mxu0 %v8259_v60  ;;  %v4369_v60 = vld [vmem:[#allocation13 + $0x160] sm:$0xff] }
 0x55e   : > { %5206 = vmatprep.subr.bf16.mxu0 %v7362_v41  ;;  %v8844_v41 = vld [vmem:[%s9595_s30] sm:$0xff] }
 0x5bc   : > { %v7780_v56 = vpop.f32.mrf.mxu1 }
 0x5be   : > { %v3567_v55 = vpop.f32.mrf.mxu1 }
 0x5bf   : > { %v7764_v27 = vpop.f32.mrf.mxu0 }
 0x5c0   : > { %v7781_v51 = vpop.f32.mrf.mxu1 }
 0x5c1   : > { %v3490_v38 = vpop.f32.mrf.mxu0  ;;  %v3755_v52 = vpack.c.bf16 %v7781_v51, %v7780_v56  ;;  %v4366_v56 = vld [vmem:[#allocation13 + $0x148] sm:$0xff]  ;;  %v7353_v51 = vcombine.low %v4374_v61, %v4378_v36 }
 0x5c2   : > { %v3570_v30 = vpop.f32.mrf.mxu1  ;;  %v8845_v36 = vld [vmem:[%s9595_s30 + $0x8] sm:$0xff] }
 0x5c3   : > { %v3753_v13 = vpack.c.bf16 %v3570_v30, %v3567_v55  ;;  %v7765_v20 = vpop.f32.mrf.mxu0  ;;  %v4370_v55 = vld [vmem:[#allocation13 + $0x168] sm:$0xff] }
 0x5c4   : > { %v3754_v3 = vpack.c.bf16 %v7765_v20, %v7764_v27  ;;  %v7351_v27 = vcombine.low %v4373_v47, %v4377_v45  ;;  %v7346_v30 = vcombine.high %v4366_v56, %v4370_v55  ;;  %v4361_v20 = vld [vmem:[#allocation13 + $0x120] sm:$0xff]  ;;  %v7425_v45 = vcombine.low %v4446_v57, %v4450_v2 }
 0x5c5   : > { %v3493_v54 = vpop.f32.mrf.mxu0  ;;  %3992 = vmatprep.mubr.bf16.mxu0 %v3753_v13  ;;  %v4357_v13 = vld [vmem:[#allocation13 + $0x100] sm:$0xff] }
 0x5c6   : > { %v3752_v33 = vpack.c.bf16 %v3493_v54, %v3490_v38  ;;  %v7344_v38 = vcombine.high %v4365_v12, %v4369_v60  ;;  %v4358_v54 = vld [vmem:[#allocation13 + $0x108] sm:$0xff]  ;;  %5096 = vmatpush1.bf16.msra.mxu1 %v7351_v27  ;;  %v4429_v57 = vld [vmem:[#allocation13 + $0x340] sm:$0xff] }
 0x5c7   : > { %v4433_v2 = vld [vmem:[#allocation13 + $0x360] sm:$0xff] }
 0x5c8   : > { %3993 = vmatmul.mubr.bf16.vlgmr.msra.gmra.mxu0 %v3752_v33  ;;  %v4362_v33 = vld [vmem:[#allocation13 + $0x128] sm:$0xff]  ;;  %5097 = vmatprep.subr.bf16.mxu1 %v7344_v38  ;;  %v8847_v38 = vld [vmem:[%s9595_s30 + $0x18] sm:$0xff] }
 0x5c9   : > { %4002 = vmatprep.mubr.bf16.mxu0 %v3755_v52  ;;  %5207 = vmatpush1.bf16.msra.mxu0 %v7361_v26  ;;  %v7343_v52 = vcombine.low %v4365_v12, %v4369_v60  ;;  %v8846_v60 = vld [vmem:[%s9595_s30 + $0x10] sm:$0xff] }
 0x5ca   : > { %5208 = vmatprep.subr.bf16.mxu0 %v7354_v49 }
 0x5cb   : > { %5098 = vmatpush1.bf16.msra.mxu1 %v7343_v52 }
 0x5cc   : > { %v7784_v32 = vpop.f32.mrf.mxu1 }
 0x5cd   : > { %5209 = vmatpush1.bf16.msra.mxu0 %v7353_v51 }
 0x5ce   : > { %v3583_v15 = vpop.f32.mrf.mxu1  ;;  %5210 = vmatprep.subr.bf16.mxu0 %v7346_v30 }
 0x5cf   : > { %v7768_v40 = vpop.f32.mrf.mxu0 }
 0x5d0   : > { %4003 = vmatmul.mubr.bf16.gmra.mxu0 %v3754_v3  ;;  %v7785_v16 = vpop.f32.mrf.mxu1  ;;  %v7336_v3 = vcombine.high %v4357_v13, %v4361_v20 }
 0x5d1   : > { %v3506_v4 = vpop.f32.mrf.mxu0  ;;  %v3759_v19 = vpack.c.bf16 %v7785_v16, %v7784_v32  ;;  %v7345_v32 = vcombine.low %v4366_v56, %v4370_v55  ;;  %v4353_v16 = vld [vmem:[#allocation13 + $0xe0] sm:$0xff] }
 0x5d2   : > { %v3586_v25 = vpop.f32.mrf.mxu1  ;;  %5099 = vmatprep.subr.bf16.mxu1 %v7336_v3 }
 0x5d3   : > { %v3757_v31 = vpack.c.bf16 %v3586_v25, %v3583_v15  ;;  %v7769_v48 = vpop.f32.mrf.mxu0  ;;  %v7338_v15 = vcombine.high %v4358_v54, %v4362_v33  ;;  %v4354_v25 = vld [vmem:[#allocation13 + $0xe8] sm:$0xff]  ;;  %5211 = vmatpush1.bf16.msra.mxu0 %v7345_v32 }
 0x5d4   : > { %v3758_v6 = vpack.c.bf16 %v7769_v48, %v7768_v40  ;;  %v4349_v40 = vld [vmem:[#allocation13 + $0xc0] sm:$0xff]  ;;  %v7337_v48 = vcombine.low %v4358_v54, %v4362_v33 }
 0x5d5   : > { %v3509_v9 = vpop.f32.mrf.mxu0  ;;  %4012 = vmatprep.mubr.bf16.mxu0 %v3757_v31  ;;  %v7335_v31 = vcombine.low %v4357_v13, %v4361_v20  ;;  %5212 = vmatprep.subr.bf16.mxu0 %v7338_v15  ;;  %v8848_v54 = vld [vmem:[%s9595_s30 + $0x20] sm:$0xff]  ;;  %v8849_v15 = vld [vmem:[%s9595_s30 + $0x28] sm:$0xff] }
 0x5d6   : > { %v3756_v17 = vpack.c.bf16 %v3509_v9, %v3506_v4  ;;  %v4350_v4 = vld [vmem:[#allocation13 + $0xc8] sm:$0xff]  ;;  %v7328_v9 = vcombine.high %v4349_v40, %v4353_v16 }
 0x5d7   : > { %5100 = vmatpush1.bf16.msra.mxu1 %v7335_v31  ;;  %5213 = vmatpush1.bf16.msra.mxu0 %v7337_v48 }
 0x5d8   : > { %4013 = vmatmul.mubr.bf16.gmra.mxu0 %v3756_v17  ;;  %v7330_v17 = vcombine.high %v4350_v4, %v4354_v25  ;;  %5101 = vmatprep.subr.bf16.mxu1 %v7328_v9 }
 0x5d9   : > { %4022 = vmatprep.mubr.bf16.mxu0 %v3759_v19  ;;  %v4341_v19 = vld [vmem:[#allocation13 + $0x80] sm:$0xff] }
 0x5da   : > { %5214 = vmatprep.subr.bf16.mxu0 %v7330_v17 }
 0x5dd   : > { %v7812_v58 = vpop.f32.mrf.mxu1 }
 0x5df   : > { %v3721_v0 = vpop.f32.mrf.mxu1 }
 0x5e0   : > { %v7796_v22 = vpop.f32.mrf.mxu0  ;;  %4023 = vmatmul.mubr.bf16.gmra.mxu0 %v3758_v6  ;;  %v4342_v6 = vld [vmem:[#allocation13 + $0x88] sm:$0xff] }
 0x5e1   : > { %v7813_v7 = vpop.f32.mrf.mxu1 }
 0x5e2   : > { %v3644_v63 = vpop.f32.mrf.mxu0  ;;  %v3763_v59 = vpack.c.bf16 %v7813_v7, %v7812_v58  ;;  %v4345_v58 = vld [vmem:[#allocation13 + $0xa0] sm:$0xff]  ;;  %v7329_v7 = vcombine.low %v4350_v4, %v4354_v25  ;;  %v8850_v25 = vld [vmem:[%s9595_s30 + $0x30] sm:$0xff] }
 0x5e3   : > { %v3724_v8 = vpop.f32.mrf.mxu1 }
 0x5e4   : > { %v3761_v46 = vpack.c.bf16 %v3724_v8, %v3721_v0  ;;  %v7797_v53 = vpop.f32.mrf.mxu0  ;;  %v4346_v0 = vld [vmem:[#allocation13 + $0xa8] sm:$0xff]  ;;  %5215 = vmatpush1.bf16.msra.mxu0 %v7329_v7 }
 0x5e5   : > { %v3762_v39 = vpack.c.bf16 %v7797_v53, %v7796_v22  ;;  %v7327_v22 = vcombine.low %v4349_v40, %v4353_v16  ;;  %v7322_v8 = vcombine.high %v4342_v6, %v4346_v0  ;;  %v4337_v53 = vld [vmem:[#allocation13 + $0x60] sm:$0xff] }
 0x5e6   : > { %4032 = vmatprep.mubr.bf16.mxu0 %v3761_v46  ;;  %v3647_v35 = vpop.f32.mrf.mxu0  ;;  %v4333_v46 = vld [vmem:[#allocation13 + $0x40] sm:$0xff] }
 0x5e7   : > { %v3760_v43 = vpack.c.bf16 %v3647_v35, %v3644_v63  ;;  %v7320_v63 = vcombine.high %v4341_v19, %v4345_v58  ;;  %v4334_v35 = vld [vmem:[#allocation13 + $0x48] sm:$0xff]  ;;  %5102 = vmatpush1.bf16.msra.mxu1 %v7327_v22  ;;  %5216 = vmatprep.subr.bf16.mxu0 %v7322_v8 }
 0x5e9   : > { %4033 = vmatmul.mubr.bf16.gmra.mxu0 %v3760_v43  ;;  %v4338_v43 = vld [vmem:[#allocation13 + $0x68] sm:$0xff]  ;;  %5103 = vmatprep.subr.bf16.mxu1 %v7320_v63  ;;  %v8852_v63 = vld [vmem:[%s9595_s30 + $0x40] sm:$0xff] }
 0x5ea   : > { %4042 = vmatprep.mubr.bf16.mxu0 %v3763_v59  ;;  %v7319_v59 = vcombine.low %v4341_v19, %v4345_v58  ;;  %v8851_v19 = vld [vmem:[%s9595_s30 + $0x38] sm:$0xff] }
 0x5ec   : > { %5104 = vmatpush1.bf16.msra.mxu1 %v7319_v59  ;;  %v4438_v59 = vld [vmem:[#allocation13 + $0x388] sm:$0xff] }
 0x5ed   : > { %v7816_v28 = vpop.f32.mrf.mxu1 }
 0x5ef   : > { %v3737_v50 = vpop.f32.mrf.mxu1 }
 0x5f0   : > { %v7800_v44 = vpop.f32.mrf.mxu0 }
 0x5f1   : > { %v7817_v37 = vpop.f32.mrf.mxu1  ;;  %4043 = vmatmul.mubr.bf16.gmra.mxu0 %v3762_v39  ;;  %v7312_v39 = vcombine.high %v4333_v46, %v4337_v53 }
 0x5f2   : > { %v3660_v14 = vpop.f32.mrf.mxu0  ;;  %v3767_v34 = vpack.c.bf16 %v7817_v37, %v7816_v28  ;;  %v7321_v28 = vcombine.low %v4342_v6, %v4346_v0  ;;  %v4329_v37 = vld [vmem:[#allocation13 + $0x20] sm:$0xff] }
 0x5f3   : > { %v3740_v1 = vpop.f32.mrf.mxu1  ;;  %5105 = vmatprep.subr.bf16.mxu1 %v7312_v39 }
 0x5f4   : > { %v7801_v29 = vpop.f32.mrf.mxu0  ;;  %v3765_v18 = vpack.c.bf16 %v3740_v1, %v3737_v50  ;;  %v7314_v50 = vcombine.high %v4334_v35, %v4338_v43  ;;  %v4330_v1 = vld [vmem:[#allocation13 + $0x28] sm:$0xff]  ;;  %5217 = vmatpush1.bf16.msra.mxu0 %v7321_v28 }
 0x5f5   : > { %v3766_v62 = vpack.c.bf16 %v7801_v29, %v7800_v44  ;;  %v4325_v44 = vld [vmem:[#allocation13] sm:$0xff]  ;;  %v7311_v29 = vcombine.low %v4333_v46, %v4337_v53  ;;  %v8853_v28 = vld [vmem:[%s9595_s30 + $0x48] sm:$0xff] }
 0x5f6   : > { %v3663_v24 = vpop.f32.mrf.mxu0  ;;  %4052 = vmatprep.mubr.bf16.mxu0 %v3765_v18  ;;  %v7313_v18 = vcombine.low %v4334_v35, %v4338_v43  ;;  %5218 = vmatprep.subr.bf16.mxu0 %v7314_v50  ;;  %v7303_v23 = vcombine.low %v4325_v44, %v4329_v37  ;;  %v4437_v35 = vld [vmem:[#allocation13 + $0x380] sm:$0xff] }
 0x5f7   : > { %v3764_v10 = vpack.c.bf16 %v3663_v24, %v3660_v14  ;;  %v4326_v14 = vld [vmem:[#allocation13 + $0x8] sm:$0xff]  ;;  %v7304_v24 = vcombine.high %v4325_v44, %v4329_v37  ;;  %5106 = vmatpush1.bf16.msra.mxu1 %v7311_v29  ;;  %v4441_v43 = vld [vmem:[#allocation13 + $0x3a0] sm:$0xff] }
 0x5f8   : > { %5219 = vmatpush1.bf16.msra.mxu0 %v7313_v18  ;;  %v7305_v21 = vcombine.low %v4326_v14, %v4330_v1  ;;  %v7416_v50 = vcombine.high %v4437_v35, %v4441_v43  ;;  %v4442_v44 = vld [vmem:[#allocation13 + $0x3a8] sm:$0xff]  ;;  %v8854_v18 = vld [vmem:[%s9595_s30 + $0x50] sm:$0xff] }
 0x5f9   : > { %4053 = vmatmul.mubr.bf16.gmra.mxu0 %v3764_v10  ;;  %v7306_v10 = vcombine.high %v4326_v14, %v4330_v1  ;;  %5107 = vmatprep.subr.bf16.mxu1 %v7304_v24  ;;  %v7415_v14 = vcombine.low %v4437_v35, %v4441_v43  ;;  %v7417_v1 = vcombine.low %v4438_v59, %v4442_v44 }
 0x5fa   : > { %4062 = vmatprep.mubr.bf16.mxu0 %v3767_v34  ;;  %v4445_v34 = vld [vmem:[#allocation13 + $0x3c0] sm:$0xff]  ;;  %v7418_v29 = vcombine.high %v4438_v59, %v4442_v44  ;;  %v4418_v59 = vld [vmem:[#allocation13 + $0x2e8] sm:$0xff] }
 0x5fb   : > { %5220 = vmatprep.subr.bf16.mxu0 %v7306_v10  ;;  %5108 = vmatpush1.bf16.msra.mxu1 %v7303_v23  ;;  %v4430_v23 = vld [vmem:[#allocation13 + $0x348] sm:$0xff] }
 0x5fc   : > { %5221 = vmatpush1.bf16.msra.mxu0 %v7305_v21  ;;  %v8855_v21 = vld [vmem:[%s9595_s30 + $0x58] sm:$0xff] }
 0x5fd   : > { %5222 = vmatprep.subr.bf16.mxu0 %v7426_v42 }
 0x600   : > { %5223 = vmatpush2.bf16.msra.mxu0 %v7425_v45  ;;  %v4434_v45 = vld [vmem:[#allocation13 + $0x368] sm:$0xff] }
 0x601   : > { %4063 = vmatmul.mubr.bf16.gmra.mxu0 %v3766_v62  ;;  %v4449_v62 = vld [vmem:[#allocation13 + $0x3e0] sm:$0xff]  ;;  %5224 = vmatprep.subr.bf16.mxu0 %v7418_v29 }
 0x602   : > { %v7424_v11 = vcombine.high %v4445_v34, %v4449_v62  ;;  %v7423_v47 = vcombine.low %v4445_v34, %v4449_v62  ;;  %v8860_v29 = vld [vmem:[%s9595_s30 + $0x80] sm:$0xff] }
 0x604   : > { %5109 = vmatprep.subr.bf16.mxu1 %v7424_v11  ;;  %5225 = vmatpush2.bf16.msra.mxu0 %v7417_v1 }
 0x605   : > { %5110 = vmatpush2.bf16.msra.mxu1 %v7423_v47  ;;  %v7408_v47 = vcombine.high %v4429_v57, %v4433_v2 }
 0x606   : > { %5111 = vmatprep.subr.bf16.mxu1 %v7416_v50 }
 0x609   : > { %5112 = vmatpush2.bf16.msra.mxu1 %v7415_v14 }
 0x60a   : > { %5113 = vmatprep.subr.bf16.mxu1 %v7408_v47 }
 0x688   : > { %v3994_v26 = vpop.f32.mrf.mxu0 }
 0x689   : > { %v10788_v5 = vadd.f32 %v8844_v41, %v3994_v26  ;;  %v7407_v41 = vcombine.low %v4429_v57, %v4433_v2 }
 0x68a   : > { %v3996_v61 = vpop.f32.mrf.mxu0 }
 0x68b   : > { %12048 = vst [vmem:[#allocation35_spill] sm:$0xff] %v10788_v5  ;;  %v10791_v12 = vadd.f32 %v8845_v36, %v3996_v61  ;;  %v4106_v55 = vmul.f32 %v10788_v5, %v10788_v5  ;;  %v7409_v61 = vcombine.low %v4430_v23, %v4434_v45  ;;  %v7410_v36 = vcombine.high %v4430_v23, %v4434_v45 }
 0x68c   : > { %v3998_v49 = vpop.f32.mrf.mxu0  ;;  %5114 = vmatpush2.bf16.msra.mxu1 %v7407_v41 }
 0x68d   : > { %12049 = vst [vmem:[#allocation34_spill] sm:$0xff] %v10791_v12  ;;  %v10794_v56 = vadd.f32 %v8846_v60, %v3998_v49  ;;  %v4107_v27 = vmul.f32 %v10791_v12, %v10791_v12  ;;  %v8856_v49 = vld [vmem:[%s9595_s30 + $0x60] sm:$0xff]  ;;  %5226 = vmatprep.subr.bf16.mxu0 %v7410_v36  ;;  %v8862_v36 = vld [vmem:[%s9595_s30 + $0x90] sm:$0xff] }
 0x68e   : > { %v4000_v51 = vpop.f32.mrf.mxu0  ;;  %5227 = vmatpush2.bf16.msra.mxu0 %v7409_v61 }
 0x68f   : > { %12050 = vst [vmem:[#allocation38_spill] sm:$0xff] %v10794_v56  ;;  %v10801_v30 = vadd.f32 %v8847_v38, %v4000_v51  ;;  %v4138_v13 = vadd.f32 %v4107_v27, %v4106_v55  ;;  %v4108_v52 = vmul.f32 %v10794_v56, %v10794_v56  ;;  %v4421_v38 = vld [vmem:[#allocation13 + $0x300] sm:$0xff] }
 0x690   : > { %v4004_v20 = vpop.f32.mrf.mxu0 }
 0x691   : > { %12051 = vst [vmem:[#allocation39_spill] sm:$0xff] %v10801_v30  ;;  %v10804_v33 = vadd.f32 %v8848_v54, %v4004_v20  ;;  %4139 = vadd.xlane.f32.xlu0 %v4138_v13  ;;  %v4109_v32 = vmul.f32 %v10801_v30, %v10801_v30  ;;  %v4425_v13 = vld [vmem:[#allocation13 + $0x320] sm:$0xff]  ;;  %v4422_v20 = vld [vmem:[#allocation13 + $0x308] sm:$0xff] }
 0x692   : > { %v4006_v3 = vpop.f32.mrf.mxu0  ;;  %v8857_v54 = vld [vmem:[%s9595_s30 + $0x68] sm:$0xff] }
 0x693   : > { %12052 = vst [vmem:[#allocation41_spill] sm:$0xff] %v10804_v33  ;;  %v10811_v40 = vadd.f32 %v8849_v15, %v4006_v3  ;;  %v4141_v16 = vadd.f32 %v4109_v32, %v4108_v52  ;;  %v4110_v48 = vmul.f32 %v10804_v33, %v10804_v33  ;;  %v7400_v3 = vcombine.high %v4421_v38, %v4425_v13  ;;  %v4426_v15 = vld [vmem:[#allocation13 + $0x328] sm:$0xff] }
 0x694   : > { %v4008_v4 = vpop.f32.mrf.mxu0 }
 0x695   : > { %12053 = vst [vmem:[#allocation42_spill] sm:$0xff] %v10811_v40  ;;  %v10814_v31 = vadd.f32 %v8850_v25, %v4008_v4  ;;  %4142 = vadd.xlane.f32.xlu1 %v4141_v16  ;;  %v4111_v9 = vmul.f32 %v10811_v40, %v10811_v40  ;;  %v7399_v4 = vcombine.low %v4421_v38, %v4425_v13  ;;  %v4401_v38 = vld [vmem:[#allocation13 + $0x260] sm:$0xff]  ;;  %v4398_v13 = vld [vmem:[#allocation13 + $0x248] sm:$0xff] }
 0x696   : > { %v4010_v17 = vpop.f32.mrf.mxu0  ;;  %v7401_v25 = vcombine.low %v4422_v20, %v4426_v15  ;;  %5115 = vmatprep.subr.bf16.mxu1 %v7400_v3  ;;  %v8863_v3 = vld [vmem:[%s9595_s30 + $0x98] sm:$0xff] }
 0x697   : > { %12054 = vst [vmem:[#allocation36_spill] sm:$0xff] %v10814_v31  ;;  %v10821_v58 = vadd.f32 %v8851_v19, %v4010_v17  ;;  %v4144_v6 = vadd.f32 %v4111_v9, %v4110_v48  ;;  %v4112_v22 = vmul.f32 %v10814_v31, %v10814_v31  ;;  %v7402_v48 = vcombine.high %v4422_v20, %v4426_v15  ;;  %v8858_v9 = vld [vmem:[%s9595_s30 + $0x70] sm:$0xff] }
 0x698   : > { %v4014_v0 = vpop.f32.mrf.mxu0  ;;  %5116 = vmatpush2.bf16.msra.mxu1 %v7399_v4 }
 0x699   : > { %12055 = vst [vmem:[#allocation47_spill] sm:$0xff] %v10821_v58  ;;  %4145 = vadd.xlane.f32.xlu0 %v4144_v6  ;;  %v4113_v7 = vmul.f32 %v10821_v58, %v10821_v58  ;;  %v10828_v8 = vadd.f32 %v8852_v63, %v4014_v0  ;;  %5228 = vmatprep.subr.bf16.mxu0 %v7402_v48  ;;  %v4414_v63 = vld [vmem:[#allocation13 + $0x2c8] sm:$0xff] }
 0x69a   : > { %v4016_v46 = vpop.f32.mrf.mxu0  ;;  %5229 = vmatpush2.bf16.msra.mxu0 %v7401_v25  ;;  %v7393_v50 = vcombine.low %v4414_v63, %v4418_v59  ;;  %v7394_v44 = vcombine.high %v4414_v63, %v4418_v59  ;;  %v4393_v63 = vld [vmem:[#allocation13 + $0x220] sm:$0xff]  ;;  %v4394_v59 = vld [vmem:[#allocation13 + $0x228] sm:$0xff] }
 0x69b   : > { %12056 = vst [vmem:[#allocation43_spill] sm:$0xff] %v10828_v8  ;;  %v4147_v53 = vadd.f32 %v4113_v7, %v4112_v22  ;;  %v10831_v39 = vadd.f32 %v8853_v28, %v4016_v46  ;;  %v4114_v10 = vmul.f32 %v10828_v8, %v10828_v8  ;;  %v4413_v22 = vld [vmem:[#allocation13 + $0x2c0] sm:$0xff]  ;;  %v8859_v46 = vld [vmem:[%s9595_s30 + $0x78] sm:$0xff] }
 0x69c   : > { %v4018_v37 = vpop.f32.mrf.mxu0  ;;  %v4417_v7 = vld [vmem:[#allocation13 + $0x2e0] sm:$0xff]  ;;  %5230 = vmatprep.subr.bf16.mxu0 %v7394_v44 }
 0x69d   : > { %12057 = vst [vmem:[#allocation52_spill] sm:$0xff] %v10831_v39  ;;  %4148 = vadd.xlane.f32.xlu1 %v4147_v53  ;;  %v10834_v24 = vadd.f32 %v8854_v18, %v4018_v37  ;;  %v4115_v34 = vmul.f32 %v10831_v39, %v10831_v39  ;;  %v7392_v43 = vcombine.high %v4413_v22, %v4417_v7 }
 0x69e   : > { %v4020_v62 = vpop.f32.mrf.mxu0  ;;  %v7391_v28 = vcombine.low %v4413_v22, %v4417_v7  ;;  %5231 = vmatpush2.bf16.msra.mxu0 %v7393_v50  ;;  %v4389_v7 = vld [vmem:[#allocation13 + $0x200] sm:$0xff] }
 0x69f   : > { %12058 = vst [vmem:[#allocation48_spill] sm:$0xff] %v10834_v24  ;;  %v10841_v11 = vadd.f32 %v8855_v21, %v4020_v62  ;;  %v4150_v42 = vadd.f32 %v4115_v34, %v4114_v10  ;;  %v4116_v55 = vmul.f32 %v10834_v24, %v10834_v24  ;;  %5117 = vmatprep.subr.bf16.mxu1 %v7392_v43  ;;  %v4405_v10 = vld [vmem:[#allocation13 + $0x280] sm:$0xff]  ;;  %v4406_v62 = vld [vmem:[#allocation13 + $0x288] sm:$0xff] }
 0x6a0   : > { %v4024_v26 = vpop.f32.mrf.mxu0  ;;  %5118 = vmatpush2.bf16.msra.mxu1 %v7391_v28  ;;  %v4409_v34 = vld [vmem:[#allocation13 + $0x2a0] sm:$0xff]  ;;  %v4410_v21 = vld [vmem:[#allocation13 + $0x2a8] sm:$0xff]  ;;  %v7368_v43 = vcombine.high %v4389_v7, %v4393_v63 }
 0x6a1   : > { %12059 = vst [vmem:[#allocation37_spill] sm:$0xff] %v10841_v11  ;;  %v10844_v60 = vadd.f32 %v8856_v49, %v4024_v26  ;;  %4151 = vadd.xlane.f32.xlu0 %v4150_v42  ;;  %v4117_v27 = vmul.f32 %v10841_v11, %v10841_v11  ;;  %v7384_v23 = vcombine.high %v4405_v10, %v4409_v34  ;;  %v8861_v42 = vld [vmem:[%s9595_s30 + $0x88] sm:$0xff] }
 0x6a2   : > { %v4026_v51 = vpop.f32.mrf.mxu0  ;;  %v7383_v45 = vcombine.low %v4405_v10, %v4409_v34  ;;  %v7385_v26 = vcombine.low %v4406_v62, %v4410_v21  ;;  %v7386_v61 = vcombine.high %v4406_v62, %v4410_v21  ;;  %v8865_v28 = vld [vmem:[%s9595_s30 + $0xa8] sm:$0xff]  ;;  %v8866_v10 = vld [vmem:[%s9595_s30 + $0xb0] sm:$0xff]  ;;  %v10904_v21 = vld [vmem:[#allocation13 + $0x1d8] sm:$0xff] }
 0x6a3   : > { %12060 = vst [vmem:[#allocation40_spill] sm:$0xff] %v10844_v60  ;;  %v10851_v52 = vadd.f32 %v8857_v54, %v4026_v51  ;;  %v4153_v32 = vadd.f32 %v4117_v27, %v4116_v55  ;;  %v4118_v19 = vmul.f32 %v10844_v60, %v10844_v60  ;;  %5119 = vmatprep.subr.bf16.mxu1 %v7384_v23  ;;  %v4397_v51 = vld [vmem:[#allocation13 + $0x240] sm:$0xff]  ;;  %v10902_v23 = vld [vmem:[#allocation13 + $0x1f0] sm:$0xff] }
 0x6a4   : > { %v4028_v16 = vpop.f32.mrf.mxu0  ;;  %5120 = vmatpush2.bf16.msra.mxu1 %v7383_v45  ;;  %5232 = vmatprep.subr.bf16.mxu0 %v7386_v61  ;;  %v7376_v54 = vcombine.high %v4397_v51, %v4401_v38  ;;  %v7375_v4 = vcombine.low %v4397_v51, %v4401_v38 }
 0x6a5   : > { %12061 = vst [vmem:[#allocation57_spill] sm:$0xff] %v10851_v52  ;;  %v10854_v17 = vadd.f32 %v8858_v9, %v4028_v16  ;;  %4154 = vadd.xlane.f32.xlu1 %v4153_v32  ;;  %v4119_v6 = vmul.f32 %v10851_v52, %v10851_v52  ;;  %v4402_v32 = vld [vmem:[#allocation13 + $0x268] sm:$0xff]  ;;  %5233 = vmatpush2.bf16.msra.mxu0 %v7385_v26  ;;  %v10908_v26 = vld [vmem:[#allocation13 + $0x1f8] sm:$0xff] }
 0x6a6   : > { %v4030_v0 = vpop.f32.mrf.mxu0  ;;  %5121 = vmatprep.subr.bf16.mxu1 %v7376_v54  ;;  %v7377_v48 = vcombine.low %v4398_v13, %v4402_v32  ;;  %v7378_v9 = vcombine.high %v4398_v13, %v4402_v32  ;;  %v7365_v51 = vcombine.low %v10904_v21, %v10908_v26  ;;  %v7366_v38 = vcombine.high %v10904_v21, %v10908_v26  ;;  %v8868_v13 = vld [vmem:[%s9595_s30 + $0xc0] sm:$0xff]  ;;  %v4363_v26 = vld [vmem:[#allocation13 + $0x130] sm:$0xff] }
 0x6a7   : > { %12062 = vst [vmem:[#allocation53_spill] sm:$0xff] %v10854_v17  ;;  %v10861_v53 = vadd.f32 %v8859_v46, %v4030_v0  ;;  %v4156_v35 = vadd.f32 %v4119_v6, %v4118_v19  ;;  %v4120_v14 = vmul.f32 %v10854_v17, %v10854_v17  ;;  %v8864_v19 = vld [vmem:[%s9595_s30 + $0xa0] sm:$0xff]  ;;  %v4390_v46 = vld [vmem:[#allocation13 + $0x208] sm:$0xff] }
 0x6a8   : > { %5122 = vmatpush2.bf16.msra.mxu1 %v7375_v4  ;;  %5234 = vmatprep.subr.bf16.mxu0 %v7378_v9  ;;  %v8870_v9 = vld [vmem:[%s9595_s30 + $0xd0] sm:$0xff] }
 0x6a9   : > { %12063 = vst [vmem:[#allocation45_spill] sm:$0xff] %v10861_v53  ;;  %v4034_v37 = vpop.f32.mrf.mxu0  ;;  %4157 = vadd.xlane.f32.xlu0 %v4156_v35  ;;  %v4121_v1 = vmul.f32 %v10861_v53, %v10861_v53  ;;  %5235 = vmatpush2.bf16.msra.mxu0 %v7377_v48 }
 0x6aa   : > { %v10868_v18 = vadd.f32 %v8860_v29, %v4034_v37  ;;  %v7367_v37 = vcombine.low %v4389_v7, %v4393_v63  ;;  %5123 = vmatprep.subr.bf16.mxu1 %v7368_v43  ;;  %v7370_v29 = vcombine.high %v4390_v46, %v4394_v59  ;;  %v8871_v63 = vld [vmem:[%s9595_s30 + $0xd8] sm:$0xff] }
 0x6ab   : > { %v4036_v57 = vpop.f32.mrf.mxu0  ;;  %v4159_v2 = vadd.f32 %v4121_v1, %v4120_v14  ;;  %v7369_v1 = vcombine.low %v4390_v46, %v4394_v59  ;;  %v8872_v59 = vld [vmem:[%s9595_s30 + $0xe0] sm:$0xff] }
 0x6ac   : > { %12064 = vst [vmem:[#allocation46_spill] sm:$0xff] %v10868_v18  ;;  %v10871_v47 = vadd.f32 %v8861_v42, %v4036_v57  ;;  %v4122_v55 = vmul.f32 %v10868_v18, %v10868_v18  ;;  %5124 = vmatpush2.bf16.msra.mxu1 %v7367_v37  ;;  %5236 = vmatprep.subr.bf16.mxu0 %v7370_v29 }
 0x6ad   : > { %v4038_v41 = vpop.f32.mrf.mxu0  ;;  %4160 = vadd.xlane.f32.xlu1 %v4159_v2  ;;  %v10900_v2 = vld [vmem:[#allocation13 + $0x1d0] sm:$0xff]  ;;  %5237 = vmatpush2.bf16.msra.mxu0 %v7369_v1  ;;  %v8873_v1 = vld [vmem:[%s9595_s30 + $0xe8] sm:$0xff] }
 0x6ae   : > { %12065 = vst [vmem:[#allocation50_spill] sm:$0xff] %v10871_v47  ;;  %v10874_v49 = vadd.f32 %v8862_v36, %v4038_v41  ;;  %v4123_v27 = vmul.f32 %v10871_v47, %v10871_v47  ;;  %v7364_v45 = vcombine.high %v10900_v2, %v10902_v23  ;;  %v8867_v41 = vld [vmem:[%s9595_s30 + $0xb8] sm:$0xff]  ;;  %5432 = vmatprep.subr.bf16.mxu0 %v7366_v38 }
 0x6af   : > { %v4040_v20 = vpop.f32.mrf.mxu0 }
 0x6b0   : > { %12066 = vst [vmem:[#allocation51_spill] sm:$0xff] %v10874_v49  ;;  %v10881_v15 = vadd.f32 %v8863_v3, %v4040_v20  ;;  %v4162_v16 = vadd.f32 %v4123_v27, %v4122_v55  ;;  %v4124_v0 = vmul.f32 %v10874_v49, %v10874_v49  ;;  %v7363_v55 = vcombine.low %v10900_v2, %v10902_v23 }
 0x6b1   : > { %v4044_v25 = vpop.f32.mrf.mxu0  ;;  %5319 = vmatprep.subr.bf16.mxu1 %v7364_v45 }
 0x6b2   : > { %12067 = vst [vmem:[#allocation44_spill] sm:$0xff] %v10881_v15  ;;  %v10884_v6 = vadd.f32 %v8864_v19, %v4044_v25  ;;  %4163 = vadd.xlane.f32.xlu0 %v4162_v16  ;;  %v4125_v22 = vmul.f32 %v10881_v15, %v10881_v15  ;;  %v8869_v16 = vld [vmem:[%s9595_s30 + $0xc8] sm:$0xff] }
 0x6b3   : > { %v4046_v35 = vpop.f32.mrf.mxu0 }
 0x6b4   : > { %12068 = vst [vmem:[#allocation55_spill] sm:$0xff] %v10884_v6  ;;  %v10891_v50 = vadd.f32 %v8865_v28, %v4046_v35  ;;  %v4165_v44 = vadd.f32 %v4125_v22, %v4124_v0  ;;  %v4126_v62 = vmul.f32 %v10884_v6, %v10884_v6 }
 0x6b5   : > { %v4048_v14 = vpop.f32.mrf.mxu0 }
 0x6b6   : > { %12069 = vst [vmem:[#allocation56_spill] sm:$0xff] %v10891_v50  ;;  %v10894_v34 = vadd.f32 %v8866_v10, %v4048_v14  ;;  %4166 = vadd.xlane.f32.xlu1 %v4165_v44  ;;  %v4127_v57 = vmul.f32 %v10891_v50, %v10891_v50 }
 0x6b7   : > { %v4050_v42 = vpop.f32.mrf.mxu0 }
 0x6b8   : > { %12070 = vst [vmem:[#allocation49_spill] sm:$0xff] %v10894_v34  ;;  %v10911_v61 = vadd.f32 %v8867_v41, %v4050_v42  ;;  %v4168_v36 = vadd.f32 %v4127_v57, %v4126_v62  ;;  %v4128_v54 = vmul.f32 %v10894_v34, %v10894_v34  ;;  %v8874_v57 = vld [vmem:[%s9595_s30 + $0xf0] sm:$0xff] }
 0x6b9   : > { %v4054_v27 = vpop.f32.mrf.mxu0 }
 0x6ba   : > { %12071 = vst [vmem:[#allocation54_spill] sm:$0xff] %v10911_v61  ;;  %v10920_v20 = vadd.f32 %v8868_v13, %v4054_v27  ;;  %4169 = vadd.xlane.f32.xlu0 %v4168_v36  ;;  %v4129_v32 = vmul.f32 %v10911_v61, %v10911_v61  ;;  %v8875_v27 = vld [vmem:[%s9595_s30 + $0xf8] sm:$0xff]  ;;  %s6769_s30 = scalar_lea.sflag [#allocation18], %s9602_s11 }
 0x6bb   : > { %v4056_v3 = vpop.f32.mrf.mxu0 }
 0x6bc   : > { %12072 = vst [vmem:[#allocation58_spill] sm:$0xff] %v10920_v20  ;;  %v10927_v4 = vadd.f32 %v8869_v16, %v4056_v3  ;;  %v4171_v25 = vadd.f32 %v4129_v32, %v4128_v54  ;;  %v4130_v0 = vmul.f32 %v10920_v20, %v10920_v20 }
 0x6bd   : > { %v4058_v48 = vpop.f32.mrf.mxu0 }
 0x6be   : > { %12073 = vst [vmem:[#allocation59_spill] sm:$0xff] %v10927_v4  ;;  %v10930_v19 = vadd.f32 %v8870_v9, %v4058_v48  ;;  %4172 = vadd.xlane.f32.xlu1 %v4171_v25  ;;  %v4131_v22 = vmul.f32 %v10927_v4, %v10927_v4 }
 0x6bf   : > { %v4060_v7 = vpop.f32.mrf.mxu0 }
 0x6c0   : > { %12074 = vst [vmem:[#allocation60_spill] sm:$0xff] %v10930_v19  ;;  %v10937_v46 = vadd.f32 %v8871_v63, %v4060_v7  ;;  %v4174_v35 = vadd.f32 %v4131_v22, %v4130_v0  ;;  %v4132_v44 = vmul.f32 %v10930_v19, %v10930_v19 }
 0x6c1   : > { %v4064_v43 = vpop.f32.mrf.mxu0 }
 0x6c2   : > { %12075 = vst [vmem:[#allocation61_spill] sm:$0xff] %v10937_v46  ;;  %v10940_v28 = vadd.f32 %v8872_v59, %v4064_v43  ;;  %4175 = vadd.xlane.f32.xlu0 %v4174_v35  ;;  %v4133_v37 = vmul.f32 %v10937_v46, %v10937_v46 }
 0x6c3   : > { %v4066_v14 = vpop.f32.mrf.mxu0 }
 0x6c4   : > { %12076 = vst [vmem:[#allocation62_spill] sm:$0xff] %v10940_v28  ;;  %v10947_v29 = vadd.f32 %v8873_v1, %v4066_v14  ;;  %v4177_v10 = vadd.f32 %v4133_v37, %v4132_v44  ;;  %v4134_v45 = vmul.f32 %v10940_v28, %v10940_v28  ;;  %v4105_v1 = vld [vmem:[%s11840_s7] sm:$0x3] }
 0x6c5   : > { %v4068_v62 = vpop.f32.mrf.mxu0 }
 0x6c6   : > { %12077 = vst [vmem:[#allocation63_spill] sm:$0xff] %v10947_v29  ;;  %v10950_v42 = vadd.f32 %v8874_v57, %v4068_v62  ;;  %4178 = vadd.xlane.f32.xlu1 %v4177_v10  ;;  %v4135_v41 = vmul.f32 %v10947_v29, %v10947_v29  ;;  %v12080_v57 = vld [vmem:[#allocation33_spill] sm:$0xff] }
 0x6c7   : > { %v4070_v36 = vpop.f32.mrf.mxu0 }
 0x6c8   : > { %12078 = vst [vmem:[#allocation64_spill] sm:$0xff] %v10950_v42  ;;  %v10957_v38 = vadd.f32 %v8875_v27, %v4070_v36  ;;  %v4180_v13 = vadd.f32 %v4135_v41, %v4134_v45  ;;  %v4136_v54 = vmul.f32 %v10950_v42, %v10950_v42  ;;  %v12081_v45 = vsub.s32 0, %v12080_v57 }
 0x6ca   : > { %12079 = vst [vmem:[#allocation65_spill] sm:$0xff] %v10957_v38  ;;  %4181 = vadd.xlane.f32.xlu0 %v4180_v13  ;;  %v4137_v32 = vmul.f32 %v10957_v38, %v10957_v38  ;;  %v10968_v41 = vrot.slane %v4105_v1, %v12081_v45 }
 0x6cc   : > { %v4183_v3 = vadd.f32 %v4137_v32, %v4136_v54  ;;  %v12082_v54 = vsub.s32 1, %v12080_v57 }
 0x6ce   : > { %4184 = vadd.xlane.f32.xlu1 %v4183_v3  ;;  %v10974_v32 = vrot.slane %v4105_v1, %v12082_v54 }
 0x71a   : > { %v4140_v16 = vpop.xlane.xlu0 %4139 }
 0x71b   : > { %v4186_v25 = vmul.f32 0.00390625, %v4140_v16 }
 0x71d   : > { %v4202_v48 = vadd.f32 1e-06, %v4186_v25 }
 0x71e   : > { %v4143_v9 = vpop.xlane.xlu1 %4142 }
 0x71f   : > { %8518 = vrsqrt.f32 %v4202_v48  ;;  %v4187_v0 = vmul.f32 0.00390625, %v4143_v9 }
 0x721   : > { %v4203_v22 = vadd.f32 1e-06, %v4187_v0  ;;  %v4375_v0 = vld [vmem:[#allocation13 + $0x190] sm:$0xff] }
 0x722   : > { %v4146_v7 = vpop.xlane.xlu0 %4145 }
 0x723   : > { %8520 = vrsqrt.f32 %v4203_v22  ;;  %v4188_v63 = vmul.f32 0.00390625, %v4146_v7 }
 0x725   : > { %v4204_v35 = vadd.f32 1e-06, %v4188_v63 }
 0x726   : > { %v4149_v43 = vpop.xlane.xlu1 %4148 }
 0x727   : > { %8522 = vrsqrt.f32 %v4204_v35  ;;  %v4189_v59 = vmul.f32 0.00390625, %v4149_v43 }
 0x729   : > { %v4205_v44 = vadd.f32 1e-06, %v4189_v59  ;;  %v4379_v59 = vld [vmem:[#allocation13 + $0x1b0] sm:$0xff] }
 0x72a   : > { %v4152_v37 = vpop.xlane.xlu0 %4151  ;;  %v7356_v45 = vcombine.high %v4375_v0, %v4379_v59 }
 0x72b   : > { %8524 = vrsqrt.f32 %v4205_v44  ;;  %v4190_v10 = vmul.f32 0.00390625, %v4152_v37  ;;  %v4376_v44 = vld [vmem:[#allocation13 + $0x198] sm:$0xff] }
 0x72c   : > { %v8519_v14 = vpop.eup %8518  ;;  %v4380_v37 = vld [vmem:[#allocation13 + $0x1b8] sm:$0xff] }
 0x72d   : > { %v4206_v62 = vadd.f32 1e-06, %v4190_v10  ;;  %v4234_v36 = vmul.f32 %v8519_v14, %v10788_v5  ;;  %v4235_v13 = vmul.f32 %v8519_v14, %v10791_v12 }
 0x72e   : > { %v4155_v27 = vpop.xlane.xlu1 %4154 }
 0x72f   : > { %8526 = vrsqrt.f32 %v4206_v62  ;;  %v4191_v16 = vmul.f32 0.00390625, %v4155_v27  ;;  %v4277_v22 = vmul.f32 %v10968_v41, %v4234_v36  ;;  %v4278_v35 = vmul.f32 %v10974_v32, %v4235_v13  ;;  %v10986_v27 = vld [vmem:[#allocation13 + $0x150] sm:$0xff] }
 0x730   : > { %v8521_v3 = vpop.eup %8520  ;;  %v7358_v36 = vcombine.high %v4376_v44, %v4380_v37 }
 0x731   : > { %v4236_v25 = vmul.f32 %v8521_v3, %v10794_v56  ;;  %v4237_v48 = vmul.f32 %v8521_v3, %v10801_v30  ;;  %v4207_v9 = vadd.f32 1e-06, %v4191_v16  ;;  %v4371_v3 = vld [vmem:[#allocation13 + $0x170] sm:$0xff]  ;;  %v4368_v16 = vld [vmem:[#allocation13 + $0x158] sm:$0xff] }
 0x732   : > { %v4158_v63 = vpop.xlane.xlu0 %4157 }
 0x733   : > { %v4279_v7 = vmul.f32 %v10968_v41, %v4236_v25  ;;  %v4280_v43 = vmul.f32 %v10974_v32, %v4237_v48  ;;  %8528 = vrsqrt.f32 %v4207_v9  ;;  %v4192_v1 = vmul.f32 0.00390625, %v4158_v63  ;;  %v4372_v25 = vld [vmem:[#allocation13 + $0x178] sm:$0xff] }
 0x734   : > { %v8523_v14 = vpop.eup %8522  ;;  %v7357_v63 = vcombine.low %v4376_v44, %v4380_v37  ;;  %v7347_v37 = vcombine.low %v10986_v27, %v4371_v3 }
 0x735   : > { %v10982_v10 = vpack.c.bf16 %v4280_v43, %v4278_v35  ;;  %v10984_v62 = vpack.c.bf16 %v4279_v7, %v4277_v22  ;;  %v4208_v57 = vadd.f32 1e-06, %v4192_v1  ;;  %v4239_v13 = vmul.f32 %v8523_v14, %v10811_v40 }
 0x736   : > { %v4161_v54 = vpop.xlane.xlu1 %4160  ;;  %v4238_v48 = vmul.f32 %v8523_v14, %v10804_v33  ;;  %v7355_v7 = vcombine.low %v4375_v0, %v4379_v59  ;;  %v7348_v1 = vcombine.high %v10986_v27, %v4371_v3  ;;  %v4359_v0 = vld [vmem:[#allocation13 + $0x110] sm:$0xff]  ;;  %v4352_v27 = vld [vmem:[#allocation13 + $0xd8] sm:$0xff] }
 0x737   : > { %5125 = vmatprep.mubr.bf16.mxu1 %v10982_v10  ;;  %5238 = vmatprep.mubr.bf16.mxu0 %v10982_v10  ;;  %8530 = vrsqrt.f32 %v4208_v57  ;;  %v4193_v22 = vmul.f32 0.00390625, %v4161_v54  ;;  %v7350_v57 = vcombine.high %v4368_v16, %v4372_v25  ;;  %v4282_v59 = vmul.f32 %v10974_v32, %v4239_v13  ;;  %v4356_v3 = vld [vmem:[#allocation13 + $0xf8] sm:$0xff] }
 0x738   : > { %v8525_v9 = vpop.eup %8524  ;;  %5126 = vmatmul.mubr.bf16.vlgmr.msra.gmra.mxu1 %v10984_v62  ;;  %5239 = vmatmul.mubr.bf16.vlgmr.msra.gmra.mxu0 %v10984_v62  ;;  %v4281_v23 = vmul.f32 %v10968_v41, %v4238_v48  ;;  %v7349_v13 = vcombine.low %v4368_v16, %v4372_v25  ;;  %v7340_v48 = vcombine.high %v4359_v0, %v4363_v26 }
 0x739   : > { %5320 = vmatpush1.bf16.msra.mxu1 %v7363_v55  ;;  %5433 = vmatpush1.bf16.msra.mxu0 %v7365_v51  ;;  %v4241_v35 = vmul.f32 %v8525_v9, %v10821_v58  ;;  %v4240_v43 = vmul.f32 %v8525_v9, %v10814_v31  ;;  %v4209_v14 = vadd.f32 1e-06, %v4193_v22  ;;  %v4360_v55 = vld [vmem:[#allocation13 + $0x118] sm:$0xff]  ;;  %v7339_v16 = vcombine.low %v4359_v0, %v4363_v26 }
 0x73a   : > { %5321 = vmatprep.subr.bf16.mxu1 %v7356_v45  ;;  %5434 = vmatprep.subr.bf16.mxu0 %v7358_v36  ;;  %v4364_v51 = vld [vmem:[#allocation13 + $0x138] sm:$0xff] }
 0x73b   : > { %v4284_v2 = vmul.f32 %v10974_v32, %v4241_v35  ;;  %v4283_v21 = vmul.f32 %v10968_v41, %v4240_v43  ;;  %8532 = vrsqrt.f32 %v4209_v14  ;;  %v4164_v44 = vpop.xlane.xlu0 %4163  ;;  %v7342_v22 = vcombine.high %v4360_v55, %v4364_v51  ;;  %v11012_v35 = vld [vmem:[#allocation13 + $0xd0] sm:$0xff] }
 0x73c   : > { %v8527_v45 = vpop.eup %8526  ;;  %v4194_v36 = vmul.f32 0.00390625, %v4164_v44  ;;  %v11014_v43 = vld [vmem:[#allocation13 + $0xf0] sm:$0xff] }
 0x73d   : > { %5322 = vmatpush1.bf16.msra.mxu1 %v7355_v7  ;;  %5435 = vmatpush1.bf16.msra.mxu0 %v7357_v63  ;;  %v11008_v54 = vpack.c.bf16 %v4284_v2, %v4282_v59  ;;  %v11010_v9 = vpack.c.bf16 %v4283_v21, %v4281_v23  ;;  %v4243_v25 = vmul.f32 %v8527_v45, %v10831_v39  ;;  %v4343_v44 = vld [vmem:[#allocation13 + $0x90] sm:$0xff] }
 0x73e   : > { %5323 = vmatprep.subr.bf16.mxu1 %v7348_v1  ;;  %5436 = vmatprep.subr.bf16.mxu0 %v7350_v57  ;;  %v4210_v14 = vadd.f32 1e-06, %v4194_v36  ;;  %v4242_v63 = vmul.f32 %v8527_v45, %v10828_v8  ;;  %v7341_v59 = vcombine.low %v4360_v55, %v4364_v51  ;;  %v7332_v2 = vcombine.high %v11012_v35, %v11014_v43  ;;  %v4347_v51 = vld [vmem:[#allocation13 + $0xb0] sm:$0xff] }
 0x73f   : > { %5135 = vmatprep.mubr.bf16.mxu1 %v11008_v54  ;;  %5248 = vmatprep.mubr.bf16.mxu0 %v11008_v54  ;;  %v4167_v7 = vpop.xlane.xlu1 %4166  ;;  %v7334_v21 = vcombine.high %v4352_v27, %v4356_v3  ;;  %v4286_v45 = vmul.f32 %v10974_v32, %v4243_v25  ;;  %v7333_v25 = vcombine.low %v4352_v27, %v4356_v3 }
 0x740   : > { %5136 = vmatmul.mubr.bf16.gmra.mxu1 %v11010_v9  ;;  %5249 = vmatmul.mubr.bf16.gmra.mxu0 %v11010_v9  ;;  %v8529_v1 = vpop.eup %8528  ;;  %8534 = vrsqrt.f32 %v4210_v14  ;;  %v4195_v57 = vmul.f32 0.00390625, %v4167_v7 }
 0x741   : > { %5324 = vmatpush1.bf16.msra.mxu1 %v7347_v37  ;;  %5437 = vmatpush1.bf16.msra.mxu0 %v7349_v13  ;;  %v4245_v23 = vmul.f32 %v8529_v1, %v10841_v11  ;;  %v4244_v0 = vmul.f32 %v8529_v1, %v10834_v24  ;;  %v4285_v37 = vmul.f32 %v10968_v41, %v4242_v63  ;;  %v4344_v13 = vld [vmem:[#allocation13 + $0x98] sm:$0xff]  ;;  %v4335_v24 = vld [vmem:[#allocation13 + $0x50] sm:$0xff] }
 0x742   : > { %5325 = vmatprep.subr.bf16.mxu1 %v7340_v48  ;;  %5438 = vmatprep.subr.bf16.mxu0 %v7342_v22  ;;  %v4211_v26 = vadd.f32 1e-06, %v4195_v57  ;;  %v4348_v48 = vld [vmem:[#allocation13 + $0xb8] sm:$0xff]  ;;  %v7331_v1 = vcombine.low %v11012_v35, %v11014_v43 }
 0x743   : > { %v4170_v36 = vpop.xlane.xlu0 %4169  ;;  %v4288_v14 = vmul.f32 %v10974_v32, %v4245_v23  ;;  %v4287_v55 = vmul.f32 %v10968_v41, %v4244_v0  ;;  %v7324_v0 = vcombine.high %v4343_v44, %v4347_v51  ;;  %v7326_v11 = vcombine.high %v4344_v13, %v4348_v48  ;;  %v4336_v35 = vld [vmem:[#allocation13 + $0x58] sm:$0xff] }
 0x744   : > { %v8531_v22 = vpop.eup %8530  ;;  %8536 = vrsqrt.f32 %v4211_v26  ;;  %v4196_v7 = vmul.f32 0.00390625, %v4170_v36  ;;  %v4340_v43 = vld [vmem:[#allocation13 + $0x78] sm:$0xff]  ;;  %v7325_v26 = vcombine.low %v4344_v13, %v4348_v48  ;;  %v4331_v13 = vld [vmem:[#allocation13 + $0x30] sm:$0xff] }
 0x745   : > { %5326 = vmatpush1.bf16.msra.mxu1 %v7339_v16  ;;  %5439 = vmatpush1.bf16.msra.mxu0 %v7341_v59  ;;  %v11032_v57 = vpack.c.bf16 %v4288_v14, %v4286_v45  ;;  %v11034_v23 = vpack.c.bf16 %v4287_v55, %v4285_v37  ;;  %v4247_v16 = vmul.f32 %v8531_v22, %v10851_v52  ;;  %v4339_v59 = vld [vmem:[#allocation13 + $0x70] sm:$0xff]  ;;  %v4328_v48 = vld [vmem:[#allocation13 + $0x18] sm:$0xff] }
 0x746   : > { %5327 = vmatprep.subr.bf16.mxu1 %v7332_v2  ;;  %5440 = vmatprep.subr.bf16.mxu0 %v7334_v21  ;;  %v4212_v63 = vadd.f32 1e-06, %v4196_v7  ;;  %v4246_v2 = vmul.f32 %v8531_v22, %v10844_v60  ;;  %v7323_v21 = vcombine.low %v4343_v44, %v4347_v51  ;;  %v7316_v37 = vcombine.high %v4335_v24, %v4339_v59  ;;  %v4327_v22 = vld [vmem:[#allocation13 + $0x10] sm:$0xff] }
 0x747   : > { %v4173_v39 = vpop.xlane.xlu1 %4172  ;;  %5145 = vmatprep.mubr.bf16.mxu1 %v11032_v57  ;;  %5258 = vmatprep.mubr.bf16.mxu0 %v11032_v57  ;;  %v7318_v55 = vcombine.high %v4336_v35, %v4340_v43 }
 0x748   : > { %v8533_v27 = vpop.eup %8532  ;;  %8538 = vrsqrt.f32 %v4212_v63  ;;  %v4197_v3 = vmul.f32 0.00390625, %v4173_v39  ;;  %5146 = vmatmul.mubr.bf16.gmra.mxu1 %v11034_v23  ;;  %5259 = vmatmul.mubr.bf16.gmra.mxu0 %v11034_v23  ;;  %v4290_v39 = vmul.f32 %v10974_v32, %v4247_v16  ;;  %v4289_v44 = vmul.f32 %v10968_v41, %v4246_v2 }
 0x749   : > { %5328 = vmatpush1.bf16.msra.mxu1 %v7331_v1  ;;  %5441 = vmatpush1.bf16.msra.mxu0 %v7333_v25  ;;  %v4249_v36 = vmul.f32 %v8533_v27, %v10861_v53  ;;  %v4248_v45 = vmul.f32 %v8533_v27, %v10854_v17  ;;  %v4332_v1 = vld [vmem:[#allocation13 + $0x38] sm:$0xff]  ;;  %v7315_v27 = vcombine.low %v4335_v24, %v4339_v59  ;;  %v11054_v17 = vld [vmem:[#allocation13 + $0x3f0] sm:$0xff] }
 0x74a   : > { %v4213_v14 = vadd.f32 1e-06, %v4197_v3  ;;  %5329 = vmatprep.subr.bf16.mxu1 %v7324_v0  ;;  %5442 = vmatprep.subr.bf16.mxu0 %v7326_v11  ;;  %v7317_v3 = vcombine.low %v4336_v35, %v4340_v43  ;;  %v7308_v2 = vcombine.high %v4327_v22, %v4331_v13  ;;  %v4448_v59 = vld [vmem:[#allocation13 + $0x3d8] sm:$0xff] }
 0x74b   : > { %v4176_v7 = vpop.xlane.xlu0 %4175  ;;  %v4292_v63 = vmul.f32 %v10974_v32, %v4249_v36  ;;  %v4291_v51 = vmul.f32 %v10968_v41, %v4248_v45  ;;  %v7310_v36 = vcombine.high %v4328_v48, %v4332_v1  ;;  %v11052_v45 = vld [vmem:[#allocation13 + $0x3d0] sm:$0xff]  ;;  %v4452_v35 = vld [vmem:[#allocation13 + $0x3f8] sm:$0xff] }
 0x74c   : > { %8540 = vrsqrt.f32 %v4213_v14  ;;  %v4198_v25 = vmul.f32 0.00390625, %v4176_v7  ;;  %v7428_v7 = vcombine.high %v11052_v45, %v11054_v17 }
 0x74d   : > { %v8535_v0 = vpop.eup %8534  ;;  %5330 = vmatpush1.bf16.msra.mxu1 %v7323_v21  ;;  %5443 = vmatpush1.bf16.msra.mxu0 %v7325_v26  ;;  %v11048_v11 = vpack.c.bf16 %v4292_v63, %v4290_v39  ;;  %v11050_v53 = vpack.c.bf16 %v4291_v51, %v4289_v44  ;;  %v7430_v44 = vcombine.high %v4448_v59, %v4452_v35 }
 0x74e   : > { %v4214_v16 = vadd.f32 1e-06, %v4198_v25  ;;  %5331 = vmatprep.subr.bf16.mxu1 %v7316_v37  ;;  %5444 = vmatprep.subr.bf16.mxu0 %v7318_v55  ;;  %v4251_v24 = vmul.f32 %v8535_v0, %v10871_v47  ;;  %v4250_v43 = vmul.f32 %v8535_v0, %v10868_v18  ;;  %v7307_v37 = vcombine.low %v4327_v22, %v4331_v13 }
 0x74f   : > { %v4179_v14 = vpop.xlane.xlu1 %4178  ;;  %5155 = vmatprep.mubr.bf16.mxu1 %v11048_v11  ;;  %5268 = vmatprep.mubr.bf16.mxu0 %v11048_v11  ;;  %v7309_v55 = vcombine.low %v4328_v48, %v4332_v1  ;;  %v4443_v1 = vld [vmem:[#allocation13 + $0x3b0] sm:$0xff] }
 0x750   : > { %8542 = vrsqrt.f32 %v4214_v16  ;;  %v4199_v21 = vmul.f32 0.00390625, %v4179_v14  ;;  %5156 = vmatmul.mubr.bf16.gmra.mxu1 %v11050_v53  ;;  %5269 = vmatmul.mubr.bf16.gmra.mxu0 %v11050_v53  ;;  %v4294_v0 = vmul.f32 %v10974_v32, %v4251_v24  ;;  %v4293_v16 = vmul.f32 %v10968_v41, %v4250_v43 }
 0x751   : > { %v8537_v26 = vpop.eup %8536  ;;  %5332 = vmatpush1.bf16.msra.mxu1 %v7315_v27  ;;  %5445 = vmatpush1.bf16.msra.mxu0 %v7317_v3  ;;  %v4439_v27 = vld [vmem:[#allocation13 + $0x390] sm:$0xff]  ;;  %v4440_v3 = vld [vmem:[#allocation13 + $0x398] sm:$0xff]  ;;  %v7427_v14 = vcombine.low %v11052_v45, %v11054_v17  ;;  %v7429_v43 = vcombine.low %v4448_v59, %v4452_v35 }
 0x752   : > { %v4215_v39 = vadd.f32 1e-06, %v4199_v21  ;;  %5333 = vmatprep.subr.bf16.mxu1 %v7308_v2  ;;  %5446 = vmatprep.subr.bf16.mxu0 %v7310_v36  ;;  %v4253_v63 = vmul.f32 %v8537_v26, %v10881_v15  ;;  %v4252_v51 = vmul.f32 %v8537_v26, %v10874_v49  ;;  %v4444_v2 = vld [vmem:[#allocation13 + $0x3b8] sm:$0xff]  ;;  %v4431_v15 = vld [vmem:[#allocation13 + $0x350] sm:$0xff] }
 0x753   : > { %v4182_v25 = vpop.xlane.xlu0 %4181  ;;  %v4435_v17 = vld [vmem:[#allocation13 + $0x370] sm:$0xff]  ;;  %v4432_v45 = vld [vmem:[#allocation13 + $0x358] sm:$0xff] }
 0x754   : > { %8544 = vrsqrt.f32 %v4215_v39  ;;  %v4200_v22 = vmul.f32 0.00390625, %v4182_v25  ;;  %v4296_v13 = vmul.f32 %v10974_v32, %v4253_v63  ;;  %v4295_v48 = vmul.f32 %v10968_v41, %v4252_v51 }
 0x755   : > { %v8539_v36 = vpop.eup %8538  ;;  %5334 = vmatpush1.bf16.msra.mxu1 %v7307_v37  ;;  %5447 = vmatpush1.bf16.msra.mxu0 %v7309_v55  ;;  %v7420_v63 = vcombine.high %v4439_v27, %v4443_v1  ;;  %v7422_v51 = vcombine.high %v4440_v3, %v4444_v2  ;;  %v4436_v55 = vld [vmem:[#allocation13 + $0x378] sm:$0xff] }
 0x756   : > { %v4216_v21 = vadd.f32 1e-06, %v4200_v22  ;;  %v11072_v24 = vpack.c.bf16 %v4296_v13, %v4294_v0  ;;  %5335 = vmatprep.subr.bf16.mxu1 %v7428_v7  ;;  %5448 = vmatprep.subr.bf16.mxu0 %v7430_v44  ;;  %v11074_v26 = vpack.c.bf16 %v4295_v48, %v4293_v16  ;;  %v4255_v25 = vmul.f32 %v8539_v36, %v10891_v50 }
 0x757   : > { %v4185_v39 = vpop.xlane.xlu1 %4184  ;;  %v4254_v59 = vmul.f32 %v8539_v36, %v10884_v6  ;;  %v7419_v7 = vcombine.low %v4439_v27, %v4443_v1  ;;  %v7421_v0 = vcombine.low %v4440_v3, %v4444_v2  ;;  %v7412_v48 = vcombine.high %v4431_v15, %v4435_v17  ;;  %v4424_v3 = vld [vmem:[#allocation13 + $0x318] sm:$0xff] }
 0x758   : > { %8546 = vrsqrt.f32 %v4216_v21  ;;  %v4201_v37 = vmul.f32 0.00390625, %v4185_v39  ;;  %5165 = vmatprep.mubr.bf16.mxu1 %v11072_v24  ;;  %5278 = vmatprep.mubr.bf16.mxu0 %v11072_v24  ;;  %v4298_v13 = vmul.f32 %v10974_v32, %v4255_v25  ;;  %v7414_v36 = vcombine.high %v4432_v45, %v4436_v55  ;;  %v4423_v21 = vld [vmem:[#allocation13 + $0x310] sm:$0xff]  ;;  %v4428_v2 = vld [vmem:[#allocation13 + $0x338] sm:$0xff] }
 0x759   : > { %v8541_v35 = vpop.eup %8540  ;;  %5166 = vmatmul.mubr.bf16.gmra.mxu1 %v11074_v26  ;;  %5279 = vmatmul.mubr.bf16.gmra.mxu0 %v11074_v26  ;;  %v4297_v27 = vmul.f32 %v10968_v41, %v4254_v59 }
 0x75a   : > { %v4217_v44 = vadd.f32 1e-06, %v4201_v37  ;;  %5336 = vmatpush2.bf16.msra.mxu1 %v7427_v14  ;;  %5449 = vmatpush2.bf16.msra.mxu0 %v7429_v43  ;;  %v4257_v16 = vmul.f32 %v8541_v35, %v10911_v61  ;;  %v4256_v22 = vmul.f32 %v8541_v35, %v10894_v34  ;;  %v4427_v14 = vld [vmem:[#allocation13 + $0x330] sm:$0xff]  ;;  %v7411_v37 = vcombine.low %v4431_v15, %v4435_v17  ;;  %v4416_v15 = vld [vmem:[#allocation13 + $0x2d8] sm:$0xff] }
 0x75b   : > { %5337 = vmatprep.subr.bf16.mxu1 %v7420_v63  ;;  %5450 = vmatprep.subr.bf16.mxu0 %v7422_v51  ;;  %v7413_v51 = vcombine.low %v4432_v45, %v4436_v55  ;;  %v7404_v35 = vcombine.high %v4423_v21, %v4427_v14  ;;  %v4420_v17 = vld [vmem:[#allocation13 + $0x2f8] sm:$0xff]  ;;  %v7403_v45 = vcombine.low %v4423_v21, %v4427_v14  ;;  %v4411_v14 = vld [vmem:[#allocation13 + $0x2b0] sm:$0xff] }
 0x75c   : > { %8548 = vrsqrt.f32 %v4217_v44  ;;  %v4300_v39 = vmul.f32 %v10974_v32, %v4257_v16  ;;  %v4299_v1 = vmul.f32 %v10968_v41, %v4256_v22  ;;  %v7406_v44 = vcombine.high %v4424_v3, %v4428_v2  ;;  %v4415_v16 = vld [vmem:[#allocation13 + $0x2d0] sm:$0xff] }
 0x75d   : > { %v8543_v43 = vpop.eup %8542  ;;  %v4419_v22 = vld [vmem:[#allocation13 + $0x2f0] sm:$0xff]  ;;  %v7405_v55 = vcombine.low %v4424_v3, %v4428_v2  ;;  %v4412_v3 = vld [vmem:[#allocation13 + $0x2b8] sm:$0xff] }
 0x75e   : > { %5338 = vmatpush2.bf16.msra.mxu1 %v7419_v7  ;;  %5451 = vmatpush2.bf16.msra.mxu0 %v7421_v0  ;;  %v11088_v63 = vpack.c.bf16 %v4300_v39, %v4298_v13  ;;  %v11090_v25 = vpack.c.bf16 %v4299_v1, %v4297_v27  ;;  %v4259_v59 = vmul.f32 %v8543_v43, %v10927_v4  ;;  %v4407_v27 = vld [vmem:[#allocation13 + $0x290] sm:$0xff] }
 0x75f   : > { %5339 = vmatprep.subr.bf16.mxu1 %v7412_v48  ;;  %5452 = vmatprep.subr.bf16.mxu0 %v7414_v36  ;;  %v4258_v7 = vmul.f32 %v8543_v43, %v10920_v20  ;;  %v7396_v36 = vcombine.high %v4415_v16, %v4419_v22  ;;  %v7398_v39 = vcombine.high %v4416_v15, %v4420_v17 }
 0x760   : > { %5175 = vmatprep.mubr.bf16.mxu1 %v11088_v63  ;;  %5288 = vmatprep.mubr.bf16.mxu0 %v11088_v63  ;;  %v4302_v1 = vmul.f32 %v10974_v32, %v4259_v59  ;;  %v7388_v59 = vcombine.high %v4407_v27, %v4411_v14 }
 0x761   : > { %v8545_v0 = vpop.eup %8544  ;;  %5176 = vmatmul.mubr.bf16.gmra.mxu1 %v11090_v25  ;;  %5289 = vmatmul.mubr.bf16.gmra.mxu0 %v11090_v25  ;;  %v4301_v4 = vmul.f32 %v10968_v41, %v4258_v7 }
 0x762   : > { %5340 = vmatpush2.bf16.msra.mxu1 %v7411_v37  ;;  %5453 = vmatpush2.bf16.msra.mxu0 %v7413_v51  ;;  %v4261_v13 = vmul.f32 %v8545_v0, %v10937_v46  ;;  %v4260_v48 = vmul.f32 %v8545_v0, %v10930_v19  ;;  %v4408_v37 = vld [vmem:[#allocation13 + $0x298] sm:$0xff]  ;;  %v7395_v51 = vcombine.low %v4415_v16, %v4419_v22  ;;  %v4399_v46 = vld [vmem:[#allocation13 + $0x250] sm:$0xff] }
 0x763   : > { %5341 = vmatprep.subr.bf16.mxu1 %v7404_v35  ;;  %5454 = vmatprep.subr.bf16.mxu0 %v7406_v44  ;;  %v7397_v44 = vcombine.low %v4416_v15, %v4420_v17  ;;  %v4400_v16 = vld [vmem:[#allocation13 + $0x258] sm:$0xff]  ;;  %v7389_v15 = vcombine.low %v4408_v37, %v4412_v3 }
 0x764   : > { %v4304_v43 = vmul.f32 %v10974_v32, %v4261_v13  ;;  %v4303_v21 = vmul.f32 %v10968_v41, %v4260_v48  ;;  %v7390_v13 = vcombine.high %v4408_v37, %v4412_v3  ;;  %v4403_v48 = vld [vmem:[#allocation13 + $0x270] sm:$0xff]  ;;  %v4404_v22 = vld [vmem:[#allocation13 + $0x278] sm:$0xff] }
 0x765   : > { %v8547_v2 = vpop.eup %8546  ;;  %v4392_v37 = vld [vmem:[#allocation13 + $0x218] sm:$0xff] }
 0x766   : > { %5342 = vmatpush2.bf16.msra.mxu1 %v7403_v45  ;;  %5455 = vmatpush2.bf16.msra.mxu0 %v7405_v55  ;;  %v11104_v35 = vpack.c.bf16 %v4304_v43, %v4302_v1  ;;  %v11106_v0 = vpack.c.bf16 %v4303_v21, %v4301_v4  ;;  %v4263_v7 = vmul.f32 %v8547_v2, %v10947_v29  ;;  %v4396_v3 = vld [vmem:[#allocation13 + $0x238] sm:$0xff] }
 0x767   : > { %5343 = vmatprep.subr.bf16.mxu1 %v7396_v36  ;;  %5456 = vmatprep.subr.bf16.mxu0 %v7398_v39  ;;  %v4262_v45 = vmul.f32 %v8547_v2, %v10940_v28  ;;  %v7387_v4 = vcombine.low %v4407_v27, %v4411_v14  ;;  %v7380_v39 = vcombine.high %v4399_v46, %v4403_v48  ;;  %v4391_v27 = vld [vmem:[#allocation13 + $0x210] sm:$0xff] }
 0x768   : > { %5185 = vmatprep.mubr.bf16.mxu1 %v11104_v35  ;;  %5298 = vmatprep.mubr.bf16.mxu0 %v11104_v35  ;;  %v7382_v1 = vcombine.high %v4400_v16, %v4404_v22  ;;  %v4306_v43 = vmul.f32 %v10974_v32, %v4263_v7  ;;  %v7379_v14 = vcombine.low %v4399_v46, %v4403_v48  ;;  %v8262_v48 = vld [vmem:[#allocation14 + $0x70] ss:$8 sps:$4 sm:$0xff]  }
 0x769   : > { %v8549_v55 = vpop.eup %8548  ;;  %5186 = vmatmul.mubr.bf16.gmra.mxu1 %v11106_v0  ;;  %5299 = vmatmul.mubr.bf16.gmra.mxu0 %v11106_v0  ;;  %v4305_v2 = vmul.f32 %v10968_v41, %v4262_v45  ;;  %v7373_v7 = vcombine.low %v4392_v37, %v4396_v3  ;;  %v8277_v45 = vld [vmem:[#allocation14 + $0x150] ss:$8 sps:$4 sm:$0xff]  }
 0x76a   : > { %5344 = vmatpush2.bf16.msra.mxu1 %v7395_v51  ;;  %5457 = vmatpush2.bf16.msra.mxu0 %v7397_v44  ;;  %v4265_v17 = vmul.f32 %v8549_v55, %v10957_v38  ;;  %v4264_v36 = vmul.f32 %v8549_v55, %v10950_v42  ;;  %v4395_v51 = vld [vmem:[#allocation13 + $0x230] sm:$0xff]  ;;  %v8285_v55 = vld [vmem:[#allocation14 + $0x144] ss:$8 sps:$4 sm:$0xff]  }
 0x76b   : > { %5345 = vmatprep.subr.bf16.mxu1 %v7388_v59  ;;  %5458 = vmatprep.subr.bf16.mxu0 %v7390_v13  ;;  %v7381_v59 = vcombine.low %v4400_v16, %v4404_v22  ;;  %v7371_v46 = vcombine.low %v4391_v27, %v4395_v51  ;;  %v8265_v16 = vld [vmem:[#allocation14 + $0x170] ss:$8 sps:$4 sm:$0xff]   ;;  %v8273_v22 = vld [vmem:[#allocation14 + $0x164] ss:$8 sps:$4 sm:$0xff]  }
 0x76c   : > { %v4308_v21 = vmul.f32 %v10974_v32, %v4265_v17  ;;  %v4307_v29 = vmul.f32 %v10968_v41, %v4264_v36  ;;  %v7372_v32 = vcombine.high %v4391_v27, %v4395_v51  ;;  %v7374_v41 = vcombine.high %v4392_v37, %v4396_v3  ;;  %v8289_v17 = vld [vmem:[#allocation14 + $0x130] ss:$8 sps:$4 sm:$0xff]   ;;  %v8294_v36 = vld [vmem:[#allocation14 + $0x24] ss:$8 sps:$4 sm:$0xff]   ;;  %v8307_v51 = vld [vmem:[#allocation14 + $0x100] ss:$8 sps:$4 sm:$0xff]  }
 0x76d   : > { %v8306_v27 = vld [vmem:[#allocation14 + $0x4] ss:$8 sps:$4 sm:$0xff]   ;;  %v8312_v37 = vld [vmem:[#allocation14 + $0xf4] ss:$8 sps:$4 sm:$0xff]  }
 0x76e   : > { %5346 = vmatpush2.bf16.msra.mxu1 %v7387_v4  ;;  %5459 = vmatpush2.bf16.msra.mxu0 %v7389_v15  ;;  %v11120_v44 = vpack.c.bf16 %v4308_v21, %v4306_v43  ;;  %v11122_v13 = vpack.c.bf16 %v4307_v29, %v4305_v2  ;;  %v8264_v29 = vld [vmem:[#allocation14 + $0x74] ss:$8 sps:$4 sm:$0xff]   ;;  %v8280_v4 = vld [vmem:[#allocation14 + $0x40] ss:$8 sps:$4 sm:$0xff]   ;;  %v8286_v15 = vld [vmem:[#allocation14 + $0x30] ss:$8 sps:$4 sm:$0xff]  }
 0x76f   : > { %5347 = vmatprep.subr.bf16.mxu1 %v7380_v39  ;;  %5460 = vmatprep.subr.bf16.mxu0 %v7382_v1  ;;  %v8297_v39 = vld [vmem:[#allocation14 + $0x124] ss:$8 sps:$4 sm:$0xff]   ;;  %v8292_v1 = vld [vmem:[#allocation14 + $0x20] ss:$8 sps:$4 sm:$0xff]   ;;  %v8298_v21 = vld [vmem:[#allocation14 + $0x10] ss:$8 sps:$4 sm:$0xff]  }
 0x770   : > { %5195 = vmatprep.mubr.bf16.mxu1 %v11120_v44  ;;  %5308 = vmatprep.mubr.bf16.mxu0 %v11120_v44  ;;  %v8295_v43 = vld [vmem:[#allocation14 + $0x120] ss:$8 sps:$4 sm:$0xff]   ;;  %v8301_v2 = vld [vmem:[#allocation14 + $0x110] ss:$8 sps:$4 sm:$0xff]   ;;  %v8315_v3 = vld [vmem:[#allocation14 + $0x1f4] ss:$8 sps:$4 sm:$0xff]  }
 0x771   : > { %5196 = vmatmul.mubr.bf16.gmra.mxu1 %v11122_v13  ;;  %5309 = vmatmul.mubr.bf16.gmra.mxu0 %v11122_v13 }
 0x772   : > { %5348 = vmatpush2.bf16.msra.mxu1 %v7379_v14  ;;  %5461 = vmatpush2.bf16.msra.mxu0 %v7381_v59  ;;  %v8304_v14 = vld [vmem:[#allocation14] ss:$8 sps:$4 sm:$0xff]   ;;  %v8313_v59 = vld [vmem:[#allocation14 + $0x1f0] ss:$8 sps:$4 sm:$0xff]  }
 0x773   : > { %5351 = vmatprep.mubr.bf16.mxu1 %v10982_v10  ;;  %5464 = vmatprep.mubr.bf16.mxu0 %v10982_v10  ;;  %v8267_v10 = vld [vmem:[#allocation14 + $0x174] ss:$8 sps:$4 sm:$0xff]  }
 0x774   : > { %5349 = vmatprep.subr.bf16.mxu1 %v7372_v32  ;;  %5462 = vmatprep.subr.bf16.mxu0 %v7374_v41  ;;  %v8321_v32 = vld [vmem:[#allocation14 + $0x1e4] ss:$8 sps:$4 sm:$0xff]   ;;  %v8316_v41 = vld [vmem:[#allocation14 + $0xe0] ss:$8 sps:$4 sm:$0xff]  }
 0x776   : > { %5350 = vmatpush2.bf16.msra.mxu1 %v7371_v46  ;;  %5463 = vmatpush2.bf16.msra.mxu0 %v7373_v7  ;;  %v8319_v46 = vld [vmem:[#allocation14 + $0x1e0] ss:$8 sps:$4 sm:$0xff]   ;;  %v8324_v7 = vld [vmem:[#allocation14 + $0xd4] ss:$8 sps:$4 sm:$0xff]  }
 0x777   : > { %6473 = vmatprep.subr.bf16.mxu1 %v8264_v29  ;;  %6586 = vmatprep.subr.bf16.mxu0 %v8267_v10  ;;  %v8327_v29 = vld [vmem:[#allocation14 + $0x1d4] ss:$8 sps:$4 sm:$0xff]   ;;  %v8322_v10 = vld [vmem:[#allocation14 + $0xd0] ss:$8 sps:$4 sm:$0xff]  }
 0x779   : > { %5352 = vmatmul.mubr.bf16.vlgmr.msra.gmra.mxu1 %v10984_v62  ;;  %5465 = vmatmul.mubr.bf16.vlgmr.msra.gmra.mxu0 %v10984_v62  ;;  %v8270_v62 = vld [vmem:[#allocation14 + $0x64] ss:$8 sps:$4 sm:$0xff]  }
 0x77a   : > { %5361 = vmatprep.mubr.bf16.mxu1 %v11008_v54  ;;  %5474 = vmatprep.mubr.bf16.mxu0 %v11008_v54  ;;  %v8268_v54 = vld [vmem:[#allocation14 + $0x60] ss:$8 sps:$4 sm:$0xff]  }
 0x77b   : > { %6474 = vmatpush1.bf16.msra.mxu1 %v8262_v48  ;;  %6587 = vmatpush1.bf16.msra.mxu0 %v8265_v16  ;;  %v8325_v48 = vld [vmem:[#allocation14 + $0x1d0] ss:$8 sps:$4 sm:$0xff]   ;;  %v8330_v16 = vld [vmem:[#allocation14 + $0xc4] ss:$8 sps:$4 sm:$0xff]  }
 0x77c   : > { %6475 = vmatprep.subr.bf16.mxu1 %v8270_v62  ;;  %6588 = vmatprep.subr.bf16.mxu0 %v8273_v22  ;;  %v8333_v62 = vld [vmem:[#allocation14 + $0x1c4] ss:$8 sps:$4 sm:$0xff]   ;;  %v8328_v22 = vld [vmem:[#allocation14 + $0xc0] ss:$8 sps:$4 sm:$0xff]  }
 0x77f   : > { %6476 = vmatpush1.bf16.msra.mxu1 %v8268_v54  ;;  %v8331_v54 = vld [vmem:[#allocation14 + $0x1c0] ss:$8 sps:$4 sm:$0xff]  }
 0x781   : > { %5362 = vmatmul.mubr.bf16.gmra.mxu1 %v11010_v9  ;;  %5475 = vmatmul.mubr.bf16.gmra.mxu0 %v11010_v9  ;;  %v8271_v9 = vld [vmem:[#allocation14 + $0x160] ss:$8 sps:$4 sm:$0xff]  }
 0x782   : > { %5371 = vmatprep.mubr.bf16.mxu1 %v11032_v57  ;;  %5484 = vmatprep.mubr.bf16.mxu0 %v11032_v57  ;;  %v8276_v57 = vld [vmem:[#allocation14 + $0x54] ss:$8 sps:$4 sm:$0xff]  }
 0x783   : > { %6589 = vmatpush1.bf16.msra.mxu0 %v8271_v9  ;;  %6477 = vmatprep.subr.bf16.mxu1 %v8276_v57  ;;  %v8336_v9 = vld [vmem:[#allocation14 + $0xb4] ss:$8 sps:$4 sm:$0xff]  }
 0x784   : > { %v8339_v57 = vld [vmem:[#allocation14 + $0x1b4] ss:$8 sps:$4 sm:$0xff]  }
 0x789   : > { %5372 = vmatmul.mubr.bf16.gmra.mxu1 %v11034_v23  ;;  %5485 = vmatmul.mubr.bf16.gmra.mxu0 %v11034_v23  ;;  %v8279_v23 = vld [vmem:[#allocation14 + $0x154] ss:$8 sps:$4 sm:$0xff]  }
 0x78a   : > { %5381 = vmatprep.mubr.bf16.mxu1 %v11048_v11  ;;  %5494 = vmatprep.mubr.bf16.mxu0 %v11048_v11  ;;  %v8274_v11 = vld [vmem:[#allocation14 + $0x50] ss:$8 sps:$4 sm:$0xff]  }
 0x78b   : > { %6590 = vmatprep.subr.bf16.mxu0 %v8279_v23  ;;  %6478 = vmatpush1.bf16.msra.mxu1 %v8274_v11  ;;  %v8334_v23 = vld [vmem:[#allocation14 + $0xb0] ss:$8 sps:$4 sm:$0xff]  }
 0x78c   : > { %6591 = vmatpush1.bf16.msra.mxu0 %v8277_v45  ;;  %v8337_v11 = vld [vmem:[#allocation14 + $0x1b0] ss:$8 sps:$4 sm:$0xff]   ;;  %v8342_v45 = vld [vmem:[#allocation14 + $0xa4] ss:$8 sps:$4 sm:$0xff]  }
 0x78d   : > { %6592 = vmatprep.subr.bf16.mxu0 %v8285_v55  ;;  %v8340_v55 = vld [vmem:[#allocation14 + $0xa0] ss:$8 sps:$4 sm:$0xff]  }
 0x791   : > { %5382 = vmatmul.mubr.bf16.gmra.mxu1 %v11050_v53  ;;  %5495 = vmatmul.mubr.bf16.gmra.mxu0 %v11050_v53  ;;  %v8282_v53 = vld [vmem:[#allocation14 + $0x44] ss:$8 sps:$4 sm:$0xff]  }
 0x792   : > { %5391 = vmatprep.mubr.bf16.mxu1 %v11072_v24  ;;  %5504 = vmatprep.mubr.bf16.mxu0 %v11072_v24  ;;  %v8283_v24 = vld [vmem:[#allocation14 + $0x140] ss:$8 sps:$4 sm:$0xff]  }
 0x793   : > { %6479 = vmatprep.subr.bf16.mxu1 %v8282_v53  ;;  %6593 = vmatpush1.bf16.msra.mxu0 %v8283_v24  ;;  %v8345_v53 = vld [vmem:[#allocation14 + $0x1a4] ss:$8 sps:$4 sm:$0xff]   ;;  %v8348_v24 = vld [vmem:[#allocation14 + $0x94] ss:$8 sps:$4 sm:$0xff]  }
 0x794   : > { %6480 = vmatpush1.bf16.msra.mxu1 %v8280_v4  ;;  %v8343_v4 = vld [vmem:[#allocation14 + $0x1a0] ss:$8 sps:$4 sm:$0xff]  }
 0x799   : > { %5392 = vmatmul.mubr.bf16.gmra.mxu1 %v11074_v26  ;;  %5505 = vmatmul.mubr.bf16.gmra.mxu0 %v11074_v26  ;;  %v8288_v26 = vld [vmem:[#allocation14 + $0x34] ss:$8 sps:$4 sm:$0xff]  }
 0x79a   : > { %5401 = vmatprep.mubr.bf16.mxu1 %v11088_v63  ;;  %5514 = vmatprep.mubr.bf16.mxu0 %v11088_v63  ;;  %v8291_v63 = vld [vmem:[#allocation14 + $0x134] ss:$8 sps:$4 sm:$0xff]  }
 0x79b   : > { %6481 = vmatprep.subr.bf16.mxu1 %v8288_v26  ;;  %6594 = vmatprep.subr.bf16.mxu0 %v8291_v63  ;;  %v8351_v26 = vld [vmem:[#allocation14 + $0x194] ss:$8 sps:$4 sm:$0xff]   ;;  %v8346_v63 = vld [vmem:[#allocation14 + $0x90] ss:$8 sps:$4 sm:$0xff]  }
 0x79c   : > { %6482 = vmatpush1.bf16.msra.mxu1 %v8286_v15  ;;  %6595 = vmatpush1.bf16.msra.mxu0 %v8289_v17  ;;  %v8349_v15 = vld [vmem:[#allocation14 + $0x190] ss:$8 sps:$4 sm:$0xff]   ;;  %v8354_v17 = vld [vmem:[#allocation14 + $0x84] ss:$8 sps:$4 sm:$0xff]  }
 0x79d   : > { %6483 = vmatprep.subr.bf16.mxu1 %v8294_v36  ;;  %6596 = vmatprep.subr.bf16.mxu0 %v8297_v39  ;;  %v8357_v36 = vld [vmem:[#allocation14 + $0x184] ss:$8 sps:$4 sm:$0xff]   ;;  %v8352_v39 = vld [vmem:[#allocation14 + $0x80] ss:$8 sps:$4 sm:$0xff]  }
 0x7a0   : > { %6484 = vmatpush1.bf16.msra.mxu1 %v8292_v1  ;;  %6597 = vmatpush1.bf16.msra.mxu0 %v8295_v43  ;;  %v8355_v1 = vld [vmem:[#allocation14 + $0x180] ss:$8 sps:$4 sm:$0xff]  }
 0x7a1   : > { %5402 = vmatmul.mubr.bf16.gmra.mxu1 %v11090_v25  ;;  %5515 = vmatmul.mubr.bf16.gmra.mxu0 %v11090_v25  ;;  %v8300_v25 = vld [vmem:[#allocation14 + $0x14] ss:$8 sps:$4 sm:$0xff]  }
 0x7a2   : > { %5411 = vmatprep.mubr.bf16.mxu1 %v11104_v35  ;;  %5524 = vmatprep.mubr.bf16.mxu0 %v11104_v35  ;;  %v8303_v35 = vld [vmem:[#allocation14 + $0x114] ss:$8 sps:$4 sm:$0xff]  }
 0x7a3   : > { %6485 = vmatprep.subr.bf16.mxu1 %v8300_v25  ;;  %6598 = vmatprep.subr.bf16.mxu0 %v8303_v35 }
 0x7a4   : > { %6486 = vmatpush1.bf16.msra.mxu1 %v8298_v21  ;;  %6599 = vmatpush1.bf16.msra.mxu0 %v8301_v2 }
 0x7a5   : > { %6487 = vmatprep.subr.bf16.mxu1 %v8306_v27 }
 0x7a8   : > { %6488 = vmatpush1.bf16.msra.mxu1 %v8304_v14 }
 0x7a9   : > { %5412 = vmatmul.mubr.bf16.gmra.mxu1 %v11106_v0  ;;  %5525 = vmatmul.mubr.bf16.gmra.mxu0 %v11106_v0  ;;  %v8309_v0 = vld [vmem:[#allocation14 + $0x104] ss:$8 sps:$4 sm:$0xff]  }
 0x7aa   : > { %5421 = vmatprep.mubr.bf16.mxu1 %v11120_v44  ;;  %5534 = vmatprep.mubr.bf16.mxu0 %v11120_v44  ;;  %v8310_v44 = vld [vmem:[#allocation14 + $0xf0] ss:$8 sps:$4 sm:$0xff]  }
 0x7ab   : > { %6600 = vmatprep.subr.bf16.mxu0 %v8309_v0  ;;  %6489 = vmatprep.subr.bf16.mxu1 %v8312_v37 }
 0x7ac   : > { %6601 = vmatpush1.bf16.msra.mxu0 %v8307_v51  ;;  %6490 = vmatpush2.bf16.msra.mxu1 %v8310_v44 }
 0x7ad   : > { %6602 = vmatprep.subr.bf16.mxu0 %v8315_v3 }
 0x7b0   : > { %6603 = vmatpush2.bf16.msra.mxu0 %v8313_v59 }
 0x7b1   : > { %5422 = vmatmul.mubr.bf16.gmra.mxu1 %v11122_v13  ;;  %5535 = vmatmul.mubr.bf16.gmra.mxu0 %v11122_v13  ;;  %v8318_v13 = vld [vmem:[#allocation14 + $0xe4] ss:$8 sps:$4 sm:$0xff]  }
 0x7b2   : > { %6491 = vmatprep.subr.bf16.mxu1 %v8318_v13  ;;  %6604 = vmatprep.subr.bf16.mxu0 %v8321_v32 }
 0x7b3   : > { %6492 = vmatpush2.bf16.msra.mxu1 %v8316_v41 }
 0x7b4   : > { %6605 = vmatpush2.bf16.msra.mxu0 %v8319_v46  ;;  %6493 = vmatprep.subr.bf16.mxu1 %v8324_v7 }
 0x7b5   : > { %6606 = vmatprep.subr.bf16.mxu0 %v8327_v29 }
 0x7b7   : > { %6494 = vmatpush2.bf16.msra.mxu1 %v8322_v10 }
 0x7b8   : > { %6607 = vmatpush2.bf16.msra.mxu0 %v8325_v48  ;;  %6495 = vmatprep.subr.bf16.mxu1 %v8330_v16 }
 0x7b9   : > { %6608 = vmatprep.subr.bf16.mxu0 %v8333_v62 }
 0x7bb   : > { %6496 = vmatpush2.bf16.msra.mxu1 %v8328_v22 }
 0x7bc   : > { %6609 = vmatpush2.bf16.msra.mxu0 %v8331_v54  ;;  %6497 = vmatprep.subr.bf16.mxu1 %v8336_v9 }
 0x7bd   : > { %6610 = vmatprep.subr.bf16.mxu0 %v8339_v57 }
 0x7bf   : > { %6498 = vmatpush2.bf16.msra.mxu1 %v8334_v23 }
 0x7c0   : > { %6611 = vmatpush2.bf16.msra.mxu0 %v8337_v11  ;;  %6499 = vmatprep.subr.bf16.mxu1 %v8342_v45 }
 0x7c1   : > { %6612 = vmatprep.subr.bf16.mxu0 %v8345_v53 }
 0x7c3   : > { %6500 = vmatpush2.bf16.msra.mxu1 %v8340_v55 }
 0x7c4   : > { %6613 = vmatpush2.bf16.msra.mxu0 %v8343_v4  ;;  %6501 = vmatprep.subr.bf16.mxu1 %v8348_v24 }
 0x7c5   : > { %6614 = vmatprep.subr.bf16.mxu0 %v8351_v26 }
 0x7c7   : > { %6502 = vmatpush2.bf16.msra.mxu1 %v8346_v63 }
 0x7c8   : > { %6615 = vmatpush2.bf16.msra.mxu0 %v8349_v15  ;;  %6503 = vmatprep.subr.bf16.mxu1 %v8354_v17 }
 0x7c9   : > { %6616 = vmatprep.subr.bf16.mxu0 %v8357_v36 }
 0x7cb   : > { %6504 = vmatpush2.bf16.msra.mxu1 %v8352_v39 }
 0x7cc   : > { %6617 = vmatpush2.bf16.msra.mxu0 %v8355_v1 }
 0x7f8   : > { %v11160_v43 = vpop.f32.mrf.mxu1  ;;  %v11162_v25 = vpop.f32.mrf.mxu0 }
 0x7f9   : > { %v7431_v35 = vmul.f32 -1.442695, %v11160_v43  ;;  %v7433_v21 = vmul.f32 -1.442695, %v11162_v25 }
 0x7fa   : > { %v11166_v2 = vpop.f32.mrf.mxu1  ;;  %v11168_v27 = vpop.f32.mrf.mxu0 }
 0x7fb   : > { %8550 = vpow2.f32 %v7431_v35  ;;  %v7432_v0 = vmul.f32 -1.442695, %v11166_v2  ;;  %v7434_v14 = vmul.f32 -1.442695, %v11168_v27 }
 0x7fc   : > { %8552 = vpow2.f32 %v7433_v21  ;;  %v11172_v51 = vpop.f32.mrf.mxu1  ;;  %v11174_v37 = vpop.f32.mrf.mxu0 }
 0x7fd   : > { %8554 = vpow2.f32 %v7432_v0  ;;  %v7435_v3 = vmul.f32 -1.442695, %v11172_v51  ;;  %v7437_v44 = vmul.f32 -1.442695, %v11174_v37 }
 0x7fe   : > { %8556 = vpow2.f32 %v7434_v14  ;;  %v11178_v59 = vpop.f32.mrf.mxu1  ;;  %v11180_v13 = vpop.f32.mrf.mxu0 }
 0x7ff   : > { %8558 = vpow2.f32 %v7435_v3  ;;  %v7436_v32 = vmul.f32 -1.442695, %v11178_v59  ;;  %v7438_v41 = vmul.f32 -1.442695, %v11180_v13 }
 0x800   : > { %8560 = vpow2.f32 %v7437_v44  ;;  %v11184_v46 = vpop.f32.mrf.mxu1  ;;  %v11186_v7 = vpop.f32.mrf.mxu0 }
 0x801   : > { %8562 = vpow2.f32 %v7436_v32  ;;  %v7439_v29 = vmul.f32 -1.442695, %v11184_v46  ;;  %v7441_v10 = vmul.f32 -1.442695, %v11186_v7 }
 0x802   : > { %8564 = vpow2.f32 %v7438_v41  ;;  %v11190_v48 = vpop.f32.mrf.mxu1  ;;  %v11192_v16 = vpop.f32.mrf.mxu0 }
 0x803   : > { %8566 = vpow2.f32 %v7439_v29  ;;  %v7440_v62 = vmul.f32 -1.442695, %v11190_v48  ;;  %v7442_v22 = vmul.f32 -1.442695, %v11192_v16 }
 0x804   : > { %8568 = vpow2.f32 %v7441_v10  ;;  %v11196_v54 = vpop.f32.mrf.mxu1  ;;  %v11198_v9 = vpop.f32.mrf.mxu0 }
 0x805   : > { %8570 = vpow2.f32 %v7440_v62  ;;  %v7443_v57 = vmul.f32 -1.442695, %v11196_v54  ;;  %v7445_v23 = vmul.f32 -1.442695, %v11198_v9 }
 0x806   : > { %8572 = vpow2.f32 %v7442_v22  ;;  %v11202_v11 = vpop.f32.mrf.mxu1  ;;  %v11204_v45 = vpop.f32.mrf.mxu0 }
 0x807   : > { %8574 = vpow2.f32 %v7443_v57  ;;  %v7444_v53 = vmul.f32 -1.442695, %v11202_v11  ;;  %v7446_v55 = vmul.f32 -1.442695, %v11204_v45 }
 0x808   : > { %v8551_v4 = vpop.eup %8550  ;;  %8576 = vpow2.f32 %v7445_v23  ;;  %v11208_v63 = vpop.f32.mrf.mxu1 }
 0x809   : > { %v8553_v24 = vpop.eup %8552  ;;  %v5737_v26 = vadd.f32 1.0, %v8551_v4  ;;  %8578 = vpow2.f32 %v7444_v53  ;;  %12083 = vst [vmem:[#allocation33_spill] sm:$0xff] %v11208_v63  ;;  %v11210_v15 = vpop.f32.mrf.mxu0 }
 0x80a   : > { %12084 = vst [vmem:[#allocation66_spill] sm:$0xff] %v11210_v15  ;;  %v8555_v17 = vpop.eup %8554  ;;  %v5739_v36 = vadd.f32 1.0, %v8553_v24  ;;  %8580 = vpow2.f32 %v7446_v55  ;;  %v11212_v35 = vpop.f32.mrf.mxu1 }
 0x80b   : > { %v8557_v39 = vpop.eup %8556  ;;  %8582 = vrcp.f32 %v5737_v26  ;;  %v5738_v1 = vadd.f32 1.0, %v8555_v17  ;;  %12085 = vst [vmem:[#allocation67_spill] sm:$0xff] %v11212_v35  ;;  %v11214_v21 = vpop.f32.mrf.mxu0 }
 0x80c   : > { %12086 = vst [vmem:[#allocation68_spill] sm:$0xff] %v11214_v21  ;;  %v8559_v0 = vpop.eup %8558  ;;  %8584 = vrcp.f32 %v5739_v36  ;;  %v5740_v14 = vadd.f32 1.0, %v8557_v39  ;;  %v11216_v32 = vpop.f32.mrf.mxu1 }
 0x80d   : > { %v8561_v3 = vpop.eup %8560  ;;  %8586 = vrcp.f32 %v5738_v1  ;;  %v5741_v44 = vadd.f32 1.0, %v8559_v0  ;;  %12087 = vst [vmem:[#allocation69_spill] sm:$0xff] %v11216_v32  ;;  %v11218_v41 = vpop.f32.mrf.mxu0 }
 0x80e   : > { %12088 = vst [vmem:[#allocation70_spill] sm:$0xff] %v11218_v41  ;;  %v8563_v29 = vpop.eup %8562  ;;  %8588 = vrcp.f32 %v5740_v14  ;;  %v5743_v10 = vadd.f32 1.0, %v8561_v3  ;;  %v11220_v57 = vpop.f32.mrf.mxu1 }
 0x80f   : > { %v8565_v62 = vpop.eup %8564  ;;  %8590 = vrcp.f32 %v5741_v44  ;;  %v5742_v22 = vadd.f32 1.0, %v8563_v29  ;;  %12089 = vst [vmem:[#allocation71_spill] sm:$0xff] %v11220_v57  ;;  %v11222_v23 = vpop.f32.mrf.mxu0  ;;  %v7452_v50 = vmul.f32 -1.442695, %v11220_v57 }
 0x810   : > { %12090 = vst [vmem:[#allocation72_spill] sm:$0xff] %v11222_v23  ;;  %v8567_v53 = vpop.eup %8566  ;;  %8592 = vrcp.f32 %v5743_v10  ;;  %v5744_v55 = vadd.f32 1.0, %v8565_v62  ;;  %v11224_v26 = vpop.f32.mrf.mxu1 }
 0x811   : > { %v8569_v4 = vpop.eup %8568  ;;  %8594 = vrcp.f32 %v5742_v22  ;;  %v5745_v24 = vadd.f32 1.0, %v8567_v53  ;;  %12091 = vst [vmem:[#allocation73_spill] sm:$0xff] %v11224_v26  ;;  %v11226_v17 = vpop.f32.mrf.mxu0  ;;  %v7455_v18 = vmul.f32 -1.442695, %v11224_v26 }
 0x812   : > { %12092 = vst [vmem:[#allocation74_spill] sm:$0xff] %v11226_v17  ;;  %v8571_v36 = vpop.eup %8570  ;;  %8596 = vrcp.f32 %v5744_v55  ;;  %v5747_v39 = vadd.f32 1.0, %v8569_v4  ;;  %v11228_v14 = vpop.f32.mrf.mxu1 }
 0x813   : > { %v8573_v1 = vpop.eup %8572  ;;  %8598 = vrcp.f32 %v5745_v24  ;;  %v5746_v0 = vadd.f32 1.0, %v8571_v36  ;;  %12093 = vst [vmem:[#allocation75_spill] sm:$0xff] %v11228_v14  ;;  %v11230_v3 = vpop.f32.mrf.mxu0  ;;  %v7447_v36 = vmul.f32 -1.442695, %v11208_v63  ;;  %v7456_v58 = vmul.f32 -1.442695, %v11228_v14 }
 0x814   : > { %12094 = vst [vmem:[#allocation76_spill] sm:$0xff] %v11230_v3  ;;  %v8575_v44 = vpop.eup %8574  ;;  %8600 = vrcp.f32 %v5747_v39  ;;  %v5748_v29 = vadd.f32 1.0, %v8573_v1  ;;  %v11232_v22 = vpop.f32.mrf.mxu1 }
 0x815   : > { %v8577_v10 = vpop.eup %8576  ;;  %8602 = vrcp.f32 %v5746_v0  ;;  %v5749_v62 = vadd.f32 1.0, %v8575_v44  ;;  %12095 = vst [vmem:[#allocation77_spill] sm:$0xff] %v11232_v22  ;;  %v11234_v53 = vpop.f32.mrf.mxu0  ;;  %v7449_v0 = vmul.f32 -1.442695, %v11210_v15  ;;  %v7459_v30 = vmul.f32 -1.442695, %v11232_v22 }
 0x816   : > { %12096 = vst [vmem:[#allocation78_spill] sm:$0xff] %v11234_v53  ;;  %v8579_v38 = vpop.eup %8578  ;;  %8604 = vrcp.f32 %v5748_v29  ;;  %v5751_v55 = vadd.f32 1.0, %v8577_v10  ;;  %v11237_v42 = vpop.f32.mrf.mxu1  ;;  %v7448_v29 = vmul.f32 -1.442695, %v11212_v35 }
 0x817   : > { %v8581_v4 = vpop.eup %8580  ;;  %8606 = vrcp.f32 %v5749_v62  ;;  %v5750_v24 = vadd.f32 1.0, %v8579_v38  ;;  %12097 = vst [vmem:[#allocation79_spill] sm:$0xff] %v11237_v42  ;;  %v11239_v28 = vpop.f32.mrf.mxu0  ;;  %v7450_v38 = vmul.f32 -1.442695, %v11214_v21 }
 0x818   : > { %12098 = vst [vmem:[#allocation80_spill] sm:$0xff] %v11239_v28  ;;  %v11241_v39 = vpop.eup %8582  ;;  %8608 = vrcp.f32 %v5751_v55  ;;  %v5752_v1 = vadd.f32 1.0, %v8581_v4  ;;  %v7451_v55 = vmul.f32 -1.442695, %v11216_v32 }
 0x819   : > { %v11244_v44 = vpop.eup %8584  ;;  %8610 = vrcp.f32 %v5750_v24  ;;  %v11250_v62 = vpop.f32.mrf.mxu1  ;;  %v7453_v24 = vmul.f32 -1.442695, %v11218_v41 }
 0x81a   : > { %v11247_v10 = vpop.eup %8586  ;;  %8612 = vrcp.f32 %v5752_v1  ;;  %12099 = vst [vmem:[#allocation81_spill] sm:$0xff] %v11250_v62  ;;  %v11252_v19 = vpop.f32.mrf.mxu0 }
 0x81b   : > { %12100 = vst [vmem:[#allocation82_spill] sm:$0xff] %v11252_v19  ;;  %v11254_v20 = vpop.eup %8588  ;;  %8614 = vpow2.f32 %v7447_v36  ;;  %v11260_v61 = vpop.f32.mrf.mxu1  ;;  %v7454_v36 = vmul.f32 -1.442695, %v11222_v23 }
 0x81c   : > { %v11257_v4 = vpop.eup %8590  ;;  %8616 = vpow2.f32 %v7449_v0  ;;  %12101 = vst [vmem:[#allocation83_spill] sm:$0xff] %v11260_v61  ;;  %v11262_v34 = vpop.f32.mrf.mxu0 }
 0x81d   : > { %12102 = vst [vmem:[#allocation84_spill] sm:$0xff] %v11262_v34  ;;  %v11264_v1 = vpop.eup %8592  ;;  %8618 = vpow2.f32 %v7448_v29  ;;  %v11270_v49 = vpop.f32.mrf.mxu1  ;;  %v7457_v29 = vmul.f32 -1.442695, %v11226_v17 }
 0x81e   : > { %v11267_v6 = vpop.eup %8594  ;;  %8620 = vpow2.f32 %v7450_v38  ;;  %v11272_v47 = vpop.f32.mrf.mxu0 }
 0x81f   : > { %12103 = vst [vmem:[#allocation85_spill] sm:$0xff] %v11272_v47  ;;  %v11274_v0 = vpop.eup %8596  ;;  %8622 = vpow2.f32 %v7451_v55  ;;  %v11280_v60 = vpop.f32.mrf.mxu1  ;;  %v7458_v55 = vmul.f32 -1.442695, %v11230_v3  ;;  %v7460_v3 = vmul.f32 -1.442695, %v11237_v42 }
 0x820   : > { %v11277_v52 = vpop.eup %8598  ;;  %8624 = vpow2.f32 %v7453_v24  ;;  %v11282_v8 = vpop.f32.mrf.mxu0 }
 0x821   : > { %12104 = vst [vmem:[#allocation86_spill] sm:$0xff] %v11282_v8  ;;  %v11284_v38 = vpop.eup %8600  ;;  %8626 = vpow2.f32 %v7452_v50  ;;  %v11290_v40 = vpop.f32.mrf.mxu1  ;;  %v7461_v50 = vmul.f32 -1.442695, %v11234_v53 }
 0x822   : > { %v11287_v31 = vpop.eup %8602  ;;  %8628 = vpow2.f32 %v7454_v36  ;;  %12105 = vst [vmem:[#allocation87_spill] sm:$0xff] %v11290_v40  ;;  %v11292_v33 = vpop.f32.mrf.mxu0 }
 0x823   : > { %12106 = vst [vmem:[#allocation88_spill] sm:$0xff] %v11292_v33  ;;  %v11294_v24 = vpop.eup %8604  ;;  %8630 = vpow2.f32 %v7455_v18  ;;  %v11300_v12 = vpop.f32.mrf.mxu1  ;;  %v7462_v18 = vmul.f32 -1.442695, %v11239_v28 }
 0x824   : > { %v11297_v56 = vpop.eup %8606  ;;  %8632 = vpow2.f32 %v7457_v29  ;;  %12107 = vst [vmem:[#allocation89_spill] sm:$0xff] %v11300_v12  ;;  %v11302_v5 = vpop.f32.mrf.mxu0 }
 0x825   : > { %12108 = vst [vmem:[#allocation90_spill] sm:$0xff] %v11302_v5  ;;  %v11304_v36 = vpop.eup %8608  ;;  %8634 = vpow2.f32 %v7456_v58  ;;  %v11310_v22 = vpop.f32.mrf.mxu1 }
 0x826   : > { %v11307_v14 = vpop.eup %8610  ;;  %8636 = vpow2.f32 %v7458_v55  ;;  %12109 = vst [vmem:[#allocation91_spill] sm:$0xff] %v11310_v22  ;;  %v11312_v17 = vpop.f32.mrf.mxu0 }
 0x827   : > { %12110 = vst [vmem:[#allocation92_spill] sm:$0xff] %v11312_v17  ;;  %v11314_v29 = vpop.eup %8612  ;;  %8638 = vpow2.f32 %v7459_v30  ;;  %v11316_v26 = vpop.f32.mrf.mxu1 }
 0x828   : > { %v8615_v53 = vpop.eup %8614  ;;  %8640 = vpow2.f32 %v7461_v50  ;;  %12111 = vst [vmem:[#allocation93_spill] sm:$0xff] %v11316_v26  ;;  %v11318_v23 = vpop.f32.mrf.mxu0 }
 0x829   : > { %12112 = vst [vmem:[#allocation94_spill] sm:$0xff] %v11318_v23  ;;  %v8617_v58 = vpop.eup %8616  ;;  %v5753_v42 = vadd.f32 1.0, %v8615_v53  ;;  %8642 = vpow2.f32 %v7460_v3  ;;  %v11320_v28 = vpop.f32.mrf.mxu1 }
 0x82a   : > { %v8619_v57 = vpop.eup %8618  ;;  %v5755_v55 = vadd.f32 1.0, %v8617_v58  ;;  %8644 = vpow2.f32 %v7462_v18  ;;  %12113 = vst [vmem:[#allocation95_spill] sm:$0xff] %v11320_v28  ;;  %v11322_v41 = vpop.f32.mrf.mxu0 }
 0x82b   : > { %12114 = vst [vmem:[#allocation96_spill] sm:$0xff] %v11322_v41  ;;  %v8621_v32 = vpop.eup %8620  ;;  %8646 = vrcp.f32 %v5753_v42  ;;  %v5754_v21 = vadd.f32 1.0, %v8619_v57  ;;  %v11324_v35 = vpop.f32.mrf.mxu1 }
 0x82c   : > { %v8623_v30 = vpop.eup %8622  ;;  %8648 = vrcp.f32 %v5755_v55  ;;  %v5756_v50 = vadd.f32 1.0, %v8621_v32  ;;  %12115 = vst [vmem:[#allocation97_spill] sm:$0xff] %v11324_v35  ;;  %v11326_v15 = vpop.f32.mrf.mxu0  ;;  %v11334_v32 = vmul.f32 %v11241_v39, %v11160_v43  ;;  %v11338_v55 = vmul.f32 %v11244_v44, %v11162_v25 }
 0x82d   : > { %12116 = vst [vmem:[#allocation98_spill] sm:$0xff] %v11326_v15  ;;  %v8625_v63 = vpop.eup %8624  ;;  %8650 = vrcp.f32 %v5754_v21  ;;  %v5757_v3 = vadd.f32 1.0, %v8623_v30  ;;  %v11328_v58 = vpop.f32.mrf.mxu1  ;;  %v7463_v43 = vmul.f32 -1.442695, %v11250_v62  ;;  %v11351_v25 = vmul.f32 %v11254_v20, %v11168_v27 }
 0x82e   : > { %v8627_v53 = vpop.eup %8626  ;;  %8652 = vrcp.f32 %v5756_v50  ;;  %v5759_v18 = vadd.f32 1.0, %v8625_v63  ;;  %12117 = vst [vmem:[#allocation99_spill] sm:$0xff] %v11328_v58  ;;  %v11330_v28 = vpop.f32.mrf.mxu0  ;;  %v7465_v44 = vmul.f32 -1.442695, %v11252_v19  ;;  %v11365_v20 = vmul.f32 %v11264_v1, %v11174_v37 }
 0x82f   : > { %12118 = vst [vmem:[#allocation100_spill] sm:$0xff] %v11330_v28  ;;  %v8629_v41 = vpop.eup %8628  ;;  %8654 = vrcp.f32 %v5757_v3  ;;  %v5758_v42 = vadd.f32 1.0, %v8627_v53  ;;  %v11340_v30 = vpop.f32.mrf.mxu1  ;;  %v11346_v3 = vmul.f32 %v11247_v10, %v11166_v2  ;;  %v11360_v2 = vmul.f32 %v11257_v4, %v11172_v51 }
 0x830   : > { %v8631_v57 = vpop.eup %8630  ;;  %8656 = vrcp.f32 %v5759_v18  ;;  %v5760_v21 = vadd.f32 1.0, %v8629_v41  ;;  %12119 = vst [vmem:[#allocation101_spill] sm:$0xff] %v11340_v30  ;;  %v11342_v63 = vpop.f32.mrf.mxu0  ;;  %v11374_v51 = vmul.f32 %v11267_v6, %v11178_v59  ;;  %v11379_v37 = vmul.f32 %v11274_v0, %v11180_v13 }
 0x831   : > { %12120 = vst [vmem:[#allocation102_spill] sm:$0xff] %v11342_v63  ;;  %v8633_v50 = vpop.eup %8632  ;;  %8658 = vrcp.f32 %v5758_v42  ;;  %v5761_v53 = vadd.f32 1.0, %v8631_v57  ;;  %v11354_v18 = vpop.f32.mrf.mxu1  ;;  %v7464_v42 = vmul.f32 -1.442695, %v11260_v61  ;;  %v11388_v6 = vmul.f32 %v11277_v52, %v11184_v46 }
 0x832   : > { %v8635_v39 = vpop.eup %8634  ;;  %8660 = vrcp.f32 %v5760_v21  ;;  %v5763_v41 = vadd.f32 1.0, %v8633_v50  ;;  %12121 = vst [vmem:[#allocation103_spill] sm:$0xff] %v11354_v18  ;;  %v11356_v63 = vpop.f32.mrf.mxu0  ;;  %v7466_v21 = vmul.f32 -1.442695, %v11262_v34  ;;  %v11395_v13 = vmul.f32 %v11284_v38, %v11186_v7 }
 0x833   : > { %v8637_v30 = vpop.eup %8636  ;;  %8662 = vrcp.f32 %v5761_v53  ;;  %v5762_v10 = vadd.f32 1.0, %v8635_v39  ;;  %v11368_v50 = vpop.f32.mrf.mxu1  ;;  %v7467_v53 = vmul.f32 -1.442695, %v11270_v49  ;;  %v7470_v0 = vmul.f32 -1.442695, %v11282_v8 }
 0x834   : > { %v8639_v57 = vpop.eup %8638  ;;  %8664 = vrcp.f32 %v5763_v41  ;;  %v5764_v27 = vadd.f32 1.0, %v8637_v30  ;;  %v11370_v19 = vpop.f32.mrf.mxu0  ;;  %v7469_v30 = vmul.f32 -1.442695, %v11272_v47  ;;  %v11406_v46 = vmul.f32 %v11287_v31, %v11190_v48 }
 0x835   : > { %v8641_v62 = vpop.eup %8640  ;;  %8666 = vrcp.f32 %v5762_v10  ;;  %v5765_v4 = vadd.f32 1.0, %v8639_v57  ;;  %v11382_v41 = vpop.f32.mrf.mxu1  ;;  %v7468_v10 = vmul.f32 -1.442695, %v11280_v60  ;;  %v7473_v7 = vmul.f32 -1.442695, %v11292_v33 }
 0x836   : > { %v8643_v39 = vpop.eup %8642  ;;  %8668 = vrcp.f32 %v5764_v27  ;;  %v5767_v1 = vadd.f32 1.0, %v8641_v62  ;;  %v11384_v34 = vpop.f32.mrf.mxu0 }
 0x837   : > { %v8645_v61 = vpop.eup %8644  ;;  %8670 = vrcp.f32 %v5765_v4  ;;  %v5766_v59 = vadd.f32 1.0, %v8643_v39  ;;  %v11398_v27 = vpop.f32.mrf.mxu1  ;;  %v7471_v4 = vmul.f32 -1.442695, %v11290_v40  ;;  %v11418_v39 = vmul.f32 %v11297_v56, %v11196_v54 }
 0x838   : > { %v11391_v57 = vpop.eup %8646  ;;  %8672 = vrcp.f32 %v5767_v1  ;;  %v5768_v62 = vadd.f32 1.0, %v8645_v61  ;;  %12122 = vst [vmem:[#allocation104_spill] sm:$0xff] %v11398_v27  ;;  %v11400_v47 = vpop.f32.mrf.mxu0  ;;  %v11414_v61 = vmul.f32 %v11294_v24, %v11192_v16  ;;  %v11421_v1 = vmul.f32 -1.442695, %v11300_v12 }
 0x839   : > { %12123 = vst [vmem:[#allocation105_spill] sm:$0xff] %v11400_v47  ;;  %v11402_v52 = vpop.eup %8648  ;;  %8674 = vrcp.f32 %v5766_v59  ;;  %v5353_v31 = vpop.f32.mrf.mxu1  ;;  %v11427_v47 = vmul.f32 %v11304_v36, %v11198_v9  ;;  %v11431_v16 = vmul.f32 %v11307_v14, %v11202_v11  ;;  %v11434_v56 = vmul.f32 -1.442695, %v11302_v5  ;;  %v12125_v5 = vld [vmem:[#allocation96_spill] sm:$0xff] }
 0x83a   : > { %v11410_v38 = vpop.eup %8650  ;;  %8676 = vrcp.f32 %v5768_v62  ;;  %v5466_v48 = vpop.f32.mrf.mxu0  ;;  %v11438_v24 = vmul.f32 %v11314_v29, %v11204_v45  ;;  %v11441_v62 = vmul.f32 -1.442695, %v11310_v22  ;;  %v11444_v9 = vmul.f32 -1.442695, %v11312_v17  ;;  %v12124_v45 = vld [vmem:[#allocation95_spill] sm:$0xff] }
 0x83b   : > { %v11423_v59 = vpop.eup %8652  ;;  %8678 = vpow2.f32 %v7463_v43  ;;  %v5355_v36 = vpop.f32.mrf.mxu1  ;;  %v11449_v14 = vmul.f32 -1.442695, %v11316_v26  ;;  %v11452_v43 = vmul.f32 -1.442695, %v11318_v23  ;;  %v11455_v29 = vmul.f32 -1.442695, %v12124_v45 }
 0x83c   : > { %v8655_v54 = vpop.eup %8654  ;;  %8680 = vpow2.f32 %v7465_v44  ;;  %v5468_v12 = vpop.f32.mrf.mxu0  ;;  %v11460_v17 = vmul.f32 -1.442695, %v12125_v5  ;;  %v11463_v22 = vmul.f32 -1.442695, %v11324_v35  ;;  %v5995_v23 = vmul.f32 %v11338_v55, %v5466_v48 }
 0x83d   : > { %v11446_v11 = vpop.eup %8656  ;;  %8682 = vpow2.f32 %v7464_v42  ;;  %v5993_v42 = vmul.f32 %v11334_v32, %v5353_v31  ;;  %v5357_v33 = vpop.f32.mrf.mxu1  ;;  %v11474_v5 = vmul.f32 -1.442695, %v11326_v15  ;;  %v11477_v35 = vmul.f32 -1.442695, %v11328_v58 }
 0x83e   : > { %v11457_v44 = vpop.eup %8658  ;;  %8684 = vpow2.f32 %v7466_v21  ;;  %v5470_v26 = vpop.f32.mrf.mxu0  ;;  %v5997_v45 = vmul.f32 %v11360_v2, %v5357_v33  ;;  %v11480_v32 = vmul.f32 -1.442695, %v11330_v28  ;;  %v5994_v33 = vmul.f32 %v11346_v3, %v5355_v36  ;;  %v12128_v3 = vld [vmem:[#allocation102_spill] sm:$0xff] }
 0x83f   : > { %v11466_v27 = vpop.eup %8660  ;;  %8686 = vpow2.f32 %v7467_v53  ;;  %v5999_v40 = vmul.f32 %v11365_v20, %v5470_v26  ;;  %v5359_v31 = vpop.f32.mrf.mxu1  ;;  %v5996_v20 = vmul.f32 %v11351_v25, %v5468_v12  ;;  %v11496_v36 = vmul.f32 -1.442695, %v12128_v3 }
 0x840   : > { %v11471_v21 = vpop.eup %8662  ;;  %8688 = vpow2.f32 %v7469_v30  ;;  %12126 = vst [vmem:[#allocation106_spill] sm:$0xff] %v11480_v32  ;;  %v5472_v53 = vpop.f32.mrf.mxu0  ;;  %v6057_v26 = vpack.c.bf16 %v5997_v45, %v5993_v42  ;;  %v5998_v30 = vmul.f32 %v11374_v51, %v5359_v31  ;;  %v12127_v32 = vld [vmem:[#allocation101_spill] sm:$0xff]  ;;  %v11504_v12 = vmul.f32 -1.442695, %v11356_v63  ;;  %v12130_v31 = vld [vmem:[#allocation66_spill] sm:$0xff] }
 0x841   : > { %v11482_v8 = vpop.eup %8664  ;;  %8690 = vpow2.f32 %v7468_v10  ;;  %v6059_v55 = vpack.c.bf16 %v5999_v40, %v5995_v23  ;;  %v6000_v48 = vmul.f32 %v11379_v37, %v5472_v53  ;;  %v5363_v15 = vpop.f32.mrf.mxu1  ;;  %v11493_v10 = vmul.f32 -1.442695, %v12127_v32  ;;  %v12129_v45 = vld [vmem:[#allocation33_spill] sm:$0xff] }
 0x842   : > { %v11485_v2 = vpop.eup %8666  ;;  %8692 = vpow2.f32 %v7470_v0  ;;  %v5476_v28 = vpop.f32.mrf.mxu0  ;;  %v11499_v40 = vmul.f32 -1.442695, %v11354_v18  ;;  %v6058_v25 = vpack.c.bf16 %v5998_v30, %v5994_v33  ;;  %v5945_v42 = vmul.f32 %v11391_v57, %v12129_v45  ;;  %v12131_v18 = vld [vmem:[#allocation67_spill] sm:$0xff]  ;;  %v12132_v33 = vld [vmem:[#allocation68_spill] sm:$0xff]  ;;  %v12133_v30 = vld [vmem:[#allocation69_spill] sm:$0xff] }
 0x843   : > { %v11490_v58 = vpop.eup %8668  ;;  %8694 = vpow2.f32 %v7471_v4  ;;  %v6060_v51 = vpack.c.bf16 %v6000_v48, %v5996_v20  ;;  %v5365_v37 = vpop.f32.mrf.mxu1  ;;  %v5947_v53 = vmul.f32 %v11402_v52, %v12130_v31  ;;  %v11514_v3 = vmul.f32 %v11410_v38, %v12131_v18 }
 0x844   : > { %v11501_v23 = vpop.eup %8670  ;;  %8696 = vpow2.f32 %v7473_v7  ;;  %v5478_v0 = vpop.f32.mrf.mxu0  ;;  %v11521_v20 = vmul.f32 %v11423_v59, %v12132_v33  ;;  %v5949_v48 = vmul.f32 %v8655_v54, %v12133_v30  ;;  %v6001_v57 = vmul.f32 %v11388_v6, %v5363_v15  ;;  %6505 = vmatprep.mubr.bf16.mxu1 %v6058_v25  ;;  %v12136_v33 = vld [vmem:[#allocation72_spill] sm:$0xff] }
 0x845   : > { %v11506_v4 = vpop.eup %8672  ;;  %8698 = vpow2.f32 %v11421_v1  ;;  %6618 = vmatprep.mubr.bf16.mxu0 %v6060_v51  ;;  %v5367_v52 = vpop.f32.mrf.mxu1  ;;  %v6003_v38 = vmul.f32 %v11395_v13, %v5476_v28  ;;  %6506 = vmatmul.mubr.bf16.vlgmr.msra.gmra.mxu1 %v6057_v26  ;;  %v6002_v6 = vmul.f32 %v11406_v46, %v5365_v37  ;;  %v6004_v25 = vmul.f32 %v11414_v61, %v5478_v0  ;;  %v12135_v61 = vld [vmem:[#allocation71_spill] sm:$0xff] }
 0x846   : > { %v11517_v7 = vpop.eup %8674  ;;  %8700 = vpow2.f32 %v11434_v56  ;;  %v5480_v45 = vpop.f32.mrf.mxu0  ;;  %v6005_v1 = vmul.f32 %v11418_v39, %v5367_v52  ;;  %6619 = vmatmul.mubr.bf16.vlgmr.msra.gmra.mxu0 %v6059_v55  ;;  %v12134_v56 = vld [vmem:[#allocation70_spill] sm:$0xff]  ;;  %v5950_v0 = vmul.f32 %v11457_v44, %v12135_v61  ;;  %v5952_v30 = vmul.f32 %v11466_v27, %v12136_v33 }
 0x847   : > { %v11526_v18 = vpop.eup %8676  ;;  %8702 = vpow2.f32 %v11441_v62  ;;  %v6007_v59 = vmul.f32 %v11427_v47, %v5480_v45  ;;  %v5951_v15 = vmul.f32 %v11446_v11, %v12134_v56  ;;  %v5369_v51 = vpop.f32.mrf.mxu1 }
 0x848   : > { %v8679_v54 = vpop.eup %8678  ;;  %8704 = vpow2.f32 %v11444_v9  ;;  %v5482_v62 = vpop.f32.mrf.mxu0  ;;  %v6061_v13 = vpack.c.bf16 %v6005_v1, %v6001_v57  ;;  %v6006_v11 = vmul.f32 %v11431_v16, %v5369_v51 }
 0x849   : > { %v8681_v31 = vpop.eup %8680  ;;  %v5769_v28 = vadd.f32 1.0, %v8679_v54  ;;  %8706 = vpow2.f32 %v11449_v14  ;;  %v6063_v47 = vpack.c.bf16 %v6007_v59, %v6003_v38  ;;  %v6008_v9 = vmul.f32 %v11438_v24, %v5482_v62  ;;  %v5373_v55 = vpop.f32.mrf.mxu1  ;;  %v12137_v24 = vld [vmem:[#allocation73_spill] sm:$0xff]  ;;  %v12138_v54 = vld [vmem:[#allocation74_spill] sm:$0xff] }
 0x84a   : > { %v8683_v39 = vpop.eup %8682  ;;  %v5771_v26 = vadd.f32 1.0, %v8681_v31  ;;  %8708 = vpow2.f32 %v11452_v43  ;;  %v5486_v46 = vpop.f32.mrf.mxu0  ;;  %v6062_v45 = vpack.c.bf16 %v6006_v11, %v6002_v6  ;;  %v5953_v59 = vmul.f32 %v11471_v21, %v12137_v24 }
 0x84b   : > { %v8685_v37 = vpop.eup %8684  ;;  %8710 = vrcp.f32 %v5769_v28  ;;  %v5770_v14 = vadd.f32 1.0, %v8683_v39  ;;  %v6064_v43 = vpack.c.bf16 %v6008_v9, %v6004_v25  ;;  %v5375_v38 = vpop.f32.mrf.mxu1  ;;  %v5955_v56 = vmul.f32 %v11482_v8, %v12138_v54 }
 0x84c   : > { %v8687_v57 = vpop.eup %8686  ;;  %8712 = vrcp.f32 %v5771_v26  ;;  %v5772_v52 = vadd.f32 1.0, %v8685_v37  ;;  %v5488_v16 = vpop.f32.mrf.mxu0  ;;  %v11549_v62 = vmul.f32 %v5945_v42, %v5373_v55  ;;  %v11551_v31 = vmul.f32 %v5947_v53, %v5486_v46  ;;  %6515 = vmatprep.mubr.bf16.mxu1 %v6062_v45  ;;  %v12140_v45 = vld [vmem:[#allocation76_spill] sm:$0xff] }
 0x84d   : > { %v8689_v1 = vpop.eup %8688  ;;  %8714 = vrcp.f32 %v5770_v14  ;;  %v5773_v44 = vadd.f32 1.0, %v8687_v57  ;;  %6628 = vmatprep.mubr.bf16.mxu0 %v6064_v43  ;;  %v5377_v6 = vpop.f32.mrf.mxu1  ;;  %6516 = vmatmul.mubr.bf16.gmra.mxu1 %v6061_v13  ;;  %v6010_v9 = vmul.f32 %v11514_v3, %v5375_v38  ;;  %v6012_v42 = vmul.f32 %v11521_v20, %v5488_v16  ;;  %v12139_v3 = vld [vmem:[#allocation75_spill] sm:$0xff] }
 0x84e   : > { %v8691_v51 = vpop.eup %8690  ;;  %8716 = vrcp.f32 %v5772_v52  ;;  %v5775_v27 = vadd.f32 1.0, %v8689_v1  ;;  %v5490_v25 = vpop.f32.mrf.mxu0  ;;  %v6013_v21 = vmul.f32 %v5949_v48, %v5377_v6  ;;  %6629 = vmatmul.mubr.bf16.gmra.mxu0 %v6063_v47  ;;  %v5954_v20 = vmul.f32 %v11485_v2, %v12139_v3 }
 0x84f   : > { %v8693_v28 = vpop.eup %8692  ;;  %8718 = vrcp.f32 %v5773_v44  ;;  %v5774_v39 = vadd.f32 1.0, %v8691_v51  ;;  %v6015_v26 = vmul.f32 %v5951_v15, %v5490_v25  ;;  %v5379_v53 = vpop.f32.mrf.mxu1  ;;  %v5956_v43 = vmul.f32 %v11490_v58, %v12140_v45 }
 0x850   : > { %v8695_v8 = vpop.eup %8694  ;;  %8720 = vrcp.f32 %v5775_v27  ;;  %v5776_v11 = vadd.f32 1.0, %v8693_v28  ;;  %v5492_v55 = vpop.f32.mrf.mxu0  ;;  %v6065_v61 = vpack.c.bf16 %v6013_v21, %v11549_v62  ;;  %v6014_v13 = vmul.f32 %v5950_v0, %v5379_v53  ;;  %v12142_v62 = vld [vmem:[#allocation78_spill] sm:$0xff]  ;;  %v12144_v53 = vld [vmem:[#allocation80_spill] sm:$0xff] }
 0x851   : > { %v8697_v46 = vpop.eup %8696  ;;  %8722 = vrcp.f32 %v5774_v39  ;;  %v5777_v37 = vadd.f32 1.0, %v8695_v8  ;;  %v6067_v33 = vpack.c.bf16 %v6015_v26, %v11551_v31  ;;  %v6016_v47 = vmul.f32 %v5952_v30, %v5492_v55  ;;  %v5383_v14 = vpop.f32.mrf.mxu1  ;;  %v12141_v30 = vld [vmem:[#allocation77_spill] sm:$0xff] }
 0x852   : > { %v8699_v48 = vpop.eup %8698  ;;  %8724 = vrcp.f32 %v5776_v11  ;;  %v5779_v15 = vadd.f32 1.0, %v8697_v46  ;;  %v5496_v57 = vpop.f32.mrf.mxu0  ;;  %v6066_v24 = vpack.c.bf16 %v6014_v13, %v6010_v9  ;;  %v5957_v27 = vmul.f32 %v11501_v23, %v12141_v30  ;;  %v12143_v9 = vld [vmem:[#allocation79_spill] sm:$0xff] }
 0x853   : > { %v8701_v52 = vpop.eup %8700  ;;  %8726 = vrcp.f32 %v5777_v37  ;;  %v5778_v38 = vadd.f32 1.0, %v8699_v48  ;;  %v6068_v54 = vpack.c.bf16 %v6016_v47, %v6012_v42  ;;  %v5385_v44 = vpop.f32.mrf.mxu1  ;;  %v5959_v31 = vmul.f32 %v11506_v4, %v12142_v62  ;;  %v12147_v62 = vld [vmem:[#allocation83_spill] sm:$0xff] }
 0x854   : > { %v8703_v16 = vpop.eup %8702  ;;  %8728 = vrcp.f32 %v5779_v15  ;;  %v5780_v1 = vadd.f32 1.0, %v8701_v52  ;;  %v5498_v51 = vpop.f32.mrf.mxu0  ;;  %v11565_v25 = vmul.f32 %v5953_v59, %v5383_v14  ;;  %v11567_v28 = vmul.f32 %v5955_v56, %v5496_v57  ;;  %6525 = vmatprep.mubr.bf16.mxu1 %v6066_v24 }
 0x855   : > { %v8705_v0 = vpop.eup %8704  ;;  %8730 = vrcp.f32 %v5778_v38  ;;  %v5781_v2 = vadd.f32 1.0, %v8703_v16  ;;  %6638 = vmatprep.mubr.bf16.mxu0 %v6068_v54  ;;  %v5387_v39 = vpop.f32.mrf.mxu1  ;;  %6526 = vmatmul.mubr.bf16.gmra.mxu1 %v6065_v61  ;;  %v5958_v42 = vmul.f32 %v11517_v7, %v12143_v9  ;;  %v5960_v59 = vmul.f32 %v11526_v18, %v12144_v53  ;;  %v12145_v38 = vld [vmem:[#allocation81_spill] sm:$0xff] }
 0x856   : > { %v8707_v6 = vpop.eup %8706  ;;  %8732 = vrcp.f32 %v5780_v1  ;;  %v5783_v58 = vadd.f32 1.0, %v8705_v0  ;;  %v5500_v21 = vpop.f32.mrf.mxu0  ;;  %v6021_v23 = vmul.f32 %v5957_v27, %v5387_v39  ;;  %6639 = vmatmul.mubr.bf16.gmra.mxu0 %v6067_v33  ;;  %v6018_v48 = vmul.f32 %v5954_v20, %v5385_v44  ;;  %v12149_v39 = vld [vmem:[#allocation84_spill] sm:$0xff] }
 0x857   : > { %v8709_v26 = vpop.eup %8708  ;;  %8734 = vrcp.f32 %v5781_v2  ;;  %v5782_v8 = vadd.f32 1.0, %v8707_v6  ;;  %v6023_v11 = vmul.f32 %v5959_v31, %v5500_v21  ;;  %v5389_v55 = vpop.f32.mrf.mxu1  ;;  %v6020_v33 = vmul.f32 %v5956_v43, %v5498_v51  ;;  %v12148_v2 = vld [vmem:[#allocation85_spill] sm:$0xff] }
 0x858   : > { %v8711_v4 = vpop.eup %8710  ;;  %8736 = vrcp.f32 %v5783_v58  ;;  %v5784_v56 = vadd.f32 1.0, %v8709_v26  ;;  %v5502_v46 = vpop.f32.mrf.mxu0  ;;  %v6069_v15 = vpack.c.bf16 %v6021_v23, %v11565_v25  ;;  %v6022_v47 = vmul.f32 %v5958_v42, %v5389_v55 }
 0x859   : > { %v8713_v37 = vpop.eup %8712  ;;  %8738 = vrcp.f32 %v5782_v8  ;;  %v6071_v13 = vpack.c.bf16 %v6023_v11, %v11567_v28  ;;  %v6024_v14 = vmul.f32 %v5960_v59, %v5502_v46  ;;  %v5393_v7 = vpop.f32.mrf.mxu1  ;;  %v11577_v18 = vmul.f32 -1.442695, %v11368_v50  ;;  %v12150_v8 = vld [vmem:[#allocation86_spill] sm:$0xff] }
 0x85a   : > { %v8715_v61 = vpop.eup %8714  ;;  %8740 = vrcp.f32 %v5784_v56  ;;  %v5506_v57 = vpop.f32.mrf.mxu0  ;;  %v11580_v3 = vmul.f32 -1.442695, %v11370_v19  ;;  %v11583_v20 = vmul.f32 -1.442695, %v11382_v41  ;;  %v5961_v16 = vmul.f32 %v8711_v4, %v12145_v38  ;;  %v12151_v11 = vld [vmem:[#allocation106_spill] sm:$0xff] }
 0x85b   : > { %v8717_v52 = vpop.eup %8716  ;;  %8742 = vpow2.f32 %v11455_v29  ;;  %v6070_v43 = vpack.c.bf16 %v6022_v47, %v6018_v48  ;;  %v6072_v1 = vpack.c.bf16 %v6024_v14, %v6020_v33  ;;  %v5395_v24 = vpop.f32.mrf.mxu1  ;;  %v12146_v29 = vld [vmem:[#allocation82_spill] sm:$0xff]  ;;  %v11591_v30 = vmul.f32 -1.442695, %v11384_v34  ;;  %v12153_v47 = vld [vmem:[#allocation104_spill] sm:$0xff] }
 0x85c   : > { %v8719_v45 = vpop.eup %8718  ;;  %8744 = vpow2.f32 %v11460_v17  ;;  %v5508_v54 = vpop.f32.mrf.mxu0  ;;  %v5963_v51 = vmul.f32 %v8713_v37, %v12146_v29  ;;  %v5962_v31 = vmul.f32 %v8715_v61, %v12147_v62  ;;  %v6025_v17 = vmul.f32 %v5961_v16, %v5393_v7  ;;  %v12152_v61 = vld [vmem:[#allocation87_spill] sm:$0xff]  ;;  %v12159_v62 = vld [vmem:[#allocation92_spill] sm:$0xff] }
 0x85d   : > { %v8721_v44 = vpop.eup %8720  ;;  %v5965_v0 = vmul.f32 %v8719_v45, %v11270_v49  ;;  %8746 = vpow2.f32 %v11463_v22  ;;  %6535 = vmatprep.mubr.bf16.mxu1 %v6070_v43  ;;  %6648 = vmatprep.mubr.bf16.mxu0 %v6072_v1  ;;  %v5397_v58 = vpop.f32.mrf.mxu1  ;;  %v5964_v49 = vmul.f32 %v8717_v52, %v12149_v39  ;;  %v7492_v14 = vmul.f32 -1.442695, %v12153_v47  ;;  %v12155_v45 = vld [vmem:[#allocation105_spill] sm:$0xff] }
 0x85e   : > { %v8723_v27 = vpop.eup %8722  ;;  %v5967_v6 = vmul.f32 %v8721_v44, %v12148_v2  ;;  %8748 = vpow2.f32 %v11474_v5  ;;  %v5510_v25 = vpop.f32.mrf.mxu0  ;;  %6536 = vmatmul.mubr.bf16.gmra.mxu1 %v6069_v15  ;;  %6649 = vmatmul.mubr.bf16.gmra.mxu0 %v6071_v13  ;;  %v6027_v5 = vmul.f32 %v5963_v51, %v5506_v57  ;;  %v6026_v59 = vmul.f32 %v5962_v31, %v5395_v24  ;;  %v12154_v57 = vld [vmem:[#allocation88_spill] sm:$0xff]  ;;  %v12156_v24 = vld [vmem:[#allocation89_spill] sm:$0xff]  ;;  %v12157_v44 = vld [vmem:[#allocation91_spill] sm:$0xff] }
 0x85f   : > { %v8725_v28 = vpop.eup %8724  ;;  %v5966_v22 = vmul.f32 %v8723_v27, %v11280_v60  ;;  %8750 = vpow2.f32 %v11477_v35  ;;  %v6029_v21 = vmul.f32 %v5965_v0, %v5397_v58  ;;  %v5399_v9 = vpop.f32.mrf.mxu1  ;;  %v6028_v35 = vmul.f32 %v5964_v49, %v5508_v54  ;;  %v12158_v0 = vld [vmem:[#allocation90_spill] sm:$0xff]  ;;  %v12160_v58 = vld [vmem:[#allocation93_spill] sm:$0xff] }
 0x860   : > { %v8727_v26 = vpop.eup %8726  ;;  %v5968_v23 = vmul.f32 %v8725_v28, %v12150_v8  ;;  %8752 = vpow2.f32 %v12151_v11  ;;  %v6031_v4 = vmul.f32 %v5967_v6, %v5510_v25  ;;  %v5512_v42 = vpop.f32.mrf.mxu0  ;;  %v12161_v49 = vld [vmem:[#allocation94_spill] sm:$0xff] }
 0x861   : > { %v8729_v53 = vpop.eup %8728  ;;  %8754 = vpow2.f32 %v11493_v10  ;;  %v6073_v56 = vpack.c.bf16 %v6029_v21, %v6025_v17  ;;  %v6030_v60 = vmul.f32 %v5966_v22, %v5399_v9  ;;  %v5403_v48 = vpop.f32.mrf.mxu1  ;;  %v5969_v33 = vmul.f32 %v8727_v26, %v12152_v61 }
 0x862   : > { %v8731_v55 = vpop.eup %8730  ;;  %8756 = vpow2.f32 %v11496_v36  ;;  %v6075_v46 = vpack.c.bf16 %v6031_v4, %v6027_v5  ;;  %v6032_v37 = vmul.f32 %v5968_v23, %v5512_v42  ;;  %v5516_v15 = vpop.f32.mrf.mxu0  ;;  %v5971_v52 = vmul.f32 %v8729_v53, %v12154_v57 }
 0x863   : > { %v8733_v13 = vpop.eup %8732  ;;  %8758 = vpow2.f32 %v11499_v40  ;;  %v6074_v7 = vpack.c.bf16 %v6030_v60, %v6026_v59  ;;  %v7494_v36 = vmul.f32 -1.442695, %v12155_v45  ;;  %v5405_v16 = vpop.f32.mrf.mxu1  ;;  %v5970_v54 = vmul.f32 %v8731_v55, %v12156_v24 }
 0x864   : > { %v8735_v10 = vpop.eup %8734  ;;  %8760 = vpow2.f32 %v11504_v12  ;;  %v6076_v38 = vpack.c.bf16 %v6032_v37, %v6028_v35  ;;  %v5518_v43 = vpop.f32.mrf.mxu0  ;;  %v6033_v40 = vmul.f32 %v5969_v33, %v5403_v48  ;;  %v5972_v27 = vmul.f32 %v8733_v13, %v12158_v0 }
 0x865   : > { %v8737_v1 = vpop.eup %8736  ;;  %v5973_v29 = vmul.f32 %v8735_v10, %v12157_v44  ;;  %8762 = vpow2.f32 %v11577_v18  ;;  %6545 = vmatprep.mubr.bf16.mxu1 %v6074_v7  ;;  %v6035_v12 = vmul.f32 %v5971_v52, %v5516_v15  ;;  %v5407_v2 = vpop.f32.mrf.mxu1  ;;  %v6034_v28 = vmul.f32 %v5970_v54, %v5405_v16 }
 0x866   : > { %v8739_v51 = vpop.eup %8738  ;;  %v5975_v31 = vmul.f32 %v8737_v1, %v12159_v62  ;;  %8764 = vpow2.f32 %v11580_v3  ;;  %6658 = vmatprep.mubr.bf16.mxu0 %v6076_v38  ;;  %v5520_v6 = vpop.f32.mrf.mxu0  ;;  %6546 = vmatmul.mubr.bf16.gmra.mxu1 %v6073_v56  ;;  %v6036_v21 = vmul.f32 %v5972_v27, %v5518_v43 }
 0x867   : > { %v8741_v17 = vpop.eup %8740  ;;  %v5974_v25 = vmul.f32 %v8739_v51, %v12160_v58  ;;  %8766 = vpow2.f32 %v11583_v20  ;;  %v6037_v18 = vmul.f32 %v5973_v29, %v5407_v2  ;;  %6659 = vmatmul.mubr.bf16.gmra.mxu0 %v6075_v46  ;;  %v5409_v26 = vpop.f32.mrf.mxu1 }
 0x868   : > { %v8743_v39 = vpop.eup %8742  ;;  %v5976_v22 = vmul.f32 %v8741_v17, %v12161_v49  ;;  %8768 = vpow2.f32 %v11591_v30  ;;  %v6039_v3 = vmul.f32 %v5975_v31, %v5520_v6  ;;  %v5522_v8 = vpop.f32.mrf.mxu0 }
 0x869   : > { %v8745_v23 = vpop.eup %8744  ;;  %v5785_v11 = vadd.f32 1.0, %v8743_v39  ;;  %8770 = vpow2.f32 %v7492_v14  ;;  %v6077_v5 = vpack.c.bf16 %v6037_v18, %v6033_v40  ;;  %v6038_v4 = vmul.f32 %v5974_v25, %v5409_v26  ;;  %v11619_v59 = vpop.f32.mrf.mxu1  ;;  %v12162_v26 = vld [vmem:[#allocation99_spill] sm:$0xff] }
 0x86a   : > { %v8747_v9 = vpop.eup %8746  ;;  %v5787_v20 = vadd.f32 1.0, %v8745_v23  ;;  %8772 = vpow2.f32 %v7494_v36  ;;  %v6079_v42 = vpack.c.bf16 %v6039_v3, %v6035_v12  ;;  %v6040_v53 = vmul.f32 %v5976_v22, %v5522_v8  ;;  %v11621_v55 = vpop.f32.mrf.mxu0 }
 0x86b   : > { %v8749_v56 = vpop.eup %8748  ;;  %8774 = vrcp.f32 %v5785_v11  ;;  %v5786_v60 = vadd.f32 1.0, %v8747_v9  ;;  %v6078_v30 = vpack.c.bf16 %v6038_v4, %v6034_v28  ;;  %v11623_v33 = vpop.f32.mrf.mxu1  ;;  %v12164_v9 = vld [vmem:[#allocation100_spill] sm:$0xff] }
 0x86c   : > { %v8751_v35 = vpop.eup %8750  ;;  %8776 = vrcp.f32 %v5787_v20  ;;  %v5788_v46 = vadd.f32 1.0, %v8749_v56  ;;  %v6080_v37 = vpack.c.bf16 %v6040_v53, %v6036_v21  ;;  %v11625_v10 = vpop.f32.mrf.mxu0 }
 0x86d   : > { %v8753_v48 = vpop.eup %8752  ;;  %8778 = vrcp.f32 %v5786_v60  ;;  %v5789_v15 = vadd.f32 1.0, %v8751_v35  ;;  %6555 = vmatprep.mubr.bf16.mxu1 %v6078_v30  ;;  %v5417_v1 = vpop.f32.mrf.mxu1  ;;  %v12165_v60 = vld [vmem:[#allocation95_spill] sm:$0xff]  ;;  %v12166_v35 = vld [vmem:[#allocation98_spill] sm:$0xff] }
 0x86e   : > { %v8755_v13 = vpop.eup %8754  ;;  %8780 = vrcp.f32 %v5788_v46  ;;  %v5791_v61 = vadd.f32 1.0, %v8753_v48  ;;  %6668 = vmatprep.mubr.bf16.mxu0 %v6080_v37  ;;  %6556 = vmatmul.mubr.bf16.gmra.mxu1 %v6077_v5  ;;  %v5530_v44 = vpop.f32.mrf.mxu0  ;;  %v12163_v5 = vld [vmem:[#allocation97_spill] sm:$0xff]  ;;  %v12167_v37 = vld [vmem:[#allocation102_spill] sm:$0xff] }
 0x86f   : > { %v8757_v14 = vpop.eup %8756  ;;  %8782 = vrcp.f32 %v5789_v15  ;;  %v5790_v7 = vadd.f32 1.0, %v8755_v13  ;;  %6669 = vmatmul.mubr.bf16.gmra.mxu0 %v6079_v42  ;;  %v5419_v31 = vpop.f32.mrf.mxu1 }
 0x870   : > { %v8759_v57 = vpop.eup %8758  ;;  %8784 = vrcp.f32 %v5791_v61  ;;  %v5792_v52 = vadd.f32 1.0, %v8757_v14  ;;  %v5532_v6 = vpop.f32.mrf.mxu0  ;;  %v12168_v61 = vld [vmem:[#allocation96_spill] sm:$0xff] }
 0x871   : > { %v8761_v36 = vpop.eup %8760  ;;  %8786 = vrcp.f32 %v5790_v7  ;;  %v5793_v38 = vadd.f32 1.0, %v8759_v57  ;;  %v5423_v18 = vpop.f32.mrf.mxu1 }
 0x872   : > { %v8763_v16 = vpop.eup %8762  ;;  %8788 = vrcp.f32 %v5792_v52  ;;  %v5795_v43 = vadd.f32 1.0, %v8761_v36  ;;  %v5536_v49 = vpop.f32.mrf.mxu0 }
 0x873   : > { %v8765_v24 = vpop.eup %8764  ;;  %8790 = vrcp.f32 %v5793_v38  ;;  %v5794_v54 = vadd.f32 1.0, %v8763_v16  ;;  %v5425_v23 = vpop.f32.mrf.mxu1 }
 0x874   : > { %v8767_v29 = vpop.eup %8766  ;;  %8792 = vrcp.f32 %v5795_v43  ;;  %v5796_v40 = vadd.f32 1.0, %v8765_v24  ;;  %v5538_v53 = vpop.f32.mrf.mxu0 }
 0x875   : > { %v8769_v51 = vpop.eup %8768  ;;  %8794 = vrcp.f32 %v5794_v54  ;;  %v5797_v0 = vadd.f32 1.0, %v8767_v29  ;;  %v5427_v43 = vpop.f32.mrf.mxu1 }
 0x876   : > { %v8771_v27 = vpop.eup %8770  ;;  %8796 = vrcp.f32 %v5796_v40  ;;  %v5799_v62 = vadd.f32 1.0, %v8769_v51  ;;  %v5540_v40 = vpop.f32.mrf.mxu0 }
 0x877   : > { %v8773_v12 = vpop.eup %8772  ;;  %8798 = vrcp.f32 %v5797_v0  ;;  %v5798_v2 = vadd.f32 1.0, %v8771_v27 }
 0x878   : > { %v8775_v17 = vpop.eup %8774  ;;  %8800 = vrcp.f32 %v5799_v62  ;;  %v5800_v58 = vadd.f32 1.0, %v8773_v12 }
 0x879   : > { %v8777_v25 = vpop.eup %8776  ;;  %8802 = vrcp.f32 %v5798_v2  ;;  %v5977_v30 = vmul.f32 %v8775_v17, %v12165_v60  ;;  %v5542_v2 = vpop.f32.mrf.mxu0 }
 0x87a   : > { %v8779_v28 = vpop.eup %8778  ;;  %8804 = vrcp.f32 %v5800_v58  ;;  %v5979_v14 = vmul.f32 %v8777_v25, %v12168_v61 }
 0x87b   : > { %v8781_v39 = vpop.eup %8780  ;;  %v5978_v4 = vmul.f32 %v8779_v28, %v12163_v5  ;;  %v6041_v38 = vmul.f32 %v5977_v30, %v11619_v59  ;;  %v5429_v59 = vpop.f32.mrf.mxu1 }
 0x87c   : > { %v8783_v22 = vpop.eup %8782  ;;  %v5980_v46 = vmul.f32 %v8781_v39, %v12166_v35  ;;  %v6043_v54 = vmul.f32 %v5979_v14, %v11621_v55 }
 0x87d   : > { %v8785_v21 = vpop.eup %8784  ;;  %v5981_v8 = vmul.f32 %v8783_v22, %v12162_v26  ;;  %v6042_v7 = vmul.f32 %v5978_v4, %v11623_v33 }
 0x87e   : > { %v8787_v3 = vpop.eup %8786  ;;  %v5983_v20 = vmul.f32 %v8785_v21, %v12164_v9 }
 0x87f   : > { %v8789_v11 = vpop.eup %8788  ;;  %v5982_v42 = vmul.f32 %v8787_v3, %v12127_v32  ;;  %v6045_v15 = vmul.f32 %v5981_v8, %v5417_v1  ;;  %v6044_v32 = vmul.f32 %v5980_v46, %v11625_v10 }
 0x880   : > { %v8791_v56 = vpop.eup %8790  ;;  %v5984_v48 = vmul.f32 %v8789_v11, %v12167_v37  ;;  %v6047_v57 = vmul.f32 %v5983_v20, %v5530_v44 }
 0x881   : > { %v8793_v13 = vpop.eup %8792  ;;  %v6046_v52 = vmul.f32 %v5982_v42, %v5419_v31  ;;  %v6081_v51 = vpack.c.bf16 %v6045_v15, %v6041_v38 }
 0x882   : > { %v8795_v36 = vpop.eup %8794  ;;  %v6048_v16 = vmul.f32 %v5984_v48, %v5532_v6  ;;  %v6083_v62 = vpack.c.bf16 %v6047_v57, %v6043_v54  ;;  %v12169_v6 = vld [vmem:[#allocation103_spill] sm:$0xff] }
 0x883   : > { %v8797_v24 = vpop.eup %8796  ;;  %v6082_v29 = vpack.c.bf16 %v6046_v52, %v6042_v7  ;;  %v5986_v31 = vmul.f32 %v8795_v36, %v11368_v50  ;;  %v5985_v17 = vmul.f32 %v8791_v56, %v12169_v6 }
 0x884   : > { %v8799_v1 = vpop.eup %8798  ;;  %v6084_v0 = vpack.c.bf16 %v6048_v16, %v6044_v32  ;;  %v5988_v58 = vmul.f32 %v8797_v24, %v11370_v19 }
 0x885   : > { %v8801_v27 = vpop.eup %8800  ;;  %6565 = vmatprep.mubr.bf16.mxu1 %v6082_v29  ;;  %v5989_v44 = vmul.f32 %v8799_v1, %v11382_v41  ;;  %v5987_v41 = vmul.f32 %v8793_v13, %v11356_v63  ;;  %v6050_v39 = vmul.f32 %v5986_v31, %v5425_v23  ;;  %v6049_v21 = vmul.f32 %v5985_v17, %v5423_v18 }
 0x886   : > { %v8803_v33 = vpop.eup %8802  ;;  %6678 = vmatprep.mubr.bf16.mxu0 %v6084_v0  ;;  %6566 = vmatmul.mubr.bf16.gmra.mxu1 %v6081_v51  ;;  %v5991_v12 = vmul.f32 %v8801_v27, %v11384_v34  ;;  %v6052_v34 = vmul.f32 %v5988_v58, %v5538_v53 }
 0x887   : > { %v8805_v10 = vpop.eup %8804  ;;  %v5990_v55 = vmul.f32 %v8803_v33, %v12153_v47  ;;  %6679 = vmatmul.mubr.bf16.gmra.mxu0 %v6083_v62  ;;  %v6053_v28 = vmul.f32 %v5989_v44, %v5427_v43  ;;  %v6051_v3 = vmul.f32 %v5987_v41, %v5536_v49 }
 0x888   : > { %v5992_v25 = vmul.f32 %v8805_v10, %v12155_v45  ;;  %v6055_v22 = vmul.f32 %v5991_v12, %v5540_v40 }
 0x889   : > { %v6054_v50 = vmul.f32 %v5990_v55, %v5429_v59  ;;  %v6085_v8 = vpack.c.bf16 %v6053_v28, %v6049_v21 }
 0x88a   : > { %v6056_v47 = vmul.f32 %v5992_v25, %v5542_v2  ;;  %v6087_v19 = vpack.c.bf16 %v6055_v22, %v6051_v3 }
 0x88b   : > { %v6086_v26 = vpack.c.bf16 %v6054_v50, %v6050_v39 }
 0x88c   : > { %v6088_v11 = vpack.c.bf16 %v6056_v47, %v6052_v34 }
 0x88d   : > { %6575 = vmatprep.mubr.bf16.mxu1 %v6086_v26 }
 0x88e   : > { %6688 = vmatprep.mubr.bf16.mxu0 %v6088_v11  ;;  %6576 = vmatmul.mubr.bf16.gmra.mxu1 %v6085_v8 }
 0x88f   : > { %6689 = vmatmul.mubr.bf16.gmra.mxu0 %v6087_v19 }
 0x890   : > { %9105 = shalt.err (!%p9102_p1)
}
 0x891   : > { %s9106_s19 = scalar_lea.hbm %s11654_s17, 4096  ;;  %s9110_s14 = scalar_lea.hbm %s12170_s26, 8192 }
 0x892   : > { %p9107_p0 = scmp.ne.s32.totalorder %s11654_s17, %s9106_s19  ;;  %p9111_p3 = scmp.lt.s32.totalorder %s11654_s17, %s12170_s26 }
 0x893   : > { %p9112_p4 = scmp.lt.s32.totalorder %s9110_s14, %s9106_s19 }
 0x894   : > { %p9108_p12 = pnand %p9107_p0, %p12171_p9 }
 0x895   : > { %p9113_p8 = por %p9112_p4, %p9111_p3 }
 0x896   : > { %p9109_p6 = pneg %p9108_p12 }
 0x898   : > { %p9114_p11 = pnand %p9113_p8, %p9109_p6 }
 0x89a   : > { %9117 = shalt.err (!%p9114_p11)
}
 0x89b   : > { %s9253_s15 = smov 256   ;;  %s9254_s0 = smov 16  }
 0x89c   : > { %7875 = dma.vmem_to_hbm [thread:$0]  (%p12171_p9), %s11657_s1, 4096, %s11654_s17, %s6769_s30, %s9253_s15, %s9253_s15, %s9254_s0  }
 0x89d   : > { %s12172_s18 = sld [smem:[#allocation115_spill]]  ;;  %s6822_s25 = sshll.u32 %s10262_s23, 4  ;;  %s6823_s25 = int_to_ptr.vmem [resolvable:$true] %s6822_s25 }
 0x89e   : > { %s9118_s10 = scalar_lea.vmem %s6823_s25, 4096  ;;  %s9255_s6 = smov [#allocation19]  }
 0x89f   : > { %p9119_p7 = scmp.ne.s32.totalorder %s6823_s25, %s9118_s10  ;;  %s9122_s19 = sshll.u32 %s9255_s6, 4  ;;  %s9123_s19 = int_to_ptr.vmem [resolvable:$false] %s9122_s19 }
 0x8a0   : > { %s9124_s8 = scalar_lea.vmem %s9123_s19, 8192  ;;  %p9125_p5 = scmp.lt.s32.totalorder %s6823_s25, %s9123_s19 }
 0x8a1   : > { %p9120_p2 = pnand %p9119_p7, %p12171_p9  ;;  %p9126_p10 = scmp.lt.s32.totalorder %s9124_s8, %s9118_s10 }
 0x8a3   : > { %s11689_s29 = scalar_lea.hbm %s12172_s18, %s11648_s16  ;;  %p9121_p13 = pneg %p9120_p2 }
 0x8a4   : > { %p9127_p1 = por %p9126_p10, %p9125_p5 }
 0x8a6   : > { %p9128_p0 = pnand %p9127_p1, %p9121_p13 }
 0x8a8   : > { %9131 = shalt.err (!%p9128_p0)
}
 0x8a9   : > { %s9132_s23 = scalar_lea.hbm %s11689_s29, 4096  ;;  %s9136_s13 = scalar_lea.hbm %s12172_s18, 8192 }
 0x8aa   : > { %p9133_p12 = scmp.ne.s32.totalorder %s11689_s29, %s9132_s23  ;;  %p9137_p4 = scmp.lt.s32.totalorder %s11689_s29, %s12172_s18 }
 0x8ab   : > { %p9138_p8 = scmp.lt.s32.totalorder %s9136_s13, %s9132_s23 }
 0x8ac   : > { %p9134_p6 = pnand %p9133_p12, %p12171_p9 }
 0x8ad   : > { %p9139_p11 = por %p9138_p8, %p9137_p4 }
 0x8ae   : > { %p9135_p3 = pneg %p9134_p6 }
 0x8b0   : > { %p9140_p7 = pnand %p9139_p11, %p9135_p3 }
 0x8b2   : > { %9143 = shalt.err (!%p9140_p7)
}
 0x8b3   : > { %7876 = dma.vmem_to_hbm [thread:$0]  (%p12171_p9), %s6823_s25, 4096, %s11689_s29, %s6769_s30, %s9253_s15, %s9253_s15, %s9254_s0   ;;  %v12173_v5 = vld [vmem:[#allocation35_spill] sm:$0xff]  ;;  %v12174_v53 = vld [vmem:[#allocation34_spill] sm:$0xff]  ;;  %v12177_v36 = vld [vmem:[#allocation41_spill] sm:$0xff] }
 0x8b4   : > { %s11715_s12 = scalar_lea.vmem [#allocation16], %s9591_s28  ;;  %v12175_v46 = vld [vmem:[#allocation38_spill] sm:$0xff]  ;;  %v12176_v61 = vld [vmem:[#allocation39_spill] sm:$0xff]  ;;  %v12179_v51 = vld [vmem:[#allocation36_spill] sm:$0xff]  ;;  %s12205_s9 = sld [smem:[#allocation113_spill]] }
 0x8b5   : > { %v12178_v24 = vld [vmem:[#allocation42_spill] sm:$0xff]  ;;  %v12180_v44 = vld [vmem:[#allocation47_spill] sm:$0xff]  ;;  %v12182_v25 = vld [vmem:[#allocation52_spill] sm:$0xff]  ;;  %s6788_s28 = sshll.u32 %s11715_s12, 4  ;;  %s6764_s29 = scalar_lea.sflag [#allocation4], %s9588_s21  ;;  %s11786_s28 = int_to_ptr.vmem [resolvable:$true] %s6788_s28 }
 0x8b6   : > { %v12181_v55 = vld [vmem:[#allocation43_spill] sm:$0xff]  ;;  %v12183_v50 = vld [vmem:[#allocation48_spill] sm:$0xff]  ;;  %v12184_v26 = vld [vmem:[#allocation37_spill] sm:$0xff]  ;;  %s9144_s25 = scalar_lea.vmem %s11786_s28, 4096  ;;  %s9256_s10 = smov [#allocation16]  }
 0x8b7   : > { %p9145_p2 = scmp.ne.s32.totalorder %s11786_s28, %s9144_s25  ;;  %s9148_s6 = sshll.u32 %s9256_s10, 4  ;;  %s9149_s6 = int_to_ptr.vmem [resolvable:$false] %s9148_s6 }
 0x8b8   : > { %s9150_s19 = scalar_lea.vmem %s9149_s6, 8192  ;;  %p9151_p10 = scmp.lt.s32.totalorder %s11786_s28, %s9149_s6 }
 0x8b9   : > { %p9146_p13 = pnand %p9145_p2, %p12171_p9  ;;  %p9152_p1 = scmp.lt.s32.totalorder %s9150_s19, %s9144_s25 }
 0x8ba   : > { %s11784_s20 = scalar_lea.hbm %s12205_s9, %s11648_s16 }
 0x8bb   : > { %p9147_p5 = pneg %p9146_p13  ;;  %p9153_p0 = por %p9152_p1, %p9151_p10 }
 0x8bd   : > { %p9154_p12 = pnand %p9153_p0, %p9147_p5 }
 0x905   : > { %v6507_v63 = vpop.f32.mrf.mxu1 }
 0x906   : > { %v6620_v45 = vpop.f32.mrf.mxu0 }
 0x907   : > { %v6621_v18 = vadd.f32 %v6620_v45, %v6507_v63  ;;  %v6509_v49 = vpop.f32.mrf.mxu1  ;;  %v12185_v45 = vld [vmem:[#allocation40_spill] sm:$0xff] }
 0x908   : > { %v6622_v23 = vpop.f32.mrf.mxu0 }
 0x909   : > { %v6699_v4 = vadd.f32 %v6621_v18, %v12173_v5  ;;  %v6623_v9 = vadd.f32 %v6622_v23, %v6509_v49  ;;  %v6511_v20 = vpop.f32.mrf.mxu1 }
 0x90a   : > { %v6624_v42 = vpop.f32.mrf.mxu0 }
 0x90b   : > { %6731 = vst [vmem:[%s11715_s12] sm:$0xff] %v6699_v4  ;;  %v6700_v56 = vadd.f32 %v6623_v9, %v12174_v53  ;;  %v6625_v60 = vadd.f32 %v6624_v42, %v6511_v20  ;;  %v6513_v30 = vpop.f32.mrf.mxu1  ;;  %v12186_v4 = vld [vmem:[#allocation57_spill] sm:$0xff] }
 0x90c   : > { %v6626_v35 = vpop.f32.mrf.mxu0 }
 0x90d   : > { %6732 = vst [vmem:[%s11715_s12 + $0x8] sm:$0xff] %v6700_v56  ;;  %v6701_v37 = vadd.f32 %v6625_v60, %v12175_v46  ;;  %v6627_v48 = vadd.f32 %v6626_v35, %v6513_v30  ;;  %v6517_v15 = vpop.f32.mrf.mxu1  ;;  %v12187_v56 = vld [vmem:[#allocation53_spill] sm:$0xff] }
 0x90e   : > { %v6630_v13 = vpop.f32.mrf.mxu0 }
 0x90f   : > { %6733 = vst [vmem:[%s11715_s12 + $0x10] sm:$0xff] %v6701_v37  ;;  %v6702_v14 = vadd.f32 %v6627_v48, %v12176_v61  ;;  %v6631_v7 = vadd.f32 %v6630_v13, %v6517_v15  ;;  %v6519_v57 = vpop.f32.mrf.mxu1  ;;  %v12188_v37 = vld [vmem:[#allocation45_spill] sm:$0xff] }
 0x910   : > { %v6632_v52 = vpop.f32.mrf.mxu0 }
 0x911   : > { %6734 = vst [vmem:[%s11715_s12 + $0x18] sm:$0xff] %v6702_v14  ;;  %v6703_v38 = vadd.f32 %v6631_v7, %v12177_v36  ;;  %v6633_v32 = vadd.f32 %v6632_v52, %v6519_v57  ;;  %v6521_v16 = vpop.f32.mrf.mxu1  ;;  %v12189_v14 = vld [vmem:[#allocation46_spill] sm:$0xff] }
 0x912   : > { %v6634_v43 = vpop.f32.mrf.mxu0 }
 0x913   : > { %6735 = vst [vmem:[%s11715_s12 + $0x20] sm:$0xff] %v6703_v38  ;;  %v6704_v54 = vadd.f32 %v6633_v32, %v12178_v24  ;;  %v6635_v29 = vadd.f32 %v6634_v43, %v6521_v16  ;;  %v6523_v40 = vpop.f32.mrf.mxu1  ;;  %v12190_v38 = vld [vmem:[#allocation50_spill] sm:$0xff] }
 0x914   : > { %v6636_v1 = vpop.f32.mrf.mxu0 }
 0x915   : > { %6736 = vst [vmem:[%s11715_s12 + $0x28] sm:$0xff] %v6704_v54  ;;  %v6705_v0 = vadd.f32 %v6635_v29, %v12179_v51  ;;  %v6637_v27 = vadd.f32 %v6636_v1, %v6523_v40  ;;  %v6527_v62 = vpop.f32.mrf.mxu1  ;;  %v12191_v54 = vld [vmem:[#allocation51_spill] sm:$0xff] }
 0x916   : > { %v6640_v33 = vpop.f32.mrf.mxu0 }
 0x917   : > { %6737 = vst [vmem:[%s11715_s12 + $0x30] sm:$0xff] %v6705_v0  ;;  %v6706_v59 = vadd.f32 %v6637_v27, %v12180_v44  ;;  %v6641_v10 = vadd.f32 %v6640_v33, %v6527_v62  ;;  %v6529_v31 = vpop.f32.mrf.mxu1  ;;  %v12192_v0 = vld [vmem:[#allocation44_spill] sm:$0xff] }
 0x918   : > { %v6642_v12 = vpop.f32.mrf.mxu0 }
 0x919   : > { %6738 = vst [vmem:[%s11715_s12 + $0x38] sm:$0xff] %v6706_v59  ;;  %v6707_v2 = vadd.f32 %v6641_v10, %v12181_v55  ;;  %v6643_v6 = vadd.f32 %v6642_v12, %v6529_v31  ;;  %v6531_v17 = vpop.f32.mrf.mxu1  ;;  %v12193_v59 = vld [vmem:[#allocation55_spill] sm:$0xff] }
 0x91a   : > { %v6644_v58 = vpop.f32.mrf.mxu0 }
 0x91b   : > { %6739 = vst [vmem:[%s11715_s12 + $0x40] sm:$0xff] %v6707_v2  ;;  %v6708_v28 = vadd.f32 %v6643_v6, %v12182_v25  ;;  %v6645_v41 = vadd.f32 %v6644_v58, %v6531_v17  ;;  %v6533_v39 = vpop.f32.mrf.mxu1  ;;  %v12194_v2 = vld [vmem:[#allocation56_spill] sm:$0xff] }
 0x91c   : > { %v6646_v22 = vpop.f32.mrf.mxu0 }
 0x91d   : > { %6740 = vst [vmem:[%s11715_s12 + $0x48] sm:$0xff] %v6708_v28  ;;  %v6709_v21 = vadd.f32 %v6645_v41, %v12183_v50  ;;  %v6647_v34 = vadd.f32 %v6646_v22, %v6533_v39  ;;  %v12195_v28 = vld [vmem:[#allocation49_spill] sm:$0xff]  ;;  %v12196_v22 = vld [vmem:[#allocation54_spill] sm:$0xff] }
 0x91e   : > { %v6537_v47 = vpop.f32.mrf.mxu1  ;;  %v6650_v3 = vpop.f32.mrf.mxu0 }
 0x91f   : > { %6741 = vst [vmem:[%s11715_s12 + $0x50] sm:$0xff] %v6709_v21  ;;  %v6710_v8 = vadd.f32 %v6647_v34, %v12184_v26  ;;  %v6651_v11 = vadd.f32 %v6650_v3, %v6537_v47 }
 0x920   : > { %v6539_v19 = vpop.f32.mrf.mxu1  ;;  %v6652_v63 = vpop.f32.mrf.mxu0 }
 0x921   : > { %6742 = vst [vmem:[%s11715_s12 + $0x58] sm:$0xff] %v6710_v8  ;;  %v6711_v18 = vadd.f32 %v6651_v11, %v12185_v45  ;;  %v6653_v49 = vadd.f32 %v6652_v63, %v6539_v19  ;;  %v12197_v8 = vld [vmem:[#allocation58_spill] sm:$0xff] }
 0x922   : > { %v6541_v23 = vpop.f32.mrf.mxu1  ;;  %v6654_v5 = vpop.f32.mrf.mxu0 }
 0x923   : > { %6743 = vst [vmem:[%s11715_s12 + $0x60] sm:$0xff] %v6711_v18  ;;  %v6712_v9 = vadd.f32 %v6653_v49, %v12186_v4  ;;  %v6655_v20 = vadd.f32 %v6654_v5, %v6541_v23  ;;  %v12198_v18 = vld [vmem:[#allocation59_spill] sm:$0xff] }
 0x924   : > { %v6543_v42 = vpop.f32.mrf.mxu1  ;;  %v6656_v53 = vpop.f32.mrf.mxu0 }
 0x925   : > { %6744 = vst [vmem:[%s11715_s12 + $0x68] sm:$0xff] %v6712_v9  ;;  %v6713_v60 = vadd.f32 %v6655_v20, %v12187_v56  ;;  %v6657_v30 = vadd.f32 %v6656_v53, %v6543_v42  ;;  %v12199_v9 = vld [vmem:[#allocation60_spill] sm:$0xff] }
 0x926   : > { %v6547_v35 = vpop.f32.mrf.mxu1 }
 0x927   : > { %v6660_v46 = vpop.f32.mrf.mxu0  ;;  %6745 = vst [vmem:[%s11715_s12 + $0x70] sm:$0xff] %v6713_v60  ;;  %v6714_v48 = vadd.f32 %v6657_v30, %v12188_v37  ;;  %v12200_v60 = vld [vmem:[#allocation61_spill] sm:$0xff] }
 0x928   : > { %v6661_v15 = vadd.f32 %v6660_v46, %v6547_v35  ;;  %v6549_v13 = vpop.f32.mrf.mxu1 }
 0x929   : > { %v6662_v61 = vpop.f32.mrf.mxu0  ;;  %6746 = vst [vmem:[%s11715_s12 + $0x78] sm:$0xff] %v6714_v48  ;;  %v12201_v48 = vld [vmem:[#allocation62_spill] sm:$0xff] }
 0x92a   : > { %v6715_v7 = vadd.f32 %v6661_v15, %v12189_v14  ;;  %v6663_v57 = vadd.f32 %v6662_v61, %v6549_v13  ;;  %v6551_v52 = vpop.f32.mrf.mxu1 }
 0x92b   : > { %v6664_v36 = vpop.f32.mrf.mxu0 }
 0x92c   : > { %6747 = vst [vmem:[%s11715_s12 + $0x80] sm:$0xff] %v6715_v7  ;;  %v6716_v32 = vadd.f32 %v6663_v57, %v12190_v38  ;;  %v6665_v16 = vadd.f32 %v6664_v36, %v6551_v52  ;;  %v6553_v43 = vpop.f32.mrf.mxu1  ;;  %v12202_v7 = vld [vmem:[#allocation63_spill] sm:$0xff] }
 0x92d   : > { %v6666_v24 = vpop.f32.mrf.mxu0 }
 0x92e   : > { %6748 = vst [vmem:[%s11715_s12 + $0x88] sm:$0xff] %v6716_v32  ;;  %v6717_v29 = vadd.f32 %v6665_v16, %v12191_v54  ;;  %v6667_v40 = vadd.f32 %v6666_v24, %v6553_v43  ;;  %v6557_v1 = vpop.f32.mrf.mxu1  ;;  %v12203_v32 = vld [vmem:[#allocation64_spill] sm:$0xff]  ;;  %v12204_v24 = vld [vmem:[#allocation65_spill] sm:$0xff] }
 0x92f   : > { %v6670_v51 = vpop.f32.mrf.mxu0 }
 0x930   : > { %6749 = vst [vmem:[%s11715_s12 + $0x90] sm:$0xff] %v6717_v29  ;;  %v6718_v27 = vadd.f32 %v6667_v40, %v12192_v0  ;;  %v6671_v62 = vadd.f32 %v6670_v51, %v6557_v1  ;;  %v6559_v33 = vpop.f32.mrf.mxu1 }
 0x931   : > { %v6672_v44 = vpop.f32.mrf.mxu0 }
 0x932   : > { %6750 = vst [vmem:[%s11715_s12 + $0x98] sm:$0xff] %v6718_v27  ;;  %v6719_v10 = vadd.f32 %v6671_v62, %v12193_v59  ;;  %v6673_v31 = vadd.f32 %v6672_v44, %v6559_v33  ;;  %v6561_v12 = vpop.f32.mrf.mxu1 }
 0x933   : > { %v6674_v55 = vpop.f32.mrf.mxu0 }
 0x934   : > { %6751 = vst [vmem:[%s11715_s12 + $0xa0] sm:$0xff] %v6719_v10  ;;  %v6720_v6 = vadd.f32 %v6673_v31, %v12194_v2  ;;  %v6675_v17 = vadd.f32 %v6674_v55, %v6561_v12  ;;  %v6563_v58 = vpop.f32.mrf.mxu1 }
 0x935   : > { %v6676_v25 = vpop.f32.mrf.mxu0 }
 0x936   : > { %6752 = vst [vmem:[%s11715_s12 + $0xa8] sm:$0xff] %v6720_v6  ;;  %v6721_v41 = vadd.f32 %v6675_v17, %v12195_v28  ;;  %v6677_v39 = vadd.f32 %v6676_v25, %v6563_v58 }
 0x938   : > { %6753 = vst [vmem:[%s11715_s12 + $0xb0] sm:$0xff] %v6721_v41  ;;  %v6722_v50 = vadd.f32 %v6677_v39, %v12196_v22 }
 0x93a   : > { %6754 = vst [vmem:[%s11715_s12 + $0xb8] sm:$0xff] %v6722_v50 }
 0x946   : > { %v6567_v21 = vpop.f32.mrf.mxu1 }
 0x947   : > { %v6680_v34 = vpop.f32.mrf.mxu0 }
 0x948   : > { %v6681_v47 = vadd.f32 %v6680_v34, %v6567_v21  ;;  %v6569_v3 = vpop.f32.mrf.mxu1 }
 0x949   : > { %v6682_v26 = vpop.f32.mrf.mxu0 }
 0x94a   : > { %v6723_v11 = vadd.f32 %v6681_v47, %v12197_v8  ;;  %v6683_v19 = vadd.f32 %v6682_v26, %v6569_v3  ;;  %v6571_v63 = vpop.f32.mrf.mxu1 }
 0x94b   : > { %v6684_v45 = vpop.f32.mrf.mxu0 }
 0x94c   : > { %6755 = vst [vmem:[%s11715_s12 + $0xc0] sm:$0xff] %v6723_v11  ;;  %v6724_v49 = vadd.f32 %v6683_v19, %v12198_v18  ;;  %v6685_v23 = vadd.f32 %v6684_v45, %v6571_v63  ;;  %v6573_v5 = vpop.f32.mrf.mxu1 }
 0x94d   : > { %v6686_v4 = vpop.f32.mrf.mxu0 }
 0x94e   : > { %6756 = vst [vmem:[%s11715_s12 + $0xc8] sm:$0xff] %v6724_v49  ;;  %v6725_v20 = vadd.f32 %v6685_v23, %v12199_v9  ;;  %v6687_v42 = vadd.f32 %v6686_v4, %v6573_v5  ;;  %v6577_v53 = vpop.f32.mrf.mxu1 }
 0x94f   : > { %v6690_v56 = vpop.f32.mrf.mxu0 }
 0x950   : > { %6757 = vst [vmem:[%s11715_s12 + $0xd0] sm:$0xff] %v6725_v20  ;;  %v6726_v30 = vadd.f32 %v6687_v42, %v12200_v60  ;;  %v6691_v35 = vadd.f32 %v6690_v56, %v6577_v53  ;;  %v6579_v46 = vpop.f32.mrf.mxu1 }
 0x951   : > { %v6692_v37 = vpop.f32.mrf.mxu0 }
 0x952   : > { %6758 = vst [vmem:[%s11715_s12 + $0xd8] sm:$0xff] %v6726_v30  ;;  %v6727_v15 = vadd.f32 %v6691_v35, %v12201_v48  ;;  %v6693_v13 = vadd.f32 %v6692_v37, %v6579_v46  ;;  %v6581_v61 = vpop.f32.mrf.mxu1 }
 0x953   : > { %v6694_v14 = vpop.f32.mrf.mxu0 }
 0x954   : > { %6759 = vst [vmem:[%s11715_s12 + $0xe0] sm:$0xff] %v6727_v15  ;;  %v6728_v57 = vadd.f32 %v6693_v13, %v12202_v7  ;;  %v6695_v52 = vadd.f32 %v6694_v14, %v6581_v61  ;;  %v6583_v36 = vpop.f32.mrf.mxu1 }
 0x955   : > { %v6696_v38 = vpop.f32.mrf.mxu0 }
 0x956   : > { %6760 = vst [vmem:[%s11715_s12 + $0xe8] sm:$0xff] %v6728_v57  ;;  %v6729_v16 = vadd.f32 %v6695_v52, %v12203_v32  ;;  %v6697_v43 = vadd.f32 %v6696_v38, %v6583_v36 }
 0x958   : > { %6761 = vst [vmem:[%s11715_s12 + $0xf0] sm:$0xff] %v6729_v16  ;;  %v6730_v54 = vadd.f32 %v6697_v43, %v12204_v24 }
 0x95a   : > { %6762 = vst [vmem:[%s11715_s12 + $0xf8] sm:$0xff] %v6730_v54 }
 0x95b   : > { %9157 = shalt.err (!%p9154_p12)
}
 0x95c   : > { %s9158_s16 = scalar_lea.hbm %s11784_s20, 4096  ;;  %s9162_s23 = scalar_lea.hbm %s12205_s9, 8192 }
 0x95d   : > { %p9159_p6 = scmp.ne.s32.totalorder %s11784_s20, %s9158_s16  ;;  %p9163_p8 = scmp.lt.s32.totalorder %s11784_s20, %s12205_s9 }
 0x95e   : > { %p9164_p11 = scmp.lt.s32.totalorder %s9162_s23, %s9158_s16 }
 0x95f   : > { %p9160_p3 = pnand %p9159_p6, %p12171_p9 }
 0x960   : > { %p9165_p7 = por %p9164_p11, %p9163_p8 }
 0x961   : > { %p9161_p4 = pneg %p9160_p3 }
 0x963   : > { %p9166_p2 = pnand %p9165_p7, %p9161_p4 }
 0x965   : > { %9169 = shalt.err (!%p9166_p2)
}
 0x966   : > { %7874 = dma.vmem_to_hbm [thread:$0]  (%p12171_p9), %s11786_s28, 4096, %s11784_s20, %s6764_s29, %s9253_s15, %s9253_s15, %s9254_s0  }
 0x967 PF: > { %s12206_s13 = sld [smem:[#allocation28_spill]]  ;;  %p12209_p5 = scmp.ge.s32.totalorder %s9232_s24, 2 }
 0x968   : > { %s12207_s14 = sld [smem:[#allocation30_spill]] }
 0x96d   : > { %s6837_s27 = sand.u32 1, %s12206_s13  }
 0x96e   : > { %p12208_p13 = scmp.ne.s32.totalorder %s12207_s14, 0  ;;  %s6838_s12 = scalar_lea.sflag [#allocation4], %s6837_s27 }
 0x970   : > { %p7907_p10 = pnand %p12209_p5, %p12208_p13 }
 0x972   : > { %p7908_p1 = pneg %p7907_p10 }
 0x974   : > { %9211 = dma.done.wait (%p7908_p1), %s6838_s12, 4096  }
 0x975   : > { %9213 = vsyncadd (%p7908_p1), %s6838_s12, 4294963200  ;;  %s12210_s5 = sadd.s32 4294967294, %s9232_s24  }
 0x976   : > { %s6846_s11 = sand.u32 1, %s12210_s5  }
 0x977   : > { %s6847_s30 = scalar_lea.sflag [#allocation18], %s6846_s11 }
 0x978   : > { %9215 = dma.done.wait (%p7908_p1), %s6847_s30, 8192  }
 0x979   : > { %9217 = vsyncadd (%p7908_p1), %s6847_s30, 4294959104  ;;  %s12211_s24 = sld [smem:[#allocation31_spill]]  ;;  %s12214_s21 = smov %s9224_s22 }
 0x97a   : > { %s12212_s15 = sld [smem:[#allocation29_spill]] }
 0x97b   : > { %s12213_s23 = sld [smem:[#allocation32_spill]] }
 0x97f   : > { %p37_p9 = scmp.ge.s32.totalorder %s12211_s24, 4  }
 0x980   : > { %s12215_s22 = smov %s12212_s15 }
 0x981   :  { %39 = sbr.rel (!%p37_p9) target bundleno = 23 (0x17), region = 190 }
 0x986   :  { %6861 = vsyncpa [#allocation3], 1 }
 0x987   :  { %6863 = vsyncpa [#allocation3 + $0x1], 1 }
 0x988   :  { %6864 = vsyncpa [#allocation6], 1 }
 0x989   :  { %6866 = vsyncpa [#allocation6 + $0x1], 1 }
 0x98a   :  { %6867 = vsyncpa [#allocation9], 1 }
 0x98b   :  { %6869 = vsyncpa [#allocation9 + $0x1], 1 }
 0x98c   :  { %6870 = vsyncpa [#allocation12], 1 }
 0x98d   :  { %6871 = vsyncpa [#allocation15], 1 }
 0x98e   :  { %6872 = vsyncpa [#allocation4], 1 }
 0x98f   :  { %6874 = vsyncpa [#allocation4 + $0x1], 1 }
 0x990   :  { %6875 = vsyncpa [#allocation18], 1 }
 0x991   :  { %6877 = vsyncpa [#allocation18 + $0x1], 1 }

</bundles_post_ra>
